<compile_context>
chip_gen: v7x
topology: tpu7x:2x2x1
jax: 0.10.0
libtpu: 0.0.40
codegen_flags: <defaults>
</compile_context>

<pallas_src>
import math
from functools import partial

import jax
import jax.numpy as jnp
from jax.experimental import pallas as pl
from jax.experimental.pallas import tpu as pltpu


# --------------------------------------------------------------------------
# Kernel 1: fused {block1, block2, block3, residual conv1x1, sum}
#   layout: channels on sublanes, H*W (=256) on lanes.
# --------------------------------------------------------------------------

def fused_blocks_kernel(x_ref, p_ref, w3_ref, b3_ref, lnw_ref, lnb_ref,
                        w1_ref, b1_ref, w2_ref, b2_ref, wc_ref, bc_ref, o_ref):
    x = x_ref[0]                                          # (Cin, HW)
    # residual 1x1 conv
    acc = jnp.dot(wc_ref[...], x, preferred_element_type=jnp.float32) + bc_ref[...]

    inv_sqrt2 = 1.0 / math.sqrt(2.0)
    for i in range(3):                                    # block1 / block2 / block3
        pat = p_ref[0, i]                                 # (9*Cin, HW) im2col patches
        # dilated 3x3 conv as one matmul
        h = jnp.dot(w3_ref[i], pat, preferred_element_type=jnp.float32) + b3_ref[i]
        # channels_first LayerNorm (normalize over channel axis, biased var)
        u = jnp.mean(h, axis=0, keepdims=True)
        d = h - u
        s = jnp.mean(d * d, axis=0, keepdims=True)
        hn = d * jax.lax.rsqrt(s + 1e-6)
        hn = lnw_ref[i] * hn + lnb_ref[i]
        # 1x1 conv -> exact GELU -> 1x1 conv
        y1 = jnp.dot(w1_ref[i], hn, preferred_element_type=jnp.float32) + b1_ref[i]
        g = 0.5 * y1 * (1.0 + jax.lax.erf(y1 * inv_sqrt2))
        acc = acc + jnp.dot(w2_ref[i], g, preferred_element_type=jnp.float32) + b2_ref[i]

    o_ref[0] = acc                                        # (Cout, HW)


# --------------------------------------------------------------------------
# Kernel 2: fused {separable bilinear 2x upsample, TripletAttention}
# --------------------------------------------------------------------------

def upsample_att_kernel(x_ref, uh_ref, uwt_ref, bhw_ref, bcw_ref, bhc_ref,
                        o_ref, up_ref, phw_ref, pcw_ref, phc_ref, *, C, H, W):
    H2, W2 = 2 * H, 2 * W

    # ---- separable bilinear 2x upsample ----
    uwt = uwt_ref[...]                                    # (W, 2W)
    uh = uh_ref[...]                                      # (2H, H)
    y1 = jnp.dot(x_ref[0], uwt, preferred_element_type=jnp.float32)  # (C*H, 2W)
    y1 = y1.reshape(C, H, W2)
    for c in range(C):
        up_ref[c] = jnp.dot(uh, y1[c], preferred_element_type=jnp.float32)  # (H2, W2)

    # ---- Z-pools for the three TripletAttention branches ----
    phw_ref[...] = jnp.zeros(phw_ref.shape, jnp.float32)
    pcw_ref[...] = jnp.zeros(pcw_ref.shape, jnp.float32)
    phc_ref[...] = jnp.zeros(phc_ref.shape, jnp.float32)

    # hw branch: pool over C -> (H2, W2)
    mx_hw = up_ref[0]
    sm_hw = up_ref[0]
    for c in range(1, C):
        v = up_ref[c]
        mx_hw = jnp.maximum(mx_hw, v)
        sm_hw = sm_hw + v
    phw_ref[0, 3:3 + H2, 3:3 + W2] = mx_hw
    phw_ref[1, 3:3 + H2, 3:3 + W2] = sm_hw * (1.0 / C)

    # cw branch: pool over H  -> plane (C, W2)
    # hc branch: pool over W  -> plane (H2, C)
    for c in range(C):
        v = up_ref[c]                                     # (H2, W2)
        pcw_ref[0, 3 + c:4 + c, 3:3 + W2] = jnp.max(v, axis=0, keepdims=True)
        pcw_ref[1, 3 + c:4 + c, 3:3 + W2] = jnp.mean(v, axis=0, keepdims=True)
        phc_ref[0, 3:3 + H2, 3 + c:4 + c] = jnp.max(v, axis=1, keepdims=True)
        phc_ref[1, 3:3 + H2, 3 + c:4 + c] = jnp.mean(v, axis=1, keepdims=True)

    # ---- 7x7 (2->1) gate convs as 14 banded matmuls per branch (BN folded) ----
    def band_conv(p_ref, b_ref, rows, cols):
        acc = jnp.zeros((rows, cols), jnp.float32)
        for ch in range(2):                               # 0 = max, 1 = mean (ZPool)
            for k in range(7):
                acc = acc + jnp.dot(p_ref[ch, k:k + rows, :], b_ref[ch, k],
                                    preferred_element_type=jnp.float32)
        return acc

    s_hw = jax.nn.sigmoid(band_conv(phw_ref, bhw_ref, H2, W2))   # (H2, W2)
    s_cw = jax.nn.sigmoid(band_conv(pcw_ref, bcw_ref, C, W2))    # (C,  W2)
    s_hc = jax.nn.sigmoid(band_conv(phc_ref, bhc_ref, H2, C))    # (H2, C)

    # ---- combine: out = up * (s_hw + s_cw + s_hc) / 3 ----
    third = 1.0 / 3.0
    for c in range(C):
        gate = (s_hw + s_cw[c:c + 1, :] + s_hc[:, c:c + 1]) * third
        o_ref[0, c] = up_ref[c] * gate


# --------------------------------------------------------------------------
# Host-side helpers
# --------------------------------------------------------------------------

def _full_spec(shape):
    n = len(shape)
    return pl.BlockSpec(shape, lambda b, n=n: (0,) * n)


def _bilinear_matrix(n):
    """(2n, n) interpolation matrix, scale_factor=2, align_corners=False."""
    out = jnp.arange(2 * n, dtype=jnp.float32)
    src = jnp.clip((out + 0.5) / 2.0 - 0.5, 0.0, float(n - 1))
    i0 = jnp.floor(src).astype(jnp.int32)
    i1 = jnp.minimum(i0 + 1, n - 1)
    frac = src - i0.astype(jnp.float32)
    M = jnp.zeros((2 * n, n), jnp.float32)
    M = M.at[jnp.arange(2 * n), i0].add(1.0 - frac)
    M = M.at[jnp.arange(2 * n), i1].add(frac)
    return M


def _band_matrices(w, cols):
    """w: (2, 7, 7) conv weights.  Returns B of shape (2, 7, cols+6, cols) with
    B[ch, k][j, c] = w[ch, k, j - c] (0 <= j-c < 7), so that a same-padded 7x7
    2->1 conv equals  sum_{ch,k} pad[ch, k:k+rows, :] @ B[ch, k]."""
    j = jnp.arange(cols + 6)[:, None]
    c = jnp.arange(cols)[None, :]
    d = j - c
    valid = (d >= 0) & (d < 7)
    idx = jnp.clip(d, 0, 6)
    bm = w[:, :, idx]                                     # (2, 7, cols+6, cols)
    return jnp.where(valid[None, None, :, :], bm, 0.0)


def _im2col_patches(x_nchw, dilations):
    """(B, len(dils), 9*Cin, H*W) tap stacks, single max-halo pad."""
    B, C, H, W = x_nchw.shape
    pmax = max(dilations)
    xp = jnp.pad(x_nchw, ((0, 0), (0, 0), (pmax, pmax), (pmax, pmax)))
    blocks = []
    for d in dilations:
        taps = []
        for ky in range(3):
            for kx in range(3):
                y0 = pmax + (ky - 1) * d
                x0 = pmax + (kx - 1) * d
                taps.append(xp[:, :, y0:y0 + H, x0:x0 + W].reshape(B, C, H * W))
        blocks.append(jnp.concatenate(taps, axis=1))      # (B, 9*C, HW)
    return jnp.stack(blocks, axis=1)                      # (B, ndil, 9*C, HW)


# --------------------------------------------------------------------------
# Full forward
# --------------------------------------------------------------------------

_COMPILER_PARAMS = pltpu.CompilerParams(
    dimension_semantics=("parallel",),          # batch axis -> dual-TC on v7x
    vmem_limit_bytes=32 * 1024 * 1024,
)


@jax.jit
def decoder_part_forward(x_nchw, params):
    B, Cin, H, W = x_nchw.shape
    Cout = params["conv1x1_w"].shape[0]
    HW = H * W
    dils = (1, 4, 8)

    # ---- stage 1: fused blocks + residual ----
    patches = _im2col_patches(x_nchw, dils)               # (B, 3, 9*Cin, HW)
    x_flat = x_nchw.reshape(B, Cin, HW)

    # pack weights: 3x3 conv (Co,Ci,3,3) -> (Co, (ky*3+kx)*Ci + ci), matching taps
    w3 = params["w3"]                                     # (3, Cin, Cin, 3, 3)
    w3f = jnp.transpose(w3, (0, 1, 3, 4, 2)).reshape(3, Cin, 9 * Cin)
    col = lambda v: v[..., None]                          # per-channel vecs -> (.., C, 1)
    b3, lnw, lnb = col(params["b3"]), col(params["ln_w"]), col(params["ln_b"])
    b1, b2, bc = col(params["b1"]), col(params["b2"]), col(params["conv1x1_b"])
    w1, w2, wc = params["w1"], params["w2"], params["conv1x1_w"]

    out = pl.pallas_call(
        fused_blocks_kernel,
        out_shape=jax.ShapeDtypeStruct((B, Cout, HW), jnp.float32),
        grid=(B,),
        in_specs=[
            pl.BlockSpec((1, Cin, HW), lambda b: (b, 0, 0)),
            pl.BlockSpec((1, 3, 9 * Cin, HW), lambda b: (b, 0, 0, 0)),
            _full_spec(w3f.shape), _full_spec(b3.shape),
            _full_spec(lnw.shape), _full_spec(lnb.shape),
            _full_spec(w1.shape), _full_spec(b1.shape),
            _full_spec(w2.shape), _full_spec(b2.shape),
            _full_spec(wc.shape), _full_spec(bc.shape),
        ],
        out_specs=pl.BlockSpec((1, Cout, HW), lambda b: (b, 0, 0)),
        compiler_params=_COMPILER_PARAMS,
    )(x_flat, patches, w3f, b3, lnw, lnb, w1, b1, w2, b2, wc, bc)

    # ---- stage 2: separable upsample + TripletAttention ----
    H2, W2 = 2 * H, 2 * W
    uh = _bilinear_matrix(H)                              # (2H, H)
    uwt = _bilinear_matrix(W).T                           # (W, 2W)
    bn_scale = 1.0 / math.sqrt(1.0 + 1e-5)                # eval-mode BN fold
    bhw = _band_matrices(params["att_hw_w"] * bn_scale, W2)      # conv over (H2, W2)
    bcw = _band_matrices(params["att_cw_w"] * bn_scale, W2)      # conv over (C,  W2)
    bhc = _band_matrices(params["att_hc_w"] * bn_scale, Cout)    # conv over (H2, C)

    x2 = out.reshape(B, Cout * H, W)                      # contiguous reshape

    y = pl.pallas_call(
        partial(upsample_att_kernel, C=Cout, H=H, W=W),
        out_shape=jax.ShapeDtypeStruct((B, Cout, H2, W2), jnp.float32),
        grid=(B,),
        in_specs=[
            pl.BlockSpec((1, Cout * H, W), lambda b: (b, 0, 0)),
            _full_spec(uh.shape), _full_spec(uwt.shape),
            _full_spec(bhw.shape), _full_spec(bcw.shape), _full_spec(bhc.shape),
        ],
        out_specs=pl.BlockSpec((1, Cout, H2, W2), lambda b: (b, 0, 0, 0)),
        scratch_shapes=[
            pltpu.VMEM((Cout, H2, W2), jnp.float32),          # upsampled cube
            pltpu.VMEM((2, H2 + 6, W2 + 6), jnp.float32),     # padded (H2, W2) pool
            pltpu.VMEM((2, Cout + 6, W2 + 6), jnp.float32),   # padded (C,  W2) pool
            pltpu.VMEM((2, H2 + 6, Cout + 6), jnp.float32),   # padded (H2, C)  pool
        ],
        compiler_params=_COMPILER_PARAMS,
    )(x2, uh, uwt, bhw, bcw, bhc)

    return y                                              # NCHW (B, Cout, 2H, 2W)


# --------------------------------------------------------------------------
# Deterministic parameter init (synthetic; shapes follow the nn.Module)
# --------------------------------------------------------------------------

def init_params(key, cin, cout):
    keys = jax.random.split(key, 12)

    def nrm(k, shape, scale=0.1):
        return scale * jax.random.normal(k, shape, jnp.float32)

    return {
        # per-block params stacked on a leading axis of 3 (block1/2/3)
        "w3": nrm(keys[0], (3, cin, cin, 3, 3)),          # torch layout (Co,Ci,kh,kw)
        "b3": nrm(keys[1], (3, cin)),
        "ln_w": jnp.ones((3, cin), jnp.float32),
        "ln_b": jnp.zeros((3, cin), jnp.float32),
        "w1": nrm(keys[2], (3, cout, cin)),
        "b1": nrm(keys[3], (3, cout)),
        "w2": nrm(keys[4], (3, cout, cout)),
        "b2": nrm(keys[5], (3, cout)),
        "conv1x1_w": nrm(keys[6], (cout, cin)),
        "conv1x1_b": nrm(keys[7], (cout,)),
        # TripletAttention gate convs, torch shape (1, 2, 7, 7), bias=False
        "att_hw_w": nrm(keys[8], (2, 7, 7)),
        "att_cw_w": nrm(keys[9], (2, 7, 7)),
        "att_hc_w": nrm(keys[10], (2, 7, 7)),
    }


# --------------------------------------------------------------------------
# Main
# --------------------------------------------------------------------------

if __name__ == "__main__":
    key = jax.random.PRNGKey(0)
    kx, kp = jax.random.split(key)

    B, Cin, H, W = 2, 4, 16, 16
    Cout = 8

    x = jax.random.normal(kx, (B, Cin, H, W), jnp.float32)   # PyTorch-style NCHW
    params = init_params(kp, Cin, Cout)

    out = decoder_part_forward(x, params)
    out = jax.block_until_ready(out)
    assert out.shape == (B, Cout, 2 * H, 2 * W), out.shape
    assert bool(jnp.all(jnp.isfinite(out)))
    print("KERNEL_OK")
</pallas_src>

<mosaic_0001>
module attributes {stable_mosaic.version = 11 : i64} {
  func.func private @main(%arg0: i32) attributes {dimension_semantics = [#tpu.dimension_semantics<core_parallel>], iteration_bounds = array<i64: 2>, tpu.core_type = #tpu.core_type<sc_scalar_subcore>, window_params = []} {
    return
  }
}

module attributes {stable_mosaic.version = 11 : i64} {
  func.func private @main(%arg0: i32) attributes {dimension_semantics = [#tpu.dimension_semantics<core_parallel>], iteration_bounds = array<i64: 2>, tpu.core_type = #tpu.core_type<sc_scalar_subcore>, window_params = []} {
    return
  }
}

module attributes {stable_mosaic.version = 11 : i64} {
  func.func @fused_blocks_kernel(%arg0: i32, %arg1: memref<1x4x256xf32, #tpu.memory_space<vmem>>, %arg2: memref<1x3x36x256xf32, #tpu.memory_space<vmem>>, %arg3: memref<3x4x36xf32, #tpu.memory_space<vmem>>, %arg4: memref<3x4x1xf32, #tpu.memory_space<vmem>>, %arg5: memref<3x4x1xf32, #tpu.memory_space<vmem>>, %arg6: memref<3x4x1xf32, #tpu.memory_space<vmem>>, %arg7: memref<3x8x4xf32, #tpu.memory_space<vmem>>, %arg8: memref<3x8x1xf32, #tpu.memory_space<vmem>>, %arg9: memref<3x8x8xf32, #tpu.memory_space<vmem>>, %arg10: memref<3x8x1xf32, #tpu.memory_space<vmem>>, %arg11: memref<8x4xf32, #tpu.memory_space<vmem>>, %arg12: memref<8x1xf32, #tpu.memory_space<vmem>>, %arg13: memref<1x8x256xf32, #tpu.memory_space<vmem>>) attributes {dimension_semantics = [#tpu.dimension_semantics<parallel>], iteration_bounds = array<i64: 2>, scalar_prefetch = 0 : i64, scratch_operands = 0 : i64, tpu.core_type = #tpu.core_type<tc>, window_params = [{transform_indices = @transform_0, window_bounds = array<i64: 1, 4, 256>}, {transform_indices = @transform_1, window_bounds = array<i64: 1, 3, 36, 256>}, {pipeline_mode = #tpu.pipeline_mode<synchronous>, transform_indices = @transform_2, window_bounds = array<i64: 3, 4, 36>}, {pipeline_mode = #tpu.pipeline_mode<synchronous>, transform_indices = @transform_3, window_bounds = array<i64: 3, 4, 1>}, {pipeline_mode = #tpu.pipeline_mode<synchronous>, transform_indices = @transform_4, window_bounds = array<i64: 3, 4, 1>}, {pipeline_mode = #tpu.pipeline_mode<synchronous>, transform_indices = @transform_5, window_bounds = array<i64: 3, 4, 1>}, {pipeline_mode = #tpu.pipeline_mode<synchronous>, transform_indices = @transform_6, window_bounds = array<i64: 3, 8, 4>}, {pipeline_mode = #tpu.pipeline_mode<synchronous>, transform_indices = @transform_7, window_bounds = array<i64: 3, 8, 1>}, {pipeline_mode = #tpu.pipeline_mode<synchronous>, transform_indices = @transform_8, window_bounds = array<i64: 3, 8, 8>}, {pipeline_mode = #tpu.pipeline_mode<synchronous>, transform_indices = @transform_9, window_bounds = array<i64: 3, 8, 1>}, {pipeline_mode = #tpu.pipeline_mode<synchronous>, transform_indices = @transform_10, window_bounds = array<i64: 8, 4>}, {pipeline_mode = #tpu.pipeline_mode<synchronous>, transform_indices = @transform_11, window_bounds = array<i64: 8, 1>}, {transform_indices = @transform_12, window_bounds = array<i64: 1, 8, 256>}]} {
    %c0 = arith.constant 0 : index
    %c0_0 = arith.constant 0 : index
    %c0_1 = arith.constant 0 : index
    %0 = vector.load %arg1[%c0, %c0_0, %c0_1] : memref<1x4x256xf32, #tpu.memory_space<vmem>>, vector<1x4x256xf32>
    %1 = vector.shape_cast %0 : vector<1x4x256xf32> to vector<4x256xf32>
    %c0_2 = arith.constant 0 : index
    %c0_3 = arith.constant 0 : index
    %2 = vector.load %arg11[%c0_2, %c0_3] : memref<8x4xf32, #tpu.memory_space<vmem>>, vector<8x4xf32>
    %cst = arith.constant dense<0.000000e+00> : vector<8x256xf32>
    %3 = tpu.matmul %2, %1, %cst {dimension_numbers = #tpu.dot_dimension_numbers<[1], [0], [0], [1], [0, 0, 1, 1], [], []>} : vector<8x4xf32>, vector<4x256xf32>, vector<8x256xf32> -> vector<8x256xf32>
    %c0_4 = arith.constant 0 : index
    %c0_5 = arith.constant 0 : index
    %4 = vector.load %arg12[%c0_4, %c0_5] : memref<8x1xf32, #tpu.memory_space<vmem>>, vector<8x1xf32>
    %5 = vector.broadcast %4 : vector<8x1xf32> to vector<8x256xf32>
    %6 = arith.addf %3, %5 : vector<8x256xf32>
    %c0_6 = arith.constant 0 : index
    %c0_7 = arith.constant 0 : index
    %c0_8 = arith.constant 0 : index
    %c0_9 = arith.constant 0 : index
    %7 = vector.load %arg2[%c0_6, %c0_7, %c0_8, %c0_9] : memref<1x3x36x256xf32, #tpu.memory_space<vmem>>, vector<1x1x36x256xf32>
    %8 = vector.shape_cast %7 : vector<1x1x36x256xf32> to vector<36x256xf32>
    %c0_10 = arith.constant 0 : index
    %c0_11 = arith.constant 0 : index
    %c0_12 = arith.constant 0 : index
    %9 = vector.load %arg3[%c0_10, %c0_11, %c0_12] : memref<3x4x36xf32, #tpu.memory_space<vmem>>, vector<1x4x36xf32>
    %10 = vector.shape_cast %9 : vector<1x4x36xf32> to vector<4x36xf32>
    %cst_13 = arith.constant dense<0.000000e+00> : vector<4x256xf32>
    %11 = tpu.matmul %10, %8, %cst_13 {dimension_numbers = #tpu.dot_dimension_numbers<[1], [0], [0], [1], [0, 0, 1, 1], [], []>} : vector<4x36xf32>, vector<36x256xf32>, vector<4x256xf32> -> vector<4x256xf32>
    %c0_14 = arith.constant 0 : index
    %c0_15 = arith.constant 0 : index
    %c0_16 = arith.constant 0 : index
    %12 = vector.load %arg4[%c0_14, %c0_15, %c0_16] : memref<3x4x1xf32, #tpu.memory_space<vmem>>, vector<1x4x1xf32>
    %13 = vector.shape_cast %12 : vector<1x4x1xf32> to vector<4x1xf32>
    %14 = vector.broadcast %13 : vector<4x1xf32> to vector<4x256xf32>
    %15 = arith.addf %11, %14 : vector<4x256xf32>
    %cst_17 = arith.constant dense<0.000000e+00> : vector<256xf32>
    %16 = vector.multi_reduction <add>, %15, %cst_17 [0] : vector<4x256xf32> to vector<256xf32>
    %17 = vector.shape_cast %16 : vector<256xf32> to vector<1x256xf32>
    %cst_18 = arith.constant 4.000000e+00 : f32
    %18 = vector.broadcast %cst_18 : f32 to vector<1x256xf32>
    %19 = arith.divf %17, %18 : vector<1x256xf32>
    %20 = vector.broadcast %19 : vector<1x256xf32> to vector<4x256xf32>
    %21 = arith.subf %15, %20 : vector<4x256xf32>
    %22 = arith.mulf %21, %21 : vector<4x256xf32>
    %cst_19 = arith.constant dense<0.000000e+00> : vector<256xf32>
    %23 = vector.multi_reduction <add>, %22, %cst_19 [0] : vector<4x256xf32> to vector<256xf32>
    %24 = vector.shape_cast %23 : vector<256xf32> to vector<1x256xf32>
    %cst_20 = arith.constant 4.000000e+00 : f32
    %25 = vector.broadcast %cst_20 : f32 to vector<1x256xf32>
    %26 = arith.divf %24, %25 : vector<1x256xf32>
    %cst_21 = arith.constant 9.99999997E-7 : f32
    %27 = vector.broadcast %cst_21 : f32 to vector<1x256xf32>
    %28 = arith.addf %26, %27 : vector<1x256xf32>
    %29 = math.rsqrt %28 : vector<1x256xf32>
    %30 = vector.broadcast %29 : vector<1x256xf32> to vector<4x256xf32>
    %31 = arith.mulf %21, %30 : vector<4x256xf32>
    %c0_22 = arith.constant 0 : index
    %c0_23 = arith.constant 0 : index
    %c0_24 = arith.constant 0 : index
    %32 = vector.load %arg5[%c0_22, %c0_23, %c0_24] : memref<3x4x1xf32, #tpu.memory_space<vmem>>, vector<1x4x1xf32>
    %33 = vector.shape_cast %32 : vector<1x4x1xf32> to vector<4x1xf32>
    %34 = vector.broadcast %33 : vector<4x1xf32> to vector<4x256xf32>
    %35 = arith.mulf %34, %31 : vector<4x256xf32>
    %c0_25 = arith.constant 0 : index
    %c0_26 = arith.constant 0 : index
    %c0_27 = arith.constant 0 : index
    %36 = vector.load %arg6[%c0_25, %c0_26, %c0_27] : memref<3x4x1xf32, #tpu.memory_space<vmem>>, vector<1x4x1xf32>
    %37 = vector.shape_cast %36 : vector<1x4x1xf32> to vector<4x1xf32>
    %38 = vector.broadcast %37 : vector<4x1xf32> to vector<4x256xf32>
    %39 = arith.addf %35, %38 : vector<4x256xf32>
    %c0_28 = arith.constant 0 : index
    %c0_29 = arith.constant 0 : index
    %c0_30 = arith.constant 0 : index
    %40 = vector.load %arg7[%c0_28, %c0_29, %c0_30] : memref<3x8x4xf32, #tpu.memory_space<vmem>>, vector<1x8x4xf32>
    %41 = vector.shape_cast %40 : vector<1x8x4xf32> to vector<8x4xf32>
    %cst_31 = arith.constant dense<0.000000e+00> : vector<8x256xf32>
    %42 = tpu.matmul %41, %39, %cst_31 {dimension_numbers = #tpu.dot_dimension_numbers<[1], [0], [0], [1], [0, 0, 1, 1], [], []>} : vector<8x4xf32>, vector<4x256xf32>, vector<8x256xf32> -> vector<8x256xf32>
    %c0_32 = arith.constant 0 : index
    %c0_33 = arith.constant 0 : index
    %c0_34 = arith.constant 0 : index
    %43 = vector.load %arg8[%c0_32, %c0_33, %c0_34] : memref<3x8x1xf32, #tpu.memory_space<vmem>>, vector<1x8x1xf32>
    %44 = vector.shape_cast %43 : vector<1x8x1xf32> to vector<8x1xf32>
    %45 = vector.broadcast %44 : vector<8x1xf32> to vector<8x256xf32>
    %46 = arith.addf %42, %45 : vector<8x256xf32>
    %cst_35 = arith.constant 5.000000e-01 : f32
    %47 = vector.broadcast %cst_35 : f32 to vector<8x256xf32>
    %48 = arith.mulf %47, %46 : vector<8x256xf32>
    %cst_36 = arith.constant 0.707106769 : f32
    %49 = vector.broadcast %cst_36 : f32 to vector<8x256xf32>
    %50 = arith.mulf %46, %49 : vector<8x256xf32>
    %51 = math.erf %50 : vector<8x256xf32>
    %cst_37 = arith.constant 1.000000e+00 : f32
    %52 = vector.broadcast %cst_37 : f32 to vector<8x256xf32>
    %53 = arith.addf %52, %51 : vector<8x256xf32>
    %54 = arith.mulf %48, %53 : vector<8x256xf32>
    %c0_38 = arith.constant 0 : index
    %c0_39 = arith.constant 0 : index
    %c0_40 = arith.constant 0 : index
    %55 = vector.load %arg9[%c0_38, %c0_39, %c0_40] : memref<3x8x8xf32, #tpu.memory_space<vmem>>, vector<1x8x8xf32>
    %56 = vector.shape_cast %55 : vector<1x8x8xf32> to vector<8x8xf32>
    %cst_41 = arith.constant dense<0.000000e+00> : vector<8x256xf32>
    %57 = tpu.matmul %56, %54, %cst_41 {dimension_numbers = #tpu.dot_dimension_numbers<[1], [0], [0], [1], [0, 0, 1, 1], [], []>} : vector<8x8xf32>, vector<8x256xf32>, vector<8x256xf32> -> vector<8x256xf32>
    %58 = arith.addf %6, %57 : vector<8x256xf32>
    %c0_42 = arith.constant 0 : index
    %c0_43 = arith.constant 0 : index
    %c0_44 = arith.constant 0 : index
    %59 = vector.load %arg10[%c0_42, %c0_43, %c0_44] : memref<3x8x1xf32, #tpu.memory_space<vmem>>, vector<1x8x1xf32>
    %60 = vector.shape_cast %59 : vector<1x8x1xf32> to vector<8x1xf32>
    %61 = vector.broadcast %60 : vector<8x1xf32> to vector<8x256xf32>
    %62 = arith.addf %58, %61 : vector<8x256xf32>
    %c0_45 = arith.constant 0 : index
    %c1 = arith.constant 1 : index
    %c0_46 = arith.constant 0 : index
    %c0_47 = arith.constant 0 : index
    %63 = vector.load %arg2[%c0_45, %c1, %c0_46, %c0_47] : memref<1x3x36x256xf32, #tpu.memory_space<vmem>>, vector<1x1x36x256xf32>
    %64 = vector.shape_cast %63 : vector<1x1x36x256xf32> to vector<36x256xf32>
    %c1_48 = arith.constant 1 : index
    %c0_49 = arith.constant 0 : index
    %c0_50 = arith.constant 0 : index
    %65 = vector.load %arg3[%c1_48, %c0_49, %c0_50] : memref<3x4x36xf32, #tpu.memory_space<vmem>>, vector<1x4x36xf32>
    %66 = vector.shape_cast %65 : vector<1x4x36xf32> to vector<4x36xf32>
    %cst_51 = arith.constant dense<0.000000e+00> : vector<4x256xf32>
    %67 = tpu.matmul %66, %64, %cst_51 {dimension_numbers = #tpu.dot_dimension_numbers<[1], [0], [0], [1], [0, 0, 1, 1], [], []>} : vector<4x36xf32>, vector<36x256xf32>, vector<4x256xf32> -> vector<4x256xf32>
    %c1_52 = arith.constant 1 : index
    %c0_53 = arith.constant 0 : index
    %c0_54 = arith.constant 0 : index
    %68 = vector.load %arg4[%c1_52, %c0_53, %c0_54] : memref<3x4x1xf32, #tpu.memory_space<vmem>>, vector<1x4x1xf32>
    %69 = vector.shape_cast %68 : vector<1x4x1xf32> to vector<4x1xf32>
    %70 = vector.broadcast %69 : vector<4x1xf32> to vector<4x256xf32>
    %71 = arith.addf %67, %70 : vector<4x256xf32>
    %cst_55 = arith.constant dense<0.000000e+00> : vector<256xf32>
    %72 = vector.multi_reduction <add>, %71, %cst_55 [0] : vector<4x256xf32> to vector<256xf32>
    %73 = vector.shape_cast %72 : vector<256xf32> to vector<1x256xf32>
    %cst_56 = arith.constant 4.000000e+00 : f32
    %74 = vector.broadcast %cst_56 : f32 to vector<1x256xf32>
    %75 = arith.divf %73, %74 : vector<1x256xf32>
    %76 = vector.broadcast %75 : vector<1x256xf32> to vector<4x256xf32>
    %77 = arith.subf %71, %76 : vector<4x256xf32>
    %78 = arith.mulf %77, %77 : vector<4x256xf32>
    %cst_57 = arith.constant dense<0.000000e+00> : vector<256xf32>
    %79 = vector.multi_reduction <add>, %78, %cst_57 [0] : vector<4x256xf32> to vector<256xf32>
    %80 = vector.shape_cast %79 : vector<256xf32> to vector<1x256xf32>
    %cst_58 = arith.constant 4.000000e+00 : f32
    %81 = vector.broadcast %cst_58 : f32 to vector<1x256xf32>
    %82 = arith.divf %80, %81 : vector<1x256xf32>
    %cst_59 = arith.constant 9.99999997E-7 : f32
    %83 = vector.broadcast %cst_59 : f32 to vector<1x256xf32>
    %84 = arith.addf %82, %83 : vector<1x256xf32>
    %85 = math.rsqrt %84 : vector<1x256xf32>
    %86 = vector.broadcast %85 : vector<1x256xf32> to vector<4x256xf32>
    %87 = arith.mulf %77, %86 : vector<4x256xf32>
    %c1_60 = arith.constant 1 : index
    %c0_61 = arith.constant 0 : index
    %c0_62 = arith.constant 0 : index
    %88 = vector.load %arg5[%c1_60, %c0_61, %c0_62] : memref<3x4x1xf32, #tpu.memory_space<vmem>>, vector<1x4x1xf32>
    %89 = vector.shape_cast %88 : vector<1x4x1xf32> to vector<4x1xf32>
    %90 = vector.broadcast %89 : vector<4x1xf32> to vector<4x256xf32>
    %91 = arith.mulf %90, %87 : vector<4x256xf32>
    %c1_63 = arith.constant 1 : index
    %c0_64 = arith.constant 0 : index
    %c0_65 = arith.constant 0 : index
    %92 = vector.load %arg6[%c1_63, %c0_64, %c0_65] : memref<3x4x1xf32, #tpu.memory_space<vmem>>, vector<1x4x1xf32>
    %93 = vector.shape_cast %92 : vector<1x4x1xf32> to vector<4x1xf32>
    %94 = vector.broadcast %93 : vector<4x1xf32> to vector<4x256xf32>
    %95 = arith.addf %91, %94 : vector<4x256xf32>
    %c1_66 = arith.constant 1 : index
    %c0_67 = arith.constant 0 : index
    %c0_68 = arith.constant 0 : index
    %96 = vector.load %arg7[%c1_66, %c0_67, %c0_68] : memref<3x8x4xf32, #tpu.memory_space<vmem>>, vector<1x8x4xf32>
    %97 = vector.shape_cast %96 : vector<1x8x4xf32> to vector<8x4xf32>
    %cst_69 = arith.constant dense<0.000000e+00> : vector<8x256xf32>
    %98 = tpu.matmul %97, %95, %cst_69 {dimension_numbers = #tpu.dot_dimension_numbers<[1], [0], [0], [1], [0, 0, 1, 1], [], []>} : vector<8x4xf32>, vector<4x256xf32>, vector<8x256xf32> -> vector<8x256xf32>
    %c1_70 = arith.constant 1 : index
    %c0_71 = arith.constant 0 : index
    %c0_72 = arith.constant 0 : index
    %99 = vector.load %arg8[%c1_70, %c0_71, %c0_72] : memref<3x8x1xf32, #tpu.memory_space<vmem>>, vector<1x8x1xf32>
    %100 = vector.shape_cast %99 : vector<1x8x1xf32> to vector<8x1xf32>
    %101 = vector.broadcast %100 : vector<8x1xf32> to vector<8x256xf32>
    %102 = arith.addf %98, %101 : vector<8x256xf32>
    %cst_73 = arith.constant 5.000000e-01 : f32
    %103 = vector.broadcast %cst_73 : f32 to vector<8x256xf32>
    %104 = arith.mulf %103, %102 : vector<8x256xf32>
    %cst_74 = arith.constant 0.707106769 : f32
    %105 = vector.broadcast %cst_74 : f32 to vector<8x256xf32>
    %106 = arith.mulf %102, %105 : vector<8x256xf32>
    %107 = math.erf %106 : vector<8x256xf32>
    %cst_75 = arith.constant 1.000000e+00 : f32
    %108 = vector.broadcast %cst_75 : f32 to vector<8x256xf32>
    %109 = arith.addf %108, %107 : vector<8x256xf32>
    %110 = arith.mulf %104, %109 : vector<8x256xf32>
    %c1_76 = arith.constant 1 : index
    %c0_77 = arith.constant 0 : index
    %c0_78 = arith.constant 0 : index
    %111 = vector.load %arg9[%c1_76, %c0_77, %c0_78] : memref<3x8x8xf32, #tpu.memory_space<vmem>>, vector<1x8x8xf32>
    %112 = vector.shape_cast %111 : vector<1x8x8xf32> to vector<8x8xf32>
    %cst_79 = arith.constant dense<0.000000e+00> : vector<8x256xf32>
    %113 = tpu.matmul %112, %110, %cst_79 {dimension_numbers = #tpu.dot_dimension_numbers<[1], [0], [0], [1], [0, 0, 1, 1], [], []>} : vector<8x8xf32>, vector<8x256xf32>, vector<8x256xf32> -> vector<8x256xf32>
    %114 = arith.addf %62, %113 : vector<8x256xf32>
    %c1_80 = arith.constant 1 : index
    %c0_81 = arith.constant 0 : index
    %c0_82 = arith.constant 0 : index
    %115 = vector.load %arg10[%c1_80, %c0_81, %c0_82] : memref<3x8x1xf32, #tpu.memory_space<vmem>>, vector<1x8x1xf32>
    %116 = vector.shape_cast %115 : vector<1x8x1xf32> to vector<8x1xf32>
    %117 = vector.broadcast %116 : vector<8x1xf32> to vector<8x256xf32>
    %118 = arith.addf %114, %117 : vector<8x256xf32>
    %c0_83 = arith.constant 0 : index
    %c2 = arith.constant 2 : index
    %c0_84 = arith.constant 0 : index
    %c0_85 = arith.constant 0 : index
    %119 = vector.load %arg2[%c0_83, %c2, %c0_84, %c0_85] : memref<1x3x36x256xf32, #tpu.memory_space<vmem>>, vector<1x1x36x256xf32>
    %120 = vector.shape_cast %119 : vector<1x1x36x256xf32> to vector<36x256xf32>
    %c2_86 = arith.constant 2 : index
    %c0_87 = arith.constant 0 : index
    %c0_88 = arith.constant 0 : index
    %121 = vector.load %arg3[%c2_86, %c0_87, %c0_88] : memref<3x4x36xf32, #tpu.memory_space<vmem>>, vector<1x4x36xf32>
    %122 = vector.shape_cast %121 : vector<1x4x36xf32> to vector<4x36xf32>
    %cst_89 = arith.constant dense<0.000000e+00> : vector<4x256xf32>
    %123 = tpu.matmul %122, %120, %cst_89 {dimension_numbers = #tpu.dot_dimension_numbers<[1], [0], [0], [1], [0, 0, 1, 1], [], []>} : vector<4x36xf32>, vector<36x256xf32>, vector<4x256xf32> -> vector<4x256xf32>
    %c2_90 = arith.constant 2 : index
    %c0_91 = arith.constant 0 : index
    %c0_92 = arith.constant 0 : index
    %124 = vector.load %arg4[%c2_90, %c0_91, %c0_92] : memref<3x4x1xf32, #tpu.memory_space<vmem>>, vector<1x4x1xf32>
    %125 = vector.shape_cast %124 : vector<1x4x1xf32> to vector<4x1xf32>
    %126 = vector.broadcast %125 : vector<4x1xf32> to vector<4x256xf32>
    %127 = arith.addf %123, %126 : vector<4x256xf32>
    %cst_93 = arith.constant dense<0.000000e+00> : vector<256xf32>
    %128 = vector.multi_reduction <add>, %127, %cst_93 [0] : vector<4x256xf32> to vector<256xf32>
    %129 = vector.shape_cast %128 : vector<256xf32> to vector<1x256xf32>
    %cst_94 = arith.constant 4.000000e+00 : f32
    %130 = vector.broadcast %cst_94 : f32 to vector<1x256xf32>
    %131 = arith.divf %129, %130 : vector<1x256xf32>
    %132 = vector.broadcast %131 : vector<1x256xf32> to vector<4x256xf32>
    %133 = arith.subf %127, %132 : vector<4x256xf32>
    %134 = arith.mulf %133, %133 : vector<4x256xf32>
    %cst_95 = arith.constant dense<0.000000e+00> : vector<256xf32>
    %135 = vector.multi_reduction <add>, %134, %cst_95 [0] : vector<4x256xf32> to vector<256xf32>
    %136 = vector.shape_cast %135 : vector<256xf32> to vector<1x256xf32>
    %cst_96 = arith.constant 4.000000e+00 : f32
    %137 = vector.broadcast %cst_96 : f32 to vector<1x256xf32>
    %138 = arith.divf %136, %137 : vector<1x256xf32>
    %cst_97 = arith.constant 9.99999997E-7 : f32
    %139 = vector.broadcast %cst_97 : f32 to vector<1x256xf32>
    %140 = arith.addf %138, %139 : vector<1x256xf32>
    %141 = math.rsqrt %140 : vector<1x256xf32>
    %142 = vector.broadcast %141 : vector<1x256xf32> to vector<4x256xf32>
    %143 = arith.mulf %133, %142 : vector<4x256xf32>
    %c2_98 = arith.constant 2 : index
    %c0_99 = arith.constant 0 : index
    %c0_100 = arith.constant 0 : index
    %144 = vector.load %arg5[%c2_98, %c0_99, %c0_100] : memref<3x4x1xf32, #tpu.memory_space<vmem>>, vector<1x4x1xf32>
    %145 = vector.shape_cast %144 : vector<1x4x1xf32> to vector<4x1xf32>
    %146 = vector.broadcast %145 : vector<4x1xf32> to vector<4x256xf32>
    %147 = arith.mulf %146, %143 : vector<4x256xf32>
    %c2_101 = arith.constant 2 : index
    %c0_102 = arith.constant 0 : index
    %c0_103 = arith.constant 0 : index
    %148 = vector.load %arg6[%c2_101, %c0_102, %c0_103] : memref<3x4x1xf32, #tpu.memory_space<vmem>>, vector<1x4x1xf32>
    %149 = vector.shape_cast %148 : vector<1x4x1xf32> to vector<4x1xf32>
    %150 = vector.broadcast %149 : vector<4x1xf32> to vector<4x256xf32>
    %151 = arith.addf %147, %150 : vector<4x256xf32>
    %c2_104 = arith.constant 2 : index
    %c0_105 = arith.constant 0 : index
    %c0_106 = arith.constant 0 : index
    %152 = vector.load %arg7[%c2_104, %c0_105, %c0_106] : memref<3x8x4xf32, #tpu.memory_space<vmem>>, vector<1x8x4xf32>
    %153 = vector.shape_cast %152 : vector<1x8x4xf32> to vector<8x4xf32>
    %cst_107 = arith.constant dense<0.000000e+00> : vector<8x256xf32>
    %154 = tpu.matmul %153, %151, %cst_107 {dimension_numbers = #tpu.dot_dimension_numbers<[1], [0], [0], [1], [0, 0, 1, 1], [], []>} : vector<8x4xf32>, vector<4x256xf32>, vector<8x256xf32> -> vector<8x256xf32>
    %c2_108 = arith.constant 2 : index
    %c0_109 = arith.constant 0 : index
    %c0_110 = arith.constant 0 : index
    %155 = vector.load %arg8[%c2_108, %c0_109, %c0_110] : memref<3x8x1xf32, #tpu.memory_space<vmem>>, vector<1x8x1xf32>
    %156 = vector.shape_cast %155 : vector<1x8x1xf32> to vector<8x1xf32>
    %157 = vector.broadcast %156 : vector<8x1xf32> to vector<8x256xf32>
    %158 = arith.addf %154, %157 : vector<8x256xf32>
    %cst_111 = arith.constant 5.000000e-01 : f32
    %159 = vector.broadcast %cst_111 : f32 to vector<8x256xf32>
    %160 = arith.mulf %159, %158 : vector<8x256xf32>
    %cst_112 = arith.constant 0.707106769 : f32
    %161 = vector.broadcast %cst_112 : f32 to vector<8x256xf32>
    %162 = arith.mulf %158, %161 : vector<8x256xf32>
    %163 = math.erf %162 : vector<8x256xf32>
    %cst_113 = arith.constant 1.000000e+00 : f32
    %164 = vector.broadcast %cst_113 : f32 to vector<8x256xf32>
    %165 = arith.addf %164, %163 : vector<8x256xf32>
    %166 = arith.mulf %160, %165 : vector<8x256xf32>
    %c2_114 = arith.constant 2 : index
    %c0_115 = arith.constant 0 : index
    %c0_116 = arith.constant 0 : index
    %167 = vector.load %arg9[%c2_114, %c0_115, %c0_116] : memref<3x8x8xf32, #tpu.memory_space<vmem>>, vector<1x8x8xf32>
    %168 = vector.shape_cast %167 : vector<1x8x8xf32> to vector<8x8xf32>
    %cst_117 = arith.constant dense<0.000000e+00> : vector<8x256xf32>
    %169 = tpu.matmul %168, %166, %cst_117 {dimension_numbers = #tpu.dot_dimension_numbers<[1], [0], [0], [1], [0, 0, 1, 1], [], []>} : vector<8x8xf32>, vector<8x256xf32>, vector<8x256xf32> -> vector<8x256xf32>
    %170 = arith.addf %118, %169 : vector<8x256xf32>
    %c2_118 = arith.constant 2 : index
    %c0_119 = arith.constant 0 : index
    %c0_120 = arith.constant 0 : index
    %171 = vector.load %arg10[%c2_118, %c0_119, %c0_120] : memref<3x8x1xf32, #tpu.memory_space<vmem>>, vector<1x8x1xf32>
    %172 = vector.shape_cast %171 : vector<1x8x1xf32> to vector<8x1xf32>
    %173 = vector.broadcast %172 : vector<8x1xf32> to vector<8x256xf32>
    %174 = arith.addf %170, %173 : vector<8x256xf32>
    %c0_121 = arith.constant 0 : index
    %c0_122 = arith.constant 0 : index
    %c0_123 = arith.constant 0 : index
    %175 = vector.load %arg13[%c0_121, %c0_122, %c0_123] : memref<1x8x256xf32, #tpu.memory_space<vmem>>, vector<1x8x256xf32>
    %176 = vector.shape_cast %175 : vector<1x8x256xf32> to vector<8x256xf32>
    %177 = vector.shape_cast %174 : vector<8x256xf32> to vector<1x8x256xf32>
    tpu.vector_store %arg13[%c0_121, %c0_122, %c0_123], %177 {strides = array<i32>} : memref<1x8x256xf32, #tpu.memory_space<vmem>>, vector<1x8x256xf32>,
    return
  }
  func.func @transform_0(%arg0: i32) -> (i32, i32, i32) {
    %c0_i32 = arith.constant 0 : i32
    %c0_i32_0 = arith.constant 0 : i32
    %c0_i32_1 = arith.constant 0 : i32
    return %arg0, %c0_i32, %c0_i32_0 : i32, i32, i32
  }
  func.func @transform_1(%arg0: i32) -> (i32, i32, i32, i32) {
    %c0_i32 = arith.constant 0 : i32
    %c0_i32_0 = arith.constant 0 : i32
    %c0_i32_1 = arith.constant 0 : i32
    %c0_i32_2 = arith.constant 0 : i32
    return %arg0, %c0_i32, %c0_i32_0, %c0_i32_1 : i32, i32, i32, i32
  }
  func.func @transform_2(%arg0: i32) -> (i32, i32, i32) {
    %c0_i32 = arith.constant 0 : i32
    %c0_i32_0 = arith.constant 0 : i32
    %c0_i32_1 = arith.constant 0 : i32
    %c0_i32_2 = arith.constant 0 : i32
    return %c0_i32, %c0_i32_0, %c0_i32_1 : i32, i32, i32
  }
  func.func @transform_3(%arg0: i32) -> (i32, i32, i32) {
    %c0_i32 = arith.constant 0 : i32
    %c0_i32_0 = arith.constant 0 : i32
    %c0_i32_1 = arith.constant 0 : i32
    %c0_i32_2 = arith.constant 0 : i32
    return %c0_i32, %c0_i32_0, %c0_i32_1 : i32, i32, i32
  }
  func.func @transform_4(%arg0: i32) -> (i32, i32, i32) {
    %c0_i32 = arith.constant 0 : i32
    %c0_i32_0 = arith.constant 0 : i32
    %c0_i32_1 = arith.constant 0 : i32
    %c0_i32_2 = arith.constant 0 : i32
    return %c0_i32, %c0_i32_0, %c0_i32_1 : i32, i32, i32
  }
  func.func @transform_5(%arg0: i32) -> (i32, i32, i32) {
    %c0_i32 = arith.constant 0 : i32
    %c0_i32_0 = arith.constant 0 : i32
    %c0_i32_1 = arith.constant 0 : i32
    %c0_i32_2 = arith.constant 0 : i32
    return %c0_i32, %c0_i32_0, %c0_i32_1 : i32, i32, i32
  }
  func.func @transform_6(%arg0: i32) -> (i32, i32, i32) {
    %c0_i32 = arith.constant 0 : i32
    %c0_i32_0 = arith.constant 0 : i32
    %c0_i32_1 = arith.constant 0 : i32
    %c0_i32_2 = arith.constant 0 : i32
    return %c0_i32, %c0_i32_0, %c0_i32_1 : i32, i32, i32
  }
  func.func @transform_7(%arg0: i32) -> (i32, i32, i32) {
    %c0_i32 = arith.constant 0 : i32
    %c0_i32_0 = arith.constant 0 : i32
    %c0_i32_1 = arith.constant 0 : i32
    %c0_i32_2 = arith.constant 0 : i32
    return %c0_i32, %c0_i32_0, %c0_i32_1 : i32, i32, i32
  }
  func.func @transform_8(%arg0: i32) -> (i32, i32, i32) {
    %c0_i32 = arith.constant 0 : i32
    %c0_i32_0 = arith.constant 0 : i32
    %c0_i32_1 = arith.constant 0 : i32
    %c0_i32_2 = arith.constant 0 : i32
    return %c0_i32, %c0_i32_0, %c0_i32_1 : i32, i32, i32
  }
  func.func @transform_9(%arg0: i32) -> (i32, i32, i32) {
    %c0_i32 = arith.constant 0 : i32
    %c0_i32_0 = arith.constant 0 : i32
    %c0_i32_1 = arith.constant 0 : i32
    %c0_i32_2 = arith.constant 0 : i32
    return %c0_i32, %c0_i32_0, %c0_i32_1 : i32, i32, i32
  }
  func.func @transform_10(%arg0: i32) -> (i32, i32) {
    %c0_i32 = arith.constant 0 : i32
    %c0_i32_0 = arith.constant 0 : i32
    %c0_i32_1 = arith.constant 0 : i32
    return %c0_i32, %c0_i32_0 : i32, i32
  }
  func.func @transform_11(%arg0: i32) -> (i32, i32) {
    %c0_i32 = arith.constant 0 : i32
    %c0_i32_0 = arith.constant 0 : i32
    %c0_i32_1 = arith.constant 0 : i32
    return %c0_i32, %c0_i32_0 : i32, i32
  }
  func.func @transform_12(%arg0: i32) -> (i32, i32, i32) {
    %c0_i32 = arith.constant 0 : i32
    %c0_i32_0 = arith.constant 0 : i32
    %c0_i32_1 = arith.constant 0 : i32
    return %arg0, %c0_i32, %c0_i32_0 : i32, i32, i32
  }
}

module attributes {stable_mosaic.version = 11 : i64} {
  func.func @upsample_att_kernel(%arg0: i32, %arg1: memref<1x128x16xf32, #tpu.memory_space<vmem>>, %arg2: memref<32x16xf32, #tpu.memory_space<vmem>>, %arg3: memref<16x32xf32, #tpu.memory_space<vmem>>, %arg4: memref<2x7x38x32xf32, #tpu.memory_space<vmem>>, %arg5: memref<2x7x38x32xf32, #tpu.memory_space<vmem>>, %arg6: memref<2x7x14x8xf32, #tpu.memory_space<vmem>>, %arg7: memref<1x8x32x32xf32, #tpu.memory_space<vmem>>, %arg8: memref<8x32x32xf32, #tpu.memory_space<vmem>>, %arg9: memref<2x38x38xf32, #tpu.memory_space<vmem>>, %arg10: memref<2x14x38xf32, #tpu.memory_space<vmem>>, %arg11: memref<2x38x14xf32, #tpu.memory_space<vmem>>) attributes {dimension_semantics = [#tpu.dimension_semantics<parallel>], iteration_bounds = array<i64: 2>, scalar_prefetch = 0 : i64, scratch_operands = 4 : i64, tpu.core_type = #tpu.core_type<tc>, window_params = [{transform_indices = @transform_0, window_bounds = array<i64: 1, 128, 16>}, {pipeline_mode = #tpu.pipeline_mode<synchronous>, transform_indices = @transform_1, window_bounds = array<i64: 32, 16>}, {pipeline_mode = #tpu.pipeline_mode<synchronous>, transform_indices = @transform_2, window_bounds = array<i64: 16, 32>}, {pipeline_mode = #tpu.pipeline_mode<synchronous>, transform_indices = @transform_3, window_bounds = array<i64: 2, 7, 38, 32>}, {pipeline_mode = #tpu.pipeline_mode<synchronous>, transform_indices = @transform_4, window_bounds = array<i64: 2, 7, 38, 32>}, {pipeline_mode = #tpu.pipeline_mode<synchronous>, transform_indices = @transform_5, window_bounds = array<i64: 2, 7, 14, 8>}, {transform_indices = @transform_6, window_bounds = array<i64: 1, 8, 32, 32>}]} {
    %c0 = arith.constant 0 : index
    %c0_0 = arith.constant 0 : index
    %0 = vector.load %arg3[%c0, %c0_0] : memref<16x32xf32, #tpu.memory_space<vmem>>, vector<16x32xf32>
    %c0_1 = arith.constant 0 : index
    %c0_2 = arith.constant 0 : index
    %1 = vector.load %arg2[%c0_1, %c0_2] : memref<32x16xf32, #tpu.memory_space<vmem>>, vector<32x16xf32>
    %c0_3 = arith.constant 0 : index
    %c0_4 = arith.constant 0 : index
    %c0_5 = arith.constant 0 : index
    %2 = vector.load %arg1[%c0_3, %c0_4, %c0_5] : memref<1x128x16xf32, #tpu.memory_space<vmem>>, vector<1x128x16xf32>
    %3 = vector.shape_cast %2 : vector<1x128x16xf32> to vector<128x16xf32>
    %cst = arith.constant dense<0.000000e+00> : vector<128x32xf32>
    %4 = tpu.matmul %3, %0, %cst {dimension_numbers = #tpu.dot_dimension_numbers<[1], [0], [0], [1], [0, 0, 1, 1], [], []>} : vector<128x16xf32>, vector<16x32xf32>, vector<128x32xf32> -> vector<128x32xf32>
    %5 = vector.shape_cast %4 : vector<128x32xf32> to vector<8x16x32xf32>
    %6 = vector.extract_strided_slice %5 {offsets = [0, 0, 0], sizes = [1, 16, 32], strides = [1, 1, 1]} : vector<8x16x32xf32> to vector<1x16x32xf32>
    %7 = vector.shape_cast %6 : vector<1x16x32xf32> to vector<16x32xf32>
    %cst_6 = arith.constant dense<0.000000e+00> : vector<32x32xf32>
    %8 = tpu.matmul %1, %7, %cst_6 {dimension_numbers = #tpu.dot_dimension_numbers<[1], [0], [0], [1], [0, 0, 1, 1], [], []>} : vector<32x16xf32>, vector<16x32xf32>, vector<32x32xf32> -> vector<32x32xf32>
    %c0_7 = arith.constant 0 : index
    %c0_8 = arith.constant 0 : index
    %c0_9 = arith.constant 0 : index
    %9 = vector.load %arg8[%c0_7, %c0_8, %c0_9] : memref<8x32x32xf32, #tpu.memory_space<vmem>>, vector<1x32x32xf32>
    %10 = vector.shape_cast %9 : vector<1x32x32xf32> to vector<32x32xf32>
    %11 = vector.shape_cast %8 : vector<32x32xf32> to vector<1x32x32xf32>
    tpu.vector_store %arg8[%c0_7, %c0_8, %c0_9], %11 {strides = array<i32>} : memref<8x32x32xf32, #tpu.memory_space<vmem>>, vector<1x32x32xf32>,
    %12 = vector.extract_strided_slice %5 {offsets = [1, 0, 0], sizes = [1, 16, 32], strides = [1, 1, 1]} : vector<8x16x32xf32> to vector<1x16x32xf32>
    %13 = vector.shape_cast %12 : vector<1x16x32xf32> to vector<16x32xf32>
    %cst_10 = arith.constant dense<0.000000e+00> : vector<32x32xf32>
    %14 = tpu.matmul %1, %13, %cst_10 {dimension_numbers = #tpu.dot_dimension_numbers<[1], [0], [0], [1], [0, 0, 1, 1], [], []>} : vector<32x16xf32>, vector<16x32xf32>, vector<32x32xf32> -> vector<32x32xf32>
    %c1 = arith.constant 1 : index
    %c0_11 = arith.constant 0 : index
    %c0_12 = arith.constant 0 : index
    %15 = vector.load %arg8[%c1, %c0_11, %c0_12] : memref<8x32x32xf32, #tpu.memory_space<vmem>>, vector<1x32x32xf32>
    %16 = vector.shape_cast %15 : vector<1x32x32xf32> to vector<32x32xf32>
    %17 = vector.shape_cast %14 : vector<32x32xf32> to vector<1x32x32xf32>
    tpu.vector_store %arg8[%c1, %c0_11, %c0_12], %17 {strides = array<i32>} : memref<8x32x32xf32, #tpu.memory_space<vmem>>, vector<1x32x32xf32>,
    %18 = vector.extract_strided_slice %5 {offsets = [2, 0, 0], sizes = [1, 16, 32], strides = [1, 1, 1]} : vector<8x16x32xf32> to vector<1x16x32xf32>
    %19 = vector.shape_cast %18 : vector<1x16x32xf32> to vector<16x32xf32>
    %cst_13 = arith.constant dense<0.000000e+00> : vector<32x32xf32>
    %20 = tpu.matmul %1, %19, %cst_13 {dimension_numbers = #tpu.dot_dimension_numbers<[1], [0], [0], [1], [0, 0, 1, 1], [], []>} : vector<32x16xf32>, vector<16x32xf32>, vector<32x32xf32> -> vector<32x32xf32>
    %c2 = arith.constant 2 : index
    %c0_14 = arith.constant 0 : index
    %c0_15 = arith.constant 0 : index
    %21 = vector.load %arg8[%c2, %c0_14, %c0_15] : memref<8x32x32xf32, #tpu.memory_space<vmem>>, vector<1x32x32xf32>
    %22 = vector.shape_cast %21 : vector<1x32x32xf32> to vector<32x32xf32>
    %23 = vector.shape_cast %20 : vector<32x32xf32> to vector<1x32x32xf32>
    tpu.vector_store %arg8[%c2, %c0_14, %c0_15], %23 {strides = array<i32>} : memref<8x32x32xf32, #tpu.memory_space<vmem>>, vector<1x32x32xf32>,
    %24 = vector.extract_strided_slice %5 {offsets = [3, 0, 0], sizes = [1, 16, 32], strides = [1, 1, 1]} : vector<8x16x32xf32> to vector<1x16x32xf32>
    %25 = vector.shape_cast %24 : vector<1x16x32xf32> to vector<16x32xf32>
    %cst_16 = arith.constant dense<0.000000e+00> : vector<32x32xf32>
    %26 = tpu.matmul %1, %25, %cst_16 {dimension_numbers = #tpu.dot_dimension_numbers<[1], [0], [0], [1], [0, 0, 1, 1], [], []>} : vector<32x16xf32>, vector<16x32xf32>, vector<32x32xf32> -> vector<32x32xf32>
    %c3 = arith.constant 3 : index
    %c0_17 = arith.constant 0 : index
    %c0_18 = arith.constant 0 : index
    %27 = vector.load %arg8[%c3, %c0_17, %c0_18] : memref<8x32x32xf32, #tpu.memory_space<vmem>>, vector<1x32x32xf32>
    %28 = vector.shape_cast %27 : vector<1x32x32xf32> to vector<32x32xf32>
    %29 = vector.shape_cast %26 : vector<32x32xf32> to vector<1x32x32xf32>
    tpu.vector_store %arg8[%c3, %c0_17, %c0_18], %29 {strides = array<i32>} : memref<8x32x32xf32, #tpu.memory_space<vmem>>, vector<1x32x32xf32>,
    %30 = vector.extract_strided_slice %5 {offsets = [4, 0, 0], sizes = [1, 16, 32], strides = [1, 1, 1]} : vector<8x16x32xf32> to vector<1x16x32xf32>
    %31 = vector.shape_cast %30 : vector<1x16x32xf32> to vector<16x32xf32>
    %cst_19 = arith.constant dense<0.000000e+00> : vector<32x32xf32>
    %32 = tpu.matmul %1, %31, %cst_19 {dimension_numbers = #tpu.dot_dimension_numbers<[1], [0], [0], [1], [0, 0, 1, 1], [], []>} : vector<32x16xf32>, vector<16x32xf32>, vector<32x32xf32> -> vector<32x32xf32>
    %c4 = arith.constant 4 : index
    %c0_20 = arith.constant 0 : index
    %c0_21 = arith.constant 0 : index
    %33 = vector.load %arg8[%c4, %c0_20, %c0_21] : memref<8x32x32xf32, #tpu.memory_space<vmem>>, vector<1x32x32xf32>
    %34 = vector.shape_cast %33 : vector<1x32x32xf32> to vector<32x32xf32>
    %35 = vector.shape_cast %32 : vector<32x32xf32> to vector<1x32x32xf32>
    tpu.vector_store %arg8[%c4, %c0_20, %c0_21], %35 {strides = array<i32>} : memref<8x32x32xf32, #tpu.memory_space<vmem>>, vector<1x32x32xf32>,
    %36 = vector.extract_strided_slice %5 {offsets = [5, 0, 0], sizes = [1, 16, 32], strides = [1, 1, 1]} : vector<8x16x32xf32> to vector<1x16x32xf32>
    %37 = vector.shape_cast %36 : vector<1x16x32xf32> to vector<16x32xf32>
    %cst_22 = arith.constant dense<0.000000e+00> : vector<32x32xf32>
    %38 = tpu.matmul %1, %37, %cst_22 {dimension_numbers = #tpu.dot_dimension_numbers<[1], [0], [0], [1], [0, 0, 1, 1], [], []>} : vector<32x16xf32>, vector<16x32xf32>, vector<32x32xf32> -> vector<32x32xf32>
    %c5 = arith.constant 5 : index
    %c0_23 = arith.constant 0 : index
    %c0_24 = arith.constant 0 : index
    %39 = vector.load %arg8[%c5, %c0_23, %c0_24] : memref<8x32x32xf32, #tpu.memory_space<vmem>>, vector<1x32x32xf32>
    %40 = vector.shape_cast %39 : vector<1x32x32xf32> to vector<32x32xf32>
    %41 = vector.shape_cast %38 : vector<32x32xf32> to vector<1x32x32xf32>
    tpu.vector_store %arg8[%c5, %c0_23, %c0_24], %41 {strides = array<i32>} : memref<8x32x32xf32, #tpu.memory_space<vmem>>, vector<1x32x32xf32>,
    %42 = vector.extract_strided_slice %5 {offsets = [6, 0, 0], sizes = [1, 16, 32], strides = [1, 1, 1]} : vector<8x16x32xf32> to vector<1x16x32xf32>
    %43 = vector.shape_cast %42 : vector<1x16x32xf32> to vector<16x32xf32>
    %cst_25 = arith.constant dense<0.000000e+00> : vector<32x32xf32>
    %44 = tpu.matmul %1, %43, %cst_25 {dimension_numbers = #tpu.dot_dimension_numbers<[1], [0], [0], [1], [0, 0, 1, 1], [], []>} : vector<32x16xf32>, vector<16x32xf32>, vector<32x32xf32> -> vector<32x32xf32>
    %c6 = arith.constant 6 : index
    %c0_26 = arith.constant 0 : index
    %c0_27 = arith.constant 0 : index
    %45 = vector.load %arg8[%c6, %c0_26, %c0_27] : memref<8x32x32xf32, #tpu.memory_space<vmem>>, vector<1x32x32xf32>
    %46 = vector.shape_cast %45 : vector<1x32x32xf32> to vector<32x32xf32>
    %47 = vector.shape_cast %44 : vector<32x32xf32> to vector<1x32x32xf32>
    tpu.vector_store %arg8[%c6, %c0_26, %c0_27], %47 {strides = array<i32>} : memref<8x32x32xf32, #tpu.memory_space<vmem>>, vector<1x32x32xf32>,
    %48 = vector.extract_strided_slice %5 {offsets = [7, 0, 0], sizes = [1, 16, 32], strides = [1, 1, 1]} : vector<8x16x32xf32> to vector<1x16x32xf32>
    %49 = vector.shape_cast %48 : vector<1x16x32xf32> to vector<16x32xf32>
    %cst_28 = arith.constant dense<0.000000e+00> : vector<32x32xf32>
    %50 = tpu.matmul %1, %49, %cst_28 {dimension_numbers = #tpu.dot_dimension_numbers<[1], [0], [0], [1], [0, 0, 1, 1], [], []>} : vector<32x16xf32>, vector<16x32xf32>, vector<32x32xf32> -> vector<32x32xf32>
    %c7 = arith.constant 7 : index
    %c0_29 = arith.constant 0 : index
    %c0_30 = arith.constant 0 : index
    %51 = vector.load %arg8[%c7, %c0_29, %c0_30] : memref<8x32x32xf32, #tpu.memory_space<vmem>>, vector<1x32x32xf32>
    %52 = vector.shape_cast %51 : vector<1x32x32xf32> to vector<32x32xf32>
    %53 = vector.shape_cast %50 : vector<32x32xf32> to vector<1x32x32xf32>
    tpu.vector_store %arg8[%c7, %c0_29, %c0_30], %53 {strides = array<i32>} : memref<8x32x32xf32, #tpu.memory_space<vmem>>, vector<1x32x32xf32>,
    %cst_31 = arith.constant 0.000000e+00 : f32
    %54 = vector.broadcast %cst_31 : f32 to vector<2x38x38xf32>
    %c0_32 = arith.constant 0 : index
    %c0_33 = arith.constant 0 : index
    %c0_34 = arith.constant 0 : index
    %55 = vector.load %arg9[%c0_32, %c0_33, %c0_34] : memref<2x38x38xf32, #tpu.memory_space<vmem>>, vector<2x38x38xf32>
    tpu.vector_store %arg9[%c0_32, %c0_33, %c0_34], %54 {strides = array<i32>} : memref<2x38x38xf32, #tpu.memory_space<vmem>>, vector<2x38x38xf32>,
    %cst_35 = arith.constant 0.000000e+00 : f32
    %56 = vector.broadcast %cst_35 : f32 to vector<2x14x38xf32>
    %c0_36 = arith.constant 0 : index
    %c0_37 = arith.constant 0 : index
    %c0_38 = arith.constant 0 : index
    %57 = vector.load %arg10[%c0_36, %c0_37, %c0_38] : memref<2x14x38xf32, #tpu.memory_space<vmem>>, vector<2x14x38xf32>
    tpu.vector_store %arg10[%c0_36, %c0_37, %c0_38], %56 {strides = array<i32>} : memref<2x14x38xf32, #tpu.memory_space<vmem>>, vector<2x14x38xf32>,
    %cst_39 = arith.constant 0.000000e+00 : f32
    %58 = vector.broadcast %cst_39 : f32 to vector<2x38x14xf32>
    %c0_40 = arith.constant 0 : index
    %c0_41 = arith.constant 0 : index
    %c0_42 = arith.constant 0 : index
    %59 = vector.load %arg11[%c0_40, %c0_41, %c0_42] : memref<2x38x14xf32, #tpu.memory_space<vmem>>, vector<2x38x14xf32>
    tpu.vector_store %arg11[%c0_40, %c0_41, %c0_42], %58 {strides = array<i32>} : memref<2x38x14xf32, #tpu.memory_space<vmem>>, vector<2x38x14xf32>,
    %c0_43 = arith.constant 0 : index
    %c0_44 = arith.constant 0 : index
    %c0_45 = arith.constant 0 : index
    %60 = vector.load %arg8[%c0_43, %c0_44, %c0_45] : memref<8x32x32xf32, #tpu.memory_space<vmem>>, vector<1x32x32xf32>
    %61 = vector.shape_cast %60 : vector<1x32x32xf32> to vector<32x32xf32>
    %c0_46 = arith.constant 0 : index
    %c0_47 = arith.constant 0 : index
    %c0_48 = arith.constant 0 : index
    %62 = vector.load %arg8[%c0_46, %c0_47, %c0_48] : memref<8x32x32xf32, #tpu.memory_space<vmem>>, vector<1x32x32xf32>
    %63 = vector.shape_cast %62 : vector<1x32x32xf32> to vector<32x32xf32>
    %c1_49 = arith.constant 1 : index
    %c0_50 = arith.constant 0 : index
    %c0_51 = arith.constant 0 : index
    %64 = vector.load %arg8[%c1_49, %c0_50, %c0_51] : memref<8x32x32xf32, #tpu.memory_space<vmem>>, vector<1x32x32xf32>
    %65 = vector.shape_cast %64 : vector<1x32x32xf32> to vector<32x32xf32>
    %66 = arith.maximumf %61, %65 : vector<32x32xf32>
    %67 = arith.addf %63, %65 : vector<32x32xf32>
    %c2_52 = arith.constant 2 : index
    %c0_53 = arith.constant 0 : index
    %c0_54 = arith.constant 0 : index
    %68 = vector.load %arg8[%c2_52, %c0_53, %c0_54] : memref<8x32x32xf32, #tpu.memory_space<vmem>>, vector<1x32x32xf32>
    %69 = vector.shape_cast %68 : vector<1x32x32xf32> to vector<32x32xf32>
    %70 = arith.maximumf %66, %69 : vector<32x32xf32>
    %71 = arith.addf %67, %69 : vector<32x32xf32>
    %c3_55 = arith.constant 3 : index
    %c0_56 = arith.constant 0 : index
    %c0_57 = arith.constant 0 : index
    %72 = vector.load %arg8[%c3_55, %c0_56, %c0_57] : memref<8x32x32xf32, #tpu.memory_space<vmem>>, vector<1x32x32xf32>
    %73 = vector.shape_cast %72 : vector<1x32x32xf32> to vector<32x32xf32>
    %74 = arith.maximumf %70, %73 : vector<32x32xf32>
    %75 = arith.addf %71, %73 : vector<32x32xf32>
    %c4_58 = arith.constant 4 : index
    %c0_59 = arith.constant 0 : index
    %c0_60 = arith.constant 0 : index
    %76 = vector.load %arg8[%c4_58, %c0_59, %c0_60] : memref<8x32x32xf32, #tpu.memory_space<vmem>>, vector<1x32x32xf32>
    %77 = vector.shape_cast %76 : vector<1x32x32xf32> to vector<32x32xf32>
    %78 = arith.maximumf %74, %77 : vector<32x32xf32>
    %79 = arith.addf %75, %77 : vector<32x32xf32>
    %c5_61 = arith.constant 5 : index
    %c0_62 = arith.constant 0 : index
    %c0_63 = arith.constant 0 : index
    %80 = vector.load %arg8[%c5_61, %c0_62, %c0_63] : memref<8x32x32xf32, #tpu.memory_space<vmem>>, vector<1x32x32xf32>
    %81 = vector.shape_cast %80 : vector<1x32x32xf32> to vector<32x32xf32>
    %82 = arith.maximumf %78, %81 : vector<32x32xf32>
    %83 = arith.addf %79, %81 : vector<32x32xf32>
    %c6_64 = arith.constant 6 : index
    %c0_65 = arith.constant 0 : index
    %c0_66 = arith.constant 0 : index
    %84 = vector.load %arg8[%c6_64, %c0_65, %c0_66] : memref<8x32x32xf32, #tpu.memory_space<vmem>>, vector<1x32x32xf32>
    %85 = vector.shape_cast %84 : vector<1x32x32xf32> to vector<32x32xf32>
    %86 = arith.maximumf %82, %85 : vector<32x32xf32>
    %87 = arith.addf %83, %85 : vector<32x32xf32>
    %c7_67 = arith.constant 7 : index
    %c0_68 = arith.constant 0 : index
    %c0_69 = arith.constant 0 : index
    %88 = vector.load %arg8[%c7_67, %c0_68, %c0_69] : memref<8x32x32xf32, #tpu.memory_space<vmem>>, vector<1x32x32xf32>
    %89 = vector.shape_cast %88 : vector<1x32x32xf32> to vector<32x32xf32>
    %90 = arith.maximumf %86, %89 : vector<32x32xf32>
    %91 = arith.addf %87, %89 : vector<32x32xf32>
    %c0_70 = arith.constant 0 : index
    %c3_71 = arith.constant 3 : index
    %c3_72 = arith.constant 3 : index
    %92 = vector.load %arg9[%c0_70, %c3_71, %c3_72] : memref<2x38x38xf32, #tpu.memory_space<vmem>>, vector<1x32x32xf32>
    %93 = vector.shape_cast %92 : vector<1x32x32xf32> to vector<32x32xf32>
    %94 = vector.shape_cast %90 : vector<32x32xf32> to vector<1x32x32xf32>
    tpu.vector_store %arg9[%c0_70, %c3_71, %c3_72], %94 {strides = array<i32>} : memref<2x38x38xf32, #tpu.memory_space<vmem>>, vector<1x32x32xf32>,
    %cst_73 = arith.constant 1.250000e-01 : f32
    %95 = vector.broadcast %cst_73 : f32 to vector<32x32xf32>
    %96 = arith.mulf %91, %95 : vector<32x32xf32>
    %c1_74 = arith.constant 1 : index
    %c3_75 = arith.constant 3 : index
    %c3_76 = arith.constant 3 : index
    %97 = vector.load %arg9[%c1_74, %c3_75, %c3_76] : memref<2x38x38xf32, #tpu.memory_space<vmem>>, vector<1x32x32xf32>
    %98 = vector.shape_cast %97 : vector<1x32x32xf32> to vector<32x32xf32>
    %99 = vector.shape_cast %96 : vector<32x32xf32> to vector<1x32x32xf32>
    tpu.vector_store %arg9[%c1_74, %c3_75, %c3_76], %99 {strides = array<i32>} : memref<2x38x38xf32, #tpu.memory_space<vmem>>, vector<1x32x32xf32>,
    %c0_77 = arith.constant 0 : index
    %c0_78 = arith.constant 0 : index
    %c0_79 = arith.constant 0 : index
    %100 = vector.load %arg8[%c0_77, %c0_78, %c0_79] : memref<8x32x32xf32, #tpu.memory_space<vmem>>, vector<1x32x32xf32>
    %101 = vector.shape_cast %100 : vector<1x32x32xf32> to vector<32x32xf32>
    %cst_80 = arith.constant dense<0xFF800000> : vector<32xf32>
    %102 = vector.multi_reduction <maximumf>, %101, %cst_80 [0] : vector<32x32xf32> to vector<32xf32>
    %103 = vector.shape_cast %102 : vector<32xf32> to vector<1x32xf32>
    %c0_81 = arith.constant 0 : index
    %c3_82 = arith.constant 3 : index
    %c3_83 = arith.constant 3 : index
    %104 = vector.load %arg10[%c0_81, %c3_82, %c3_83] : memref<2x14x38xf32, #tpu.memory_space<vmem>>, vector<1x1x32xf32>
    %105 = vector.shape_cast %104 : vector<1x1x32xf32> to vector<1x32xf32>
    %106 = vector.shape_cast %103 : vector<1x32xf32> to vector<1x1x32xf32>
    tpu.vector_store %arg10[%c0_81, %c3_82, %c3_83], %106 {strides = array<i32>} : memref<2x14x38xf32, #tpu.memory_space<vmem>>, vector<1x1x32xf32>,
    %cst_84 = arith.constant dense<0.000000e+00> : vector<32xf32>
    %107 = vector.multi_reduction <add>, %101, %cst_84 [0] : vector<32x32xf32> to vector<32xf32>
    %108 = vector.shape_cast %107 : vector<32xf32> to vector<1x32xf32>
    %cst_85 = arith.constant 3.200000e+01 : f32
    %109 = vector.broadcast %cst_85 : f32 to vector<1x32xf32>
    %110 = arith.divf %108, %109 : vector<1x32xf32>
    %c1_86 = arith.constant 1 : index
    %c3_87 = arith.constant 3 : index
    %c3_88 = arith.constant 3 : index
    %111 = vector.load %arg10[%c1_86, %c3_87, %c3_88] : memref<2x14x38xf32, #tpu.memory_space<vmem>>, vector<1x1x32xf32>
    %112 = vector.shape_cast %111 : vector<1x1x32xf32> to vector<1x32xf32>
    %113 = vector.shape_cast %110 : vector<1x32xf32> to vector<1x1x32xf32>
    tpu.vector_store %arg10[%c1_86, %c3_87, %c3_88], %113 {strides = array<i32>} : memref<2x14x38xf32, #tpu.memory_space<vmem>>, vector<1x1x32xf32>,
    %cst_89 = arith.constant dense<0xFF800000> : vector<32xf32>
    %114 = vector.multi_reduction <maximumf>, %101, %cst_89 [1] : vector<32x32xf32> to vector<32xf32>
    %115 = vector.shape_cast %114 : vector<32xf32> to vector<32x1xf32>
    %c0_90 = arith.constant 0 : index
    %c3_91 = arith.constant 3 : index
    %c3_92 = arith.constant 3 : index
    %116 = vector.load %arg11[%c0_90, %c3_91, %c3_92] : memref<2x38x14xf32, #tpu.memory_space<vmem>>, vector<1x32x1xf32>
    %117 = vector.shape_cast %116 : vector<1x32x1xf32> to vector<32x1xf32>
    %118 = vector.shape_cast %115 : vector<32x1xf32> to vector<1x32x1xf32>
    tpu.vector_store %arg11[%c0_90, %c3_91, %c3_92], %118 {strides = array<i32>} : memref<2x38x14xf32, #tpu.memory_space<vmem>>, vector<1x32x1xf32>,
    %cst_93 = arith.constant dense<0.000000e+00> : vector<32xf32>
    %119 = vector.multi_reduction <add>, %101, %cst_93 [1] : vector<32x32xf32> to vector<32xf32>
    %120 = vector.shape_cast %119 : vector<32xf32> to vector<32x1xf32>
    %cst_94 = arith.constant 3.200000e+01 : f32
    %121 = vector.broadcast %cst_94 : f32 to vector<32x1xf32>
    %122 = arith.divf %120, %121 : vector<32x1xf32>
    %c1_95 = arith.constant 1 : index
    %c3_96 = arith.constant 3 : index
    %c3_97 = arith.constant 3 : index
    %123 = vector.load %arg11[%c1_95, %c3_96, %c3_97] : memref<2x38x14xf32, #tpu.memory_space<vmem>>, vector<1x32x1xf32>
    %124 = vector.shape_cast %123 : vector<1x32x1xf32> to vector<32x1xf32>
    %125 = vector.shape_cast %122 : vector<32x1xf32> to vector<1x32x1xf32>
    tpu.vector_store %arg11[%c1_95, %c3_96, %c3_97], %125 {strides = array<i32>} : memref<2x38x14xf32, #tpu.memory_space<vmem>>, vector<1x32x1xf32>,
    %c1_98 = arith.constant 1 : index
    %c0_99 = arith.constant 0 : index
    %c0_100 = arith.constant 0 : index
    %126 = vector.load %arg8[%c1_98, %c0_99, %c0_100] : memref<8x32x32xf32, #tpu.memory_space<vmem>>, vector<1x32x32xf32>
    %127 = vector.shape_cast %126 : vector<1x32x32xf32> to vector<32x32xf32>
    %cst_101 = arith.constant dense<0xFF800000> : vector<32xf32>
    %128 = vector.multi_reduction <maximumf>, %127, %cst_101 [0] : vector<32x32xf32> to vector<32xf32>
    %129 = vector.shape_cast %128 : vector<32xf32> to vector<1x32xf32>
    %c0_102 = arith.constant 0 : index
    %c4_103 = arith.constant 4 : index
    %c3_104 = arith.constant 3 : index
    %130 = vector.load %arg10[%c0_102, %c4_103, %c3_104] : memref<2x14x38xf32, #tpu.memory_space<vmem>>, vector<1x1x32xf32>
    %131 = vector.shape_cast %130 : vector<1x1x32xf32> to vector<1x32xf32>
    %132 = vector.shape_cast %129 : vector<1x32xf32> to vector<1x1x32xf32>
    tpu.vector_store %arg10[%c0_102, %c4_103, %c3_104], %132 {strides = array<i32>} : memref<2x14x38xf32, #tpu.memory_space<vmem>>, vector<1x1x32xf32>,
    %cst_105 = arith.constant dense<0.000000e+00> : vector<32xf32>
    %133 = vector.multi_reduction <add>, %127, %cst_105 [0] : vector<32x32xf32> to vector<32xf32>
    %134 = vector.shape_cast %133 : vector<32xf32> to vector<1x32xf32>
    %cst_106 = arith.constant 3.200000e+01 : f32
    %135 = vector.broadcast %cst_106 : f32 to vector<1x32xf32>
    %136 = arith.divf %134, %135 : vector<1x32xf32>
    %c1_107 = arith.constant 1 : index
    %c4_108 = arith.constant 4 : index
    %c3_109 = arith.constant 3 : index
    %137 = vector.load %arg10[%c1_107, %c4_108, %c3_109] : memref<2x14x38xf32, #tpu.memory_space<vmem>>, vector<1x1x32xf32>
    %138 = vector.shape_cast %137 : vector<1x1x32xf32> to vector<1x32xf32>
    %139 = vector.shape_cast %136 : vector<1x32xf32> to vector<1x1x32xf32>
    tpu.vector_store %arg10[%c1_107, %c4_108, %c3_109], %139 {strides = array<i32>} : memref<2x14x38xf32, #tpu.memory_space<vmem>>, vector<1x1x32xf32>,
    %cst_110 = arith.constant dense<0xFF800000> : vector<32xf32>
    %140 = vector.multi_reduction <maximumf>, %127, %cst_110 [1] : vector<32x32xf32> to vector<32xf32>
    %141 = vector.shape_cast %140 : vector<32xf32> to vector<32x1xf32>
    %c0_111 = arith.constant 0 : index
    %c3_112 = arith.constant 3 : index
    %c4_113 = arith.constant 4 : index
    %142 = vector.load %arg11[%c0_111, %c3_112, %c4_113] : memref<2x38x14xf32, #tpu.memory_space<vmem>>, vector<1x32x1xf32>
    %143 = vector.shape_cast %142 : vector<1x32x1xf32> to vector<32x1xf32>
    %144 = vector.shape_cast %141 : vector<32x1xf32> to vector<1x32x1xf32>
    tpu.vector_store %arg11[%c0_111, %c3_112, %c4_113], %144 {strides = array<i32>} : memref<2x38x14xf32, #tpu.memory_space<vmem>>, vector<1x32x1xf32>,
    %cst_114 = arith.constant dense<0.000000e+00> : vector<32xf32>
    %145 = vector.multi_reduction <add>, %127, %cst_114 [1] : vector<32x32xf32> to vector<32xf32>
    %146 = vector.shape_cast %145 : vector<32xf32> to vector<32x1xf32>
    %cst_115 = arith.constant 3.200000e+01 : f32
    %147 = vector.broadcast %cst_115 : f32 to vector<32x1xf32>
    %148 = arith.divf %146, %147 : vector<32x1xf32>
    %c1_116 = arith.constant 1 : index
    %c3_117 = arith.constant 3 : index
    %c4_118 = arith.constant 4 : index
    %149 = vector.load %arg11[%c1_116, %c3_117, %c4_118] : memref<2x38x14xf32, #tpu.memory_space<vmem>>, vector<1x32x1xf32>
    %150 = vector.shape_cast %149 : vector<1x32x1xf32> to vector<32x1xf32>
    %151 = vector.shape_cast %148 : vector<32x1xf32> to vector<1x32x1xf32>
    tpu.vector_store %arg11[%c1_116, %c3_117, %c4_118], %151 {strides = array<i32>} : memref<2x38x14xf32, #tpu.memory_space<vmem>>, vector<1x32x1xf32>,
    %c2_119 = arith.constant 2 : index
    %c0_120 = arith.constant 0 : index
    %c0_121 = arith.constant 0 : index
    %152 = vector.load %arg8[%c2_119, %c0_120, %c0_121] : memref<8x32x32xf32, #tpu.memory_space<vmem>>, vector<1x32x32xf32>
    %153 = vector.shape_cast %152 : vector<1x32x32xf32> to vector<32x32xf32>
    %cst_122 = arith.constant dense<0xFF800000> : vector<32xf32>
    %154 = vector.multi_reduction <maximumf>, %153, %cst_122 [0] : vector<32x32xf32> to vector<32xf32>
    %155 = vector.shape_cast %154 : vector<32xf32> to vector<1x32xf32>
    %c0_123 = arith.constant 0 : index
    %c5_124 = arith.constant 5 : index
    %c3_125 = arith.constant 3 : index
    %156 = vector.load %arg10[%c0_123, %c5_124, %c3_125] : memref<2x14x38xf32, #tpu.memory_space<vmem>>, vector<1x1x32xf32>
    %157 = vector.shape_cast %156 : vector<1x1x32xf32> to vector<1x32xf32>
    %158 = vector.shape_cast %155 : vector<1x32xf32> to vector<1x1x32xf32>
    tpu.vector_store %arg10[%c0_123, %c5_124, %c3_125], %158 {strides = array<i32>} : memref<2x14x38xf32, #tpu.memory_space<vmem>>, vector<1x1x32xf32>,
    %cst_126 = arith.constant dense<0.000000e+00> : vector<32xf32>
    %159 = vector.multi_reduction <add>, %153, %cst_126 [0] : vector<32x32xf32> to vector<32xf32>
    %160 = vector.shape_cast %159 : vector<32xf32> to vector<1x32xf32>
    %cst_127 = arith.constant 3.200000e+01 : f32
    %161 = vector.broadcast %cst_127 : f32 to vector<1x32xf32>
    %162 = arith.divf %160, %161 : vector<1x32xf32>
    %c1_128 = arith.constant 1 : index
    %c5_129 = arith.constant 5 : index
    %c3_130 = arith.constant 3 : index
    %163 = vector.load %arg10[%c1_128, %c5_129, %c3_130] : memref<2x14x38xf32, #tpu.memory_space<vmem>>, vector<1x1x32xf32>
    %164 = vector.shape_cast %163 : vector<1x1x32xf32> to vector<1x32xf32>
    %165 = vector.shape_cast %162 : vector<1x32xf32> to vector<1x1x32xf32>
    tpu.vector_store %arg10[%c1_128, %c5_129, %c3_130], %165 {strides = array<i32>} : memref<2x14x38xf32, #tpu.memory_space<vmem>>, vector<1x1x32xf32>,
    %cst_131 = arith.constant dense<0xFF800000> : vector<32xf32>
    %166 = vector.multi_reduction <maximumf>, %153, %cst_131 [1] : vector<32x32xf32> to vector<32xf32>
    %167 = vector.shape_cast %166 : vector<32xf32> to vector<32x1xf32>
    %c0_132 = arith.constant 0 : index
    %c3_133 = arith.constant 3 : index
    %c5_134 = arith.constant 5 : index
    %168 = vector.load %arg11[%c0_132, %c3_133, %c5_134] : memref<2x38x14xf32, #tpu.memory_space<vmem>>, vector<1x32x1xf32>
    %169 = vector.shape_cast %168 : vector<1x32x1xf32> to vector<32x1xf32>
    %170 = vector.shape_cast %167 : vector<32x1xf32> to vector<1x32x1xf32>
    tpu.vector_store %arg11[%c0_132, %c3_133, %c5_134], %170 {strides = array<i32>} : memref<2x38x14xf32, #tpu.memory_space<vmem>>, vector<1x32x1xf32>,
    %cst_135 = arith.constant dense<0.000000e+00> : vector<32xf32>
    %171 = vector.multi_reduction <add>, %153, %cst_135 [1] : vector<32x32xf32> to vector<32xf32>
    %172 = vector.shape_cast %171 : vector<32xf32> to vector<32x1xf32>
    %cst_136 = arith.constant 3.200000e+01 : f32
    %173 = vector.broadcast %cst_136 : f32 to vector<32x1xf32>
    %174 = arith.divf %172, %173 : vector<32x1xf32>
    %c1_137 = arith.constant 1 : index
    %c3_138 = arith.constant 3 : index
    %c5_139 = arith.constant 5 : index
    %175 = vector.load %arg11[%c1_137, %c3_138, %c5_139] : memref<2x38x14xf32, #tpu.memory_space<vmem>>, vector<1x32x1xf32>
    %176 = vector.shape_cast %175 : vector<1x32x1xf32> to vector<32x1xf32>
    %177 = vector.shape_cast %174 : vector<32x1xf32> to vector<1x32x1xf32>
    tpu.vector_store %arg11[%c1_137, %c3_138, %c5_139], %177 {strides = array<i32>} : memref<2x38x14xf32, #tpu.memory_space<vmem>>, vector<1x32x1xf32>,
    %c3_140 = arith.constant 3 : index
    %c0_141 = arith.constant 0 : index
    %c0_142 = arith.constant 0 : index
    %178 = vector.load %arg8[%c3_140, %c0_141, %c0_142] : memref<8x32x32xf32, #tpu.memory_space<vmem>>, vector<1x32x32xf32>
    %179 = vector.shape_cast %178 : vector<1x32x32xf32> to vector<32x32xf32>
    %cst_143 = arith.constant dense<0xFF800000> : vector<32xf32>
    %180 = vector.multi_reduction <maximumf>, %179, %cst_143 [0] : vector<32x32xf32> to vector<32xf32>
    %181 = vector.shape_cast %180 : vector<32xf32> to vector<1x32xf32>
    %c0_144 = arith.constant 0 : index
    %c6_145 = arith.constant 6 : index
    %c3_146 = arith.constant 3 : index
    %182 = vector.load %arg10[%c0_144, %c6_145, %c3_146] : memref<2x14x38xf32, #tpu.memory_space<vmem>>, vector<1x1x32xf32>
    %183 = vector.shape_cast %182 : vector<1x1x32xf32> to vector<1x32xf32>
    %184 = vector.shape_cast %181 : vector<1x32xf32> to vector<1x1x32xf32>
    tpu.vector_store %arg10[%c0_144, %c6_145, %c3_146], %184 {strides = array<i32>} : memref<2x14x38xf32, #tpu.memory_space<vmem>>, vector<1x1x32xf32>,
    %cst_147 = arith.constant dense<0.000000e+00> : vector<32xf32>
    %185 = vector.multi_reduction <add>, %179, %cst_147 [0] : vector<32x32xf32> to vector<32xf32>
    %186 = vector.shape_cast %185 : vector<32xf32> to vector<1x32xf32>
    %cst_148 = arith.constant 3.200000e+01 : f32
    %187 = vector.broadcast %cst_148 : f32 to vector<1x32xf32>
    %188 = arith.divf %186, %187 : vector<1x32xf32>
    %c1_149 = arith.constant 1 : index
    %c6_150 = arith.constant 6 : index
    %c3_151 = arith.constant 3 : index
    %189 = vector.load %arg10[%c1_149, %c6_150, %c3_151] : memref<2x14x38xf32, #tpu.memory_space<vmem>>, vector<1x1x32xf32>
    %190 = vector.shape_cast %189 : vector<1x1x32xf32> to vector<1x32xf32>
    %191 = vector.shape_cast %188 : vector<1x32xf32> to vector<1x1x32xf32>
    tpu.vector_store %arg10[%c1_149, %c6_150, %c3_151], %191 {strides = array<i32>} : memref<2x14x38xf32, #tpu.memory_space<vmem>>, vector<1x1x32xf32>,
    %cst_152 = arith.constant dense<0xFF800000> : vector<32xf32>
    %192 = vector.multi_reduction <maximumf>, %179, %cst_152 [1] : vector<32x32xf32> to vector<32xf32>
    %193 = vector.shape_cast %192 : vector<32xf32> to vector<32x1xf32>
    %c0_153 = arith.constant 0 : index
    %c3_154 = arith.constant 3 : index
    %c6_155 = arith.constant 6 : index
    %194 = vector.load %arg11[%c0_153, %c3_154, %c6_155] : memref<2x38x14xf32, #tpu.memory_space<vmem>>, vector<1x32x1xf32>
    %195 = vector.shape_cast %194 : vector<1x32x1xf32> to vector<32x1xf32>
    %196 = vector.shape_cast %193 : vector<32x1xf32> to vector<1x32x1xf32>
    tpu.vector_store %arg11[%c0_153, %c3_154, %c6_155], %196 {strides = array<i32>} : memref<2x38x14xf32, #tpu.memory_space<vmem>>, vector<1x32x1xf32>,
    %cst_156 = arith.constant dense<0.000000e+00> : vector<32xf32>
    %197 = vector.multi_reduction <add>, %179, %cst_156 [1] : vector<32x32xf32> to vector<32xf32>
    %198 = vector.shape_cast %197 : vector<32xf32> to vector<32x1xf32>
    %cst_157 = arith.constant 3.200000e+01 : f32
    %199 = vector.broadcast %cst_157 : f32 to vector<32x1xf32>
    %200 = arith.divf %198, %199 : vector<32x1xf32>
    %c1_158 = arith.constant 1 : index
    %c3_159 = arith.constant 3 : index
    %c6_160 = arith.constant 6 : index
    %201 = vector.load %arg11[%c1_158, %c3_159, %c6_160] : memref<2x38x14xf32, #tpu.memory_space<vmem>>, vector<1x32x1xf32>
    %202 = vector.shape_cast %201 : vector<1x32x1xf32> to vector<32x1xf32>
    %203 = vector.shape_cast %200 : vector<32x1xf32> to vector<1x32x1xf32>
    tpu.vector_store %arg11[%c1_158, %c3_159, %c6_160], %203 {strides = array<i32>} : memref<2x38x14xf32, #tpu.memory_space<vmem>>, vector<1x32x1xf32>,
    %c4_161 = arith.constant 4 : index
    %c0_162 = arith.constant 0 : index
    %c0_163 = arith.constant 0 : index
    %204 = vector.load %arg8[%c4_161, %c0_162, %c0_163] : memref<8x32x32xf32, #tpu.memory_space<vmem>>, vector<1x32x32xf32>
    %205 = vector.shape_cast %204 : vector<1x32x32xf32> to vector<32x32xf32>
    %cst_164 = arith.constant dense<0xFF800000> : vector<32xf32>
    %206 = vector.multi_reduction <maximumf>, %205, %cst_164 [0] : vector<32x32xf32> to vector<32xf32>
    %207 = vector.shape_cast %206 : vector<32xf32> to vector<1x32xf32>
    %c0_165 = arith.constant 0 : index
    %c7_166 = arith.constant 7 : index
    %c3_167 = arith.constant 3 : index
    %208 = vector.load %arg10[%c0_165, %c7_166, %c3_167] : memref<2x14x38xf32, #tpu.memory_space<vmem>>, vector<1x1x32xf32>
    %209 = vector.shape_cast %208 : vector<1x1x32xf32> to vector<1x32xf32>
    %210 = vector.shape_cast %207 : vector<1x32xf32> to vector<1x1x32xf32>
    tpu.vector_store %arg10[%c0_165, %c7_166, %c3_167], %210 {strides = array<i32>} : memref<2x14x38xf32, #tpu.memory_space<vmem>>, vector<1x1x32xf32>,
    %cst_168 = arith.constant dense<0.000000e+00> : vector<32xf32>
    %211 = vector.multi_reduction <add>, %205, %cst_168 [0] : vector<32x32xf32> to vector<32xf32>
    %212 = vector.shape_cast %211 : vector<32xf32> to vector<1x32xf32>
    %cst_169 = arith.constant 3.200000e+01 : f32
    %213 = vector.broadcast %cst_169 : f32 to vector<1x32xf32>
    %214 = arith.divf %212, %213 : vector<1x32xf32>
    %c1_170 = arith.constant 1 : index
    %c7_171 = arith.constant 7 : index
    %c3_172 = arith.constant 3 : index
    %215 = vector.load %arg10[%c1_170, %c7_171, %c3_172] : memref<2x14x38xf32, #tpu.memory_space<vmem>>, vector<1x1x32xf32>
    %216 = vector.shape_cast %215 : vector<1x1x32xf32> to vector<1x32xf32>
    %217 = vector.shape_cast %214 : vector<1x32xf32> to vector<1x1x32xf32>
    tpu.vector_store %arg10[%c1_170, %c7_171, %c3_172], %217 {strides = array<i32>} : memref<2x14x38xf32, #tpu.memory_space<vmem>>, vector<1x1x32xf32>,
    %cst_173 = arith.constant dense<0xFF800000> : vector<32xf32>
    %218 = vector.multi_reduction <maximumf>, %205, %cst_173 [1] : vector<32x32xf32> to vector<32xf32>
    %219 = vector.shape_cast %218 : vector<32xf32> to vector<32x1xf32>
    %c0_174 = arith.constant 0 : index
    %c3_175 = arith.constant 3 : index
    %c7_176 = arith.constant 7 : index
    %220 = vector.load %arg11[%c0_174, %c3_175, %c7_176] : memref<2x38x14xf32, #tpu.memory_space<vmem>>, vector<1x32x1xf32>
    %221 = vector.shape_cast %220 : vector<1x32x1xf32> to vector<32x1xf32>
    %222 = vector.shape_cast %219 : vector<32x1xf32> to vector<1x32x1xf32>
    tpu.vector_store %arg11[%c0_174, %c3_175, %c7_176], %222 {strides = array<i32>} : memref<2x38x14xf32, #tpu.memory_space<vmem>>, vector<1x32x1xf32>,
    %cst_177 = arith.constant dense<0.000000e+00> : vector<32xf32>
    %223 = vector.multi_reduction <add>, %205, %cst_177 [1] : vector<32x32xf32> to vector<32xf32>
    %224 = vector.shape_cast %223 : vector<32xf32> to vector<32x1xf32>
    %cst_178 = arith.constant 3.200000e+01 : f32
    %225 = vector.broadcast %cst_178 : f32 to vector<32x1xf32>
    %226 = arith.divf %224, %225 : vector<32x1xf32>
    %c1_179 = arith.constant 1 : index
    %c3_180 = arith.constant 3 : index
    %c7_181 = arith.constant 7 : index
    %227 = vector.load %arg11[%c1_179, %c3_180, %c7_181] : memref<2x38x14xf32, #tpu.memory_space<vmem>>, vector<1x32x1xf32>
    %228 = vector.shape_cast %227 : vector<1x32x1xf32> to vector<32x1xf32>
    %229 = vector.shape_cast %226 : vector<32x1xf32> to vector<1x32x1xf32>
    tpu.vector_store %arg11[%c1_179, %c3_180, %c7_181], %229 {strides = array<i32>} : memref<2x38x14xf32, #tpu.memory_space<vmem>>, vector<1x32x1xf32>,
    %c5_182 = arith.constant 5 : index
    %c0_183 = arith.constant 0 : index
    %c0_184 = arith.constant 0 : index
    %230 = vector.load %arg8[%c5_182, %c0_183, %c0_184] : memref<8x32x32xf32, #tpu.memory_space<vmem>>, vector<1x32x32xf32>
    %231 = vector.shape_cast %230 : vector<1x32x32xf32> to vector<32x32xf32>
    %cst_185 = arith.constant dense<0xFF800000> : vector<32xf32>
    %232 = vector.multi_reduction <maximumf>, %231, %cst_185 [0] : vector<32x32xf32> to vector<32xf32>
    %233 = vector.shape_cast %232 : vector<32xf32> to vector<1x32xf32>
    %c0_186 = arith.constant 0 : index
    %c8 = arith.constant 8 : index
    %c3_187 = arith.constant 3 : index
    %234 = vector.load %arg10[%c0_186, %c8, %c3_187] : memref<2x14x38xf32, #tpu.memory_space<vmem>>, vector<1x1x32xf32>
    %235 = vector.shape_cast %234 : vector<1x1x32xf32> to vector<1x32xf32>
    %236 = vector.shape_cast %233 : vector<1x32xf32> to vector<1x1x32xf32>
    tpu.vector_store %arg10[%c0_186, %c8, %c3_187], %236 {strides = array<i32>} : memref<2x14x38xf32, #tpu.memory_space<vmem>>, vector<1x1x32xf32>,
    %cst_188 = arith.constant dense<0.000000e+00> : vector<32xf32>
    %237 = vector.multi_reduction <add>, %231, %cst_188 [0] : vector<32x32xf32> to vector<32xf32>
    %238 = vector.shape_cast %237 : vector<32xf32> to vector<1x32xf32>
    %cst_189 = arith.constant 3.200000e+01 : f32
    %239 = vector.broadcast %cst_189 : f32 to vector<1x32xf32>
    %240 = arith.divf %238, %239 : vector<1x32xf32>
    %c1_190 = arith.constant 1 : index
    %c8_191 = arith.constant 8 : index
    %c3_192 = arith.constant 3 : index
    %241 = vector.load %arg10[%c1_190, %c8_191, %c3_192] : memref<2x14x38xf32, #tpu.memory_space<vmem>>, vector<1x1x32xf32>
    %242 = vector.shape_cast %241 : vector<1x1x32xf32> to vector<1x32xf32>
    %243 = vector.shape_cast %240 : vector<1x32xf32> to vector<1x1x32xf32>
    tpu.vector_store %arg10[%c1_190, %c8_191, %c3_192], %243 {strides = array<i32>} : memref<2x14x38xf32, #tpu.memory_space<vmem>>, vector<1x1x32xf32>,
    %cst_193 = arith.constant dense<0xFF800000> : vector<32xf32>
    %244 = vector.multi_reduction <maximumf>, %231, %cst_193 [1] : vector<32x32xf32> to vector<32xf32>
    %245 = vector.shape_cast %244 : vector<32xf32> to vector<32x1xf32>
    %c0_194 = arith.constant 0 : index
    %c3_195 = arith.constant 3 : index
    %c8_196 = arith.constant 8 : index
    %246 = vector.load %arg11[%c0_194, %c3_195, %c8_196] : memref<2x38x14xf32, #tpu.memory_space<vmem>>, vector<1x32x1xf32>
    %247 = vector.shape_cast %246 : vector<1x32x1xf32> to vector<32x1xf32>
    %248 = vector.shape_cast %245 : vector<32x1xf32> to vector<1x32x1xf32>
    tpu.vector_store %arg11[%c0_194, %c3_195, %c8_196], %248 {strides = array<i32>} : memref<2x38x14xf32, #tpu.memory_space<vmem>>, vector<1x32x1xf32>,
    %cst_197 = arith.constant dense<0.000000e+00> : vector<32xf32>
    %249 = vector.multi_reduction <add>, %231, %cst_197 [1] : vector<32x32xf32> to vector<32xf32>
    %250 = vector.shape_cast %249 : vector<32xf32> to vector<32x1xf32>
    %cst_198 = arith.constant 3.200000e+01 : f32
    %251 = vector.broadcast %cst_198 : f32 to vector<32x1xf32>
    %252 = arith.divf %250, %251 : vector<32x1xf32>
    %c1_199 = arith.constant 1 : index
    %c3_200 = arith.constant 3 : index
    %c8_201 = arith.constant 8 : index
    %253 = vector.load %arg11[%c1_199, %c3_200, %c8_201] : memref<2x38x14xf32, #tpu.memory_space<vmem>>, vector<1x32x1xf32>
    %254 = vector.shape_cast %253 : vector<1x32x1xf32> to vector<32x1xf32>
    %255 = vector.shape_cast %252 : vector<32x1xf32> to vector<1x32x1xf32>
    tpu.vector_store %arg11[%c1_199, %c3_200, %c8_201], %255 {strides = array<i32>} : memref<2x38x14xf32, #tpu.memory_space<vmem>>, vector<1x32x1xf32>,
    %c6_202 = arith.constant 6 : index
    %c0_203 = arith.constant 0 : index
    %c0_204 = arith.constant 0 : index
    %256 = vector.load %arg8[%c6_202, %c0_203, %c0_204] : memref<8x32x32xf32, #tpu.memory_space<vmem>>, vector<1x32x32xf32>
    %257 = vector.shape_cast %256 : vector<1x32x32xf32> to vector<32x32xf32>
    %cst_205 = arith.constant dense<0xFF800000> : vector<32xf32>
    %258 = vector.multi_reduction <maximumf>, %257, %cst_205 [0] : vector<32x32xf32> to vector<32xf32>
    %259 = vector.shape_cast %258 : vector<32xf32> to vector<1x32xf32>
    %c0_206 = arith.constant 0 : index
    %c9 = arith.constant 9 : index
    %c3_207 = arith.constant 3 : index
    %260 = vector.load %arg10[%c0_206, %c9, %c3_207] : memref<2x14x38xf32, #tpu.memory_space<vmem>>, vector<1x1x32xf32>
    %261 = vector.shape_cast %260 : vector<1x1x32xf32> to vector<1x32xf32>
    %262 = vector.shape_cast %259 : vector<1x32xf32> to vector<1x1x32xf32>
    tpu.vector_store %arg10[%c0_206, %c9, %c3_207], %262 {strides = array<i32>} : memref<2x14x38xf32, #tpu.memory_space<vmem>>, vector<1x1x32xf32>,
    %cst_208 = arith.constant dense<0.000000e+00> : vector<32xf32>
    %263 = vector.multi_reduction <add>, %257, %cst_208 [0] : vector<32x32xf32> to vector<32xf32>
    %264 = vector.shape_cast %263 : vector<32xf32> to vector<1x32xf32>
    %cst_209 = arith.constant 3.200000e+01 : f32
    %265 = vector.broadcast %cst_209 : f32 to vector<1x32xf32>
    %266 = arith.divf %264, %265 : vector<1x32xf32>
    %c1_210 = arith.constant 1 : index
    %c9_211 = arith.constant 9 : index
    %c3_212 = arith.constant 3 : index
    %267 = vector.load %arg10[%c1_210, %c9_211, %c3_212] : memref<2x14x38xf32, #tpu.memory_space<vmem>>, vector<1x1x32xf32>
    %268 = vector.shape_cast %267 : vector<1x1x32xf32> to vector<1x32xf32>
    %269 = vector.shape_cast %266 : vector<1x32xf32> to vector<1x1x32xf32>
    tpu.vector_store %arg10[%c1_210, %c9_211, %c3_212], %269 {strides = array<i32>} : memref<2x14x38xf32, #tpu.memory_space<vmem>>, vector<1x1x32xf32>,
    %cst_213 = arith.constant dense<0xFF800000> : vector<32xf32>
    %270 = vector.multi_reduction <maximumf>, %257, %cst_213 [1] : vector<32x32xf32> to vector<32xf32>
    %271 = vector.shape_cast %270 : vector<32xf32> to vector<32x1xf32>
    %c0_214 = arith.constant 0 : index
    %c3_215 = arith.constant 3 : index
    %c9_216 = arith.constant 9 : index
    %272 = vector.load %arg11[%c0_214, %c3_215, %c9_216] : memref<2x38x14xf32, #tpu.memory_space<vmem>>, vector<1x32x1xf32>
    %273 = vector.shape_cast %272 : vector<1x32x1xf32> to vector<32x1xf32>
    %274 = vector.shape_cast %271 : vector<32x1xf32> to vector<1x32x1xf32>
    tpu.vector_store %arg11[%c0_214, %c3_215, %c9_216], %274 {strides = array<i32>} : memref<2x38x14xf32, #tpu.memory_space<vmem>>, vector<1x32x1xf32>,
    %cst_217 = arith.constant dense<0.000000e+00> : vector<32xf32>
    %275 = vector.multi_reduction <add>, %257, %cst_217 [1] : vector<32x32xf32> to vector<32xf32>
    %276 = vector.shape_cast %275 : vector<32xf32> to vector<32x1xf32>
    %cst_218 = arith.constant 3.200000e+01 : f32
    %277 = vector.broadcast %cst_218 : f32 to vector<32x1xf32>
    %278 = arith.divf %276, %277 : vector<32x1xf32>
    %c1_219 = arith.constant 1 : index
    %c3_220 = arith.constant 3 : index
    %c9_221 = arith.constant 9 : index
    %279 = vector.load %arg11[%c1_219, %c3_220, %c9_221] : memref<2x38x14xf32, #tpu.memory_space<vmem>>, vector<1x32x1xf32>
    %280 = vector.shape_cast %279 : vector<1x32x1xf32> to vector<32x1xf32>
    %281 = vector.shape_cast %278 : vector<32x1xf32> to vector<1x32x1xf32>
    tpu.vector_store %arg11[%c1_219, %c3_220, %c9_221], %281 {strides = array<i32>} : memref<2x38x14xf32, #tpu.memory_space<vmem>>, vector<1x32x1xf32>,
    %c7_222 = arith.constant 7 : index
    %c0_223 = arith.constant 0 : index
    %c0_224 = arith.constant 0 : index
    %282 = vector.load %arg8[%c7_222, %c0_223, %c0_224] : memref<8x32x32xf32, #tpu.memory_space<vmem>>, vector<1x32x32xf32>
    %283 = vector.shape_cast %282 : vector<1x32x32xf32> to vector<32x32xf32>
    %cst_225 = arith.constant dense<0xFF800000> : vector<32xf32>
    %284 = vector.multi_reduction <maximumf>, %283, %cst_225 [0] : vector<32x32xf32> to vector<32xf32>
    %285 = vector.shape_cast %284 : vector<32xf32> to vector<1x32xf32>
    %c0_226 = arith.constant 0 : index
    %c10 = arith.constant 10 : index
    %c3_227 = arith.constant 3 : index
    %286 = vector.load %arg10[%c0_226, %c10, %c3_227] : memref<2x14x38xf32, #tpu.memory_space<vmem>>, vector<1x1x32xf32>
    %287 = vector.shape_cast %286 : vector<1x1x32xf32> to vector<1x32xf32>
    %288 = vector.shape_cast %285 : vector<1x32xf32> to vector<1x1x32xf32>
    tpu.vector_store %arg10[%c0_226, %c10, %c3_227], %288 {strides = array<i32>} : memref<2x14x38xf32, #tpu.memory_space<vmem>>, vector<1x1x32xf32>,
    %cst_228 = arith.constant dense<0.000000e+00> : vector<32xf32>
    %289 = vector.multi_reduction <add>, %283, %cst_228 [0] : vector<32x32xf32> to vector<32xf32>
    %290 = vector.shape_cast %289 : vector<32xf32> to vector<1x32xf32>
    %cst_229 = arith.constant 3.200000e+01 : f32
    %291 = vector.broadcast %cst_229 : f32 to vector<1x32xf32>
    %292 = arith.divf %290, %291 : vector<1x32xf32>
    %c1_230 = arith.constant 1 : index
    %c10_231 = arith.constant 10 : index
    %c3_232 = arith.constant 3 : index
    %293 = vector.load %arg10[%c1_230, %c10_231, %c3_232] : memref<2x14x38xf32, #tpu.memory_space<vmem>>, vector<1x1x32xf32>
    %294 = vector.shape_cast %293 : vector<1x1x32xf32> to vector<1x32xf32>
    %295 = vector.shape_cast %292 : vector<1x32xf32> to vector<1x1x32xf32>
    tpu.vector_store %arg10[%c1_230, %c10_231, %c3_232], %295 {strides = array<i32>} : memref<2x14x38xf32, #tpu.memory_space<vmem>>, vector<1x1x32xf32>,
    %cst_233 = arith.constant dense<0xFF800000> : vector<32xf32>
    %296 = vector.multi_reduction <maximumf>, %283, %cst_233 [1] : vector<32x32xf32> to vector<32xf32>
    %297 = vector.shape_cast %296 : vector<32xf32> to vector<32x1xf32>
    %c0_234 = arith.constant 0 : index
    %c3_235 = arith.constant 3 : index
    %c10_236 = arith.constant 10 : index
    %298 = vector.load %arg11[%c0_234, %c3_235, %c10_236] : memref<2x38x14xf32, #tpu.memory_space<vmem>>, vector<1x32x1xf32>
    %299 = vector.shape_cast %298 : vector<1x32x1xf32> to vector<32x1xf32>
    %300 = vector.shape_cast %297 : vector<32x1xf32> to vector<1x32x1xf32>
    tpu.vector_store %arg11[%c0_234, %c3_235, %c10_236], %300 {strides = array<i32>} : memref<2x38x14xf32, #tpu.memory_space<vmem>>, vector<1x32x1xf32>,
    %cst_237 = arith.constant dense<0.000000e+00> : vector<32xf32>
    %301 = vector.multi_reduction <add>, %283, %cst_237 [1] : vector<32x32xf32> to vector<32xf32>
    %302 = vector.shape_cast %301 : vector<32xf32> to vector<32x1xf32>
    %cst_238 = arith.constant 3.200000e+01 : f32
    %303 = vector.broadcast %cst_238 : f32 to vector<32x1xf32>
    %304 = arith.divf %302, %303 : vector<32x1xf32>
    %c1_239 = arith.constant 1 : index
    %c3_240 = arith.constant 3 : index
    %c10_241 = arith.constant 10 : index
    %305 = vector.load %arg11[%c1_239, %c3_240, %c10_241] : memref<2x38x14xf32, #tpu.memory_space<vmem>>, vector<1x32x1xf32>
    %306 = vector.shape_cast %305 : vector<1x32x1xf32> to vector<32x1xf32>
    %307 = vector.shape_cast %304 : vector<32x1xf32> to vector<1x32x1xf32>
    tpu.vector_store %arg11[%c1_239, %c3_240, %c10_241], %307 {strides = array<i32>} : memref<2x38x14xf32, #tpu.memory_space<vmem>>, vector<1x32x1xf32>,
    %cst_242 = arith.constant 0.000000e+00 : f32
    %308 = vector.broadcast %cst_242 : f32 to vector<32x32xf32>
    %c0_243 = arith.constant 0 : index
    %c0_244 = arith.constant 0 : index
    %c0_245 = arith.constant 0 : index
    %309 = vector.load %arg9[%c0_243, %c0_244, %c0_245] : memref<2x38x38xf32, #tpu.memory_space<vmem>>, vector<1x32x38xf32>
    %310 = vector.shape_cast %309 : vector<1x32x38xf32> to vector<32x38xf32>
    %c0_246 = arith.constant 0 : index
    %c0_247 = arith.constant 0 : index
    %c0_248 = arith.constant 0 : index
    %c0_249 = arith.constant 0 : index
    %311 = vector.load %arg4[%c0_246, %c0_247, %c0_248, %c0_249] : memref<2x7x38x32xf32, #tpu.memory_space<vmem>>, vector<1x1x38x32xf32>
    %312 = vector.shape_cast %311 : vector<1x1x38x32xf32> to vector<38x32xf32>
    %cst_250 = arith.constant dense<0.000000e+00> : vector<32x32xf32>
    %313 = tpu.matmul %310, %312, %cst_250 {dimension_numbers = #tpu.dot_dimension_numbers<[1], [0], [0], [1], [0, 0, 1, 1], [], []>} : vector<32x38xf32>, vector<38x32xf32>, vector<32x32xf32> -> vector<32x32xf32>
    %314 = arith.addf %308, %313 : vector<32x32xf32>
    %c0_251 = arith.constant 0 : index
    %c1_252 = arith.constant 1 : index
    %c0_253 = arith.constant 0 : index
    %315 = vector.load %arg9[%c0_251, %c1_252, %c0_253] : memref<2x38x38xf32, #tpu.memory_space<vmem>>, vector<1x32x38xf32>
    %316 = vector.shape_cast %315 : vector<1x32x38xf32> to vector<32x38xf32>
    %c0_254 = arith.constant 0 : index
    %c1_255 = arith.constant 1 : index
    %c0_256 = arith.constant 0 : index
    %c0_257 = arith.constant 0 : index
    %317 = vector.load %arg4[%c0_254, %c1_255, %c0_256, %c0_257] : memref<2x7x38x32xf32, #tpu.memory_space<vmem>>, vector<1x1x38x32xf32>
    %318 = vector.shape_cast %317 : vector<1x1x38x32xf32> to vector<38x32xf32>
    %cst_258 = arith.constant dense<0.000000e+00> : vector<32x32xf32>
    %319 = tpu.matmul %316, %318, %cst_258 {dimension_numbers = #tpu.dot_dimension_numbers<[1], [0], [0], [1], [0, 0, 1, 1], [], []>} : vector<32x38xf32>, vector<38x32xf32>, vector<32x32xf32> -> vector<32x32xf32>
    %320 = arith.addf %314, %319 : vector<32x32xf32>
    %c0_259 = arith.constant 0 : index
    %c2_260 = arith.constant 2 : index
    %c0_261 = arith.constant 0 : index
    %321 = vector.load %arg9[%c0_259, %c2_260, %c0_261] : memref<2x38x38xf32, #tpu.memory_space<vmem>>, vector<1x32x38xf32>
    %322 = vector.shape_cast %321 : vector<1x32x38xf32> to vector<32x38xf32>
    %c0_262 = arith.constant 0 : index
    %c2_263 = arith.constant 2 : index
    %c0_264 = arith.constant 0 : index
    %c0_265 = arith.constant 0 : index
    %323 = vector.load %arg4[%c0_262, %c2_263, %c0_264, %c0_265] : memref<2x7x38x32xf32, #tpu.memory_space<vmem>>, vector<1x1x38x32xf32>
    %324 = vector.shape_cast %323 : vector<1x1x38x32xf32> to vector<38x32xf32>
    %cst_266 = arith.constant dense<0.000000e+00> : vector<32x32xf32>
    %325 = tpu.matmul %322, %324, %cst_266 {dimension_numbers = #tpu.dot_dimension_numbers<[1], [0], [0], [1], [0, 0, 1, 1], [], []>} : vector<32x38xf32>, vector<38x32xf32>, vector<32x32xf32> -> vector<32x32xf32>
    %326 = arith.addf %320, %325 : vector<32x32xf32>
    %c0_267 = arith.constant 0 : index
    %c3_268 = arith.constant 3 : index
    %c0_269 = arith.constant 0 : index
    %327 = vector.load %arg9[%c0_267, %c3_268, %c0_269] : memref<2x38x38xf32, #tpu.memory_space<vmem>>, vector<1x32x38xf32>
    %328 = vector.shape_cast %327 : vector<1x32x38xf32> to vector<32x38xf32>
    %c0_270 = arith.constant 0 : index
    %c3_271 = arith.constant 3 : index
    %c0_272 = arith.constant 0 : index
    %c0_273 = arith.constant 0 : index
    %329 = vector.load %arg4[%c0_270, %c3_271, %c0_272, %c0_273] : memref<2x7x38x32xf32, #tpu.memory_space<vmem>>, vector<1x1x38x32xf32>
    %330 = vector.shape_cast %329 : vector<1x1x38x32xf32> to vector<38x32xf32>
    %cst_274 = arith.constant dense<0.000000e+00> : vector<32x32xf32>
    %331 = tpu.matmul %328, %330, %cst_274 {dimension_numbers = #tpu.dot_dimension_numbers<[1], [0], [0], [1], [0, 0, 1, 1], [], []>} : vector<32x38xf32>, vector<38x32xf32>, vector<32x32xf32> -> vector<32x32xf32>
    %332 = arith.addf %326, %331 : vector<32x32xf32>
    %c0_275 = arith.constant 0 : index
    %c4_276 = arith.constant 4 : index
    %c0_277 = arith.constant 0 : index
    %333 = vector.load %arg9[%c0_275, %c4_276, %c0_277] : memref<2x38x38xf32, #tpu.memory_space<vmem>>, vector<1x32x38xf32>
    %334 = vector.shape_cast %333 : vector<1x32x38xf32> to vector<32x38xf32>
    %c0_278 = arith.constant 0 : index
    %c4_279 = arith.constant 4 : index
    %c0_280 = arith.constant 0 : index
    %c0_281 = arith.constant 0 : index
    %335 = vector.load %arg4[%c0_278, %c4_279, %c0_280, %c0_281] : memref<2x7x38x32xf32, #tpu.memory_space<vmem>>, vector<1x1x38x32xf32>
    %336 = vector.shape_cast %335 : vector<1x1x38x32xf32> to vector<38x32xf32>
    %cst_282 = arith.constant dense<0.000000e+00> : vector<32x32xf32>
    %337 = tpu.matmul %334, %336, %cst_282 {dimension_numbers = #tpu.dot_dimension_numbers<[1], [0], [0], [1], [0, 0, 1, 1], [], []>} : vector<32x38xf32>, vector<38x32xf32>, vector<32x32xf32> -> vector<32x32xf32>
    %338 = arith.addf %332, %337 : vector<32x32xf32>
    %c0_283 = arith.constant 0 : index
    %c5_284 = arith.constant 5 : index
    %c0_285 = arith.constant 0 : index
    %339 = vector.load %arg9[%c0_283, %c5_284, %c0_285] : memref<2x38x38xf32, #tpu.memory_space<vmem>>, vector<1x32x38xf32>
    %340 = vector.shape_cast %339 : vector<1x32x38xf32> to vector<32x38xf32>
    %c0_286 = arith.constant 0 : index
    %c5_287 = arith.constant 5 : index
    %c0_288 = arith.constant 0 : index
    %c0_289 = arith.constant 0 : index
    %341 = vector.load %arg4[%c0_286, %c5_287, %c0_288, %c0_289] : memref<2x7x38x32xf32, #tpu.memory_space<vmem>>, vector<1x1x38x32xf32>
    %342 = vector.shape_cast %341 : vector<1x1x38x32xf32> to vector<38x32xf32>
    %cst_290 = arith.constant dense<0.000000e+00> : vector<32x32xf32>
    %343 = tpu.matmul %340, %342, %cst_290 {dimension_numbers = #tpu.dot_dimension_numbers<[1], [0], [0], [1], [0, 0, 1, 1], [], []>} : vector<32x38xf32>, vector<38x32xf32>, vector<32x32xf32> -> vector<32x32xf32>
    %344 = arith.addf %338, %343 : vector<32x32xf32>
    %c0_291 = arith.constant 0 : index
    %c6_292 = arith.constant 6 : index
    %c0_293 = arith.constant 0 : index
    %345 = vector.load %arg9[%c0_291, %c6_292, %c0_293] : memref<2x38x38xf32, #tpu.memory_space<vmem>>, vector<1x32x38xf32>
    %346 = vector.shape_cast %345 : vector<1x32x38xf32> to vector<32x38xf32>
    %c0_294 = arith.constant 0 : index
    %c6_295 = arith.constant 6 : index
    %c0_296 = arith.constant 0 : index
    %c0_297 = arith.constant 0 : index
    %347 = vector.load %arg4[%c0_294, %c6_295, %c0_296, %c0_297] : memref<2x7x38x32xf32, #tpu.memory_space<vmem>>, vector<1x1x38x32xf32>
    %348 = vector.shape_cast %347 : vector<1x1x38x32xf32> to vector<38x32xf32>
    %cst_298 = arith.constant dense<0.000000e+00> : vector<32x32xf32>
    %349 = tpu.matmul %346, %348, %cst_298 {dimension_numbers = #tpu.dot_dimension_numbers<[1], [0], [0], [1], [0, 0, 1, 1], [], []>} : vector<32x38xf32>, vector<38x32xf32>, vector<32x32xf32> -> vector<32x32xf32>
    %350 = arith.addf %344, %349 : vector<32x32xf32>
    %c1_299 = arith.constant 1 : index
    %c0_300 = arith.constant 0 : index
    %c0_301 = arith.constant 0 : index
    %351 = vector.load %arg9[%c1_299, %c0_300, %c0_301] : memref<2x38x38xf32, #tpu.memory_space<vmem>>, vector<1x32x38xf32>
    %352 = vector.shape_cast %351 : vector<1x32x38xf32> to vector<32x38xf32>
    %c1_302 = arith.constant 1 : index
    %c0_303 = arith.constant 0 : index
    %c0_304 = arith.constant 0 : index
    %c0_305 = arith.constant 0 : index
    %353 = vector.load %arg4[%c1_302, %c0_303, %c0_304, %c0_305] : memref<2x7x38x32xf32, #tpu.memory_space<vmem>>, vector<1x1x38x32xf32>
    %354 = vector.shape_cast %353 : vector<1x1x38x32xf32> to vector<38x32xf32>
    %cst_306 = arith.constant dense<0.000000e+00> : vector<32x32xf32>
    %355 = tpu.matmul %352, %354, %cst_306 {dimension_numbers = #tpu.dot_dimension_numbers<[1], [0], [0], [1], [0, 0, 1, 1], [], []>} : vector<32x38xf32>, vector<38x32xf32>, vector<32x32xf32> -> vector<32x32xf32>
    %356 = arith.addf %350, %355 : vector<32x32xf32>
    %c1_307 = arith.constant 1 : index
    %c1_308 = arith.constant 1 : index
    %c0_309 = arith.constant 0 : index
    %357 = vector.load %arg9[%c1_307, %c1_308, %c0_309] : memref<2x38x38xf32, #tpu.memory_space<vmem>>, vector<1x32x38xf32>
    %358 = vector.shape_cast %357 : vector<1x32x38xf32> to vector<32x38xf32>
    %c1_310 = arith.constant 1 : index
    %c1_311 = arith.constant 1 : index
    %c0_312 = arith.constant 0 : index
    %c0_313 = arith.constant 0 : index
    %359 = vector.load %arg4[%c1_310, %c1_311, %c0_312, %c0_313] : memref<2x7x38x32xf32, #tpu.memory_space<vmem>>, vector<1x1x38x32xf32>
    %360 = vector.shape_cast %359 : vector<1x1x38x32xf32> to vector<38x32xf32>
    %cst_314 = arith.constant dense<0.000000e+00> : vector<32x32xf32>
    %361 = tpu.matmul %358, %360, %cst_314 {dimension_numbers = #tpu.dot_dimension_numbers<[1], [0], [0], [1], [0, 0, 1, 1], [], []>} : vector<32x38xf32>, vector<38x32xf32>, vector<32x32xf32> -> vector<32x32xf32>
    %362 = arith.addf %356, %361 : vector<32x32xf32>
    %c1_315 = arith.constant 1 : index
    %c2_316 = arith.constant 2 : index
    %c0_317 = arith.constant 0 : index
    %363 = vector.load %arg9[%c1_315, %c2_316, %c0_317] : memref<2x38x38xf32, #tpu.memory_space<vmem>>, vector<1x32x38xf32>
    %364 = vector.shape_cast %363 : vector<1x32x38xf32> to vector<32x38xf32>
    %c1_318 = arith.constant 1 : index
    %c2_319 = arith.constant 2 : index
    %c0_320 = arith.constant 0 : index
    %c0_321 = arith.constant 0 : index
    %365 = vector.load %arg4[%c1_318, %c2_319, %c0_320, %c0_321] : memref<2x7x38x32xf32, #tpu.memory_space<vmem>>, vector<1x1x38x32xf32>
    %366 = vector.shape_cast %365 : vector<1x1x38x32xf32> to vector<38x32xf32>
    %cst_322 = arith.constant dense<0.000000e+00> : vector<32x32xf32>
    %367 = tpu.matmul %364, %366, %cst_322 {dimension_numbers = #tpu.dot_dimension_numbers<[1], [0], [0], [1], [0, 0, 1, 1], [], []>} : vector<32x38xf32>, vector<38x32xf32>, vector<32x32xf32> -> vector<32x32xf32>
    %368 = arith.addf %362, %367 : vector<32x32xf32>
    %c1_323 = arith.constant 1 : index
    %c3_324 = arith.constant 3 : index
    %c0_325 = arith.constant 0 : index
    %369 = vector.load %arg9[%c1_323, %c3_324, %c0_325] : memref<2x38x38xf32, #tpu.memory_space<vmem>>, vector<1x32x38xf32>
    %370 = vector.shape_cast %369 : vector<1x32x38xf32> to vector<32x38xf32>
    %c1_326 = arith.constant 1 : index
    %c3_327 = arith.constant 3 : index
    %c0_328 = arith.constant 0 : index
    %c0_329 = arith.constant 0 : index
    %371 = vector.load %arg4[%c1_326, %c3_327, %c0_328, %c0_329] : memref<2x7x38x32xf32, #tpu.memory_space<vmem>>, vector<1x1x38x32xf32>
    %372 = vector.shape_cast %371 : vector<1x1x38x32xf32> to vector<38x32xf32>
    %cst_330 = arith.constant dense<0.000000e+00> : vector<32x32xf32>
    %373 = tpu.matmul %370, %372, %cst_330 {dimension_numbers = #tpu.dot_dimension_numbers<[1], [0], [0], [1], [0, 0, 1, 1], [], []>} : vector<32x38xf32>, vector<38x32xf32>, vector<32x32xf32> -> vector<32x32xf32>
    %374 = arith.addf %368, %373 : vector<32x32xf32>
    %c1_331 = arith.constant 1 : index
    %c4_332 = arith.constant 4 : index
    %c0_333 = arith.constant 0 : index
    %375 = vector.load %arg9[%c1_331, %c4_332, %c0_333] : memref<2x38x38xf32, #tpu.memory_space<vmem>>, vector<1x32x38xf32>
    %376 = vector.shape_cast %375 : vector<1x32x38xf32> to vector<32x38xf32>
    %c1_334 = arith.constant 1 : index
    %c4_335 = arith.constant 4 : index
    %c0_336 = arith.constant 0 : index
    %c0_337 = arith.constant 0 : index
    %377 = vector.load %arg4[%c1_334, %c4_335, %c0_336, %c0_337] : memref<2x7x38x32xf32, #tpu.memory_space<vmem>>, vector<1x1x38x32xf32>
    %378 = vector.shape_cast %377 : vector<1x1x38x32xf32> to vector<38x32xf32>
    %cst_338 = arith.constant dense<0.000000e+00> : vector<32x32xf32>
    %379 = tpu.matmul %376, %378, %cst_338 {dimension_numbers = #tpu.dot_dimension_numbers<[1], [0], [0], [1], [0, 0, 1, 1], [], []>} : vector<32x38xf32>, vector<38x32xf32>, vector<32x32xf32> -> vector<32x32xf32>
    %380 = arith.addf %374, %379 : vector<32x32xf32>
    %c1_339 = arith.constant 1 : index
    %c5_340 = arith.constant 5 : index
    %c0_341 = arith.constant 0 : index
    %381 = vector.load %arg9[%c1_339, %c5_340, %c0_341] : memref<2x38x38xf32, #tpu.memory_space<vmem>>, vector<1x32x38xf32>
    %382 = vector.shape_cast %381 : vector<1x32x38xf32> to vector<32x38xf32>
    %c1_342 = arith.constant 1 : index
    %c5_343 = arith.constant 5 : index
    %c0_344 = arith.constant 0 : index
    %c0_345 = arith.constant 0 : index
    %383 = vector.load %arg4[%c1_342, %c5_343, %c0_344, %c0_345] : memref<2x7x38x32xf32, #tpu.memory_space<vmem>>, vector<1x1x38x32xf32>
    %384 = vector.shape_cast %383 : vector<1x1x38x32xf32> to vector<38x32xf32>
    %cst_346 = arith.constant dense<0.000000e+00> : vector<32x32xf32>
    %385 = tpu.matmul %382, %384, %cst_346 {dimension_numbers = #tpu.dot_dimension_numbers<[1], [0], [0], [1], [0, 0, 1, 1], [], []>} : vector<32x38xf32>, vector<38x32xf32>, vector<32x32xf32> -> vector<32x32xf32>
    %386 = arith.addf %380, %385 : vector<32x32xf32>
    %c1_347 = arith.constant 1 : index
    %c6_348 = arith.constant 6 : index
    %c0_349 = arith.constant 0 : index
    %387 = vector.load %arg9[%c1_347, %c6_348, %c0_349] : memref<2x38x38xf32, #tpu.memory_space<vmem>>, vector<1x32x38xf32>
    %388 = vector.shape_cast %387 : vector<1x32x38xf32> to vector<32x38xf32>
    %c1_350 = arith.constant 1 : index
    %c6_351 = arith.constant 6 : index
    %c0_352 = arith.constant 0 : index
    %c0_353 = arith.constant 0 : index
    %389 = vector.load %arg4[%c1_350, %c6_351, %c0_352, %c0_353] : memref<2x7x38x32xf32, #tpu.memory_space<vmem>>, vector<1x1x38x32xf32>
    %390 = vector.shape_cast %389 : vector<1x1x38x32xf32> to vector<38x32xf32>
    %cst_354 = arith.constant dense<0.000000e+00> : vector<32x32xf32>
    %391 = tpu.matmul %388, %390, %cst_354 {dimension_numbers = #tpu.dot_dimension_numbers<[1], [0], [0], [1], [0, 0, 1, 1], [], []>} : vector<32x38xf32>, vector<38x32xf32>, vector<32x32xf32> -> vector<32x32xf32>
    %392 = arith.addf %386, %391 : vector<32x32xf32>
    %393 = arith.negf %392 : vector<32x32xf32>
    %394 = math.exp %393 : vector<32x32xf32>
    %cst_355 = arith.constant 1.000000e+00 : f32
    %395 = vector.broadcast %cst_355 : f32 to vector<32x32xf32>
    %396 = arith.addf %395, %394 : vector<32x32xf32>
    %397 = arith.divf %395, %396 : vector<32x32xf32>
    %cst_356 = arith.constant 0.000000e+00 : f32
    %398 = vector.broadcast %cst_356 : f32 to vector<8x32xf32>
    %c0_357 = arith.constant 0 : index
    %c0_358 = arith.constant 0 : index
    %c0_359 = arith.constant 0 : index
    %399 = vector.load %arg10[%c0_357, %c0_358, %c0_359] : memref<2x14x38xf32, #tpu.memory_space<vmem>>, vector<1x8x38xf32>
    %400 = vector.shape_cast %399 : vector<1x8x38xf32> to vector<8x38xf32>
    %c0_360 = arith.constant 0 : index
    %c0_361 = arith.constant 0 : index
    %c0_362 = arith.constant 0 : index
    %c0_363 = arith.constant 0 : index
    %401 = vector.load %arg5[%c0_360, %c0_361, %c0_362, %c0_363] : memref<2x7x38x32xf32, #tpu.memory_space<vmem>>, vector<1x1x38x32xf32>
    %402 = vector.shape_cast %401 : vector<1x1x38x32xf32> to vector<38x32xf32>
    %cst_364 = arith.constant dense<0.000000e+00> : vector<8x32xf32>
    %403 = tpu.matmul %400, %402, %cst_364 {dimension_numbers = #tpu.dot_dimension_numbers<[1], [0], [0], [1], [0, 0, 1, 1], [], []>} : vector<8x38xf32>, vector<38x32xf32>, vector<8x32xf32> -> vector<8x32xf32>
    %404 = arith.addf %398, %403 : vector<8x32xf32>
    %c0_365 = arith.constant 0 : index
    %c1_366 = arith.constant 1 : index
    %c0_367 = arith.constant 0 : index
    %405 = vector.load %arg10[%c0_365, %c1_366, %c0_367] : memref<2x14x38xf32, #tpu.memory_space<vmem>>, vector<1x8x38xf32>
    %406 = vector.shape_cast %405 : vector<1x8x38xf32> to vector<8x38xf32>
    %c0_368 = arith.constant 0 : index
    %c1_369 = arith.constant 1 : index
    %c0_370 = arith.constant 0 : index
    %c0_371 = arith.constant 0 : index
    %407 = vector.load %arg5[%c0_368, %c1_369, %c0_370, %c0_371] : memref<2x7x38x32xf32, #tpu.memory_space<vmem>>, vector<1x1x38x32xf32>
    %408 = vector.shape_cast %407 : vector<1x1x38x32xf32> to vector<38x32xf32>
    %cst_372 = arith.constant dense<0.000000e+00> : vector<8x32xf32>
    %409 = tpu.matmul %406, %408, %cst_372 {dimension_numbers = #tpu.dot_dimension_numbers<[1], [0], [0], [1], [0, 0, 1, 1], [], []>} : vector<8x38xf32>, vector<38x32xf32>, vector<8x32xf32> -> vector<8x32xf32>
    %410 = arith.addf %404, %409 : vector<8x32xf32>
    %c0_373 = arith.constant 0 : index
    %c2_374 = arith.constant 2 : index
    %c0_375 = arith.constant 0 : index
    %411 = vector.load %arg10[%c0_373, %c2_374, %c0_375] : memref<2x14x38xf32, #tpu.memory_space<vmem>>, vector<1x8x38xf32>
    %412 = vector.shape_cast %411 : vector<1x8x38xf32> to vector<8x38xf32>
    %c0_376 = arith.constant 0 : index
    %c2_377 = arith.constant 2 : index
    %c0_378 = arith.constant 0 : index
    %c0_379 = arith.constant 0 : index
    %413 = vector.load %arg5[%c0_376, %c2_377, %c0_378, %c0_379] : memref<2x7x38x32xf32, #tpu.memory_space<vmem>>, vector<1x1x38x32xf32>
    %414 = vector.shape_cast %413 : vector<1x1x38x32xf32> to vector<38x32xf32>
    %cst_380 = arith.constant dense<0.000000e+00> : vector<8x32xf32>
    %415 = tpu.matmul %412, %414, %cst_380 {dimension_numbers = #tpu.dot_dimension_numbers<[1], [0], [0], [1], [0, 0, 1, 1], [], []>} : vector<8x38xf32>, vector<38x32xf32>, vector<8x32xf32> -> vector<8x32xf32>
    %416 = arith.addf %410, %415 : vector<8x32xf32>
    %c0_381 = arith.constant 0 : index
    %c3_382 = arith.constant 3 : index
    %c0_383 = arith.constant 0 : index
    %417 = vector.load %arg10[%c0_381, %c3_382, %c0_383] : memref<2x14x38xf32, #tpu.memory_space<vmem>>, vector<1x8x38xf32>
    %418 = vector.shape_cast %417 : vector<1x8x38xf32> to vector<8x38xf32>
    %c0_384 = arith.constant 0 : index
    %c3_385 = arith.constant 3 : index
    %c0_386 = arith.constant 0 : index
    %c0_387 = arith.constant 0 : index
    %419 = vector.load %arg5[%c0_384, %c3_385, %c0_386, %c0_387] : memref<2x7x38x32xf32, #tpu.memory_space<vmem>>, vector<1x1x38x32xf32>
    %420 = vector.shape_cast %419 : vector<1x1x38x32xf32> to vector<38x32xf32>
    %cst_388 = arith.constant dense<0.000000e+00> : vector<8x32xf32>
    %421 = tpu.matmul %418, %420, %cst_388 {dimension_numbers = #tpu.dot_dimension_numbers<[1], [0], [0], [1], [0, 0, 1, 1], [], []>} : vector<8x38xf32>, vector<38x32xf32>, vector<8x32xf32> -> vector<8x32xf32>
    %422 = arith.addf %416, %421 : vector<8x32xf32>
    %c0_389 = arith.constant 0 : index
    %c4_390 = arith.constant 4 : index
    %c0_391 = arith.constant 0 : index
    %423 = vector.load %arg10[%c0_389, %c4_390, %c0_391] : memref<2x14x38xf32, #tpu.memory_space<vmem>>, vector<1x8x38xf32>
    %424 = vector.shape_cast %423 : vector<1x8x38xf32> to vector<8x38xf32>
    %c0_392 = arith.constant 0 : index
    %c4_393 = arith.constant 4 : index
    %c0_394 = arith.constant 0 : index
    %c0_395 = arith.constant 0 : index
    %425 = vector.load %arg5[%c0_392, %c4_393, %c0_394, %c0_395] : memref<2x7x38x32xf32, #tpu.memory_space<vmem>>, vector<1x1x38x32xf32>
    %426 = vector.shape_cast %425 : vector<1x1x38x32xf32> to vector<38x32xf32>
    %cst_396 = arith.constant dense<0.000000e+00> : vector<8x32xf32>
    %427 = tpu.matmul %424, %426, %cst_396 {dimension_numbers = #tpu.dot_dimension_numbers<[1], [0], [0], [1], [0, 0, 1, 1], [], []>} : vector<8x38xf32>, vector<38x32xf32>, vector<8x32xf32> -> vector<8x32xf32>
    %428 = arith.addf %422, %427 : vector<8x32xf32>
    %c0_397 = arith.constant 0 : index
    %c5_398 = arith.constant 5 : index
    %c0_399 = arith.constant 0 : index
    %429 = vector.load %arg10[%c0_397, %c5_398, %c0_399] : memref<2x14x38xf32, #tpu.memory_space<vmem>>, vector<1x8x38xf32>
    %430 = vector.shape_cast %429 : vector<1x8x38xf32> to vector<8x38xf32>
    %c0_400 = arith.constant 0 : index
    %c5_401 = arith.constant 5 : index
    %c0_402 = arith.constant 0 : index
    %c0_403 = arith.constant 0 : index
    %431 = vector.load %arg5[%c0_400, %c5_401, %c0_402, %c0_403] : memref<2x7x38x32xf32, #tpu.memory_space<vmem>>, vector<1x1x38x32xf32>
    %432 = vector.shape_cast %431 : vector<1x1x38x32xf32> to vector<38x32xf32>
    %cst_404 = arith.constant dense<0.000000e+00> : vector<8x32xf32>
    %433 = tpu.matmul %430, %432, %cst_404 {dimension_numbers = #tpu.dot_dimension_numbers<[1], [0], [0], [1], [0, 0, 1, 1], [], []>} : vector<8x38xf32>, vector<38x32xf32>, vector<8x32xf32> -> vector<8x32xf32>
    %434 = arith.addf %428, %433 : vector<8x32xf32>
    %c0_405 = arith.constant 0 : index
    %c6_406 = arith.constant 6 : index
    %c0_407 = arith.constant 0 : index
    %435 = vector.load %arg10[%c0_405, %c6_406, %c0_407] : memref<2x14x38xf32, #tpu.memory_space<vmem>>, vector<1x8x38xf32>
    %436 = vector.shape_cast %435 : vector<1x8x38xf32> to vector<8x38xf32>
    %c0_408 = arith.constant 0 : index
    %c6_409 = arith.constant 6 : index
    %c0_410 = arith.constant 0 : index
    %c0_411 = arith.constant 0 : index
    %437 = vector.load %arg5[%c0_408, %c6_409, %c0_410, %c0_411] : memref<2x7x38x32xf32, #tpu.memory_space<vmem>>, vector<1x1x38x32xf32>
    %438 = vector.shape_cast %437 : vector<1x1x38x32xf32> to vector<38x32xf32>
    %cst_412 = arith.constant dense<0.000000e+00> : vector<8x32xf32>
    %439 = tpu.matmul %436, %438, %cst_412 {dimension_numbers = #tpu.dot_dimension_numbers<[1], [0], [0], [1], [0, 0, 1, 1], [], []>} : vector<8x38xf32>, vector<38x32xf32>, vector<8x32xf32> -> vector<8x32xf32>
    %440 = arith.addf %434, %439 : vector<8x32xf32>
    %c1_413 = arith.constant 1 : index
    %c0_414 = arith.constant 0 : index
    %c0_415 = arith.constant 0 : index
    %441 = vector.load %arg10[%c1_413, %c0_414, %c0_415] : memref<2x14x38xf32, #tpu.memory_space<vmem>>, vector<1x8x38xf32>
    %442 = vector.shape_cast %441 : vector<1x8x38xf32> to vector<8x38xf32>
    %c1_416 = arith.constant 1 : index
    %c0_417 = arith.constant 0 : index
    %c0_418 = arith.constant 0 : index
    %c0_419 = arith.constant 0 : index
    %443 = vector.load %arg5[%c1_416, %c0_417, %c0_418, %c0_419] : memref<2x7x38x32xf32, #tpu.memory_space<vmem>>, vector<1x1x38x32xf32>
    %444 = vector.shape_cast %443 : vector<1x1x38x32xf32> to vector<38x32xf32>
    %cst_420 = arith.constant dense<0.000000e+00> : vector<8x32xf32>
    %445 = tpu.matmul %442, %444, %cst_420 {dimension_numbers = #tpu.dot_dimension_numbers<[1], [0], [0], [1], [0, 0, 1, 1], [], []>} : vector<8x38xf32>, vector<38x32xf32>, vector<8x32xf32> -> vector<8x32xf32>
    %446 = arith.addf %440, %445 : vector<8x32xf32>
    %c1_421 = arith.constant 1 : index
    %c1_422 = arith.constant 1 : index
    %c0_423 = arith.constant 0 : index
    %447 = vector.load %arg10[%c1_421, %c1_422, %c0_423] : memref<2x14x38xf32, #tpu.memory_space<vmem>>, vector<1x8x38xf32>
    %448 = vector.shape_cast %447 : vector<1x8x38xf32> to vector<8x38xf32>
    %c1_424 = arith.constant 1 : index
    %c1_425 = arith.constant 1 : index
    %c0_426 = arith.constant 0 : index
    %c0_427 = arith.constant 0 : index
    %449 = vector.load %arg5[%c1_424, %c1_425, %c0_426, %c0_427] : memref<2x7x38x32xf32, #tpu.memory_space<vmem>>, vector<1x1x38x32xf32>
    %450 = vector.shape_cast %449 : vector<1x1x38x32xf32> to vector<38x32xf32>
    %cst_428 = arith.constant dense<0.000000e+00> : vector<8x32xf32>
    %451 = tpu.matmul %448, %450, %cst_428 {dimension_numbers = #tpu.dot_dimension_numbers<[1], [0], [0], [1], [0, 0, 1, 1], [], []>} : vector<8x38xf32>, vector<38x32xf32>, vector<8x32xf32> -> vector<8x32xf32>
    %452 = arith.addf %446, %451 : vector<8x32xf32>
    %c1_429 = arith.constant 1 : index
    %c2_430 = arith.constant 2 : index
    %c0_431 = arith.constant 0 : index
    %453 = vector.load %arg10[%c1_429, %c2_430, %c0_431] : memref<2x14x38xf32, #tpu.memory_space<vmem>>, vector<1x8x38xf32>
    %454 = vector.shape_cast %453 : vector<1x8x38xf32> to vector<8x38xf32>
    %c1_432 = arith.constant 1 : index
    %c2_433 = arith.constant 2 : index
    %c0_434 = arith.constant 0 : index
    %c0_435 = arith.constant 0 : index
    %455 = vector.load %arg5[%c1_432, %c2_433, %c0_434, %c0_435] : memref<2x7x38x32xf32, #tpu.memory_space<vmem>>, vector<1x1x38x32xf32>
    %456 = vector.shape_cast %455 : vector<1x1x38x32xf32> to vector<38x32xf32>
    %cst_436 = arith.constant dense<0.000000e+00> : vector<8x32xf32>
    %457 = tpu.matmul %454, %456, %cst_436 {dimension_numbers = #tpu.dot_dimension_numbers<[1], [0], [0], [1], [0, 0, 1, 1], [], []>} : vector<8x38xf32>, vector<38x32xf32>, vector<8x32xf32> -> vector<8x32xf32>
    %458 = arith.addf %452, %457 : vector<8x32xf32>
    %c1_437 = arith.constant 1 : index
    %c3_438 = arith.constant 3 : index
    %c0_439 = arith.constant 0 : index
    %459 = vector.load %arg10[%c1_437, %c3_438, %c0_439] : memref<2x14x38xf32, #tpu.memory_space<vmem>>, vector<1x8x38xf32>
    %460 = vector.shape_cast %459 : vector<1x8x38xf32> to vector<8x38xf32>
    %c1_440 = arith.constant 1 : index
    %c3_441 = arith.constant 3 : index
    %c0_442 = arith.constant 0 : index
    %c0_443 = arith.constant 0 : index
    %461 = vector.load %arg5[%c1_440, %c3_441, %c0_442, %c0_443] : memref<2x7x38x32xf32, #tpu.memory_space<vmem>>, vector<1x1x38x32xf32>
    %462 = vector.shape_cast %461 : vector<1x1x38x32xf32> to vector<38x32xf32>
    %cst_444 = arith.constant dense<0.000000e+00> : vector<8x32xf32>
    %463 = tpu.matmul %460, %462, %cst_444 {dimension_numbers = #tpu.dot_dimension_numbers<[1], [0], [0], [1], [0, 0, 1, 1], [], []>} : vector<8x38xf32>, vector<38x32xf32>, vector<8x32xf32> -> vector<8x32xf32>
    %464 = arith.addf %458, %463 : vector<8x32xf32>
    %c1_445 = arith.constant 1 : index
    %c4_446 = arith.constant 4 : index
    %c0_447 = arith.constant 0 : index
    %465 = vector.load %arg10[%c1_445, %c4_446, %c0_447] : memref<2x14x38xf32, #tpu.memory_space<vmem>>, vector<1x8x38xf32>
    %466 = vector.shape_cast %465 : vector<1x8x38xf32> to vector<8x38xf32>
    %c1_448 = arith.constant 1 : index
    %c4_449 = arith.constant 4 : index
    %c0_450 = arith.constant 0 : index
    %c0_451 = arith.constant 0 : index
    %467 = vector.load %arg5[%c1_448, %c4_449, %c0_450, %c0_451] : memref<2x7x38x32xf32, #tpu.memory_space<vmem>>, vector<1x1x38x32xf32>
    %468 = vector.shape_cast %467 : vector<1x1x38x32xf32> to vector<38x32xf32>
    %cst_452 = arith.constant dense<0.000000e+00> : vector<8x32xf32>
    %469 = tpu.matmul %466, %468, %cst_452 {dimension_numbers = #tpu.dot_dimension_numbers<[1], [0], [0], [1], [0, 0, 1, 1], [], []>} : vector<8x38xf32>, vector<38x32xf32>, vector<8x32xf32> -> vector<8x32xf32>
    %470 = arith.addf %464, %469 : vector<8x32xf32>
    %c1_453 = arith.constant 1 : index
    %c5_454 = arith.constant 5 : index
    %c0_455 = arith.constant 0 : index
    %471 = vector.load %arg10[%c1_453, %c5_454, %c0_455] : memref<2x14x38xf32, #tpu.memory_space<vmem>>, vector<1x8x38xf32>
    %472 = vector.shape_cast %471 : vector<1x8x38xf32> to vector<8x38xf32>
    %c1_456 = arith.constant 1 : index
    %c5_457 = arith.constant 5 : index
    %c0_458 = arith.constant 0 : index
    %c0_459 = arith.constant 0 : index
    %473 = vector.load %arg5[%c1_456, %c5_457, %c0_458, %c0_459] : memref<2x7x38x32xf32, #tpu.memory_space<vmem>>, vector<1x1x38x32xf32>
    %474 = vector.shape_cast %473 : vector<1x1x38x32xf32> to vector<38x32xf32>
    %cst_460 = arith.constant dense<0.000000e+00> : vector<8x32xf32>
    %475 = tpu.matmul %472, %474, %cst_460 {dimension_numbers = #tpu.dot_dimension_numbers<[1], [0], [0], [1], [0, 0, 1, 1], [], []>} : vector<8x38xf32>, vector<38x32xf32>, vector<8x32xf32> -> vector<8x32xf32>
    %476 = arith.addf %470, %475 : vector<8x32xf32>
    %c1_461 = arith.constant 1 : index
    %c6_462 = arith.constant 6 : index
    %c0_463 = arith.constant 0 : index
    %477 = vector.load %arg10[%c1_461, %c6_462, %c0_463] : memref<2x14x38xf32, #tpu.memory_space<vmem>>, vector<1x8x38xf32>
    %478 = vector.shape_cast %477 : vector<1x8x38xf32> to vector<8x38xf32>
    %c1_464 = arith.constant 1 : index
    %c6_465 = arith.constant 6 : index
    %c0_466 = arith.constant 0 : index
    %c0_467 = arith.constant 0 : index
    %479 = vector.load %arg5[%c1_464, %c6_465, %c0_466, %c0_467] : memref<2x7x38x32xf32, #tpu.memory_space<vmem>>, vector<1x1x38x32xf32>
    %480 = vector.shape_cast %479 : vector<1x1x38x32xf32> to vector<38x32xf32>
    %cst_468 = arith.constant dense<0.000000e+00> : vector<8x32xf32>
    %481 = tpu.matmul %478, %480, %cst_468 {dimension_numbers = #tpu.dot_dimension_numbers<[1], [0], [0], [1], [0, 0, 1, 1], [], []>} : vector<8x38xf32>, vector<38x32xf32>, vector<8x32xf32> -> vector<8x32xf32>
    %482 = arith.addf %476, %481 : vector<8x32xf32>
    %483 = arith.negf %482 : vector<8x32xf32>
    %484 = math.exp %483 : vector<8x32xf32>
    %cst_469 = arith.constant 1.000000e+00 : f32
    %485 = vector.broadcast %cst_469 : f32 to vector<8x32xf32>
    %486 = arith.addf %485, %484 : vector<8x32xf32>
    %487 = arith.divf %485, %486 : vector<8x32xf32>
    %cst_470 = arith.constant 0.000000e+00 : f32
    %488 = vector.broadcast %cst_470 : f32 to vector<32x8xf32>
    %c0_471 = arith.constant 0 : index
    %c0_472 = arith.constant 0 : index
    %c0_473 = arith.constant 0 : index
    %489 = vector.load %arg11[%c0_471, %c0_472, %c0_473] : memref<2x38x14xf32, #tpu.memory_space<vmem>>, vector<1x32x14xf32>
    %490 = vector.shape_cast %489 : vector<1x32x14xf32> to vector<32x14xf32>
    %c0_474 = arith.constant 0 : index
    %c0_475 = arith.constant 0 : index
    %c0_476 = arith.constant 0 : index
    %c0_477 = arith.constant 0 : index
    %491 = vector.load %arg6[%c0_474, %c0_475, %c0_476, %c0_477] : memref<2x7x14x8xf32, #tpu.memory_space<vmem>>, vector<1x1x14x8xf32>
    %492 = vector.shape_cast %491 : vector<1x1x14x8xf32> to vector<14x8xf32>
    %cst_478 = arith.constant dense<0.000000e+00> : vector<32x8xf32>
    %493 = tpu.matmul %490, %492, %cst_478 {dimension_numbers = #tpu.dot_dimension_numbers<[1], [0], [0], [1], [0, 0, 1, 1], [], []>} : vector<32x14xf32>, vector<14x8xf32>, vector<32x8xf32> -> vector<32x8xf32>
    %494 = arith.addf %488, %493 : vector<32x8xf32>
    %c0_479 = arith.constant 0 : index
    %c1_480 = arith.constant 1 : index
    %c0_481 = arith.constant 0 : index
    %495 = vector.load %arg11[%c0_479, %c1_480, %c0_481] : memref<2x38x14xf32, #tpu.memory_space<vmem>>, vector<1x32x14xf32>
    %496 = vector.shape_cast %495 : vector<1x32x14xf32> to vector<32x14xf32>
    %c0_482 = arith.constant 0 : index
    %c1_483 = arith.constant 1 : index
    %c0_484 = arith.constant 0 : index
    %c0_485 = arith.constant 0 : index
    %497 = vector.load %arg6[%c0_482, %c1_483, %c0_484, %c0_485] : memref<2x7x14x8xf32, #tpu.memory_space<vmem>>, vector<1x1x14x8xf32>
    %498 = vector.shape_cast %497 : vector<1x1x14x8xf32> to vector<14x8xf32>
    %cst_486 = arith.constant dense<0.000000e+00> : vector<32x8xf32>
    %499 = tpu.matmul %496, %498, %cst_486 {dimension_numbers = #tpu.dot_dimension_numbers<[1], [0], [0], [1], [0, 0, 1, 1], [], []>} : vector<32x14xf32>, vector<14x8xf32>, vector<32x8xf32> -> vector<32x8xf32>
    %500 = arith.addf %494, %499 : vector<32x8xf32>
    %c0_487 = arith.constant 0 : index
    %c2_488 = arith.constant 2 : index
    %c0_489 = arith.constant 0 : index
    %501 = vector.load %arg11[%c0_487, %c2_488, %c0_489] : memref<2x38x14xf32, #tpu.memory_space<vmem>>, vector<1x32x14xf32>
    %502 = vector.shape_cast %501 : vector<1x32x14xf32> to vector<32x14xf32>
    %c0_490 = arith.constant 0 : index
    %c2_491 = arith.constant 2 : index
    %c0_492 = arith.constant 0 : index
    %c0_493 = arith.constant 0 : index
    %503 = vector.load %arg6[%c0_490, %c2_491, %c0_492, %c0_493] : memref<2x7x14x8xf32, #tpu.memory_space<vmem>>, vector<1x1x14x8xf32>
    %504 = vector.shape_cast %503 : vector<1x1x14x8xf32> to vector<14x8xf32>
    %cst_494 = arith.constant dense<0.000000e+00> : vector<32x8xf32>
    %505 = tpu.matmul %502, %504, %cst_494 {dimension_numbers = #tpu.dot_dimension_numbers<[1], [0], [0], [1], [0, 0, 1, 1], [], []>} : vector<32x14xf32>, vector<14x8xf32>, vector<32x8xf32> -> vector<32x8xf32>
    %506 = arith.addf %500, %505 : vector<32x8xf32>
    %c0_495 = arith.constant 0 : index
    %c3_496 = arith.constant 3 : index
    %c0_497 = arith.constant 0 : index
    %507 = vector.load %arg11[%c0_495, %c3_496, %c0_497] : memref<2x38x14xf32, #tpu.memory_space<vmem>>, vector<1x32x14xf32>
    %508 = vector.shape_cast %507 : vector<1x32x14xf32> to vector<32x14xf32>
    %c0_498 = arith.constant 0 : index
    %c3_499 = arith.constant 3 : index
    %c0_500 = arith.constant 0 : index
    %c0_501 = arith.constant 0 : index
    %509 = vector.load %arg6[%c0_498, %c3_499, %c0_500, %c0_501] : memref<2x7x14x8xf32, #tpu.memory_space<vmem>>, vector<1x1x14x8xf32>
    %510 = vector.shape_cast %509 : vector<1x1x14x8xf32> to vector<14x8xf32>
    %cst_502 = arith.constant dense<0.000000e+00> : vector<32x8xf32>
    %511 = tpu.matmul %508, %510, %cst_502 {dimension_numbers = #tpu.dot_dimension_numbers<[1], [0], [0], [1], [0, 0, 1, 1], [], []>} : vector<32x14xf32>, vector<14x8xf32>, vector<32x8xf32> -> vector<32x8xf32>
    %512 = arith.addf %506, %511 : vector<32x8xf32>
    %c0_503 = arith.constant 0 : index
    %c4_504 = arith.constant 4 : index
    %c0_505 = arith.constant 0 : index
    %513 = vector.load %arg11[%c0_503, %c4_504, %c0_505] : memref<2x38x14xf32, #tpu.memory_space<vmem>>, vector<1x32x14xf32>
    %514 = vector.shape_cast %513 : vector<1x32x14xf32> to vector<32x14xf32>
    %c0_506 = arith.constant 0 : index
    %c4_507 = arith.constant 4 : index
    %c0_508 = arith.constant 0 : index
    %c0_509 = arith.constant 0 : index
    %515 = vector.load %arg6[%c0_506, %c4_507, %c0_508, %c0_509] : memref<2x7x14x8xf32, #tpu.memory_space<vmem>>, vector<1x1x14x8xf32>
    %516 = vector.shape_cast %515 : vector<1x1x14x8xf32> to vector<14x8xf32>
    %cst_510 = arith.constant dense<0.000000e+00> : vector<32x8xf32>
    %517 = tpu.matmul %514, %516, %cst_510 {dimension_numbers = #tpu.dot_dimension_numbers<[1], [0], [0], [1], [0, 0, 1, 1], [], []>} : vector<32x14xf32>, vector<14x8xf32>, vector<32x8xf32> -> vector<32x8xf32>
    %518 = arith.addf %512, %517 : vector<32x8xf32>
    %c0_511 = arith.constant 0 : index
    %c5_512 = arith.constant 5 : index
    %c0_513 = arith.constant 0 : index
    %519 = vector.load %arg11[%c0_511, %c5_512, %c0_513] : memref<2x38x14xf32, #tpu.memory_space<vmem>>, vector<1x32x14xf32>
    %520 = vector.shape_cast %519 : vector<1x32x14xf32> to vector<32x14xf32>
    %c0_514 = arith.constant 0 : index
    %c5_515 = arith.constant 5 : index
    %c0_516 = arith.constant 0 : index
    %c0_517 = arith.constant 0 : index
    %521 = vector.load %arg6[%c0_514, %c5_515, %c0_516, %c0_517] : memref<2x7x14x8xf32, #tpu.memory_space<vmem>>, vector<1x1x14x8xf32>
    %522 = vector.shape_cast %521 : vector<1x1x14x8xf32> to vector<14x8xf32>
    %cst_518 = arith.constant dense<0.000000e+00> : vector<32x8xf32>
    %523 = tpu.matmul %520, %522, %cst_518 {dimension_numbers = #tpu.dot_dimension_numbers<[1], [0], [0], [1], [0, 0, 1, 1], [], []>} : vector<32x14xf32>, vector<14x8xf32>, vector<32x8xf32> -> vector<32x8xf32>
    %524 = arith.addf %518, %523 : vector<32x8xf32>
    %c0_519 = arith.constant 0 : index
    %c6_520 = arith.constant 6 : index
    %c0_521 = arith.constant 0 : index
    %525 = vector.load %arg11[%c0_519, %c6_520, %c0_521] : memref<2x38x14xf32, #tpu.memory_space<vmem>>, vector<1x32x14xf32>
    %526 = vector.shape_cast %525 : vector<1x32x14xf32> to vector<32x14xf32>
    %c0_522 = arith.constant 0 : index
    %c6_523 = arith.constant 6 : index
    %c0_524 = arith.constant 0 : index
    %c0_525 = arith.constant 0 : index
    %527 = vector.load %arg6[%c0_522, %c6_523, %c0_524, %c0_525] : memref<2x7x14x8xf32, #tpu.memory_space<vmem>>, vector<1x1x14x8xf32>
    %528 = vector.shape_cast %527 : vector<1x1x14x8xf32> to vector<14x8xf32>
    %cst_526 = arith.constant dense<0.000000e+00> : vector<32x8xf32>
    %529 = tpu.matmul %526, %528, %cst_526 {dimension_numbers = #tpu.dot_dimension_numbers<[1], [0], [0], [1], [0, 0, 1, 1], [], []>} : vector<32x14xf32>, vector<14x8xf32>, vector<32x8xf32> -> vector<32x8xf32>
    %530 = arith.addf %524, %529 : vector<32x8xf32>
    %c1_527 = arith.constant 1 : index
    %c0_528 = arith.constant 0 : index
    %c0_529 = arith.constant 0 : index
    %531 = vector.load %arg11[%c1_527, %c0_528, %c0_529] : memref<2x38x14xf32, #tpu.memory_space<vmem>>, vector<1x32x14xf32>
    %532 = vector.shape_cast %531 : vector<1x32x14xf32> to vector<32x14xf32>
    %c1_530 = arith.constant 1 : index
    %c0_531 = arith.constant 0 : index
    %c0_532 = arith.constant 0 : index
    %c0_533 = arith.constant 0 : index
    %533 = vector.load %arg6[%c1_530, %c0_531, %c0_532, %c0_533] : memref<2x7x14x8xf32, #tpu.memory_space<vmem>>, vector<1x1x14x8xf32>
    %534 = vector.shape_cast %533 : vector<1x1x14x8xf32> to vector<14x8xf32>
    %cst_534 = arith.constant dense<0.000000e+00> : vector<32x8xf32>
    %535 = tpu.matmul %532, %534, %cst_534 {dimension_numbers = #tpu.dot_dimension_numbers<[1], [0], [0], [1], [0, 0, 1, 1], [], []>} : vector<32x14xf32>, vector<14x8xf32>, vector<32x8xf32> -> vector<32x8xf32>
    %536 = arith.addf %530, %535 : vector<32x8xf32>
    %c1_535 = arith.constant 1 : index
    %c1_536 = arith.constant 1 : index
    %c0_537 = arith.constant 0 : index
    %537 = vector.load %arg11[%c1_535, %c1_536, %c0_537] : memref<2x38x14xf32, #tpu.memory_space<vmem>>, vector<1x32x14xf32>
    %538 = vector.shape_cast %537 : vector<1x32x14xf32> to vector<32x14xf32>
    %c1_538 = arith.constant 1 : index
    %c1_539 = arith.constant 1 : index
    %c0_540 = arith.constant 0 : index
    %c0_541 = arith.constant 0 : index
    %539 = vector.load %arg6[%c1_538, %c1_539, %c0_540, %c0_541] : memref<2x7x14x8xf32, #tpu.memory_space<vmem>>, vector<1x1x14x8xf32>
    %540 = vector.shape_cast %539 : vector<1x1x14x8xf32> to vector<14x8xf32>
    %cst_542 = arith.constant dense<0.000000e+00> : vector<32x8xf32>
    %541 = tpu.matmul %538, %540, %cst_542 {dimension_numbers = #tpu.dot_dimension_numbers<[1], [0], [0], [1], [0, 0, 1, 1], [], []>} : vector<32x14xf32>, vector<14x8xf32>, vector<32x8xf32> -> vector<32x8xf32>
    %542 = arith.addf %536, %541 : vector<32x8xf32>
    %c1_543 = arith.constant 1 : index
    %c2_544 = arith.constant 2 : index
    %c0_545 = arith.constant 0 : index
    %543 = vector.load %arg11[%c1_543, %c2_544, %c0_545] : memref<2x38x14xf32, #tpu.memory_space<vmem>>, vector<1x32x14xf32>
    %544 = vector.shape_cast %543 : vector<1x32x14xf32> to vector<32x14xf32>
    %c1_546 = arith.constant 1 : index
    %c2_547 = arith.constant 2 : index
    %c0_548 = arith.constant 0 : index
    %c0_549 = arith.constant 0 : index
    %545 = vector.load %arg6[%c1_546, %c2_547, %c0_548, %c0_549] : memref<2x7x14x8xf32, #tpu.memory_space<vmem>>, vector<1x1x14x8xf32>
    %546 = vector.shape_cast %545 : vector<1x1x14x8xf32> to vector<14x8xf32>
    %cst_550 = arith.constant dense<0.000000e+00> : vector<32x8xf32>
    %547 = tpu.matmul %544, %546, %cst_550 {dimension_numbers = #tpu.dot_dimension_numbers<[1], [0], [0], [1], [0, 0, 1, 1], [], []>} : vector<32x14xf32>, vector<14x8xf32>, vector<32x8xf32> -> vector<32x8xf32>
    %548 = arith.addf %542, %547 : vector<32x8xf32>
    %c1_551 = arith.constant 1 : index
    %c3_552 = arith.constant 3 : index
    %c0_553 = arith.constant 0 : index
    %549 = vector.load %arg11[%c1_551, %c3_552, %c0_553] : memref<2x38x14xf32, #tpu.memory_space<vmem>>, vector<1x32x14xf32>
    %550 = vector.shape_cast %549 : vector<1x32x14xf32> to vector<32x14xf32>
    %c1_554 = arith.constant 1 : index
    %c3_555 = arith.constant 3 : index
    %c0_556 = arith.constant 0 : index
    %c0_557 = arith.constant 0 : index
    %551 = vector.load %arg6[%c1_554, %c3_555, %c0_556, %c0_557] : memref<2x7x14x8xf32, #tpu.memory_space<vmem>>, vector<1x1x14x8xf32>
    %552 = vector.shape_cast %551 : vector<1x1x14x8xf32> to vector<14x8xf32>
    %cst_558 = arith.constant dense<0.000000e+00> : vector<32x8xf32>
    %553 = tpu.matmul %550, %552, %cst_558 {dimension_numbers = #tpu.dot_dimension_numbers<[1], [0], [0], [1], [0, 0, 1, 1], [], []>} : vector<32x14xf32>, vector<14x8xf32>, vector<32x8xf32> -> vector<32x8xf32>
    %554 = arith.addf %548, %553 : vector<32x8xf32>
    %c1_559 = arith.constant 1 : index
    %c4_560 = arith.constant 4 : index
    %c0_561 = arith.constant 0 : index
    %555 = vector.load %arg11[%c1_559, %c4_560, %c0_561] : memref<2x38x14xf32, #tpu.memory_space<vmem>>, vector<1x32x14xf32>
    %556 = vector.shape_cast %555 : vector<1x32x14xf32> to vector<32x14xf32>
    %c1_562 = arith.constant 1 : index
    %c4_563 = arith.constant 4 : index
    %c0_564 = arith.constant 0 : index
    %c0_565 = arith.constant 0 : index
    %557 = vector.load %arg6[%c1_562, %c4_563, %c0_564, %c0_565] : memref<2x7x14x8xf32, #tpu.memory_space<vmem>>, vector<1x1x14x8xf32>
    %558 = vector.shape_cast %557 : vector<1x1x14x8xf32> to vector<14x8xf32>
    %cst_566 = arith.constant dense<0.000000e+00> : vector<32x8xf32>
    %559 = tpu.matmul %556, %558, %cst_566 {dimension_numbers = #tpu.dot_dimension_numbers<[1], [0], [0], [1], [0, 0, 1, 1], [], []>} : vector<32x14xf32>, vector<14x8xf32>, vector<32x8xf32> -> vector<32x8xf32>
    %560 = arith.addf %554, %559 : vector<32x8xf32>
    %c1_567 = arith.constant 1 : index
    %c5_568 = arith.constant 5 : index
    %c0_569 = arith.constant 0 : index
    %561 = vector.load %arg11[%c1_567, %c5_568, %c0_569] : memref<2x38x14xf32, #tpu.memory_space<vmem>>, vector<1x32x14xf32>
    %562 = vector.shape_cast %561 : vector<1x32x14xf32> to vector<32x14xf32>
    %c1_570 = arith.constant 1 : index
    %c5_571 = arith.constant 5 : index
    %c0_572 = arith.constant 0 : index
    %c0_573 = arith.constant 0 : index
    %563 = vector.load %arg6[%c1_570, %c5_571, %c0_572, %c0_573] : memref<2x7x14x8xf32, #tpu.memory_space<vmem>>, vector<1x1x14x8xf32>
    %564 = vector.shape_cast %563 : vector<1x1x14x8xf32> to vector<14x8xf32>
    %cst_574 = arith.constant dense<0.000000e+00> : vector<32x8xf32>
    %565 = tpu.matmul %562, %564, %cst_574 {dimension_numbers = #tpu.dot_dimension_numbers<[1], [0], [0], [1], [0, 0, 1, 1], [], []>} : vector<32x14xf32>, vector<14x8xf32>, vector<32x8xf32> -> vector<32x8xf32>
    %566 = arith.addf %560, %565 : vector<32x8xf32>
    %c1_575 = arith.constant 1 : index
    %c6_576 = arith.constant 6 : index
    %c0_577 = arith.constant 0 : index
    %567 = vector.load %arg11[%c1_575, %c6_576, %c0_577] : memref<2x38x14xf32, #tpu.memory_space<vmem>>, vector<1x32x14xf32>
    %568 = vector.shape_cast %567 : vector<1x32x14xf32> to vector<32x14xf32>
    %c1_578 = arith.constant 1 : index
    %c6_579 = arith.constant 6 : index
    %c0_580 = arith.constant 0 : index
    %c0_581 = arith.constant 0 : index
    %569 = vector.load %arg6[%c1_578, %c6_579, %c0_580, %c0_581] : memref<2x7x14x8xf32, #tpu.memory_space<vmem>>, vector<1x1x14x8xf32>
    %570 = vector.shape_cast %569 : vector<1x1x14x8xf32> to vector<14x8xf32>
    %cst_582 = arith.constant dense<0.000000e+00> : vector<32x8xf32>
    %571 = tpu.matmul %568, %570, %cst_582 {dimension_numbers = #tpu.dot_dimension_numbers<[1], [0], [0], [1], [0, 0, 1, 1], [], []>} : vector<32x14xf32>, vector<14x8xf32>, vector<32x8xf32> -> vector<32x8xf32>
    %572 = arith.addf %566, %571 : vector<32x8xf32>
    %573 = arith.negf %572 : vector<32x8xf32>
    %574 = math.exp %573 : vector<32x8xf32>
    %cst_583 = arith.constant 1.000000e+00 : f32
    %575 = vector.broadcast %cst_583 : f32 to vector<32x8xf32>
    %576 = arith.addf %575, %574 : vector<32x8xf32>
    %577 = arith.divf %575, %576 : vector<32x8xf32>
    %578 = vector.extract_strided_slice %487 {offsets = [0, 0], sizes = [1, 32], strides = [1, 1]} : vector<8x32xf32> to vector<1x32xf32>
    %579 = vector.broadcast %578 : vector<1x32xf32> to vector<32x32xf32>
    %580 = arith.addf %397, %579 : vector<32x32xf32>
    %581 = vector.extract_strided_slice %577 {offsets = [0, 0], sizes = [32, 1], strides = [1, 1]} : vector<32x8xf32> to vector<32x1xf32>
    %582 = vector.broadcast %581 : vector<32x1xf32> to vector<32x32xf32>
    %583 = arith.addf %580, %582 : vector<32x32xf32>
    %cst_584 = arith.constant 0.333333343 : f32
    %584 = vector.broadcast %cst_584 : f32 to vector<32x32xf32>
    %585 = arith.mulf %583, %584 : vector<32x32xf32>
    %c0_585 = arith.constant 0 : index
    %c0_586 = arith.constant 0 : index
    %c0_587 = arith.constant 0 : index
    %586 = vector.load %arg8[%c0_585, %c0_586, %c0_587] : memref<8x32x32xf32, #tpu.memory_space<vmem>>, vector<1x32x32xf32>
    %587 = vector.shape_cast %586 : vector<1x32x32xf32> to vector<32x32xf32>
    %588 = arith.mulf %587, %585 : vector<32x32xf32>
    %c0_588 = arith.constant 0 : index
    %c0_589 = arith.constant 0 : index
    %c0_590 = arith.constant 0 : index
    %c0_591 = arith.constant 0 : index
    %589 = vector.load %arg7[%c0_588, %c0_589, %c0_590, %c0_591] : memref<1x8x32x32xf32, #tpu.memory_space<vmem>>, vector<1x1x32x32xf32>
    %590 = vector.shape_cast %589 : vector<1x1x32x32xf32> to vector<32x32xf32>
    %591 = vector.shape_cast %588 : vector<32x32xf32> to vector<1x1x32x32xf32>
    tpu.vector_store %arg7[%c0_588, %c0_589, %c0_590, %c0_591], %591 {strides = array<i32>} : memref<1x8x32x32xf32, #tpu.memory_space<vmem>>, vector<1x1x32x32xf32>,
    %592 = vector.extract_strided_slice %487 {offsets = [1, 0], sizes = [1, 32], strides = [1, 1]} : vector<8x32xf32> to vector<1x32xf32>
    %593 = vector.broadcast %592 : vector<1x32xf32> to vector<32x32xf32>
    %594 = arith.addf %397, %593 : vector<32x32xf32>
    %595 = vector.extract_strided_slice %577 {offsets = [0, 1], sizes = [32, 1], strides = [1, 1]} : vector<32x8xf32> to vector<32x1xf32>
    %596 = vector.broadcast %595 : vector<32x1xf32> to vector<32x32xf32>
    %597 = arith.addf %594, %596 : vector<32x32xf32>
    %cst_592 = arith.constant 0.333333343 : f32
    %598 = vector.broadcast %cst_592 : f32 to vector<32x32xf32>
    %599 = arith.mulf %597, %598 : vector<32x32xf32>
    %c1_593 = arith.constant 1 : index
    %c0_594 = arith.constant 0 : index
    %c0_595 = arith.constant 0 : index
    %600 = vector.load %arg8[%c1_593, %c0_594, %c0_595] : memref<8x32x32xf32, #tpu.memory_space<vmem>>, vector<1x32x32xf32>
    %601 = vector.shape_cast %600 : vector<1x32x32xf32> to vector<32x32xf32>
    %602 = arith.mulf %601, %599 : vector<32x32xf32>
    %c0_596 = arith.constant 0 : index
    %c1_597 = arith.constant 1 : index
    %c0_598 = arith.constant 0 : index
    %c0_599 = arith.constant 0 : index
    %603 = vector.load %arg7[%c0_596, %c1_597, %c0_598, %c0_599] : memref<1x8x32x32xf32, #tpu.memory_space<vmem>>, vector<1x1x32x32xf32>
    %604 = vector.shape_cast %603 : vector<1x1x32x32xf32> to vector<32x32xf32>
    %605 = vector.shape_cast %602 : vector<32x32xf32> to vector<1x1x32x32xf32>
    tpu.vector_store %arg7[%c0_596, %c1_597, %c0_598, %c0_599], %605 {strides = array<i32>} : memref<1x8x32x32xf32, #tpu.memory_space<vmem>>, vector<1x1x32x32xf32>,
    %606 = vector.extract_strided_slice %487 {offsets = [2, 0], sizes = [1, 32], strides = [1, 1]} : vector<8x32xf32> to vector<1x32xf32>
    %607 = vector.broadcast %606 : vector<1x32xf32> to vector<32x32xf32>
    %608 = arith.addf %397, %607 : vector<32x32xf32>
    %609 = vector.extract_strided_slice %577 {offsets = [0, 2], sizes = [32, 1], strides = [1, 1]} : vector<32x8xf32> to vector<32x1xf32>
    %610 = vector.broadcast %609 : vector<32x1xf32> to vector<32x32xf32>
    %611 = arith.addf %608, %610 : vector<32x32xf32>
    %cst_600 = arith.constant 0.333333343 : f32
    %612 = vector.broadcast %cst_600 : f32 to vector<32x32xf32>
    %613 = arith.mulf %611, %612 : vector<32x32xf32>
    %c2_601 = arith.constant 2 : index
    %c0_602 = arith.constant 0 : index
    %c0_603 = arith.constant 0 : index
    %614 = vector.load %arg8[%c2_601, %c0_602, %c0_603] : memref<8x32x32xf32, #tpu.memory_space<vmem>>, vector<1x32x32xf32>
    %615 = vector.shape_cast %614 : vector<1x32x32xf32> to vector<32x32xf32>
    %616 = arith.mulf %615, %613 : vector<32x32xf32>
    %c0_604 = arith.constant 0 : index
    %c2_605 = arith.constant 2 : index
    %c0_606 = arith.constant 0 : index
    %c0_607 = arith.constant 0 : index
    %617 = vector.load %arg7[%c0_604, %c2_605, %c0_606, %c0_607] : memref<1x8x32x32xf32, #tpu.memory_space<vmem>>, vector<1x1x32x32xf32>
    %618 = vector.shape_cast %617 : vector<1x1x32x32xf32> to vector<32x32xf32>
    %619 = vector.shape_cast %616 : vector<32x32xf32> to vector<1x1x32x32xf32>
    tpu.vector_store %arg7[%c0_604, %c2_605, %c0_606, %c0_607], %619 {strides = array<i32>} : memref<1x8x32x32xf32, #tpu.memory_space<vmem>>, vector<1x1x32x32xf32>,
    %620 = vector.extract_strided_slice %487 {offsets = [3, 0], sizes = [1, 32], strides = [1, 1]} : vector<8x32xf32> to vector<1x32xf32>
    %621 = vector.broadcast %620 : vector<1x32xf32> to vector<32x32xf32>
    %622 = arith.addf %397, %621 : vector<32x32xf32>
    %623 = vector.extract_strided_slice %577 {offsets = [0, 3], sizes = [32, 1], strides = [1, 1]} : vector<32x8xf32> to vector<32x1xf32>
    %624 = vector.broadcast %623 : vector<32x1xf32> to vector<32x32xf32>
    %625 = arith.addf %622, %624 : vector<32x32xf32>
    %cst_608 = arith.constant 0.333333343 : f32
    %626 = vector.broadcast %cst_608 : f32 to vector<32x32xf32>
    %627 = arith.mulf %625, %626 : vector<32x32xf32>
    %c3_609 = arith.constant 3 : index
    %c0_610 = arith.constant 0 : index
    %c0_611 = arith.constant 0 : index
    %628 = vector.load %arg8[%c3_609, %c0_610, %c0_611] : memref<8x32x32xf32, #tpu.memory_space<vmem>>, vector<1x32x32xf32>
    %629 = vector.shape_cast %628 : vector<1x32x32xf32> to vector<32x32xf32>
    %630 = arith.mulf %629, %627 : vector<32x32xf32>
    %c0_612 = arith.constant 0 : index
    %c3_613 = arith.constant 3 : index
    %c0_614 = arith.constant 0 : index
    %c0_615 = arith.constant 0 : index
    %631 = vector.load %arg7[%c0_612, %c3_613, %c0_614, %c0_615] : memref<1x8x32x32xf32, #tpu.memory_space<vmem>>, vector<1x1x32x32xf32>
    %632 = vector.shape_cast %631 : vector<1x1x32x32xf32> to vector<32x32xf32>
    %633 = vector.shape_cast %630 : vector<32x32xf32> to vector<1x1x32x32xf32>
    tpu.vector_store %arg7[%c0_612, %c3_613, %c0_614, %c0_615], %633 {strides = array<i32>} : memref<1x8x32x32xf32, #tpu.memory_space<vmem>>, vector<1x1x32x32xf32>,
    %634 = vector.extract_strided_slice %487 {offsets = [4, 0], sizes = [1, 32], strides = [1, 1]} : vector<8x32xf32> to vector<1x32xf32>
    %635 = vector.broadcast %634 : vector<1x32xf32> to vector<32x32xf32>
    %636 = arith.addf %397, %635 : vector<32x32xf32>
    %637 = vector.extract_strided_slice %577 {offsets = [0, 4], sizes = [32, 1], strides = [1, 1]} : vector<32x8xf32> to vector<32x1xf32>
    %638 = vector.broadcast %637 : vector<32x1xf32> to vector<32x32xf32>
    %639 = arith.addf %636, %638 : vector<32x32xf32>
    %cst_616 = arith.constant 0.333333343 : f32
    %640 = vector.broadcast %cst_616 : f32 to vector<32x32xf32>
    %641 = arith.mulf %639, %640 : vector<32x32xf32>
    %c4_617 = arith.constant 4 : index
    %c0_618 = arith.constant 0 : index
    %c0_619 = arith.constant 0 : index
    %642 = vector.load %arg8[%c4_617, %c0_618, %c0_619] : memref<8x32x32xf32, #tpu.memory_space<vmem>>, vector<1x32x32xf32>
    %643 = vector.shape_cast %642 : vector<1x32x32xf32> to vector<32x32xf32>
    %644 = arith.mulf %643, %641 : vector<32x32xf32>
    %c0_620 = arith.constant 0 : index
    %c4_621 = arith.constant 4 : index
    %c0_622 = arith.constant 0 : index
    %c0_623 = arith.constant 0 : index
    %645 = vector.load %arg7[%c0_620, %c4_621, %c0_622, %c0_623] : memref<1x8x32x32xf32, #tpu.memory_space<vmem>>, vector<1x1x32x32xf32>
    %646 = vector.shape_cast %645 : vector<1x1x32x32xf32> to vector<32x32xf32>
    %647 = vector.shape_cast %644 : vector<32x32xf32> to vector<1x1x32x32xf32>
    tpu.vector_store %arg7[%c0_620, %c4_621, %c0_622, %c0_623], %647 {strides = array<i32>} : memref<1x8x32x32xf32, #tpu.memory_space<vmem>>, vector<1x1x32x32xf32>,
    %648 = vector.extract_strided_slice %487 {offsets = [5, 0], sizes = [1, 32], strides = [1, 1]} : vector<8x32xf32> to vector<1x32xf32>
    %649 = vector.broadcast %648 : vector<1x32xf32> to vector<32x32xf32>
    %650 = arith.addf %397, %649 : vector<32x32xf32>
    %651 = vector.extract_strided_slice %577 {offsets = [0, 5], sizes = [32, 1], strides = [1, 1]} : vector<32x8xf32> to vector<32x1xf32>
    %652 = vector.broadcast %651 : vector<32x1xf32> to vector<32x32xf32>
    %653 = arith.addf %650, %652 : vector<32x32xf32>
    %cst_624 = arith.constant 0.333333343 : f32
    %654 = vector.broadcast %cst_624 : f32 to vector<32x32xf32>
    %655 = arith.mulf %653, %654 : vector<32x32xf32>
    %c5_625 = arith.constant 5 : index
    %c0_626 = arith.constant 0 : index
    %c0_627 = arith.constant 0 : index
    %656 = vector.load %arg8[%c5_625, %c0_626, %c0_627] : memref<8x32x32xf32, #tpu.memory_space<vmem>>, vector<1x32x32xf32>
    %657 = vector.shape_cast %656 : vector<1x32x32xf32> to vector<32x32xf32>
    %658 = arith.mulf %657, %655 : vector<32x32xf32>
    %c0_628 = arith.constant 0 : index
    %c5_629 = arith.constant 5 : index
    %c0_630 = arith.constant 0 : index
    %c0_631 = arith.constant 0 : index
    %659 = vector.load %arg7[%c0_628, %c5_629, %c0_630, %c0_631] : memref<1x8x32x32xf32, #tpu.memory_space<vmem>>, vector<1x1x32x32xf32>
    %660 = vector.shape_cast %659 : vector<1x1x32x32xf32> to vector<32x32xf32>
    %661 = vector.shape_cast %658 : vector<32x32xf32> to vector<1x1x32x32xf32>
    tpu.vector_store %arg7[%c0_628, %c5_629, %c0_630, %c0_631], %661 {strides = array<i32>} : memref<1x8x32x32xf32, #tpu.memory_space<vmem>>, vector<1x1x32x32xf32>,
    %662 = vector.extract_strided_slice %487 {offsets = [6, 0], sizes = [1, 32], strides = [1, 1]} : vector<8x32xf32> to vector<1x32xf32>
    %663 = vector.broadcast %662 : vector<1x32xf32> to vector<32x32xf32>
    %664 = arith.addf %397, %663 : vector<32x32xf32>
    %665 = vector.extract_strided_slice %577 {offsets = [0, 6], sizes = [32, 1], strides = [1, 1]} : vector<32x8xf32> to vector<32x1xf32>
    %666 = vector.broadcast %665 : vector<32x1xf32> to vector<32x32xf32>
    %667 = arith.addf %664, %666 : vector<32x32xf32>
    %cst_632 = arith.constant 0.333333343 : f32
    %668 = vector.broadcast %cst_632 : f32 to vector<32x32xf32>
    %669 = arith.mulf %667, %668 : vector<32x32xf32>
    %c6_633 = arith.constant 6 : index
    %c0_634 = arith.constant 0 : index
    %c0_635 = arith.constant 0 : index
    %670 = vector.load %arg8[%c6_633, %c0_634, %c0_635] : memref<8x32x32xf32, #tpu.memory_space<vmem>>, vector<1x32x32xf32>
    %671 = vector.shape_cast %670 : vector<1x32x32xf32> to vector<32x32xf32>
    %672 = arith.mulf %671, %669 : vector<32x32xf32>
    %c0_636 = arith.constant 0 : index
    %c6_637 = arith.constant 6 : index
    %c0_638 = arith.constant 0 : index
    %c0_639 = arith.constant 0 : index
    %673 = vector.load %arg7[%c0_636, %c6_637, %c0_638, %c0_639] : memref<1x8x32x32xf32, #tpu.memory_space<vmem>>, vector<1x1x32x32xf32>
    %674 = vector.shape_cast %673 : vector<1x1x32x32xf32> to vector<32x32xf32>
    %675 = vector.shape_cast %672 : vector<32x32xf32> to vector<1x1x32x32xf32>
    tpu.vector_store %arg7[%c0_636, %c6_637, %c0_638, %c0_639], %675 {strides = array<i32>} : memref<1x8x32x32xf32, #tpu.memory_space<vmem>>, vector<1x1x32x32xf32>,
    %676 = vector.extract_strided_slice %487 {offsets = [7, 0], sizes = [1, 32], strides = [1, 1]} : vector<8x32xf32> to vector<1x32xf32>
    %677 = vector.broadcast %676 : vector<1x32xf32> to vector<32x32xf32>
    %678 = arith.addf %397, %677 : vector<32x32xf32>
    %679 = vector.extract_strided_slice %577 {offsets = [0, 7], sizes = [32, 1], strides = [1, 1]} : vector<32x8xf32> to vector<32x1xf32>
    %680 = vector.broadcast %679 : vector<32x1xf32> to vector<32x32xf32>
    %681 = arith.addf %678, %680 : vector<32x32xf32>
    %cst_640 = arith.constant 0.333333343 : f32
    %682 = vector.broadcast %cst_640 : f32 to vector<32x32xf32>
    %683 = arith.mulf %681, %682 : vector<32x32xf32>
    %c7_641 = arith.constant 7 : index
    %c0_642 = arith.constant 0 : index
    %c0_643 = arith.constant 0 : index
    %684 = vector.load %arg8[%c7_641, %c0_642, %c0_643] : memref<8x32x32xf32, #tpu.memory_space<vmem>>, vector<1x32x32xf32>
    %685 = vector.shape_cast %684 : vector<1x32x32xf32> to vector<32x32xf32>
    %686 = arith.mulf %685, %683 : vector<32x32xf32>
    %c0_644 = arith.constant 0 : index
    %c7_645 = arith.constant 7 : index
    %c0_646 = arith.constant 0 : index
    %c0_647 = arith.constant 0 : index
    %687 = vector.load %arg7[%c0_644, %c7_645, %c0_646, %c0_647] : memref<1x8x32x32xf32, #tpu.memory_space<vmem>>, vector<1x1x32x32xf32>
    %688 = vector.shape_cast %687 : vector<1x1x32x32xf32> to vector<32x32xf32>
    %689 = vector.shape_cast %686 : vector<32x32xf32> to vector<1x1x32x32xf32>
    tpu.vector_store %arg7[%c0_644, %c7_645, %c0_646, %c0_647], %689 {strides = array<i32>} : memref<1x8x32x32xf32, #tpu.memory_space<vmem>>, vector<1x1x32x32xf32>,
    return
  }
  func.func @transform_0(%arg0: i32) -> (i32, i32, i32) {
    %c0_i32 = arith.constant 0 : i32
    %c0_i32_0 = arith.constant 0 : i32
    %c0_i32_1 = arith.constant 0 : i32
    return %arg0, %c0_i32, %c0_i32_0 : i32, i32, i32
  }
  func.func @transform_1(%arg0: i32) -> (i32, i32) {
    %c0_i32 = arith.constant 0 : i32
    %c0_i32_0 = arith.constant 0 : i32
    %c0_i32_1 = arith.constant 0 : i32
    return %c0_i32, %c0_i32_0 : i32, i32
  }
  func.func @transform_2(%arg0: i32) -> (i32, i32) {
    %c0_i32 = arith.constant 0 : i32
    %c0_i32_0 = arith.constant 0 : i32
    %c0_i32_1 = arith.constant 0 : i32
    return %c0_i32, %c0_i32_0 : i32, i32
  }
  func.func @transform_3(%arg0: i32) -> (i32, i32, i32, i32) {
    %c0_i32 = arith.constant 0 : i32
    %c0_i32_0 = arith.constant 0 : i32
    %c0_i32_1 = arith.constant 0 : i32
    %c0_i32_2 = arith.constant 0 : i32
    %c0_i32_3 = arith.constant 0 : i32
    return %c0_i32, %c0_i32_0, %c0_i32_1, %c0_i32_2 : i32, i32, i32, i32
  }
  func.func @transform_4(%arg0: i32) -> (i32, i32, i32, i32) {
    %c0_i32 = arith.constant 0 : i32
    %c0_i32_0 = arith.constant 0 : i32
    %c0_i32_1 = arith.constant 0 : i32
    %c0_i32_2 = arith.constant 0 : i32
    %c0_i32_3 = arith.constant 0 : i32
    return %c0_i32, %c0_i32_0, %c0_i32_1, %c0_i32_2 : i32, i32, i32, i32
  }
  func.func @transform_5(%arg0: i32) -> (i32, i32, i32, i32) {
    %c0_i32 = arith.constant 0 : i32
    %c0_i32_0 = arith.constant 0 : i32
    %c0_i32_1 = arith.constant 0 : i32
    %c0_i32_2 = arith.constant 0 : i32
    %c0_i32_3 = arith.constant 0 : i32
    return %c0_i32, %c0_i32_0, %c0_i32_1, %c0_i32_2 : i32, i32, i32, i32
  }
  func.func @transform_6(%arg0: i32) -> (i32, i32, i32, i32) {
    %c0_i32 = arith.constant 0 : i32
    %c0_i32_0 = arith.constant 0 : i32
    %c0_i32_1 = arith.constant 0 : i32
    %c0_i32_2 = arith.constant 0 : i32
    return %arg0, %c0_i32, %c0_i32_0, %c0_i32_1 : i32, i32, i32, i32
  }
}

</mosaic_0001>

<bundles_post_ra>
// kernel: decoder_part_forward.2
= control target key start
LH: loop header
LB: loop body
LE: loop exit
PB: predicated region body
PF: predicated region fallthrough
CT: control target
= control target key end

     0   :  { %s1848_s21 = smov 0   ;;  %s2035_s0 = inlined_call_operand.vmem [shape: f32[2,4,256], index: 0, kind: input, shape index: {}]   ;;  %s2036_s1 = inlined_call_operand.vmem [shape: f32[2,3,36,256], index: 1, kind: input, shape index: {}]   ;;  %s2037_s2 = inlined_call_operand.vmem [shape: f32[3,4,36], index: 2, kind: input, shape index: {}]   ;;  %s2038_s3 = inlined_call_operand.vmem [shape: f32[3,4,1], index: 3, kind: input, shape index: {}]   ;;  %s2039_s4 = inlined_call_operand.vmem [shape: f32[3,4,1], index: 4, kind: input, shape index: {}]   ;;  %s2040_s5 = inlined_call_operand.vmem [shape: f32[3,4,1], index: 5, kind: input, shape index: {}]   ;;  %s2041_s6 = inlined_call_operand.vmem [shape: f32[3,8,4], index: 6, kind: input, shape index: {}]   ;;  %s2042_s7 = inlined_call_operand.vmem [shape: f32[3,8,1], index: 7, kind: input, shape index: {}]   ;;  %s2043_s8 = inlined_call_operand.vmem [shape: f32[3,8,8], index: 8, kind: input, shape index: {}]   ;;  %s2044_s9 = inlined_call_operand.vmem [shape: f32[3,8,1], index: 9, kind: input, shape index: {}]   ;;  %s2045_s10 = inlined_call_operand.vmem [shape: f32[8,4], index: 10, kind: input, shape index: {}]   ;;  %s2046_s11 = inlined_call_operand.vmem [shape: f32[8,1], index: 11, kind: input, shape index: {}]   ;;  %s2047_s12 = inlined_call_operand.vmem [shape: f32[2,8,256], index: 12, kind: output, shape index: {}]  }
   0x1 LB: > { %s1625_s22 = sadd.s32 4294967295, %s1779_s21   ;;  %p1629_p0 = scmp.ge.s32.totalorder %s1779_s21, 1  ;;  %s1779_s21 = sphi %s1848_s21, %s22_s21  }
   0x2   : > { %p372_p1 = scmp.lt.s32.totalorder %s1779_s21, 3 }
   0x4   : > { %p373_p2 = pnand %p1629_p0, %p372_p1 }
   0x5   : > { %p419_p3 = scmp.lt.s32.totalorder (!%p373_p2), %s1625_s22, 1  ;;  %v1781_v0 = vmov (!%p373_p2), 0.0   ;;  %v535_v1 = vld [vmem:[%s2038_s3] sm:$0xf] (!%p373_p2)  ;;  %v1782_v2 = vmov (!%p373_p2), 0   ;;  %vm448_vm0 = vcmask (!%p373_p2), 1043456  }
   0x6   : > { %376 = sbr.rel (%p373_p2) target bundleno = 1547 (0x60b), region = 68  ;;  %517 = vmatprep.mubr.f32.mxu1 (!%p373_p2), %v1781_v0  ;;  %761 = vmatprep.mubr.f32.mxu0 (!%p373_p2), %v1781_v0  ;;  %v673_v3 = vld [vmem:[%s2040_s5] sm:$0xf] (!%p373_p2)  ;;  %vm444_vm1 = vcmask (!%p373_p2), 31744   ;;  %v1656_v20 = vld [vmem:[%s2038_s3 + $0x4] sm:$0xf] (!%p373_p2) }
   0x7   : > { %1746 = vset.pattern.permute.xlu0 (!%p373_p2), %v1782_v2  ;;  %1747 = vset.pattern.permute.xlu1 (!%p373_p2), %v1782_v2  ;;  %v665_v4 = vld [vmem:[%s2039_s4] sm:$0xf] (!%p373_p2)  ;;  %v1660_v21 = vld [vmem:[%s2039_s4 + $0x4] sm:$0xf] (!%p373_p2)  ;;  %v1681_v25 = vld [vmem:[%s2038_s3 + $0x8] sm:$0xf] (!%p373_p2) }
   0x8   : > { %538 = vperm.xlu0 (!%p373_p2), %1746, %v535_v1   ;;  %676 = vperm.xlu1 (!%p373_p2), %1747, %v673_v3   ;;  %v682_v5 = vld [vmem:[%s2042_s7] sm:$0xff] (!%p373_p2)  ;;  %vm541_vm2 = vcmask (!%p373_p2), 293888   ;;  %v1663_v28 = vld [vmem:[%s2042_s7 + $0x8] sm:$0xff] (!%p373_p2)  ;;  %v1688_v31 = vld [vmem:[%s2042_s7 + $0x10] sm:$0xff] (!%p373_p2)  ;;  %vm779_vm3 = vcmask (!%p373_p2), 64512  }
   0x9   : > { %v435_v7 = vld [vmem:[%s2045_s10] sm:$0xff] (!%p373_p2)  ;;  %v1685_v29 = vld [vmem:[%s2039_s4 + $0x8] sm:$0xf] (!%p373_p2)  ;;  %v1694_v35 = vld [vmem:[%s2044_s9 + $0x10] sm:$0xff] (!%p373_p2) }
   0xa   : > { %v1661_v24 = vld [vmem:[%s2040_s5 + $0x4] sm:$0xf] (!%p373_p2)  ;;  %v534_v27 = vld [vmem:[%s2037_s2] sm:$0xf] (!%p373_p2)  ;;  %v1686_v30 = vld [vmem:[%s2040_s5 + $0x8] sm:$0xf] (!%p373_p2) }
   0xb   : > { %v436_v32 = vld [vmem:[%s2046_s11] sm:$0xff] (!%p373_p2)  ;;  %v1669_v34 = vld [vmem:[%s2044_s9 + $0x8] sm:$0xff] (!%p373_p2) }
   0xc   : > { %668 = vperm.xlu0 (!%p373_p2), %1746, %v665_v4   ;;  %685 = vperm.xlu1 (!%p373_p2), %1747, %v682_v5   ;;  %v856_v33 = vld [vmem:[%s2044_s9] sm:$0xff] (!%p373_p2) }
   0xd   : > { %s2049_s22 = smov (!%p419_p3, %s1625_s22), 1 }
   0xe   : > { %s1697_s27 = sshll.u32 %s2049_s22, 3  ;;  %s1735_s28 = smul.u32 240, %s2049_s22 }
   0xf   : > { %s423_s17 = scalar_lea.vmem %s2035_s0, %s1697_s27  ;;  %s1698_s18 = sshll.u32 %s2049_s22, 4 }
  0x10   : > { %s1880_s20 = scalar_lea.vmem %s2036_s1, %s1735_s28  ;;  %v434_v6 = vld [vmem:[%s423_s17] sm:$0xff]  ;;  %881 = vperm.xlu0 %1746, %v1656_v20   ;;  %1010 = vperm.xlu1 %1747, %v1660_v21   ;;  %s433_s24 = scalar_lea.vmem %s2047_s12, %s1698_s18 }
  0x11   : > { %v443_v8 = vcombine.high %v434_v6, %v434_v6  ;;  %v525_v9 = vld [vmem:[%s1880_s20 + $0x8] sm:$0xff]  ;;  %v527_v10 = vld [vmem:[%s1880_s20 + $0x18] sm:$0xff]  ;;  %v524_v11 = vld [vmem:[%s1880_s20] sm:$0xff] }
  0x12   : > { %v1699_v12 = vpack.c.bf16 %v527_v10, %v525_v9  ;;  %v526_v13 = vld [vmem:[%s1880_s20 + $0x10] sm:$0xff]  ;;  %v529_v14 = vld [vmem:[%s1880_s20 + $0x28] sm:$0xff]  ;;  %v531_v15 = vld [vmem:[%s1880_s20 + $0x38] sm:$0xff] }
  0x13   : > { %1635 = vmatprep.subr.msk.mxu1 %vm448_vm0, %v443_v8  ;;  %v1701_v16 = vpack.c.bf16 %v526_v13, %v524_v11  ;;  %v1703_v17 = vpack.c.bf16 %v531_v15, %v529_v14  ;;  %v528_v18 = vld [vmem:[%s1880_s20 + $0x20] sm:$0xff]  ;;  %v530_v19 = vld [vmem:[%s1880_s20 + $0x30] sm:$0xff]  ;;  %v533_v23 = vld [vmem:[%s1880_s20 + $0x48] sm:$0xf] }
  0x14   : > { %1636 = vmatpush1.msk.msra.mxu1 %vm448_vm0, %v434_v6  ;;  %v1705_v22 = vpack.c.bf16 %v530_v19, %v528_v18  ;;  %v532_v26 = vld [vmem:[%s1880_s20 + $0x40] sm:$0xf]  ;;  %1019 = vperm.xlu0 %1746, %v1661_v24  }
  0x15   : > { %1637 = vmatmul.mubr.msk.f32.vlgmr.msra.gmra.mrb[0].mxu1 %vm444_vm1, %v435_v7  ;;  %1700 = vmatprep.subr.bf16.mxu1 %v1699_v12 }
  0x16   : > { %1702 = vmatpush1.bf16.msra.mxu1 %v1701_v16  ;;  %615 = vmatprep.mubr.f32.mxu1 %v1781_v0 }
  0x17   : > { %1704 = vmatprep.subr.bf16.mxu1 %v1703_v17  ;;  %1227 = vperm.xlu1 %1747, %v1681_v25  }
  0x18   : > { %1030 = vperm.xlu0 %1746, %v1663_v28   ;;  %v681_v28 = vld [vmem:[%s2041_s6] sm:$0xff] }
  0x1a   : > { %1706 = vmatpush1.bf16.msra.mxu1 %v1705_v22 }
  0x1b   : > { %1638 = vmatprep.subr.msk.mxu1 %vm448_vm0, %v533_v23  ;;  %1356 = vperm.xlu1 %1747, %v1685_v29  }
  0x1c   : > { %1365 = vperm.xlu0 %1746, %v1686_v30  }
  0x1e   : > { %1639 = vmatpush1.msk.msra.mxu1 %vm448_vm0, %v532_v26 }
  0x1f   : > { %1640 = vmatmul.mubr.msk.f32.vlgmr.msra.gmra.mrb[2].mxu1 %vm541_vm2, %v534_v27  ;;  %1376 = vperm.xlu1 %1747, %v1688_v31  }
  0x20   : > { %1106 = vmatprep.mubr.f32.mxu1 %v1781_v0  ;;  %439 = vperm.xlu0 %1746, %v436_v32  }
  0x23   : > { %859 = vperm.xlu1 %1747, %v856_v33  }
  0x24   : > { %1205 = vperm.xlu0 %1746, %v1669_v34  }
  0x27   : > { %1551 = vperm.xlu1 %1747, %v1694_v35  }
  0x87   : > { %v539_v38 = vpop.permute.xlu0 %538  ;;  %v677_v25 = vpop.permute.xlu1 %676 }
  0x8b   : > { %v669_v21 = vpop.permute.xlu0 %668  ;;  %v686_v29 = vpop.permute.xlu1 %685 }
  0xe8   : > { %v1942_v36 = vpop.f32.mrb[0].mxu1 }
  0xe9   : > { %v1944_v37 = vpop.f32.mrb[1].mxu1 }
  0xf2   : > { %v617_v39 = vpop.f32.mrb[2].mxu1 }
  0xf3   : > { %v618_v40 = vadd.f32 %v617_v39, %v539_v38  ;;  %v619_v41 = vpop.f32.mrb[3].mxu1 }
  0xf4   : > { %v620_v42 = vadd.f32 %v619_v41, %v539_v38  ;;  %v1646_v41 = vld [vmem:[%s1880_s20 + $0x58] sm:$0xff] }
  0xf5   : > { %v622_v43 = vsel %vm448_vm0, %v618_v40, 0.0 }
  0xf6   : > { %v623_v44 = vrot.slane %v622_v43, 4  ;;  %v629_v45 = vsel %vm448_vm0, %v620_v42, 0.0 }
  0xf7   : > { %v630_v46 = vrot.slane %v629_v45, 4 }
  0xf8   : > { %v624_v47 = vadd.f32 %v623_v44, %v622_v43 }
  0xf9   : > { %v631_v48 = vadd.f32 %v630_v46, %v629_v45  ;;  %v1645_v45 = vld [vmem:[%s1880_s20 + $0x50] sm:$0xff]  ;;  %v1647_v46 = vld [vmem:[%s1880_s20 + $0x60] sm:$0xff] }
  0xfa   : > { %v625_v49 = vrot.slane %v624_v47, 2 }
  0xfb   : > { %v632_v50 = vrot.slane %v631_v48, 2 }
  0xfc   : > { %v626_v51 = vadd.f32 %v625_v49, %v624_v47  ;;  %v1652_v49 = vld [vmem:[%s1880_s20 + $0x88] sm:$0xff] }
  0xfd   : > { %v633_v52 = vadd.f32 %v632_v50, %v631_v48  ;;  %v1650_v48 = vld [vmem:[%s1880_s20 + $0x78] sm:$0xff] }
  0xfe   : > { %v627_v53 = vrot.slane %v626_v51, 1 }
  0xff   : > { %v634_v54 = vrot.slane %v633_v52, 1 }
 0x100   : > { %v628_v55 = vadd.f32 %v627_v53, %v626_v51  ;;  %v778_v53 = vld [vmem:[%s2043_s8] sm:$0xff] }
 0x101   : > { %v635_v56 = vadd.f32 %v634_v54, %v633_v52  ;;  %v1709_v54 = vpack.c.bf16 %v1647_v46, %v1645_v45 }
 0x102   : > { %v637_v57 = vmul.f32 0.25, %v628_v55  ;;  %v1711_v55 = vpack.c.bf16 %v1652_v49, %v1650_v48 }
 0x103   : > { %v638_v58 = vmul.f32 0.25, %v635_v56  ;;  %v1649_v56 = vld [vmem:[%s1880_s20 + $0x70] sm:$0xff] }
 0x104   : > { %v639_v59 = vsub.f32 %v618_v40, %v637_v57  ;;  %v1651_v57 = vld [vmem:[%s1880_s20 + $0x80] sm:$0xff] }
 0x105   : > { %v640_v60 = vsub.f32 %v620_v42, %v638_v58  ;;  %v1648_v42 = vld [vmem:[%s1880_s20 + $0x68] sm:$0xff]  ;;  %v1713_v58 = vpack.c.bf16 %v1651_v57, %v1649_v56  ;;  %v1677_v57 = vld [vmem:[%s1880_s20 + $0xd8] sm:$0xff] }
 0x106   : > { %v641_v61 = vmul.f32 %v639_v59, %v639_v59  ;;  %v1707_v51 = vpack.c.bf16 %v1648_v42, %v1646_v41  ;;  %v1675_v56 = vld [vmem:[%s1880_s20 + $0xc8] sm:$0xff] }
 0x107   : > { %v642_v62 = vmul.f32 %v640_v60, %v640_v60 }
 0x108   : > { %v643_v63 = vsel %vm448_vm0, %v641_v61, 0.0  ;;  %v1655_v61 = vld [vmem:[%s2037_s2 + $0x4] sm:$0xf] }
 0x109   : > { %v644_v1 = vrot.slane %v643_v63, 4  ;;  %v650_v2 = vsel %vm448_vm0, %v642_v62, 0.0  ;;  %v882_v62 = vpop.permute.xlu0 %881 }
 0x10a   : > { %v651_v3 = vrot.slane %v650_v2, 4 }
 0x10b   : > { %v645_v4 = vadd.f32 %v644_v1, %v643_v63 }
 0x10c   : > { %v652_v5 = vadd.f32 %v651_v3, %v650_v2 }
 0x10d   : > { %v646_v6 = vrot.slane %v645_v4, 2 }
 0x10e   : > { %v653_v7 = vrot.slane %v652_v5, 2 }
 0x10f   : > { %v647_v8 = vadd.f32 %v646_v6, %v645_v4 }
 0x110   : > { %v654_v9 = vadd.f32 %v653_v7, %v652_v5 }
 0x111   : > { %v648_v10 = vrot.slane %v647_v8, 1 }
 0x112   : > { %v655_v11 = vrot.slane %v654_v9, 1 }
 0x113   : > { %v649_v12 = vadd.f32 %v648_v10, %v647_v8 }
 0x114   : > { %v656_v13 = vadd.f32 %v655_v11, %v654_v9 }
 0x115   : > { %v657_v14 = vmul.f32 0.25, %v649_v12 }
 0x116   : > { %v658_v15 = vmul.f32 0.25, %v656_v13 }
 0x117   : > { %v659_v16 = vadd.f32 1e-06, %v657_v14 }
 0x118   : > { %v660_v17 = vadd.f32 1e-06, %v658_v15 }
 0x119   : > { %1749 = vrsqrt.f32 %v659_v16 }
 0x11a   : > { %1751 = vrsqrt.f32 %v660_v17 }
 0x123   : > { %v1750_v18 = vpop.eup %1749 }
 0x124   : > { %v1752_v19 = vpop.eup %1751  ;;  %v663_v20 = vmul.f32 %v1750_v18, %v639_v59  ;;  %v1654_v59 = vld [vmem:[%s1880_s20 + $0x98] sm:$0xf] }
 0x125   : > { %v664_v22 = vmul.f32 %v1752_v19, %v640_v60  ;;  %v1653_v60 = vld [vmem:[%s1880_s20 + $0x90] sm:$0xf] }
 0x126   : > { %v671_v23 = vmul.f32 %v669_v21, %v663_v20 }
 0x127   : > { %v672_v24 = vmul.f32 %v669_v21, %v664_v22 }
 0x128   : > { %v679_v27 = vadd.f32 %v677_v25, %v671_v23 }
 0x129   : > { %v680_v26 = vadd.f32 %v677_v25, %v672_v24 }
 0x12b   : > { %1641 = vmatprep.subr.msk.mxu0 %vm448_vm0, %v680_v26 }
 0x12c   : > { %1642 = vmatpush1.msk.msra.mxu0 %vm448_vm0, %v679_v27 }
 0x12d   : > { %1643 = vmatmul.mubr.msk.f32.vlgmr.msra.gmra.mrb[0].mxu0 %vm444_vm1, %v681_v28 }
 0x12e   : > { %847 = vmatprep.mubr.f32.mxu0 %v1781_v0 }
 0x200   : > { %v763_v30 = vpop.f32.mrb[0].mxu0 }
 0x201   : > { %v764_v31 = vadd.f32 %v763_v30, %v686_v29  ;;  %v765_v32 = vpop.f32.mrb[1].mxu0 }
 0x202   : > { %v766_v33 = vadd.f32 %v765_v32, %v686_v29 }
 0x203   : > { %v770_v34 = vmul.f32 0.70710677, %v764_v31  ;;  %v768_v47 = vmul.f32 0.5, %v764_v31 }
 0x204   : > { %v771_v35 = vmul.f32 0.70710677, %v766_v33  ;;  %v769_v43 = vmul.f32 0.5, %v766_v33 }
 0x205   : > { %1753 = verf.f32 %v770_v34 }
 0x206   : > { %1755 = verf.f32 %v771_v35 }
 0x20f   : > { %v1754_v38 = vpop.eup %1753 }
 0x210   : > { %v1756_v39 = vpop.eup %1755  ;;  %v774_v40 = vadd.f32 1.0, %v1754_v38 }
 0x211   : > { %v775_v44 = vadd.f32 1.0, %v1756_v39 }
 0x212   : > { %v776_v52 = vmul.f32 %v774_v40, %v768_v47  ;;  %v1011_v47 = vpop.permute.xlu1 %1010 }
 0x213   : > { %v777_v50 = vmul.f32 %v775_v44, %v769_v43 }
 0x215   : > { %783 = vmatprep.subr.mxu0 %v777_v50  ;;  %v1671_v50 = vld [vmem:[%s1880_s20 + $0xa8] sm:$0xff] }
 0x216   : > { %784 = vmatpush1.msra.mxu0 %v776_v52 }
 0x217   : > { %1708 = vmatprep.subr.bf16.mxu0 %v1707_v51  ;;  %1644 = vmatmul.mubr.msk.f32.vlgmr.msra.gmra.mrb[2].mxu0 %vm779_vm3, %v778_v53  ;;  %v1673_v51 = vld [vmem:[%s1880_s20 + $0xb8] sm:$0xff]  ;;  %v1670_v53 = vld [vmem:[%s1880_s20 + $0xa0] sm:$0xff] }
 0x218   : > { %1710 = vmatpush1.bf16.msra.mxu0 %v1709_v54  ;;  %957 = vmatprep.mubr.f32.mxu0 %v1781_v0  ;;  %v1672_v54 = vld [vmem:[%s1880_s20 + $0xb0] sm:$0xff] }
 0x219   : > { %1712 = vmatprep.subr.bf16.mxu0 %v1711_v55  ;;  %v1020_v55 = vpop.permute.xlu0 %1019 }
 0x21c   : > { %1714 = vmatpush1.bf16.msra.mxu0 %v1713_v58 }
 0x21d   : > { %1657 = vmatprep.subr.msk.mxu0 %vm448_vm0, %v1654_v59  ;;  %v1715_v59 = vpack.c.bf16 %v1673_v51, %v1671_v50 }
 0x220   : > { %1658 = vmatpush1.msk.msra.mxu0 %vm448_vm0, %v1653_v60 }
 0x221   : > { %1659 = vmatmul.mubr.msk.f32.vlgmr.msra.gmra.mrb[4].mxu0 %vm541_vm2, %v1655_v61  ;;  %v1662_v61 = vld [vmem:[%s2041_s6 + $0x8] sm:$0xff] }
 0x222   : > { %1192 = vmatprep.mubr.f32.mxu0 %v1781_v0 }
 0x2f4   : > { %v959_v63 = vpop.f32.mrb[4].mxu0 }
 0x2f5   : > { %v960_v1 = vadd.f32 %v959_v63, %v882_v62  ;;  %v961_v2 = vpop.f32.mrb[5].mxu0  ;;  %v1719_v63 = vpack.c.bf16 %v1677_v57, %v1675_v56 }
 0x2f6   : > { %v962_v3 = vadd.f32 %v961_v2, %v882_v62  ;;  %v1717_v62 = vpack.c.bf16 %v1672_v54, %v1670_v53  ;;  %v1676_v2 = vld [vmem:[%s1880_s20 + $0xd0] sm:$0xff] }
 0x2f7   : > { %v964_v4 = vsel %vm448_vm0, %v960_v1, 0.0 }
 0x2f8   : > { %v965_v5 = vrot.slane %v964_v4, 4  ;;  %v971_v6 = vsel %vm448_vm0, %v962_v3, 0.0 }
 0x2f9   : > { %v972_v7 = vrot.slane %v971_v6, 4 }
 0x2fa   : > { %v966_v8 = vadd.f32 %v965_v5, %v964_v4  ;;  %v1679_v4 = vld [vmem:[%s1880_s20 + $0xe8] sm:$0xf]  ;;  %v1678_v5 = vld [vmem:[%s1880_s20 + $0xe0] sm:$0xf] }
 0x2fb   : > { %v973_v9 = vadd.f32 %v972_v7, %v971_v6  ;;  %v1680_v6 = vld [vmem:[%s2037_s2 + $0x8] sm:$0xf]  ;;  %v1031_v7 = vpop.permute.xlu0 %1030 }
 0x2fc   : > { %v967_v10 = vrot.slane %v966_v8, 2 }
 0x2fd   : > { %v974_v11 = vrot.slane %v973_v9, 2 }
 0x2fe   : > { %v968_v12 = vadd.f32 %v967_v10, %v966_v8 }
 0x2ff   : > { %v975_v13 = vadd.f32 %v974_v11, %v973_v9 }
 0x300   : > { %v969_v14 = vrot.slane %v968_v12, 1 }
 0x301   : > { %v976_v15 = vrot.slane %v975_v13, 1 }
 0x302   : > { %v970_v16 = vadd.f32 %v969_v14, %v968_v12  ;;  %v1228_v14 = vpop.permute.xlu1 %1227 }
 0x303   : > { %v977_v17 = vadd.f32 %v976_v15, %v975_v13 }
 0x304   : > { %v978_v18 = vmul.f32 0.25, %v970_v16 }
 0x305   : > { %v979_v19 = vmul.f32 0.25, %v977_v17 }
 0x306   : > { %v980_v20 = vsub.f32 %v960_v1, %v978_v18  ;;  %v1674_v1 = vld [vmem:[%s1880_s20 + $0xc0] sm:$0xff] }
 0x307   : > { %v981_v21 = vsub.f32 %v962_v3, %v979_v19  ;;  %v1721_v3 = vpack.c.bf16 %v1676_v2, %v1674_v1 }
 0x308   : > { %v982_v22 = vmul.f32 %v980_v20, %v980_v20 }
 0x309   : > { %v983_v23 = vmul.f32 %v981_v21, %v981_v21 }
 0x30a   : > { %v984_v24 = vsel %vm448_vm0, %v982_v22, 0.0 }
 0x30b   : > { %v985_v25 = vrot.slane %v984_v24, 4  ;;  %v991_v26 = vsel %vm448_vm0, %v983_v23, 0.0 }
 0x30c   : > { %v992_v27 = vrot.slane %v991_v26, 4 }
 0x30d   : > { %v986_v28 = vadd.f32 %v985_v25, %v984_v24 }
 0x30e   : > { %v993_v29 = vadd.f32 %v992_v27, %v991_v26 }
 0x30f   : > { %v987_v30 = vrot.slane %v986_v28, 2 }
 0x310   : > { %v994_v31 = vrot.slane %v993_v29, 2 }
 0x311   : > { %v988_v32 = vadd.f32 %v987_v30, %v986_v28 }
 0x312   : > { %v995_v33 = vadd.f32 %v994_v31, %v993_v29 }
 0x313   : > { %v989_v34 = vrot.slane %v988_v32, 1 }
 0x314   : > { %v996_v35 = vrot.slane %v995_v33, 1 }
 0x315   : > { %v990_v38 = vadd.f32 %v989_v34, %v988_v32 }
 0x316   : > { %v997_v39 = vadd.f32 %v996_v35, %v995_v33 }
 0x317   : > { %v998_v40 = vmul.f32 0.25, %v990_v38  ;;  %v1667_v38 = vld [vmem:[%s2043_s8 + $0x8] sm:$0xff] }
 0x318   : > { %v999_v41 = vmul.f32 0.25, %v997_v39 }
 0x319   : > { %v1000_v42 = vadd.f32 1e-06, %v998_v40 }
 0x31a   : > { %v1001_v43 = vadd.f32 1e-06, %v999_v41 }
 0x31b   : > { %1757 = vrsqrt.f32 %v1000_v42 }
 0x31c   : > { %1759 = vrsqrt.f32 %v1001_v43 }
 0x325   : > { %v1758_v44 = vpop.eup %1757 }
 0x326   : > { %v1760_v45 = vpop.eup %1759  ;;  %v1004_v46 = vmul.f32 %v1758_v44, %v980_v20 }
 0x327   : > { %v1005_v48 = vmul.f32 %v1760_v45, %v981_v21 }
 0x328   : > { %v1013_v49 = vmul.f32 %v1011_v47, %v1004_v46 }
 0x329   : > { %v1014_v52 = vmul.f32 %v1011_v47, %v1005_v48 }
 0x32a   : > { %v1022_v60 = vadd.f32 %v1020_v55, %v1013_v49 }
 0x32b   : > { %v1023_v58 = vadd.f32 %v1020_v55, %v1014_v52 }
 0x32d   : > { %1664 = vmatprep.subr.msk.mxu1 %vm448_vm0, %v1023_v58 }
 0x32e   : > { %1665 = vmatpush1.msk.msra.mxu1 %vm448_vm0, %v1022_v60 }
 0x32f   : > { %1666 = vmatmul.mubr.msk.f32.vlgmr.msra.gmra.mrb[4].mxu1 %vm444_vm1, %v1662_v61  ;;  %1716 = vmatprep.subr.bf16.mxu1 %v1715_v59 }
 0x330   : > { %1718 = vmatpush1.bf16.msra.mxu1 %v1717_v62  ;;  %1303 = vmatprep.mubr.f32.mxu1 %v1781_v0 }
 0x331   : > { %1720 = vmatprep.subr.bf16.mxu1 %v1719_v63 }
 0x334   : > { %1722 = vmatpush1.bf16.msra.mxu1 %v1721_v3 }
 0x335   : > { %1682 = vmatprep.subr.msk.mxu1 %vm448_vm0, %v1679_v4 }
 0x338   : > { %1683 = vmatpush1.msk.msra.mxu1 %vm448_vm0, %v1678_v5 }
 0x339   : > { %1684 = vmatmul.mubr.msk.f32.vlgmr.msra.gmra.mrb[6].mxu1 %vm541_vm2, %v1680_v6 }
 0x402   : > { %v1108_v8 = vpop.f32.mrb[4].mxu1 }
 0x403   : > { %v1109_v9 = vadd.f32 %v1108_v8, %v1031_v7  ;;  %v1110_v10 = vpop.f32.mrb[5].mxu1  ;;  %v1357_v8 = vpop.permute.xlu1 %1356 }
 0x404   : > { %v1111_v11 = vadd.f32 %v1110_v10, %v1031_v7 }
 0x405   : > { %v1115_v12 = vmul.f32 0.70710677, %v1109_v9  ;;  %v1113_v30 = vmul.f32 0.5, %v1109_v9 }
 0x406   : > { %v1116_v13 = vmul.f32 0.70710677, %v1111_v11  ;;  %v1114_v27 = vmul.f32 0.5, %v1111_v11 }
 0x407   : > { %1761 = verf.f32 %v1115_v12  ;;  %v1366_v12 = vpop.permute.xlu0 %1365 }
 0x408   : > { %1763 = verf.f32 %v1116_v13 }
 0x40c   : > { %v1305_v15 = vpop.f32.mrb[6].mxu1 }
 0x40d   : > { %v1306_v16 = vadd.f32 %v1305_v15, %v1228_v14  ;;  %v1307_v17 = vpop.f32.mrb[7].mxu1  ;;  %v1687_v15 = vld [vmem:[%s2041_s6 + $0x10] sm:$0xff] }
 0x40e   : > { %v1308_v18 = vadd.f32 %v1307_v17, %v1228_v14 }
 0x40f   : > { %v1310_v19 = vsel %vm448_vm0, %v1306_v16, 0.0 }
 0x410   : > { %v1311_v20 = vrot.slane %v1310_v19, 4  ;;  %v1317_v21 = vsel %vm448_vm0, %v1308_v18, 0.0 }
 0x411   : > { %v1762_v22 = vpop.eup %1761  ;;  %v1318_v23 = vrot.slane %v1317_v21, 4 }
 0x412   : > { %v1764_v24 = vpop.eup %1763  ;;  %v1119_v25 = vadd.f32 1.0, %v1762_v22  ;;  %v1312_v26 = vadd.f32 %v1311_v20, %v1310_v19 }
 0x413   : > { %v1120_v28 = vadd.f32 1.0, %v1764_v24  ;;  %v1319_v29 = vadd.f32 %v1318_v23, %v1317_v21 }
 0x414   : > { %v1313_v31 = vrot.slane %v1312_v26, 2  ;;  %v1121_v34 = vmul.f32 %v1119_v25, %v1113_v30 }
 0x415   : > { %v1320_v32 = vrot.slane %v1319_v29, 2  ;;  %v1122_v33 = vmul.f32 %v1120_v28, %v1114_v27 }
 0x416   : > { %v1314_v35 = vadd.f32 %v1313_v31, %v1312_v26  ;;  %v440_v31 = vpop.permute.xlu0 %439 }
 0x417   : > { %v1321_v39 = vadd.f32 %v1320_v32, %v1319_v29  ;;  %1128 = vmatprep.subr.mxu0 %v1122_v33  ;;  %v520_v32 = vadd.f32 %v1942_v36, %v440_v31  ;;  %v522_v33 = vadd.f32 %v1944_v37, %v440_v31 }
 0x418   : > { %v1315_v40 = vrot.slane %v1314_v35, 1  ;;  %1129 = vmatpush1.msra.mxu0 %v1121_v34 }
 0x419   : > { %v1322_v41 = vrot.slane %v1321_v39, 1  ;;  %1668 = vmatmul.mubr.msk.f32.vlgmr.msra.gmra.mrb[2].mxu0 %vm779_vm3, %v1667_v38 }
 0x41a   : > { %v1316_v42 = vadd.f32 %v1315_v40, %v1314_v35  ;;  %1452 = vmatprep.mubr.f32.mxu0 %v1781_v0 }
 0x41b   : > { %v1323_v43 = vadd.f32 %v1322_v41, %v1321_v39  ;;  %v1206_v39 = vpop.permute.xlu0 %1205 }
 0x41c   : > { %v1324_v44 = vmul.f32 0.25, %v1316_v42 }
 0x41d   : > { %v1325_v45 = vmul.f32 0.25, %v1323_v43 }
 0x41e   : > { %v1326_v46 = vsub.f32 %v1306_v16, %v1324_v44  ;;  %v1377_v16 = vpop.permute.xlu1 %1376 }
 0x41f   : > { %v1327_v47 = vsub.f32 %v1308_v18, %v1325_v45 }
 0x420   : > { %v1328_v48 = vmul.f32 %v1326_v46, %v1326_v46 }
 0x421   : > { %v1329_v49 = vmul.f32 %v1327_v47, %v1327_v47 }
 0x422   : > { %v1330_v50 = vsel %vm448_vm0, %v1328_v48, 0.0  ;;  %v860_v34 = vpop.permute.xlu1 %859 }
 0x423   : > { %v1331_v51 = vrot.slane %v1330_v50, 4  ;;  %v1337_v52 = vsel %vm448_vm0, %v1329_v49, 0.0  ;;  %v1724_v35 = vadd.f32 %v860_v34, %v520_v32  ;;  %v1728_v38 = vadd.f32 %v860_v34, %v522_v33 }
 0x424   : > { %v1338_v53 = vrot.slane %v1337_v52, 4 }
 0x425   : > { %v1332_v54 = vadd.f32 %v1331_v51, %v1330_v50  ;;  %v1725_v40 = vadd.f32 %v1724_v35, %v1206_v39  ;;  %v1729_v41 = vadd.f32 %v1728_v38, %v1206_v39 }
 0x426   : > { %v1339_v55 = vadd.f32 %v1338_v53, %v1337_v52  ;;  %v1552_v45 = vpop.permute.xlu1 %1551 }
 0x427   : > { %v1333_v56 = vrot.slane %v1332_v54, 2 }
 0x428   : > { %v1340_v57 = vrot.slane %v1339_v55, 2 }
 0x429   : > { %v1334_v58 = vadd.f32 %v1333_v56, %v1332_v54 }
 0x42a   : > { %v1341_v59 = vadd.f32 %v1340_v57, %v1339_v55 }
 0x42b   : > { %v1335_v60 = vrot.slane %v1334_v58, 1 }
 0x42c   : > { %v1342_v61 = vrot.slane %v1341_v59, 1 }
 0x42d   : > { %v1336_v62 = vadd.f32 %v1335_v60, %v1334_v58 }
 0x42e   : > { %v1343_v63 = vadd.f32 %v1342_v61, %v1341_v59 }
 0x42f   : > { %v1344_v1 = vmul.f32 0.25, %v1336_v62 }
 0x430   : > { %v1345_v2 = vmul.f32 0.25, %v1343_v63 }
 0x431   : > { %v1346_v3 = vadd.f32 1e-06, %v1344_v1 }
 0x432   : > { %v1347_v4 = vadd.f32 1e-06, %v1345_v2 }
 0x433   : > { %1765 = vrsqrt.f32 %v1346_v3 }
 0x434   : > { %1767 = vrsqrt.f32 %v1347_v4 }
 0x43d   : > { %v1766_v5 = vpop.eup %1765 }
 0x43e   : > { %v1768_v6 = vpop.eup %1767  ;;  %v1350_v7 = vmul.f32 %v1766_v5, %v1326_v46 }
 0x43f   : > { %v1351_v9 = vmul.f32 %v1768_v6, %v1327_v47 }
 0x440   : > { %v1359_v10 = vmul.f32 %v1357_v8, %v1350_v7 }
 0x441   : > { %v1360_v11 = vmul.f32 %v1357_v8, %v1351_v9 }
 0x442   : > { %v1368_v14 = vadd.f32 %v1366_v12, %v1359_v10 }
 0x443   : > { %v1369_v13 = vadd.f32 %v1366_v12, %v1360_v11 }
 0x445   : > { %1689 = vmatprep.subr.msk.mxu0 %vm448_vm0, %v1369_v13 }
 0x446   : > { %1690 = vmatpush1.msk.msra.mxu0 %vm448_vm0, %v1368_v14 }
 0x447   : > { %1691 = vmatmul.mubr.msk.f32.vlgmr.msra.gmra.mrb[6].mxu0 %vm444_vm1, %v1687_v15 }
 0x448   : > { %1538 = vmatprep.mubr.f32.mxu0 %v1781_v0  ;;  %v1692_v0 = vld [vmem:[%s2043_s8 + $0x10] sm:$0xff] }
 0x51a   : > { %v1454_v17 = vpop.f32.mrb[6].mxu0 }
 0x51b   : > { %v1455_v18 = vadd.f32 %v1454_v17, %v1377_v16  ;;  %v1456_v19 = vpop.f32.mrb[7].mxu0 }
 0x51c   : > { %v1457_v20 = vadd.f32 %v1456_v19, %v1377_v16 }
 0x51d   : > { %v1461_v21 = vmul.f32 0.70710677, %v1455_v18  ;;  %v1459_v28 = vmul.f32 0.5, %v1455_v18 }
 0x51e   : > { %v1462_v22 = vmul.f32 0.70710677, %v1457_v20  ;;  %v1460_v26 = vmul.f32 0.5, %v1457_v20 }
 0x51f   : > { %1769 = verf.f32 %v1461_v21 }
 0x520   : > { %1771 = verf.f32 %v1462_v22 }
 0x529   : > { %v1770_v23 = vpop.eup %1769 }
 0x52a   : > { %v1772_v24 = vpop.eup %1771  ;;  %v1465_v25 = vadd.f32 1.0, %v1770_v23 }
 0x52b   : > { %v1466_v27 = vadd.f32 1.0, %v1772_v24 }
 0x52c   : > { %v1467_v30 = vmul.f32 %v1465_v25, %v1459_v28 }
 0x52d   : > { %v1468_v29 = vmul.f32 %v1466_v27, %v1460_v26 }
 0x52f   : > { %1474 = vmatprep.subr.mxu0 %v1468_v29 }
 0x530   : > { %1475 = vmatpush1.msra.mxu0 %v1467_v30 }
 0x531   : > { %1693 = vmatmul.mubr.msk.f32.vlgmr.msra.gmra.mrb[2].mxu0 %vm779_vm3, %v1692_v0 }
 0x604   : > { %v1540_v42 = vpop.f32.mrb[2].mxu0 }
 0x605   : > { %v1726_v43 = vadd.f32 %v1725_v40, %v1540_v42  ;;  %v1542_v44 = vpop.f32.mrb[3].mxu0 }
 0x606   : > { %v1730_v46 = vadd.f32 %v1729_v41, %v1542_v44 }
 0x607   : > { %v1554_v47 = vadd.f32 %v1726_v43, %v1552_v45 }
 0x608   : > { %v1555_v36 = vadd.f32 %v1730_v46, %v1552_v45 }
 0x609   : > { %1556 = vst [vmem:[%s433_s24] sm:$0xff] %v1554_v47 }
 0x60a   : > { %1557 = vst [vmem:[%s433_s24 + $0x8] sm:$0xff] %v1555_v36 }
 0x60b PF: > { %s22_s21 = sadd.s32 1, %s1779_s21  }
 0x60c   : > { %p19_p4 = scmp.ge.s32.totalorder %s22_s21, 4  }
 0x60e   :  { %21 = sbr.rel (!%p19_p4) target bundleno = 1 (0x1), region = 119 }

// kernel: decoder_part_forward.3
= control target key start
LH: loop header
LB: loop body
LE: loop exit
PB: predicated region body
PF: predicated region fallthrough
CT: control target
= control target key end

     0   :  { %11 = vsyncpa [#allocation7], 0  ;;  %s10910_s0 = inlined_call_operand.vmem [shape: f32[2,128,16], index: 0, kind: input, shape index: {}]   ;;  %s10911_s1 = inlined_call_operand.vmem [shape: f32[32,16], index: 1, kind: input, shape index: {}]   ;;  %s10912_s2 = inlined_call_operand.hbm [shape: f32[16,32], index: 2, kind: input, shape index: {}]   ;;  %s10913_s3 = inlined_call_operand.vmem [shape: f32[2,7,38,32], index: 3, kind: input, shape index: {}]   ;;  %s10914_s4 = inlined_call_operand.vmem [shape: f32[2,7,38,32], index: 4, kind: input, shape index: {}]   ;;  %s10915_s5 = inlined_call_operand.vmem [shape: f32[2,7,14,8], index: 5, kind: input, shape index: {}]   ;;  %s10916_s6 = inlined_call_operand.hbm [shape: f32[2,8,32,32], index: 6, kind: output, shape index: {}]  }
   0x1   :  { %12 = vsyncpa [#allocation8], 0 }
   0x2   :  { %14 = vsyncpa [#allocation8 + $0x1], 0  ;;  %s8918_s21 = smov 0   ;;  %s8920_s22 = smov 0  }
   0x3   :  { %s8922_s23 = smov 0   ;;  %s8924_s24 = smov 0  }
   0x4 LB: > { %s8939_s25 = sadd.s32 4294967295, %s8862_s24   ;;  %s6750_s26 = sadd.s32 4294967294, %s8862_s24   ;;  %s8862_s24 = sphi %s8924_s24, %s10974_s24   ;;  %s8858_s23 = sphi %s8922_s23, %s10973_s23   ;;  %s8854_s22 = sphi %s8920_s22, %s10972_s22   ;;  %s8850_s21 = sphi %s8918_s21, %s10971_s21  }
   0x5   : > { %s8943_s27 = sadd.s32 1, %s8862_s24   ;;  %s158_s28 = sadd.s32 1, %s8858_s23 }
   0x6   : > { %s155_s29 = ssub.s32 %s8862_s24, %s8943_s27  ;;  %p168_p0 = scmp.ne.s32.totalorder %s8858_s23, %s8854_s22 }
   0x7   : > { %p156_p1 = scmp.eq.s32.totalorder %s155_s29, 0  ;;  %p169_p2 = scmp.eq.s32.totalorder %s8939_s25, 1 }
   0x8   : > { %p174_p3 = scmp.ne.s32.totalorder %s8854_s22, %s8850_s21  ;;  %p175_p4 = scmp.eq.s32.totalorder %s6750_s26, 1 }
   0x9   : > { %s8954_s30 = scalar_select %p156_p1, %s8858_s23, %s158_s28  }
   0xa   : > { %p8956_p5 = por %p169_p2, %p168_p0  ;;  %p8960_p6 = por %p175_p4, %p174_p3 }
   0xb   : > { %p6751_p7 = scmp.ge.s32.totalorder %s8862_s24, 1  ;;  %p182_p8 = scmp.lt.s32.totalorder %s8862_s24, 3 }
   0xc   : > { %s10923_s7 = scalar_select %p8956_p5, 1, 0 }
   0xd   : > { %s10924_s8 = scalar_select %p8960_p6, 1, 0 }
   0xe   : > { %p10917_p9 = scmp.eq.s32.totalorder %s8939_s25, 0  ;;  %p8967_p10 = pnand %p6751_p7, %p182_p8 }
   0xf   : > { %s8864_s10 = smov [#allocation6]   ;;  %s8768_s15 = scalar_lea.hbm %s10912_s2, 256 }
  0x10   : > { %s10925_s9 = scalar_select %p8967_p10, 1, 0 }
  0x11   : > { %s197_s11 = sshll.u32 %s8864_s10, 4  ;;  %p8640_p11 = pneg %p8967_p10  ;;  %s198_s11 = int_to_ptr.vmem [resolvable:$true] %s197_s11 }
  0x12   : > { %p8769_p13 = scmp.ne.s32.totalorder %s10912_s2, %s8768_s15  ;;  %p8775_p3 = scmp.lt.u32.totalorder %s8768_s15, %s10912_s2 }
  0x13   : > { %p8975_p12 = pnand %p10917_p9, %p8640_p11 }
  0x15   : > { %p8770_p0 = pneg %p8975_p12 }
  0x17   : > { %p8771_p1 = pnand %p8770_p0, %p8769_p13 }
  0x19   : > { %p8772_p2 = pneg %p8771_p1 }
  0x1b   : > { %p8777_p4 = pnand %p8775_p3, %p8772_p2 }
  0x1d   : > { %8780 = shalt.err (!%p8777_p4)
}
  0x1e   : > { %s8781_s20 = scalar_lea.vmem %s198_s11, 256  ;;  %p8789_p9 = scmp.lt.s32.totalorder %s198_s11, %s198_s11 }
  0x1f   : > { %p8782_p7 = scmp.ne.s32.totalorder %s198_s11, %s8781_s20  ;;  %p8790_p6 = scmp.lt.s32.totalorder %s8781_s20, %s8781_s20 }
  0x21   : > { %p8784_p8 = pnand %p8782_p7, %p8770_p0  ;;  %p8791_p5 = por %p8790_p6, %p8789_p9 }
  0x23   : > { %p8785_p11 = pneg %p8784_p8 }
  0x25   : > { %p8792_p10 = pnand %p8791_p5, %p8785_p11 }
  0x27   : > { %8795 = shalt.err (!%p8792_p10)
}
  0x28   : > { %s8865_s26 = smov 128   ;;  %s8866_s28 = smov 8  }
  0x29   : > { %8643 = dma.hbm_to_vmem [thread:$0]  (!%p8975_p12), %s10912_s2, 256, %s198_s11, [#allocation7], %s8865_s26, %s8865_s26, %s8866_s28  }
  0x2a   : > { %p10927_p13 = scmp.ne.s32.totalorder %s10925_s9, 0 }
  0x2c   : > { %230 = sbr.rel (%p10927_p13) target bundleno = 1572 (0x624), region = 44 }
  0x33   : > { %p10928_p1 = scmp.eq.s32.totalorder %s8939_s25, 0 }
  0x35   : > { %8841 = dma.done.wait (%p10928_p1), [#allocation7], 256   ;;  %p10929_p0 = pmov %p10928_p1 }
  0x36   : > { %p260_p5 = scmp.lt.s32.totalorder %s8939_s25, 1  ;;  %vm287_vm0 = vcmask 130048   ;;  %v265_v0 = vld [vmem:[#allocation6] sm:$0xff]  ;;  %v266_v1 = vld [vmem:[#allocation6 + $0x8] sm:$0xff]  ;;  %v269_v27 = vld [vmem:[%s10911_s1 + $0x10] sm:$0xff]  ;;  %vm10922_vm1 = vcmask 261120  }
  0x37   : > { %8843 = vsyncadd (%p10929_p0), [#allocation7], 4294967040  ;;  %v8189_v3 = vpack.c.bf16 %v266_v1, %v265_v0  ;;  %v9043_v19 = vld [vmem:[%s10911_s1] sm:$0xff]  ;;  %v9052_v25 = vld [vmem:[%s10911_s1 + $0x8] sm:$0xff]  ;;  %vm1229_vm2 = vcmask 113664   ;;  %vm1234_vm3 = vcmask 111616  }
  0x38   : > { %s261_s13 = scalar_select %p260_p5, %s8939_s25, 1  ;;  %7577 = vmatprep.mubr.msk.f32.mxu1 %vm287_vm0, %v9043_v19  ;;  %v270_v30 = vld [vmem:[%s10911_s1 + $0x18] sm:$0xff]  ;;  %vm1213_vm4 = vcmask 310272   ;;  %vm1427_vm5 = vcmask 31768   ;;  %vm1498_vm6 = vcmask 39968   ;;  %vm1568_vm7 = vcmask 48168  }
  0x39   : > { %8190 = vmatprep.subr.bf16.mxu0 %v8189_v3  ;;  %s8868_s29 = smov 3   ;;  %vm1638_vm8 = vcmask 56368   ;;  %vm1708_vm9 = vcmask 64568   ;;  %vm1218_vm10 = vcmask 308224   ;;  %vm1396_vm11 = vcmask 278552   ;;  %s257_s26 = sand.u32 1, %s8854_s22  }
  0x3a   : > { %s7173_s14 = sshll.u32 %s261_s13, 7  ;;  %8192 = vmatpush3.bf16.msra.mxu0 %v8189_v3  ;;  %vm1970_vm12 = vcmask 1045504   ;;  %vm1778_vm13 = vcmask 72768   ;;  %vm1848_vm14 = vcmask 80968   ;;  %vm1918_vm15 = vcmask 89168   ;;  %s6756_s28 = sshll.u32 %s257_s26, 8 }
  0x3b   : > { %s9006_s16 = scalar_lea.vmem %s10910_s0, %s7173_s14  ;;  %s10764_s10 = scalar_lea.vmem [#allocation9], %s6756_s28 }
  0x3c   : > { %v271_v2 = vld [vmem:[%s9006_s16] sm:$0xff]  ;;  %v272_v4 = vld [vmem:[%s9006_s16 + $0x8] sm:$0xff]  ;;  %v273_v5 = vld [vmem:[%s9006_s16 + $0x10] sm:$0xff]  ;;  %s7174_s13 = sshll.u32 %s8939_s25, 12  ;;  %s6676_s14 = sshll.u32 %s10764_s10, 4  ;;  %s10863_s14 = int_to_ptr.vmem [resolvable:$true] %s6676_s14 }
  0x3d   : > { %7539 = vmatprep.mubr.msk.f32.mxu0 %vm287_vm0, %v271_v2  ;;  %v274_v6 = vld [vmem:[%s9006_s16 + $0x18] sm:$0xff]  ;;  %v275_v7 = vld [vmem:[%s9006_s16 + $0x20] sm:$0xff]  ;;  %v276_v8 = vld [vmem:[%s9006_s16 + $0x28] sm:$0xff]  ;;  %s10869_s25 = scalar_lea.sflag [#allocation8], %s257_s26  ;;  %p10969_p9 = scmp.ne.s32.totalorder %s10923_s7, 0 }
  0x3e   : > { %7540 = vmatmul.mubr.msk.f32.vlgmr.msra.gmra.mrb[0].mxu0 %vm287_vm0, %v272_v4  ;;  %v277_v9 = vld [vmem:[%s9006_s16 + $0x30] sm:$0xff]  ;;  %v278_v10 = vld [vmem:[%s9006_s16 + $0x38] sm:$0xff]  ;;  %v279_v11 = vld [vmem:[%s9006_s16 + $0x40] sm:$0xff]  ;;  %s8880_s9 = smov [#allocation9]  }
  0x3f   : > { %7542 = vmatprep.mubr.msk.f32.mxu0 %vm287_vm0, %v273_v5  ;;  %v280_v12 = vld [vmem:[%s9006_s16 + $0x48] sm:$0xff]  ;;  %v281_v13 = vld [vmem:[%s9006_s16 + $0x50] sm:$0xff]  ;;  %v282_v14 = vld [vmem:[%s9006_s16 + $0x58] sm:$0xff]  ;;  %s8800_s11 = sshll.u32 %s8880_s9, 4  ;;  %s8801_s11 = int_to_ptr.vmem [resolvable:$false] %s8800_s11 }
  0x40   : > { %v283_v15 = vld [vmem:[%s9006_s16 + $0x60] sm:$0xff]  ;;  %v284_v16 = vld [vmem:[%s9006_s16 + $0x68] sm:$0xff]  ;;  %v285_v17 = vld [vmem:[%s9006_s16 + $0x70] sm:$0xff]  ;;  %s8802_s17 = scalar_lea.vmem %s8801_s11, 8192  ;;  %p8803_p2 = scmp.lt.s32.totalorder %s10863_s14, %s8801_s11 }
  0x41   : > { %v286_v18 = vld [vmem:[%s9006_s16 + $0x78] sm:$0xff]  ;;  %s8796_s16 = scalar_lea.vmem %s10863_s14, 4096 }
  0x42   : > { %7543 = vmatmul.mubr.msk.f32.gmra.mrb[2].mxu0 %vm287_vm0, %v274_v6  ;;  %p8797_p6 = scmp.ne.s32.totalorder %s10863_s14, %s8796_s16  ;;  %p8804_p3 = scmp.lt.s32.totalorder %s8802_s17, %s8796_s16 }
  0x43   : > { %7545 = vmatprep.mubr.msk.f32.mxu0 %vm287_vm0, %v275_v7 }
  0x44   : > { %p8798_p10 = pnand %p8797_p6, %p10969_p9  ;;  %p8805_p4 = por %p8804_p3, %p8803_p2 }
  0x46   : > { %7546 = vmatmul.mubr.msk.f32.gmra.mrb[4].mxu0 %vm287_vm0, %v276_v8  ;;  %p8799_p12 = pneg %p8798_p10 }
  0x47   : > { %7548 = vmatprep.mubr.msk.f32.mxu0 %vm287_vm0, %v277_v9 }
  0x48   : > { %p8806_p7 = pnand %p8805_p4, %p8799_p12 }
  0x4a   : > { %7549 = vmatmul.mubr.msk.f32.gmra.mrb[6].mxu0 %vm287_vm0, %v278_v10 }
  0x4b   : > { %7551 = vmatprep.mubr.msk.f32.mxu0 %vm287_vm0, %v279_v11 }
  0x4e   : > { %7552 = vmatmul.mubr.msk.f32.gmra.mrb[8].mxu0 %vm287_vm0, %v280_v12 }
  0x4f   : > { %7554 = vmatprep.mubr.msk.f32.mxu0 %vm287_vm0, %v281_v13 }
  0x52   : > { %7555 = vmatmul.mubr.msk.f32.gmra.mrb[10].mxu0 %vm287_vm0, %v282_v14 }
  0x53   : > { %7557 = vmatprep.mubr.msk.f32.mxu0 %vm287_vm0, %v283_v15 }
  0x56   : > { %7558 = vmatmul.mubr.msk.f32.gmra.mrb[12].mxu0 %vm287_vm0, %v284_v16 }
  0x57   : > { %7560 = vmatprep.mubr.msk.f32.mxu0 %vm287_vm0, %v285_v17 }
  0x5a   : > { %7561 = vmatmul.mubr.msk.f32.gmra.mrb[14].mxu0 %vm287_vm0, %v286_v18 }
  0x5b   : > { %7567 = vmatprep.mubr.msk.f32.mxu0 %vm287_vm0, %v9043_v19 }
 0x111   : > { %v7541_v20 = vpop.f32.mrb[0].mxu0 }
 0x112   : > { %v402_v21 = vpop.f32.mrb[1].mxu0 }
 0x113   : > { %v8193_v22 = vpack.c.bf16 %v7541_v20, %v402_v21 }
 0x115   : > { %8194 = vmatprep.subr.bf16.mxu0 %v8193_v22  ;;  %v7544_v23 = vpop.f32.mrb[2].mxu0 }
 0x116   : > { %8196 = vmatpush3.bf16.msra.mxu0 %v8193_v22  ;;  %v412_v24 = vpop.f32.mrb[3].mxu0 }
 0x117   : > { %v8197_v26 = vpack.c.bf16 %v7544_v23, %v412_v24  ;;  %v10920_v24 = vmov 0.0  }
 0x118   : > { %1231 = vst.msk [vmem:[#allocation5 + $0x8] sm:$0xff] %vm1229_vm2, %v10920_v24  ;;  %1232 = vst.msk [vmem:[#allocation5 + $0x10] sm:$0xff] %vm1229_vm2, %v10920_v24 }
 0x119   : > { %7568 = vmatmul.mubr.msk.f32.vlgmr.msra.gmra.mrb[16].mxu0 %vm287_vm0, %v9052_v25  ;;  %8198 = vmatprep.subr.bf16.mxu1 %v8197_v26  ;;  %v7547_v28 = vpop.f32.mrb[4].mxu0  ;;  %1230 = vst.msk [vmem:[#allocation5] sm:$0xff] %vm1229_vm2, %v10920_v24  ;;  %1233 = vst.msk [vmem:[#allocation5 + $0x18] sm:$0xff] %vm1229_vm2, %v10920_v24 }
 0x11a   : > { %8200 = vmatpush3.bf16.msra.mxu1 %v8197_v26  ;;  %7570 = vmatprep.mubr.msk.f32.mxu0 %vm287_vm0, %v269_v27  ;;  %v422_v29 = vpop.f32.mrb[5].mxu0  ;;  %1236 = vst.msk [vmem:[#allocation5 + $0x28] sm:$0xff] %vm1229_vm2, %v10920_v24  ;;  %1237 = vst.msk [vmem:[#allocation5 + $0x30] sm:$0xff] %vm1229_vm2, %v10920_v24 }
 0x11b   : > { %v8201_v31 = vpack.c.bf16 %v7547_v28, %v422_v29  ;;  %1238 = vst.msk [vmem:[#allocation5 + $0x38] sm:$0xff] %vm1229_vm2, %v10920_v24  ;;  %1239 = vst.msk [vmem:[#allocation5 + $0x40] sm:$0xff] %vm1229_vm2, %v10920_v24 }
 0x11c   : > { %1235 = vst.msk [vmem:[#allocation5 + $0x20] sm:$0x3f] %vm1234_vm3, %v10920_v24  ;;  %1240 = vst.msk [vmem:[#allocation5 + $0x48] sm:$0x3f] %vm1234_vm3, %v10920_v24  ;;  %vm8870_vm3 = vmmov 0  }
 0x11d   : > { %7578 = vmatmul.mubr.msk.f32.vlgmr.msra.gmra.mrb[0].mxu1 %vm287_vm0, %v9052_v25  ;;  %7571 = vmatmul.mubr.msk.f32.gmra.mrb[18].mxu0 %vm287_vm0, %v270_v30  ;;  %v7550_v32 = vpop.f32.mrb[6].mxu0  ;;  %1227 = vst.msk [vmem:[#allocation4 + $0x10] sm:$0xff] %vm1213_vm4, %v10920_v24  ;;  %1214 = vst.msk [vmem:[#allocation3] sm:$0xff] %vm1213_vm4, %v10920_v24 }
 0x11e   : > { %7580 = vmatprep.mubr.msk.f32.mxu1 %vm287_vm0, %v269_v27  ;;  %v432_v33 = vpop.f32.mrb[7].mxu0  ;;  %8202 = vmatprep.subr.bf16.mxu1 %v8201_v31  ;;  %1215 = vst.msk [vmem:[#allocation3 + $0x8] sm:$0xff] %vm1213_vm4, %v10920_v24  ;;  %1216 = vst.msk [vmem:[#allocation3 + $0x10] sm:$0xff] %vm1213_vm4, %v10920_v24 }
 0x11f   : > { %v8205_v34 = vpack.c.bf16 %v7550_v32, %v432_v33  ;;  %8204 = vmatpush3.bf16.msra.mxu1 %v8201_v31  ;;  %7607 = vmatprep.mubr.msk.f32.mxu0 %vm287_vm0, %v9043_v19  ;;  %1217 = vst.msk [vmem:[#allocation3 + $0x18] sm:$0xff] %vm1213_vm4, %v10920_v24  ;;  %1220 = vst.msk [vmem:[#allocation3 + $0x28] sm:$0xff] %vm1213_vm4, %v10920_v24 }
 0x120   : > { %1221 = vst.msk [vmem:[#allocation3 + $0x30] sm:$0xff] %vm1213_vm4, %v10920_v24  ;;  %1222 = vst.msk [vmem:[#allocation3 + $0x38] sm:$0xff] %vm1213_vm4, %v10920_v24 }
 0x121   : > { %7581 = vmatmul.mubr.msk.f32.gmra.mrb[2].mxu1 %vm287_vm0, %v270_v30  ;;  %v7553_v35 = vpop.f32.mrb[8].mxu0  ;;  %8206 = vmatprep.subr.bf16.mxu1 %v8205_v34  ;;  %1223 = vst.msk [vmem:[#allocation3 + $0x40] sm:$0xff] %vm1213_vm4, %v10920_v24  ;;  %1225 = vst.msk [vmem:[#allocation4] sm:$0xff] %vm1213_vm4, %v10920_v24 }
 0x122   : > { %v442_v36 = vpop.f32.mrb[9].mxu0  ;;  %7587 = vmatprep.mubr.msk.f32.mxu1 %vm287_vm0, %v9043_v19 }
 0x123   : > { %v8209_v37 = vpack.c.bf16 %v7553_v35, %v442_v36 }
 0x125   : > { %7588 = vmatmul.mubr.msk.f32.vlgmr.msra.gmra.mrb[4].mxu1 %vm287_vm0, %v9052_v25  ;;  %8210 = vmatprep.subr.bf16.mxu0 %v8209_v37  ;;  %v7556_v38 = vpop.f32.mrb[10].mxu0 }
 0x126   : > { %8212 = vmatpush3.bf16.msra.mxu0 %v8209_v37  ;;  %7590 = vmatprep.mubr.msk.f32.mxu1 %vm287_vm0, %v269_v27  ;;  %v452_v39 = vpop.f32.mrb[11].mxu0 }
 0x127   : > { %8208 = vmatpush3.bf16.msra.mxu1 %v8205_v34  ;;  %v8213_v40 = vpack.c.bf16 %v7556_v38, %v452_v39 }
 0x129   : > { %7591 = vmatmul.mubr.msk.f32.gmra.mrb[6].mxu1 %vm287_vm0, %v270_v30  ;;  %7608 = vmatmul.mubr.msk.f32.vlgmr.msra.gmra.mrb[20].mxu0 %vm287_vm0, %v9052_v25  ;;  %v7559_v41 = vpop.f32.mrb[12].mxu0 }
 0x12a   : > { %7597 = vmatprep.mubr.msk.f32.mxu1 %vm287_vm0, %v9043_v19  ;;  %8214 = vmatprep.subr.bf16.mxu1 %v8213_v40  ;;  %v462_v42 = vpop.f32.mrb[13].mxu0 }
 0x12b   : > { %v8217_v43 = vpack.c.bf16 %v7559_v41, %v462_v42  ;;  %7610 = vmatprep.mubr.msk.f32.mxu0 %vm287_vm0, %v269_v27 }
 0x12d   : > { %7598 = vmatmul.mubr.msk.f32.vlgmr.msra.gmra.mrb[8].mxu1 %vm287_vm0, %v9052_v25  ;;  %v7562_v44 = vpop.f32.mrb[14].mxu0  ;;  %7611 = vmatmul.mubr.msk.f32.gmra.mrb[22].mxu0 %vm287_vm0, %v270_v30 }
 0x12e   : > { %7600 = vmatprep.mubr.msk.f32.mxu1 %vm287_vm0, %v269_v27  ;;  %8216 = vmatpush3.bf16.msra.mxu1 %v8213_v40  ;;  %v472_v45 = vpop.f32.mrb[15].mxu0 }
 0x12f   : > { %v8221_v46 = vpack.c.bf16 %v7562_v44, %v472_v45  ;;  %8218 = vmatprep.subr.bf16.mxu0 %v8217_v43  ;;  %7627 = vmatprep.mubr.msk.f32.mxu0 %vm287_vm0, %v9043_v19 }
 0x130   : > { %8220 = vmatpush3.bf16.msra.mxu0 %v8217_v43 }
 0x131   : > { %7601 = vmatmul.mubr.msk.f32.gmra.mrb[10].mxu1 %vm287_vm0, %v270_v30  ;;  %8222 = vmatprep.subr.bf16.mxu1 %v8221_v46 }
 0x132   : > { %7617 = vmatprep.mubr.msk.f32.mxu1 %vm287_vm0, %v9043_v19 }
 0x133   : > { %7628 = vmatmul.mubr.msk.f32.vlgmr.msra.gmra.mrb[24].mxu0 %vm287_vm0, %v9052_v25 }
 0x134   : > { %7630 = vmatprep.mubr.msk.f32.mxu0 %vm287_vm0, %v269_v27 }
 0x135   : > { %7618 = vmatmul.mubr.msk.f32.vlgmr.msra.gmra.mrb[12].mxu1 %vm287_vm0, %v9052_v25 }
 0x136   : > { %7620 = vmatprep.mubr.msk.f32.mxu1 %vm287_vm0, %v269_v27  ;;  %8224 = vmatpush3.bf16.msra.mxu1 %v8221_v46 }
 0x137   : > { %7631 = vmatmul.mubr.msk.f32.gmra.mrb[26].mxu0 %vm287_vm0, %v270_v30 }
 0x139   : > { %7621 = vmatmul.mubr.msk.f32.gmra.mrb[14].mxu1 %vm287_vm0, %v270_v30 }
 0x13a   : > { %7637 = vmatprep.mubr.msk.f32.mxu1 %vm287_vm0, %v9043_v19 }
 0x13d   : > { %7638 = vmatmul.mubr.msk.f32.vlgmr.msra.gmra.mrb[16].mxu1 %vm287_vm0, %v9052_v25 }
 0x13e   : > { %7640 = vmatprep.mubr.msk.f32.mxu1 %vm287_vm0, %v269_v27 }
 0x141   : > { %7641 = vmatmul.mubr.msk.f32.gmra.mrb[18].mxu1 %vm287_vm0, %v270_v30  ;;  %vm1345_vm0 = vcmask 285720  }
 0x1ec   : > { %v7569_v47 = vpop.f32.mrb[16].mxu0 }
 0x1ed   : > { %580 = vst.msk [vmem:[#allocation2 + $0x8] sm:$0xff] %vm10922_vm1, %v7569_v47  ;;  %v559_v48 = vpop.f32.mrb[17].mxu0 }
 0x1ee   : > { %579 = vst.msk [vmem:[#allocation2] sm:$0xff] %vm10922_vm1, %v559_v48 }
 0x1f0   : > { %v7572_v49 = vpop.f32.mrb[18].mxu0  ;;  %v7579_v50 = vpop.f32.mrb[0].mxu1 }
 0x1f1   : > { %582 = vst.msk [vmem:[#allocation2 + $0x18] sm:$0xff] %vm10922_vm1, %v7572_v49  ;;  %670 = vst.msk [vmem:[#allocation2 + $0x28] sm:$0xff] %vm10922_vm1, %v7579_v50  ;;  %v649_v51 = vpop.f32.mrb[1].mxu1  ;;  %v569_v52 = vpop.f32.mrb[19].mxu0 }
 0x1f2   : > { %669 = vst.msk [vmem:[#allocation2 + $0x20] sm:$0xff] %vm10922_vm1, %v649_v51  ;;  %581 = vst.msk [vmem:[#allocation2 + $0x10] sm:$0xff] %vm10922_vm1, %v569_v52 }
 0x1f4   : > { %v9110_v53 = vld [vmem:[#allocation2 + $0x8] sm:$0xff]  ;;  %v7582_v54 = vpop.f32.mrb[2].mxu1 }
 0x1f5   : > { %v1380_v55 = vsel %vm10922_vm1, %v9110_v53, -inf  ;;  %v9114_v56 = vld [vmem:[#allocation2] sm:$0xff]  ;;  %672 = vst.msk [vmem:[#allocation2 + $0x38] sm:$0xff] %vm10922_vm1, %v7582_v54  ;;  %v659_v57 = vpop.f32.mrb[3].mxu1  ;;  %v9126_v63 = vsel %vm10922_vm1, %v9110_v53, 0.0 }
 0x1f6   : > { %1421 = vmax.xlane.f32.xlu1 %v1380_v55  ;;  %v1379_v58 = vsel %vm10922_vm1, %v9114_v56, -inf  ;;  %671 = vst.msk [vmem:[#allocation2 + $0x30] sm:$0xff] %vm10922_vm1, %v659_v57  ;;  %v9142_v6 = vsel %vm10922_vm1, %v9114_v56, 0.0 }
 0x1f7   : > { %1419 = vmax.xlane.f32.xlu0 %v1379_v58  ;;  %v1383_v59 = vmax.f32 %v1379_v58, %v1380_v55 }
 0x1f8   : > { %v7589_v60 = vpop.f32.mrb[4].mxu1  ;;  %v9120_v61 = vld [vmem:[#allocation2 + $0x18] sm:$0xff]  ;;  %v9122_v62 = vld [vmem:[#allocation2 + $0x28] sm:$0xff] }
 0x1f9   : > { %760 = vst.msk [vmem:[#allocation2 + $0x48] sm:$0xff] %vm10922_vm1, %v7589_v60  ;;  %v739_v0 = vpop.f32.mrb[5].mxu1  ;;  %v1382_v1 = vsel %vm10922_vm1, %v9120_v61, -inf  ;;  %v1454_v2 = vsel %vm10922_vm1, %v9122_v62, -inf  ;;  %v9133_v3 = vld [vmem:[#allocation2 + $0x20] sm:$0xff]  ;;  %v9135_v4 = vld [vmem:[#allocation2 + $0x10] sm:$0xff]  ;;  %v1250_v5 = vmax.f32 %v9110_v53, %v9122_v62  ;;  %v9163_v16 = vadd.f32 %v9122_v62, %v9110_v53 }
 0x1fa   : > { %1434 = vadd.xlane.f32.xlu1 %v9126_v63  ;;  %759 = vst.msk [vmem:[#allocation2 + $0x40] sm:$0xff] %vm10922_vm1, %v739_v0  ;;  %v1453_v7 = vsel %vm10922_vm1, %v9133_v3, -inf  ;;  %v9149_v8 = vsel %vm10922_vm1, %v9135_v4, -inf  ;;  %v1249_v14 = vmax.f32 %v9114_v56, %v9133_v3  ;;  %v9159_v15 = vadd.f32 %v9133_v3, %v9114_v56 }
 0x1fb   : > { %1432 = vadd.xlane.f32.xlu0 %v9142_v6  ;;  %v1457_v9 = vmax.f32 %v1453_v7, %v1454_v2  ;;  %v1384_v10 = vmax.f32 %v9149_v8, %v1382_v1  ;;  %v1471_v47 = vsel %vm10922_vm1, %v9133_v3, 0.0  ;;  %v9242_v48 = vsel %vm10922_vm1, %v9122_v62, 0.0 }
 0x1fc   : > { %v7609_v11 = vpop.f32.mrb[20].mxu0  ;;  %v9153_v12 = vld [vmem:[#allocation2 + $0x38] sm:$0xff]  ;;  %v7592_v13 = vpop.f32.mrb[6].mxu1 }
 0x1fd   : > { %940 = vst.msk [vmem:[#allocation2 + $0x88] sm:$0xff] %vm10922_vm1, %v7609_v11  ;;  %v1456_v17 = vsel %vm10922_vm1, %v9153_v12, -inf  ;;  %762 = vst.msk [vmem:[#allocation2 + $0x58] sm:$0xff] %vm10922_vm1, %v7592_v13  ;;  %v749_v18 = vpop.f32.mrb[7].mxu1  ;;  %v9169_v19 = vmax.f32 %v1383_v59, %v1384_v10  ;;  %v919_v20 = vpop.f32.mrb[21].mxu0  ;;  %v9171_v21 = vld [vmem:[#allocation2 + $0x30] sm:$0xff]  ;;  %v1252_v27 = vmax.f32 %v9120_v61, %v9153_v12  ;;  %v1473_v59 = vadd.f32 %v9242_v48, %v1471_v47 }
 0x1fe   : > { %1425 = vmax.xlane.f32.xlu1 %v1382_v1  ;;  %761 = vst.msk [vmem:[#allocation2 + $0x50] sm:$0xff] %vm10922_vm1, %v749_v18  ;;  %939 = vst.msk [vmem:[#allocation2 + $0x80] sm:$0xff] %vm10922_vm1, %v919_v20  ;;  %v9177_v22 = vsel %vm10922_vm1, %v9171_v21, -inf  ;;  %v1251_v28 = vmax.f32 %v9135_v4, %v9171_v21  ;;  %v9202_v29 = vadd.f32 %v9171_v21, %v9135_v4  ;;  %v9297_v20 = vsel %vm10922_vm1, %v9153_v12, 0.0 }
 0x1ff   : > { %1492 = vmax.xlane.f32.xlu0 %v1454_v2  ;;  %v1458_v23 = vmax.f32 %v9177_v22, %v1456_v17  ;;  %v9276_v2 = vsel %vm10922_vm1, %v9171_v21, 0.0 }
 0x200   : > { %v7599_v25 = vpop.f32.mrb[8].mxu1  ;;  %v7612_v26 = vpop.f32.mrb[22].mxu0  ;;  %v9210_v34 = vld [vmem:[#allocation2 + $0x48] sm:$0xff] }
 0x201   : > { %v9204_v30 = vld [vmem:[#allocation2 + $0x40] sm:$0xff]  ;;  %850 = vst.msk [vmem:[#allocation2 + $0x68] sm:$0xff] %vm10922_vm1, %v7599_v25  ;;  %v829_v31 = vpop.f32.mrb[9].mxu1  ;;  %942 = vst.msk [vmem:[#allocation2 + $0x98] sm:$0xff] %vm10922_vm1, %v7612_v26  ;;  %v929_v32 = vpop.f32.mrb[23].mxu0  ;;  %v9208_v33 = vmax.f32 %v1457_v9, %v1458_v23  ;;  %v9218_v36 = vsel %vm10922_vm1, %v9210_v34, -inf  ;;  %v9226_v41 = vmax.f32 %v1250_v5, %v9210_v34 }
 0x202   : > { %1496 = vmax.xlane.f32.xlu1 %v1456_v17  ;;  %v1523_v35 = vsel %vm10922_vm1, %v9204_v30, -inf  ;;  %849 = vst.msk [vmem:[#allocation2 + $0x60] sm:$0xff] %vm10922_vm1, %v829_v31  ;;  %941 = vst.msk [vmem:[#allocation2 + $0x90] sm:$0xff] %vm10922_vm1, %v929_v32  ;;  %v9229_v42 = vmax.f32 %v1249_v14, %v9204_v30  ;;  %v1475_v17 = vadd.f32 %v9276_v2, %v1473_v59 }
 0x203   : > { %1490 = vmax.xlane.f32.xlu0 %v1453_v7  ;;  %v1527_v37 = vmax.f32 %v1523_v35, %v9218_v36 }
 0x204   : > { %v9221_v38 = vld [vmem:[#allocation2 + $0x88] sm:$0xff]  ;;  %v7602_v39 = vpop.f32.mrb[10].mxu1  ;;  %v9223_v40 = vld [vmem:[#allocation2 + $0x58] sm:$0xff]  ;;  %v1477_v31 = vadd.f32 %v9297_v20, %v1475_v17 }
 0x205   : > { %v1664_v43 = vsel %vm10922_vm1, %v9221_v38, -inf  ;;  %852 = vst.msk [vmem:[#allocation2 + $0x78] sm:$0xff] %vm10922_vm1, %v7602_v39  ;;  %v839_v44 = vpop.f32.mrb[11].mxu1  ;;  %v1526_v45 = vsel %vm10922_vm1, %v9223_v40, -inf  ;;  %v9236_v46 = vld [vmem:[#allocation2 + $0x80] sm:$0xff]  ;;  %v9249_v51 = vld [vmem:[#allocation2 + $0x50] sm:$0xff] }
 0x206   : > { %1560 = vmax.xlane.f32.xlu1 %v1523_v35  ;;  %851 = vst.msk [vmem:[#allocation2 + $0x70] sm:$0xff] %vm10922_vm1, %v839_v44  ;;  %v7629_v49 = vpop.f32.mrb[24].mxu0  ;;  %v9247_v50 = vsel %vm10922_vm1, %v9236_v46, -inf  ;;  %v9256_v54 = vsel %vm10922_vm1, %v9249_v51, -inf  ;;  %v1478_v59 = vrot.slane %v1477_v31, 4 }
 0x207   : > { %1423 = vmax.xlane.f32.xlu0 %v9149_v8  ;;  %1120 = vst.msk [vmem:[#allocation2 + $0xc8] sm:$0xff] %vm10922_vm1, %v7629_v49  ;;  %v1099_v52 = vpop.f32.mrb[25].mxu0  ;;  %v1667_v53 = vmax.f32 %v9247_v50, %v1664_v43  ;;  %v1528_v57 = vmax.f32 %v9256_v54, %v1526_v45  ;;  %v9331_v49 = vsel %vm10922_vm1, %v9135_v4, 0.0 }
 0x208   : > { %v7619_v55 = vpop.f32.mrb[12].mxu1  ;;  %v9258_v56 = vld [vmem:[#allocation2 + $0x68] sm:$0xff]  ;;  %1119 = vst.msk [vmem:[#allocation2 + $0xc0] sm:$0xff] %vm10922_vm1, %v1099_v52  ;;  %v9262_v58 = vld [vmem:[#allocation2 + $0x98] sm:$0xff] }
 0x209   : > { %1030 = vst.msk [vmem:[#allocation2 + $0xa8] sm:$0xff] %vm10922_vm1, %v7619_v55  ;;  %v1009_v60 = vpop.f32.mrb[13].mxu1  ;;  %v1594_v62 = vsel %vm10922_vm1, %v9258_v56, -inf  ;;  %v9268_v0 = vld [vmem:[#allocation2 + $0x60] sm:$0xff]  ;;  %v9272_v1 = vsel %vm10922_vm1, %v9262_v58, -inf  ;;  %v9281_v5 = vmax.f32 %v1527_v37, %v1528_v57  ;;  %v9283_v8 = vld [vmem:[#allocation2 + $0x90] sm:$0xff] }
 0x20a   : > { %1702 = vmax.xlane.f32.xlu1 %v1664_v43  ;;  %1029 = vst.msk [vmem:[#allocation2 + $0xa0] sm:$0xff] %vm10922_vm1, %v1009_v60  ;;  %v1593_v3 = vsel %vm10922_vm1, %v9268_v0, -inf  ;;  %v7632_v7 = vpop.f32.mrb[26].mxu0  ;;  %v9288_v11 = vsel %vm10922_vm1, %v9283_v8, -inf }
 0x20b   : > { %1503 = vadd.xlane.f32.xlu0 %v1471_v47  ;;  %v1597_v9 = vmax.f32 %v1593_v3, %v1594_v62  ;;  %1122 = vst.msk [vmem:[#allocation2 + $0xd8] sm:$0xff] %vm10922_vm1, %v7632_v7  ;;  %v1109_v10 = vpop.f32.mrb[27].mxu0  ;;  %v1668_v14 = vmax.f32 %v9288_v11, %v9272_v1 }
 0x20c   : > { %v7622_v13 = vpop.f32.mrb[14].mxu1  ;;  %1121 = vst.msk [vmem:[#allocation2 + $0xd0] sm:$0xff] %vm10922_vm1, %v1109_v10  ;;  %v9303_v26 = vld [vmem:[#allocation2 + $0x78] sm:$0xff] }
 0x20d   : > { %1032 = vst.msk [vmem:[#allocation2 + $0xb8] sm:$0xff] %vm10922_vm1, %v7622_v13  ;;  %v1019_v18 = vpop.f32.mrb[15].mxu1  ;;  %v9300_v23 = vmax.f32 %v1667_v53, %v1668_v14  ;;  %v1596_v37 = vsel %vm10922_vm1, %v9303_v26, -inf  ;;  %v9320_v44 = vld [vmem:[#allocation2 + $0x70] sm:$0xff]  ;;  %v1479_v14 = vadd.f32 %v1478_v59, %v1477_v31 }
 0x20e   : > { %1566 = vmax.xlane.f32.xlu1 %v1526_v45  ;;  %1031 = vst.msk [vmem:[#allocation2 + $0xb0] sm:$0xff] %vm10922_vm1, %v1019_v18  ;;  %v9307_v35 = vld [vmem:[#allocation2 + $0xc8] sm:$0xff]  ;;  %v9327_v47 = vsel %vm10922_vm1, %v9320_v44, -inf }
 0x20f   : > { %1494 = vmax.xlane.f32.xlu0 %v9177_v22  ;;  %v9311_v39 = vld [vmem:[#allocation2 + $0xc0] sm:$0xff]  ;;  %v1804_v22 = vsel %vm10922_vm1, %v9307_v35, -inf  ;;  %v1598_v55 = vmax.f32 %v9327_v47, %v1596_v37 }
 0x210   : > { %v7639_v25 = vpop.f32.mrb[16].mxu1  ;;  %v9318_v43 = vsel %vm10922_vm1, %v9311_v39, -inf  ;;  %v9365_v18 = vld [vmem:[#allocation2 + $0xa8] sm:$0xff] }
 0x211   : > { %1210 = vst.msk [vmem:[#allocation2 + $0xe8] sm:$0xff] %vm10922_vm1, %v7639_v25  ;;  %v1189_v32 = vpop.f32.mrb[17].mxu1  ;;  %v9349_v10 = vmax.f32 %v1597_v9, %v1598_v55  ;;  %v1274_v9 = vmax.f32 %v9226_v41, %v9258_v56  ;;  %v9382_v55 = vld [vmem:[#allocation2 + $0xa0] sm:$0xff] }
 0x212   : > { %1632 = vmax.xlane.f32.xlu1 %v1594_v62  ;;  %1209 = vst.msk [vmem:[#allocation2 + $0xe0] sm:$0xff] %vm10922_vm1, %v1189_v32  ;;  %v9338_v57 = vld [vmem:[#allocation2 + $0xd8] sm:$0xff]  ;;  %v1807_v62 = vmax.f32 %v9318_v43, %v1804_v22 }
 0x213   : > { %1562 = vmax.xlane.f32.xlu0 %v9218_v36  ;;  %v9323_v45 = vld [vmem:[#allocation2 + $0xd0] sm:$0xff]  ;;  %v1400_v36 = vadd.f32 %v9126_v63, %v9142_v6  ;;  %v9346_v7 = vsel %vm10922_vm1, %v9338_v57, -inf  ;;  %v9357_v6 = vsel %vm10922_vm1, %v9120_v61, 0.0  ;;  %v1286_v25 = vmax.f32 %v1274_v9, %v9221_v38 }
 0x214   : > { %v7642_v52 = vpop.f32.mrb[18].mxu1  ;;  %v9335_v53 = vsel %vm10922_vm1, %v9323_v45, -inf }
 0x215   : > { %1212 = vst.msk [vmem:[#allocation2 + $0xf8] sm:$0xff] %vm10922_vm1, %v7642_v52  ;;  %v1199_v60 = vpop.f32.mrb[19].mxu1  ;;  %v1402_v13 = vadd.f32 %v9331_v49, %v1400_v36  ;;  %v1808_v63 = vmax.f32 %v9335_v53, %v9346_v7  ;;  %v1298_v31 = vmax.f32 %v1286_v25, %v9365_v18  ;;  %v1263_v25 = vmax.f32 %v1251_v28, %v9249_v51 }
 0x216   : > { %1630 = vmax.xlane.f32.xlu1 %v1593_v3  ;;  %1211 = vst.msk [vmem:[#allocation2 + $0xf0] sm:$0xff] %vm10922_vm1, %v1199_v60  ;;  %v1256_v28 = vadd.f32 %v9153_v12, %v9120_v61 }
 0x217   : > { %1700 = vmax.xlane.f32.xlu0 %v9247_v50  ;;  %v9359_v17 = vmax.f32 %v1807_v62, %v1808_v63  ;;  %v1404_v3 = vadd.f32 %v9357_v6, %v1402_v13  ;;  %v1480_v50 = vrot.slane %v1479_v14, 2  ;;  %v9386_v62 = vld [vmem:[#allocation2 + $0xb8] sm:$0xff] }
 0x219   : > { %v1405_v32 = vrot.slane %v1404_v3, 4  ;;  %v1481_v52 = vadd.f32 %v1480_v50, %v1479_v14 }
 0x21a   : > { %1842 = vmax.xlane.f32.xlu1 %v1804_v22  ;;  %v9371_v22 = vmax.f32 %v1298_v31, %v9307_v35  ;;  %v1275_v31 = vmax.f32 %v1263_v25, %v9320_v44 }
 0x21b   : > { %1564 = vmax.xlane.f32.xlu0 %v9256_v54  ;;  %v1406_v41 = vadd.f32 %v1405_v32, %v1404_v3  ;;  %v1482_v54 = vrot.slane %v1481_v52, 1  ;;  %v1265_v32 = vadd.f32 %v9204_v30, %v9159_v15 }
 0x21d   : > { %v1407_v36 = vrot.slane %v1406_v41, 2  ;;  %v1483_v13 = vadd.f32 %v1482_v54, %v1481_v52  ;;  %v1267_v52 = vadd.f32 %v9249_v51, %v9202_v29  ;;  %v1277_v54 = vadd.f32 %v9268_v0, %v1265_v32 }
 0x21e   : > { %1636 = vmax.xlane.f32.xlu1 %v1596_v37  ;;  %v1273_v37 = vmax.f32 %v9229_v42, %v9268_v0 }
 0x21f   : > { %1706 = vmax.xlane.f32.xlu0 %v9272_v1  ;;  %v1264_v1 = vmax.f32 %v1252_v27, %v9223_v40  ;;  %v1408_v14 = vadd.f32 %v1407_v36, %v1406_v41  ;;  %v1484_v42 = vmul.f32 0.03125, %v1483_v13  ;;  %v9427_v41 = vld [vmem:[#allocation2 + $0xb0] sm:$0xff]  ;;  %v1279_v36 = vadd.f32 %v9320_v44, %v1267_v52  ;;  %v9440_v13 = vld [vmem:[#allocation2 + $0xe0] sm:$0xff] }
 0x220   : > { %v1285_v60 = vmax.f32 %v1273_v37, %v9236_v46  ;;  %v1287_v37 = vmax.f32 %v1275_v31, %v9283_v8  ;;  %v1289_v4 = vadd.f32 %v9236_v46, %v1277_v54 }
 0x221   : > { %v1276_v59 = vmax.f32 %v1264_v1, %v9303_v26  ;;  %v1409_v50 = vrot.slane %v1408_v14, 1  ;;  %v1291_v15 = vadd.f32 %v9283_v8, %v1279_v36  ;;  %v9468_v36 = vld [vmem:[#allocation2 + $0xe8] sm:$0xff] }
 0x222   : > { %v1297_v63 = vmax.f32 %v1285_v60, %v9382_v55  ;;  %v1299_v21 = vmax.f32 %v1287_v37, %v9427_v41  ;;  %v1301_v29 = vadd.f32 %v9382_v55, %v1289_v4  ;;  %v1322_v24 = vmax.f32 %v9371_v22, %v9468_v36 }
 0x223   : > { %1704 = vmax.xlane.f32.xlu0 %v9288_v11  ;;  %v1288_v11 = vmax.f32 %v1276_v59, %v9262_v58  ;;  %v1410_v1 = vadd.f32 %v1409_v50, %v1408_v14  ;;  %v9437_v59 = vld [vmem:[#allocation2 + $0xf0] sm:$0xff]  ;;  %v1268_v14 = vadd.f32 %v9223_v40, %v1256_v28  ;;  %v9541_v22 = vsel %vm10922_vm1, %v9258_v56, 0.0 }
 0x224   : > { %v9392_v3 = vmax.f32 %v1297_v63, %v9311_v39  ;;  %v1303_v63 = vadd.f32 %v9427_v41, %v1291_v15 }
 0x225   : > { %v1300_v27 = vmax.f32 %v1288_v11, %v9386_v62  ;;  %v1412_v60 = vmul.f32 0.03125, %v1410_v1  ;;  %v9443_v11 = vmax.f32 %v1299_v21, %v9323_v45  ;;  %v1280_v50 = vadd.f32 %v9303_v26, %v1268_v14  ;;  %v9465_v1 = vld [vmem:[#allocation2 + $0xf8] sm:$0xff] }
 0x226   : > { %v1315_v12 = vadd.f32 %v9323_v45, %v1303_v63  ;;  %v9489_v63 = vsel %vm10922_vm1, %v9210_v34, 0.0 }
 0x227   : > { %v9395_v9 = vmax.f32 %v1300_v27, %v9338_v57  ;;  %v1313_v27 = vadd.f32 %v9311_v39, %v1301_v29  ;;  %v1292_v52 = vadd.f32 %v9262_v58, %v1280_v50  ;;  %v9480_v29 = vsel %vm10922_vm1, %v9365_v18, -inf }
 0x228   : > { %v9460_v31 = vadd.f32 %v9437_v59, %v1315_v12  ;;  %v9520_v12 = vsel %vm10922_vm1, %v9468_v36, -inf  ;;  %v1530_v50 = vrot.slane %v9281_v5, 4 }
 0x229   : > { %v9456_v25 = vadd.f32 %v9440_v13, %v1313_v27  ;;  %v1304_v54 = vadd.f32 %v9386_v62, %v1292_v52  ;;  %v9497_v27 = vsel %vm10922_vm1, %v9249_v51, 0.0  ;;  %v9513_v51 = vsel %vm10922_vm1, %v9427_v41, -inf }
 0x22b   : > { %v1316_v4 = vadd.f32 %v9338_v57, %v1304_v54 }
 0x22d   : > { %v9473_v15 = vadd.f32 %v9465_v1, %v1316_v4 }
 0x22f   : > { %1486 = vrot.lane.b32.xlu1 %v1484_v42, %s8868_s29  ;;  %v1266_v42 = vadd.f32 %v9210_v34, %v9163_v16  ;;  %10930 = vst [vmem:[#allocation12_spill] sm:$0xff] %v9473_v15  ;;  %v9508_v34 = vsel %vm10922_vm1, %v9223_v40, 0.0  ;;  %v9526_v40 = vsel %vm10922_vm1, %v9382_v55, -inf }
 0x231   : > { %v1278_v32 = vadd.f32 %v9258_v56, %v1266_v42  ;;  %v9501_v42 = vsel %vm10922_vm1, %v9386_v62, -inf  ;;  %v9553_v56 = vsel %vm10922_vm1, %v9320_v44, 0.0  ;;  %v9568_v44 = vsel %vm10922_vm1, %v9303_v26, 0.0 }
 0x233   : > { %v1290_v16 = vadd.f32 %v9221_v38, %v1278_v32 }
 0x235   : > { %v1302_v37 = vadd.f32 %v9365_v18, %v1290_v16 }
 0x237   : > { %v1314_v21 = vadd.f32 %v9307_v35, %v1302_v37 }
 0x239   : > { %1414 = vrot.lane.b32.xlu0 %v1412_v60, %s8868_s29  ;;  %v9476_v28 = vadd.f32 %v9468_v36, %v1314_v21  ;;  %v9485_v60 = vsel %vm10922_vm1, %v9204_v30, 0.0 }
 0x23a   : > { %v1543_v14 = vadd.f32 %v9489_v63, %v9485_v60 }
 0x23b   : > { %10931 = vst [vmem:[#allocation13_spill] sm:$0xff] %v9476_v28 }
 0x23c   : > { %v1545_v30 = vadd.f32 %v9497_v27, %v1543_v14 }
 0x253   : > { %1772 = vmax.xlane.f32.xlu1 %v9480_v29 }
 0x257   : > { %1844 = vmax.xlane.f32.xlu1 %v9335_v53  ;;  %v1547_v53 = vadd.f32 %v9508_v34, %v1545_v30 }
 0x258   : > { %1840 = vmax.xlane.f32.xlu0 %v9318_v43  ;;  %v1670_v43 = vrot.slane %v9300_v23, 4 }
 0x259   : > { %v1548_v32 = vrot.slane %v1547_v53, 4 }
 0x25b   : > { %1776 = vmax.xlane.f32.xlu1 %v9501_v42  ;;  %v1549_v16 = vadd.f32 %v1548_v32, %v1547_v53 }
 0x25c   : > { %1634 = vmax.xlane.f32.xlu0 %v9327_v47  ;;  %v1671_v47 = vmax.f32 %v9300_v23, %v1670_v43 }
 0x25d   : > { %v1550_v4 = vrot.slane %v1549_v16, 2 }
 0x25e   : > { %v1672_v52 = vrot.slane %v1671_v47, 2 }
 0x25f   : > { %1774 = vmax.xlane.f32.xlu1 %v9513_v51  ;;  %v1551_v14 = vadd.f32 %v1550_v4, %v1549_v16  ;;  %v9563_v16 = vsel %vm10922_vm1, %v9236_v46, 0.0 }
 0x260   : > { %1846 = vmax.xlane.f32.xlu0 %v9346_v7  ;;  %v1531_v7 = vmax.f32 %v9281_v5, %v1530_v50  ;;  %v1673_v54 = vmax.f32 %v1671_v47, %v1672_v52 }
 0x261   : > { %v1552_v61 = vrot.slane %v1551_v14, 1 }
 0x262   : > { %v1532_v37 = vrot.slane %v1531_v7, 2  ;;  %v1674_v21 = vrot.slane %v1673_v54, 1 }
 0x263   : > { %1912 = vmax.xlane.f32.xlu1 %v9520_v12  ;;  %v1553_v15 = vadd.f32 %v1552_v61, %v1551_v14 }
 0x264   : > { %1770 = vmax.xlane.f32.xlu0 %v9526_v40  ;;  %v1533_v23 = vmax.f32 %v1531_v7, %v1532_v37  ;;  %v1675_v30 = vmax.f32 %v1673_v54, %v1674_v21  ;;  %v9559_v7 = vsel %vm10922_vm1, %v9221_v38, 0.0  ;;  %v9576_v38 = vsel %vm10922_vm1, %v9283_v8, 0.0 }
 0x265   : > { %v1554_v5 = vmul.f32 0.03125, %v1553_v15  ;;  %v1683_v21 = vadd.f32 %v9559_v7, %v9563_v16 }
 0x266   : > { %v1534_v43 = vrot.slane %v1533_v23, 1 }
 0x267   : > { %v1685_v14 = vadd.f32 %v9576_v38, %v1683_v21 }
 0x268   : > { %v1535_v28 = vmax.f32 %v1533_v23, %v1534_v43 }
 0x274   : > { %1677 = vrot.lane.b32.xlu1 %v1675_v30, %s8868_s29  ;;  %v9584_v30 = vsel %vm10922_vm1, %v9262_v58, 0.0 }
 0x275   : > { %v1687_v8 = vadd.f32 %v9584_v30, %v1685_v14 }
 0x278   : > { %1335 = vrot.lane.b32.xlu1 %v1322_v24, %s8868_s29  ;;  %v9545_v24 = vsel %vm10922_vm1, %v9268_v0, 0.0 }
 0x279   : > { %v1613_v32 = vadd.f32 %v9541_v22, %v9545_v24 }
 0x27a   : > { %1537 = vrot.lane.b32.xlu0 %v1535_v28, %s8868_s29 }
 0x27b   : > { %v1615_v54 = vadd.f32 %v9553_v56, %v1613_v32  ;;  %v1688_v32 = vrot.slane %v1687_v8, 4 }
 0x27d   : > { %v1617_v46 = vadd.f32 %v9568_v44, %v1615_v54 }
 0x27e   : > { %1556 = vrot.lane.b32.xlu0 %v1554_v5, %s8868_s29 }
 0x27f   : > { %v1618_v43 = vrot.slane %v1617_v46, 4 }
 0x283   : > { %v1422_v53 = vpop.xlane.xlu1 %1421 }
 0x284   : > { %1429 = vst.msk [vmem:[#allocation5 + $0xb] sm:$0xff] %vm1427_vm5, %v1422_v53  ;;  %v1420_v47 = vpop.xlane.xlu0 %1419 }
 0x285   : > { %1428 = vst.msk [vmem:[#allocation5 + $0x3] sm:$0xff] %vm1427_vm5, %v1420_v47 }
 0x287   : > { %v1435_v50 = vpop.xlane.xlu1 %1434 }
 0x288   : > { %v1441_v61 = vmul.f32 0.03125, %v1435_v50  ;;  %v1433_v15 = vpop.xlane.xlu0 %1432  ;;  %v1619_v50 = vadd.f32 %v1618_v43, %v1617_v46 }
 0x289   : > { %v1440_v28 = vmul.f32 0.03125, %v1433_v15  ;;  %v9590_v15 = vsel %vm10922_vm1, %v9437_v59, -inf }
 0x28a   : > { %1446 = vst.msk [vmem:[#allocation5 + $0x33] sm:$0xff] %vm1427_vm5, %v1441_v61 }
 0x28b   : > { %1445 = vst.msk [vmem:[#allocation5 + $0x2b] sm:$0xff] %vm1427_vm5, %v1440_v28  ;;  %v1426_v52 = vpop.xlane.xlu1 %1425  ;;  %v9596_v28 = vsel %vm10922_vm1, %v9440_v13, -inf }
 0x28c   : > { %1431 = vst.msk [vmem:[#allocation5 + $0x1b] sm:$0xff] %vm1427_vm5, %v1426_v52  ;;  %v1493_v0 = vpop.xlane.xlu0 %1492 }
 0x28d   : > { %1500 = vst.msk [vmem:[#allocation5 + $0xb] sm:$0xff] %vm1498_vm6, %v1493_v0  ;;  %v1620_v0 = vrot.slane %v1619_v50, 2 }
 0x28f   : > { %v1497_v37 = vpop.xlane.xlu1 %1496  ;;  %v1621_v21 = vadd.f32 %v1620_v0, %v1619_v50  ;;  %v10932_v50 = vmov 0.0  }
 0x290   : > { %1502 = vst.msk [vmem:[#allocation5 + $0x1b] sm:$0xff] %vm1498_vm6, %v1497_v37  ;;  %v1491_v4 = vpop.xlane.xlu0 %1490  ;;  %v1689_v37 = vadd.f32 %v1688_v32, %v1687_v8  ;;  %v6808_v32 = vld [vmem:[%s10913_s3 + $0x30] sm:$0xff]  ;;  %7942 = vmatprep.mubr.msk.f32.mxu1 %vm8870_vm3, %v10932_v50 }
 0x291   : > { %1499 = vst.msk [vmem:[#allocation5 + $0x3] sm:$0xff] %vm1498_vm6, %v1491_v4  ;;  %v1622_v14 = vrot.slane %v1621_v21, 1 }
 0x292   : > { %1219 = vst.msk [vmem:[#allocation3 + $0x20] sm:$0x3f] %vm1218_vm10, %v10932_v50  ;;  %1224 = vst.msk [vmem:[#allocation3 + $0x48] sm:$0x3f] %vm1218_vm10, %v10932_v50 }
 0x293   : > { %v1561_v23 = vpop.xlane.xlu1 %1560  ;;  %1226 = vst.msk [vmem:[#allocation4 + $0x8] sm:$0x3f] %vm1218_vm10, %v10932_v50  ;;  %1228 = vst.msk [vmem:[#allocation4 + $0x18] sm:$0x3f] %vm1218_vm10, %v10932_v50  ;;  %vm8871_vm10 = vmmov 1  }
 0x294   : > { %1569 = vst.msk [vmem:[#allocation5 + $0x3] sm:$0xff] %vm1568_vm7, %v1561_v23  ;;  %v1424_v26 = vpop.xlane.xlu0 %1423  ;;  %v1690_v23 = vrot.slane %v1689_v37, 2 }
 0x295   : > { %1430 = vst.msk [vmem:[#allocation5 + $0x13] sm:$0xff] %vm1427_vm5, %v1424_v26 }
 0x297   : > { %v1703_v5 = vpop.xlane.xlu1 %1702 }
 0x298   : > { %v1504_v53 = vpop.xlane.xlu0 %1503 }
 0x299   : > { %v1511_v47 = vmul.f32 0.03125, %v1504_v53  ;;  %v1691_v53 = vadd.f32 %v1690_v23, %v1689_v37  ;;  %v6810_v23 = vld [vmem:[%s10913_s3 + $0x40] sm:$0xff] }
 0x29b   : > { %1515 = vst.msk [vmem:[#allocation5 + $0x2b] sm:$0xff] %vm1498_vm6, %v1511_v47  ;;  %v1567_v61 = vpop.xlane.xlu1 %1566  ;;  %v1324_v47 = vmax.f32 %v9395_v9, %v9465_v1  ;;  %v6807_v9 = vld [vmem:[%s10913_s3 + $0x28] sm:$0xff] }
 0x29c   : > { %1572 = vst.msk [vmem:[#allocation5 + $0x1b] sm:$0xff] %vm1568_vm7, %v1567_v61  ;;  %1914 = vmax.xlane.f32.xlu1 %v9590_v15  ;;  %v1495_v58 = vpop.xlane.xlu0 %1494  ;;  %v1623_v61 = vadd.f32 %v1622_v14, %v1621_v21 }
 0x29d   : > { %1501 = vst.msk [vmem:[#allocation5 + $0x13] sm:$0xff] %vm1498_vm6, %v1495_v58  ;;  %1910 = vmax.xlane.f32.xlu0 %v9596_v28  ;;  %v1692_v58 = vrot.slane %v1691_v53, 1 }
 0x29e   : > { %v1624_v0 = vmul.f32 0.03125, %v1623_v61 }
 0x29f   : > { %v1633_v52 = vpop.xlane.xlu1 %1632  ;;  %v1693_v21 = vadd.f32 %v1692_v58, %v1691_v53  ;;  %v9645_v53 = vsel %vm10922_vm1, %v9365_v18, 0.0  ;;  %v1738_v58 = vmax.f32 %v9513_v51, %v9501_v42  ;;  %v1877_v42 = vmax.f32 %v9596_v28, %v9520_v12 }
 0x2a0   : > { %v1563_v54 = vpop.xlane.xlu0 %1562  ;;  %v1810_v12 = vrot.slane %v9359_v17, 4 }
 0x2a1   : > { %1570 = vst.msk [vmem:[#allocation5 + $0xb] sm:$0xff] %vm1568_vm7, %v1563_v54  ;;  %v8225_v54 = vpack.c.bf16 %v6808_v32, %v6807_v9  ;;  %v1737_v9 = vmax.f32 %v9526_v40, %v9480_v29  ;;  %v9664_v32 = vsel %vm10922_vm1, %v9386_v62, 0.0  ;;  %v1600_v29 = vrot.slane %v9349_v10, 4 }
 0x2a2   : > { %1640 = vst.msk [vmem:[#allocation5 + $0xb] sm:$0xff] %vm1638_vm8, %v1633_v52 }
 0x2a3   : > { %v1631_v4 = vpop.xlane.xlu1 %1630  ;;  %1710 = vst.msk [vmem:[#allocation5 + $0xb] sm:$0xff] %vm1708_vm9, %v1703_v5  ;;  %8226 = vmatprep.subr.bf16.mxu0 %v8225_v54 }
 0x2a4   : > { %1639 = vst.msk [vmem:[#allocation5 + $0x3] sm:$0xff] %vm1638_vm8, %v1631_v4  ;;  %v1701_v46 = vpop.xlane.xlu0 %1700  ;;  %v1321_v4 = vmax.f32 %v9392_v3, %v9440_v13  ;;  %8228 = vmatpush3.bf16.msra.mxu0 %v8225_v54  ;;  %v1694_v3 = vmul.f32 0.03125, %v1693_v21  ;;  %v1601_v21 = vmax.f32 %v9349_v10, %v1600_v29 }
 0x2a5   : > { %1709 = vst.msk [vmem:[#allocation5 + $0x3] sm:$0xff] %vm1708_vm9, %v1701_v46  ;;  %v6809_v46 = vld [vmem:[%s10913_s3 + $0x38] sm:$0xff] }
 0x2a6   : > { %v8229_v14 = vpack.c.bf16 %v6810_v23, %v6809_v46 }
 0x2a7   : > { %v9605_v26 = vpop.xlane.xlu1 %1842 }
 0x2a8   : > { %v1565_v43 = vpop.xlane.xlu0 %1564  ;;  %8230 = vmatprep.subr.bf16.mxu0 %v8229_v14 }
 0x2a9   : > { %1571 = vst.msk [vmem:[#allocation5 + $0x13] sm:$0xff] %vm1568_vm7, %v1565_v43  ;;  %8232 = vmatpush3.bf16.msra.mxu0 %v8229_v14 }
 0x2ab   : > { %v1637_v8 = vpop.xlane.xlu1 %1636 }
 0x2ac   : > { %1642 = vst.msk [vmem:[#allocation5 + $0x1b] sm:$0xff] %vm1638_vm8, %v1637_v8  ;;  %v1707_v5 = vpop.xlane.xlu0 %1706  ;;  %v6811_v8 = vld [vmem:[%s10913_s3 + $0x48] sm:$0x3f] }
 0x2ad   : > { %1712 = vst.msk [vmem:[#allocation5 + $0x1b] sm:$0xff] %vm1708_vm9, %v1707_v5  ;;  %1339 = vrot.lane.b32.xlu1 %v1324_v47, %s8868_s29  ;;  %7651 = vmatprep.subr.msk.mxu0 %vm1970_vm12, %v6811_v8  ;;  %v9649_v47 = vsel %vm10922_vm1, %v9382_v55, 0.0  ;;  %v9655_v5 = vsel %vm10922_vm1, %v9427_v41, 0.0  ;;  %v1739_v55 = vmax.f32 %v1737_v9, %v1738_v58 }
 0x2ae   : > { %7652 = vmatpush3.msk.msra.mxu0 %vm1970_vm12, %v6811_v8  ;;  %v1753_v61 = vadd.f32 %v9645_v53, %v9649_v47 }
 0x2af   : > { %v1487_v52 = vpop.permute.xlu1 %1486  ;;  %v1740_v41 = vrot.slane %v1739_v55, 4 }
 0x2b0   : > { %1489 = vst.msk [vmem:[#allocation4 + $0x14] sm:$0x1] %vm1396_vm11, %v1487_v52  ;;  %v9624_v37 = vpop.xlane.xlu0 %1704  ;;  %v1755_v18 = vadd.f32 %v9655_v5, %v1753_v61 }
 0x2b1   : > { %1626 = vrot.lane.b32.xlu1 %v1624_v0, %s8868_s29  ;;  %v1876_v0 = vsel %vm10922_vm1, %v9465_v1, -inf  ;;  %v1741_v62 = vmax.f32 %v1739_v55, %v1740_v41 }
 0x2b2   : > { %v1757_v52 = vadd.f32 %v9664_v32, %v1755_v18  ;;  %v1878_v51 = vmax.f32 %v9590_v15, %v1876_v0 }
 0x2b3   : > { %1333 = vrot.lane.b32.xlu0 %v1321_v4, %s8868_s29  ;;  %v1742_v46 = vrot.slane %v1741_v62, 2 }
 0x2b4   : > { %v1415_v43 = vpop.permute.xlu0 %1414  ;;  %v1758_v54 = vrot.slane %v1757_v52, 4  ;;  %v1879_v40 = vmax.f32 %v1877_v42, %v1878_v51 }
 0x2b5   : > { %1418 = vst.msk [vmem:[#allocation4 + $0x13] sm:$0x1] %vm1396_vm11, %v1415_v43  ;;  %v1602_v43 = vrot.slane %v1601_v21, 2  ;;  %v1743_v28 = vmax.f32 %v1741_v62, %v1742_v46 }
 0x2b6   : > { %v1759_v4 = vadd.f32 %v1758_v54, %v1757_v52  ;;  %v1880_v23 = vrot.slane %v1879_v40, 4 }
 0x2b7   : > { %1696 = vrot.lane.b32.xlu0 %v1694_v3, %s8868_s29  ;;  %v1811_v3 = vmax.f32 %v9359_v17, %v1810_v12  ;;  %v1603_v61 = vmax.f32 %v1601_v21, %v1602_v43  ;;  %v1744_v58 = vrot.slane %v1743_v28, 1  ;;  %v1944_v21 = vld [vmem:[%s10913_s3 + $0x8] sm:$0xff]  ;;  %v10933_v43 = vmax.f32 %v9443_v11, %v9437_v59 }
 0x2b8   : > { %v1760_v14 = vrot.slane %v1759_v4, 2  ;;  %v1881_v15 = vmax.f32 %v1879_v40, %v1880_v23 }
 0x2b9   : > { %v1812_v55 = vrot.slane %v1811_v3, 2  ;;  %v1604_v52 = vrot.slane %v1603_v61, 1  ;;  %v1745_v41 = vmax.f32 %v1743_v28, %v1744_v58  ;;  %v6979_v58 = vld [vmem:[%s10914_s4 + $0xe0] sm:$0xff] }
 0x2ba   : > { %v1761_v8 = vadd.f32 %v1760_v14, %v1759_v4  ;;  %v1882_v10 = vrot.slane %v1881_v15, 2  ;;  %v1943_v4 = vld [vmem:[%s10913_s3] sm:$0xff] }
 0x2bb   : > { %v1605_v17 = vmax.f32 %v1603_v61, %v1604_v52  ;;  %v9694_v23 = vpack.c.bf16 %v1944_v21, %v1943_v4  ;;  %v6980_v52 = vld [vmem:[%s10914_s4 + $0xe8] sm:$0x3f] }
 0x2bc   : > { %v1762_v9 = vrot.slane %v1761_v8, 1  ;;  %v1883_v42 = vmax.f32 %v1881_v15, %v1882_v10  ;;  %v6976_v15 = vld [vmem:[%s10914_s4 + $0xc8] sm:$0xff] }
 0x2bd   : > { %8234 = vmatprep.subr.bf16.mxu0 %v9694_v23 }
 0x2be   : > { %v1763_v54 = vadd.f32 %v1762_v9, %v1761_v8  ;;  %v1884_v40 = vrot.slane %v1883_v42, 1  ;;  %v8869_v8 = vmov 0.0|0.0  }
 0x2bf   : > { %8367 = vmatprep.subr.bf16.mxu1 %v8869_v8 }
 0x2c0   : > { %v1764_v62 = vmul.f32 0.03125, %v1763_v54  ;;  %v1885_v12 = vmax.f32 %v1883_v42, %v1884_v40  ;;  %v9745_v54 = vsel %vm10922_vm1, %v9307_v35, 0.0  ;;  %v9749_v42 = vsel %vm10922_vm1, %v9311_v39, 0.0 }
 0x2c1   : > { %v9766_v39 = vsel %vm10922_vm1, %v9465_v1, 0.0 }
 0x2d5   : > { %1573 = vadd.xlane.f32.xlu1 %v9485_v60 }
 0x2d6   : > { %1916 = vmax.xlane.f32.xlu0 %v1876_v0 }
 0x2d9   : > { %1643 = vadd.xlane.f32.xlu1 %v9545_v24 }
 0x2e0   : > { %v1773_v60 = vpop.xlane.xlu1 %1772 }
 0x2e1   : > { %1780 = vst.msk [vmem:[#allocation5 + $0xb] sm:$0xff] %vm1778_vm13, %v1773_v60  ;;  %v6977_v60 = vld [vmem:[%s10914_s4 + $0xd0] sm:$0xff] }
 0x2e2   : > { %1850 = vst.msk [vmem:[#allocation5 + $0xb] sm:$0xff] %vm1848_vm14, %v9605_v26  ;;  %v1813_v26 = vmax.f32 %v1811_v3, %v1812_v55  ;;  %v8368_v3 = vpack.c.bf16 %v6977_v60, %v6976_v15 }
 0x2e4   : > { %v1845_v24 = vpop.xlane.xlu1 %1844  ;;  %8369 = vmatpush3.bf16.msra.mxu1 %v8368_v3 }
 0x2e5   : > { %v1841_v18 = vpop.xlane.xlu0 %1840  ;;  %8370 = vmatprep.subr.bf16.mxu1 %v8869_v8 }
 0x2e8   : > { %v1777_v0 = vpop.xlane.xlu1 %1776 }
 0x2e9   : > { %1782 = vst.msk [vmem:[#allocation5 + $0x1b] sm:$0xff] %vm1778_vm13, %v1777_v0  ;;  %v1635_v51 = vpop.xlane.xlu0 %1634  ;;  %v9737_v0 = vsel %vm10922_vm1, %v9468_v36, 0.0  ;;  %v1823_v36 = vadd.f32 %v9745_v54, %v9749_v42 }
 0x2ea   : > { %1641 = vst.msk [vmem:[#allocation5 + $0x13] sm:$0xff] %vm1638_vm8, %v1635_v51  ;;  %1747 = vrot.lane.b32.xlu1 %v1745_v41, %s8868_s29  ;;  %v9741_v41 = vsel %vm10922_vm1, %v9440_v13, 0.0  ;;  %v9761_v13 = vsel %vm10922_vm1, %v9323_v45, 0.0 }
 0x2eb   : > { %1711 = vst.msk [vmem:[#allocation5 + $0x13] sm:$0xff] %vm1708_vm9, %v9624_v37  ;;  %v1814_v37 = vrot.slane %v1813_v26, 1  ;;  %v1893_v51 = vadd.f32 %v9737_v0, %v9741_v41 }
 0x2ec   : > { %v1775_v29 = vpop.xlane.xlu1 %1774  ;;  %1607 = vrot.lane.b32.xlu0 %v1605_v17, %s8868_s29  ;;  %v9755_v17 = vsel %vm10922_vm1, %v9437_v59, 0.0 }
 0x2ed   : > { %1781 = vst.msk [vmem:[#allocation5 + $0x13] sm:$0xff] %vm1778_vm13, %v1775_v29  ;;  %v1847_v46 = vpop.xlane.xlu0 %1846  ;;  %v1815_v11 = vmax.f32 %v1813_v26, %v1814_v37  ;;  %v1895_v35 = vadd.f32 %v9755_v17, %v1893_v51  ;;  %v1825_v26 = vadd.f32 %v9761_v13, %v1823_v36  ;;  %v9771_v29 = vsel %vm10922_vm1, %v9338_v57, 0.0  ;;  %v6822_v51 = vld [vmem:[%s10913_s3 + $0x50] sm:$0xff]  ;;  %v6823_v36 = vld [vmem:[%s10913_s3 + $0x58] sm:$0xff]  ;;  %vm10180_vm1 = vmpackc.low %vm1970_vm12, %vm8871_vm10 }
 0x2ee   : > { %1852 = vst.msk [vmem:[#allocation5 + $0x1b] sm:$0xff] %vm1848_vm14, %v1847_v46  ;;  %1851 = vst.msk [vmem:[#allocation5 + $0x13] sm:$0xff] %vm1848_vm14, %v1845_v24  ;;  %1766 = vrot.lane.b32.xlu1 %v1764_v62, %s8868_s29  ;;  %v6978_v24 = vld [vmem:[%s10914_s4 + $0xd8] sm:$0xff] }
 0x2ef   : > { %v8371_v9 = vpack.c.bf16 %v6979_v58, %v6978_v24  ;;  %v1897_v59 = vadd.f32 %v9766_v39, %v1895_v35  ;;  %v1827_v62 = vadd.f32 %v9771_v29, %v1825_v26  ;;  %v1945_v24 = vld [vmem:[%s10913_s3 + $0x10] sm:$0xff]  ;;  %v1946_v58 = vld [vmem:[%s10913_s3 + $0x18] sm:$0xff]  ;;  %v9804_v35 = vpack.c.bf16 %v6823_v36, %v6822_v51 }
 0x2f0   : > { %v1913_v14 = vpop.xlane.xlu1 %1912  ;;  %1337 = vrot.lane.b32.xlu0 %v10933_v43, %s8868_s29  ;;  %v6845_v36 = vld [vmem:[%s10913_s3 + $0xb8] sm:$0xff] }
 0x2f1   : > { %1920 = vst.msk [vmem:[#allocation5 + $0xb] sm:$0xff] %vm1918_vm15, %v1913_v14  ;;  %v1771_v28 = vpop.xlane.xlu0 %1770  ;;  %8372 = vmatpush3.bf16.msra.mxu1 %v8371_v9  ;;  %v1898_v40 = vrot.slane %v1897_v59, 4  ;;  %v1828_v4 = vrot.slane %v1827_v62, 4 }
 0x2f2   : > { %1779 = vst.msk [vmem:[#allocation5 + $0x3] sm:$0xff] %vm1778_vm13, %v1771_v28  ;;  %1887 = vrot.lane.b32.xlu1 %v1885_v12, %s8868_s29  ;;  %7940 = vmatprep.subr.mxu1 %v10932_v50 }
 0x2f3   : > { %1849 = vst.msk [vmem:[#allocation5 + $0x3] sm:$0xff] %vm1848_vm14, %v1841_v18  ;;  %v1899_v45 = vadd.f32 %v1898_v40, %v1897_v59  ;;  %v1829_v21 = vadd.f32 %v1828_v4, %v1827_v62  ;;  %v1460_v59 = vrot.slane %v9208_v33, 4  ;;  %v6832_v4 = vld [vmem:[%s10913_s3 + $0x78] sm:$0xff] }
 0x2f4   : > { %v1678_v61 = vpop.permute.xlu1 %1677  ;;  %1817 = vrot.lane.b32.xlu0 %v1815_v11, %s8868_s29 }
 0x2f5   : > { %1680 = vst.msk [vmem:[#allocation4 + $0x7] sm:$0x1] %vm1396_vm11, %v1678_v61  ;;  %v1538_v10 = vpop.permute.xlu0 %1537  ;;  %7941 = vmatpush3.msk.msra.mxu1 %vm1970_vm12, %v6980_v52  ;;  %v1900_v46 = vrot.slane %v1899_v45, 2  ;;  %v1830_v1 = vrot.slane %v1829_v21, 2  ;;  %v1947_v52 = vld [vmem:[%s10913_s3 + $0x20] sm:$0x3f] }
 0x2f6   : > { %1540 = vst.msk [vmem:[#allocation4 + $0x5] sm:$0x1] %vm1396_vm11, %v1538_v10  ;;  %8373 = vmatprep.subr.bf16.mxu1 %v8869_v8 }
 0x2f7   : > { %v1901_v37 = vadd.f32 %v1900_v46, %v1899_v45  ;;  %v1831_v14 = vadd.f32 %v1830_v1, %v1829_v21  ;;  %v6833_v45 = vld [vmem:[%s10913_s3 + $0x80] sm:$0xff]  ;;  %v1461_v46 = vmax.f32 %v9208_v33, %v1460_v59  ;;  %v6990_v1 = vld [vmem:[%s10914_s4 + $0x118] sm:$0xff]  ;;  %v6835_v33 = vld [vmem:[%s10913_s3 + $0x90] sm:$0xff] }
 0x2f8   : > { %v1336_v18 = vpop.permute.xlu1 %1335 }
 0x2f9   : > { %1347 = vst.msk [vmem:[#allocation3 + $0xb] sm:$0xff] %vm1345_vm0, %v1336_v18  ;;  %v1557_v55 = vpop.permute.xlu0 %1556  ;;  %v1902_v43 = vrot.slane %v1901_v37, 1  ;;  %v1832_v12 = vrot.slane %v1831_v14, 1 }
 0x2fa   : > { %1559 = vst.msk [vmem:[#allocation4 + $0x15] sm:$0x1] %vm1396_vm11, %v1557_v55  ;;  %v8237_v55 = vpack.c.bf16 %v1946_v58, %v1945_v24  ;;  %v6836_v24 = vld [vmem:[%s10913_s3 + $0x98] sm:$0x3f] }
 0x2fb   : > { %v1903_v57 = vadd.f32 %v1902_v43, %v1901_v37  ;;  %v1833_v15 = vadd.f32 %v1832_v12, %v1831_v14  ;;  %v6991_v37 = vld [vmem:[%s10914_s4 + $0x120] sm:$0xff]  ;;  %v1386_v14 = vrot.slane %v9169_v19, 4  ;;  %v6834_v43 = vld [vmem:[%s10913_s3 + $0x88] sm:$0xff] }
 0x2fd   : > { %v1904_v60 = vmul.f32 0.03125, %v1903_v57  ;;  %v1834_v28 = vmul.f32 0.03125, %v1833_v15  ;;  %v6987_v57 = vld [vmem:[%s10914_s4 + $0x110] sm:$0x3f] }
 0x313   : > { %1505 = vadd.xlane.f32.xlu0 %v9242_v48 }
 0x316   : > { %1645 = vadd.xlane.f32.xlu1 %v9541_v22 }
 0x327   : > { %1906 = vrot.lane.b32.xlu1 %v1904_v60, %s8868_s29  ;;  %v1350_v60 = vmul.f32 0.125, %v9456_v25 }
 0x329   : > { %v1915_v3 = vpop.xlane.xlu1 %1914  ;;  %1836 = vrot.lane.b32.xlu0 %v1834_v28, %s8868_s29  ;;  %v8380_v28 = vpack.c.bf16 %v6991_v37, %v6990_v1  ;;  %v7006_v37 = vld [vmem:[%s10914_s4 + $0x178] sm:$0xff] }
 0x32a   : > { %1921 = vst.msk [vmem:[#allocation5 + $0x13] sm:$0xff] %vm1918_vm15, %v1915_v3  ;;  %v1911_v48 = vpop.xlane.xlu0 %1910  ;;  %v1462_v3 = vrot.slane %v1461_v46, 2 }
 0x32b   : > { %1919 = vst.msk [vmem:[#allocation5 + $0x3] sm:$0xff] %vm1918_vm15, %v1911_v48  ;;  %v8253_v48 = vpack.c.bf16 %v6835_v33, %v6834_v43  ;;  %v6856_v33 = vld [vmem:[%s10913_s3 + $0xe8] sm:$0x3f] }
 0x32d   : > { %v1340_v22 = vpop.permute.xlu1 %1339 }
 0x32e   : > { %1349 = vst.msk [vmem:[#allocation3 + $0x1b] sm:$0xff] %vm1345_vm0, %v1340_v22  ;;  %v1334_v11 = vpop.permute.xlu0 %1333  ;;  %v6992_v22 = vld [vmem:[%s10914_s4 + $0x128] sm:$0xff] }
 0x32f   : > { %1346 = vst.msk [vmem:[#allocation3 + $0x3] sm:$0xff] %vm1345_vm0, %v1334_v11  ;;  %v6993_v11 = vld [vmem:[%s10914_s4 + $0x130] sm:$0xff] }
 0x331   : > { %v1627_v61 = vpop.permute.xlu1 %1626 }
 0x332   : > { %1629 = vst.msk [vmem:[#allocation4 + $0x16] sm:$0x1] %vm1396_vm11, %v1627_v61  ;;  %v1697_v10 = vpop.permute.xlu0 %1696  ;;  %v1387_v61 = vmax.f32 %v9169_v19, %v1386_v14  ;;  %v1352_v19 = vmul.f32 0.125, %v9460_v31  ;;  %v6844_v31 = vld [vmem:[%s10913_s3 + $0xb0] sm:$0xff]  ;;  %v7007_v14 = vld [vmem:[%s10914_s4 + $0x180] sm:$0xff] }
 0x333   : > { %1699 = vst.msk [vmem:[#allocation4 + $0x17] sm:$0x1] %vm1396_vm11, %v1697_v10 }
 0x334   : > { %v1388_v51 = vrot.slane %v1387_v61, 2 }
 0x336   : > { %v1948_v9 = vld [vmem:[#allocation3 + $0x1] sm:$0xff]  ;;  %v1949_v18 = vld [vmem:[#allocation3 + $0x9] sm:$0xff] }
 0x337   : > { %7653 = vmatprep.mubr.msk.f32.mxu0 %vm1213_vm4, %v1948_v9  ;;  %v2159_v21 = vld [vmem:[#allocation3 + $0x2] sm:$0xff]  ;;  %v2160_v12 = vld [vmem:[#allocation3 + $0xa] sm:$0xff]  ;;  %v8383_v9 = vpack.c.bf16 %v6993_v11, %v6992_v22 }
 0x338   : > { %7654 = vmatmul.mubr.msk.f32.vlgmr.msra.gmra.mrb[28].mxu0 %vm1213_vm4, %v1949_v18  ;;  %v2273_v58 = vld [vmem:[#allocation3 + $0x3] sm:$0xff] }
 0x339   : > { %8236 = vmatpush3.bf16.msra.mxu0 %v9694_v23  ;;  %v6983_v23 = vld [vmem:[%s10914_s4 + $0xf0] sm:$0xff]  ;;  %v6842_v18 = vld [vmem:[%s10913_s3 + $0xa0] sm:$0xff] }
 0x33a   : > { %8238 = vmatprep.subr.bf16.mxu0 %v8237_v55 }
 0x33d   : > { %8240 = vmatpush3.bf16.msra.mxu0 %v8237_v55  ;;  %v6843_v55 = vld [vmem:[%s10913_s3 + $0xa8] sm:$0xff] }
 0x33e   : > { %7667 = vmatprep.subr.msk.mxu0 %vm1970_vm12, %v1947_v52 }
 0x341   : > { %7668 = vmatpush3.msk.msra.mxu0 %vm1970_vm12, %v1947_v52  ;;  %v1463_v52 = vmax.f32 %v1461_v46, %v1462_v3  ;;  %v6864_v3 = vld [vmem:[%s10913_s3 + $0x100] sm:$0xff] }
 0x342   : > { %8242 = vmatprep.subr.bf16.mxu0 %v9804_v35 }
 0x348   : > { %1575 = vadd.xlane.f32.xlu0 %v9489_v63 }
 0x34b   : > { %1438 = vadd.xlane.f32.xlu1 %v9357_v6 }
 0x34c   : > { %1436 = vadd.xlane.f32.xlu0 %v9331_v49 }
 0x34f   : > { %1715 = vadd.xlane.f32.xlu1 %v9559_v7 }
 0x350   : > { %1713 = vadd.xlane.f32.xlu0 %v9563_v16 }
 0x353   : > { %1509 = vadd.xlane.f32.xlu1 %v9297_v20 }
 0x354   : > { %1507 = vadd.xlane.f32.xlu0 %v9276_v2 }
 0x357   : > { %1785 = vadd.xlane.f32.xlu1 %v9645_v53 }
 0x358   : > { %1783 = vadd.xlane.f32.xlu0 %v9649_v47 }
 0x35b   : > { %1579 = vadd.xlane.f32.xlu1 %v9508_v34 }
 0x35c   : > { %1577 = vadd.xlane.f32.xlu0 %v9497_v27 }
 0x35f   : > { %1855 = vadd.xlane.f32.xlu1 %v9745_v54 }
 0x360   : > { %1853 = vadd.xlane.f32.xlu0 %v9749_v42 }
 0x362   : > { %v1574_v49 = vpop.xlane.xlu1 %1573 }
 0x363   : > { %v1581_v6 = vmul.f32 0.03125, %v1574_v49  ;;  %1649 = vadd.xlane.f32.xlu1 %v9568_v44  ;;  %v1917_v63 = vpop.xlane.xlu0 %1916  ;;  %v10934_v49 = vld [vmem:[#allocation12_spill] sm:$0xff] }
 0x364   : > { %1922 = vst.msk [vmem:[#allocation5 + $0x1b] sm:$0xff] %vm1918_vm15, %v1917_v63  ;;  %1647 = vadd.xlane.f32.xlu0 %v9553_v56  ;;  %v6997_v63 = vld [vmem:[%s10914_s4 + $0x140] sm:$0xff] }
 0x365   : > { %1585 = vst.msk [vmem:[#allocation5 + $0x2b] sm:$0xff] %vm1568_vm7, %v1581_v6  ;;  %v1353_v6 = vmul.f32 0.125, %v10934_v49  ;;  %v6873_v49 = vld [vmem:[%s10913_s3 + $0x120] sm:$0xff] }
 0x366   : > { %v1644_v2 = vpop.xlane.xlu1 %1643 }
 0x367   : > { %v1651_v20 = vmul.f32 0.03125, %v1644_v2  ;;  %1925 = vadd.xlane.f32.xlu1 %v9737_v0  ;;  %v1608_v27 = vpop.permute.xlu0 %1607  ;;  %v6998_v2 = vld [vmem:[%s10914_s4 + $0x148] sm:$0xff] }
 0x368   : > { %1610 = vst.msk [vmem:[#allocation4 + $0x6] sm:$0x1] %vm1396_vm11, %v1608_v27  ;;  %1923 = vadd.xlane.f32.xlu0 %v9741_v41  ;;  %v1940_v41 = vld [vmem:[#allocation3 + $0x8] sm:$0xff]  ;;  %v8261_v27 = vpack.c.bf16 %v6845_v36, %v6844_v31  ;;  %v7011_v31 = vld [vmem:[%s10914_s4 + $0x190] sm:$0xff]  ;;  %v7012_v36 = vld [vmem:[%s10914_s4 + $0x198] sm:$0xff] }
 0x369   : > { %1655 = vst.msk [vmem:[#allocation5 + $0x2b] sm:$0xff] %vm1638_vm8, %v1651_v20  ;;  %v1464_v20 = vrot.slane %v1463_v52, 1 }
 0x36a   : > { %v1748_v34 = vpop.permute.xlu1 %1747 }
 0x36b   : > { %1750 = vst.msk [vmem:[#allocation4 + $0x8] sm:$0x1] %vm1396_vm11, %v1748_v34  ;;  %1787 = vadd.xlane.f32.xlu1 %v9655_v5  ;;  %v1338_v7 = vpop.permute.xlu0 %1337  ;;  %v6825_v5 = vld [vmem:[%s10913_s3 + $0x68] sm:$0xff] }
 0x36c   : > { %1348 = vst.msk [vmem:[#allocation3 + $0x13] sm:$0xff] %vm1345_vm0, %v1338_v7  ;;  %1717 = vadd.xlane.f32.xlu0 %v9576_v38  ;;  %v6824_v38 = vld [vmem:[%s10913_s3 + $0x60] sm:$0xff]  ;;  %v2274_v34 = vld [vmem:[#allocation3 + $0xb] sm:$0xff]  ;;  %v6994_v7 = vld [vmem:[%s10914_s4 + $0x138] sm:$0x3f] }
 0x36d   : > { %v8245_v0 = vpack.c.bf16 %v6825_v5, %v6824_v38  ;;  %v4136_v38 = vld [vmem:[#allocation4 + $0x10] sm:$0xff]  ;;  %v1465_v5 = vmax.f32 %v1463_v52, %v1464_v20  ;;  %v7014_v20 = vld [vmem:[%s10914_s4 + $0x1a8] sm:$0xff] }
 0x36e   : > { %v1767_v56 = vpop.permute.xlu1 %1766  ;;  %v2615_v52 = vld [vmem:[#allocation3 + $0x6] sm:$0xff] }
 0x36f   : > { %1769 = vst.msk [vmem:[#allocation4 + $0x18] sm:$0x1] %vm1396_vm11, %v1767_v56  ;;  %1857 = vadd.xlane.f32.xlu1 %v9761_v13  ;;  %v1818_v16 = vpop.permute.xlu0 %1817  ;;  %v6986_v13 = vld [vmem:[%s10914_s4 + $0x108] sm:$0xff]  ;;  %v1389_v56 = vmax.f32 %v1387_v61, %v1388_v51 }
 0x370   : > { %1820 = vst.msk [vmem:[#allocation4 + $0x9] sm:$0x1] %vm1396_vm11, %v1818_v16  ;;  %1719 = vadd.xlane.f32.xlu0 %v9584_v30  ;;  %v1939_v30 = vld [vmem:[#allocation3] sm:$0xff] }
 0x372   : > { %v1888_v44 = vpop.permute.xlu1 %1887 }
 0x373   : > { %1890 = vst.msk [vmem:[#allocation4 + $0xa] sm:$0x1] %vm1396_vm11, %v1888_v44  ;;  %1927 = vadd.xlane.f32.xlu1 %v9755_v17  ;;  %v1950_v53 = vld [vmem:[#allocation3 + $0x11] sm:$0xff]  ;;  %v1951_v47 = vld [vmem:[#allocation3 + $0x19] sm:$0xff]  ;;  %v8386_v44 = vpack.c.bf16 %v6998_v2, %v6997_v63 }
 0x374   : > { %1789 = vadd.xlane.f32.xlu0 %v9664_v32  ;;  %7656 = vmatprep.mubr.msk.f32.mxu0 %vm1213_vm4, %v1950_v53  ;;  %v6984_v32 = vld [vmem:[%s10914_s4 + $0xf8] sm:$0xff]  ;;  %v1941_v42 = vld [vmem:[#allocation3 + $0x10] sm:$0xff]  ;;  %v6985_v17 = vld [vmem:[%s10914_s4 + $0x100] sm:$0xff] }
 0x375   : > { %7657 = vmatmul.mubr.msk.f32.gmra.mrb[30].mxu0 %vm1213_vm4, %v1951_v47  ;;  %v8374_v54 = vpack.c.bf16 %v6984_v32, %v6983_v23  ;;  %v1942_v62 = vld [vmem:[#allocation3 + $0x18] sm:$0xff]  ;;  %v8377_v40 = vpack.c.bf16 %v6986_v13, %v6985_v17  ;;  %v6999_v53 = vld [vmem:[%s10914_s4 + $0x150] sm:$0xff]  ;;  %v6846_v32 = vld [vmem:[%s10913_s3 + $0xc0] sm:$0x3f] }
 0x376   : > { %7669 = vmatprep.mubr.msk.f32.mxu0 %vm1213_vm4, %v1939_v30  ;;  %v2161_v15 = vld [vmem:[#allocation3 + $0x12] sm:$0xff]  ;;  %v2162_v10 = vld [vmem:[#allocation3 + $0x1a] sm:$0xff]  ;;  %v2387_v13 = vld [vmem:[#allocation3 + $0x4] sm:$0xff] }
 0x377   : > { %v2275_v16 = vld [vmem:[#allocation3 + $0x13] sm:$0xff]  ;;  %v4220_v43 = vld [vmem:[#allocation4 + $0x11] sm:$0xff] }
 0x378   : > { %1859 = vadd.xlane.f32.xlu0 %v9771_v29  ;;  %v6826_v29 = vld [vmem:[%s10913_s3 + $0x70] sm:$0x3f]  ;;  %v7000_v47 = vld [vmem:[%s10914_s4 + $0x158] sm:$0xff]  ;;  %v7013_v2 = vld [vmem:[%s10914_s4 + $0x1a0] sm:$0xff] }
 0x379   : > { %7670 = vmatmul.mubr.msk.f32.vlgmr.msra.gmra.mrb[28].mxu0 %vm1213_vm4, %v1940_v41  ;;  %v10935_v30 = vld [vmem:[#allocation13_spill] sm:$0xff]  ;;  %v6853_v17 = vld [vmem:[%s10913_s3 + $0xd0] sm:$0xff] }
 0x37a   : > { %8244 = vmatpush3.bf16.msra.mxu0 %v9804_v35  ;;  %7672 = vmatprep.mubr.msk.f32.mxu0 %vm1213_vm4, %v1941_v42  ;;  %v3968_v26 = vld [vmem:[#allocation4 + $0x5] sm:$0xff]  ;;  %v8257_v35 = vpack.c.bf16 %v6843_v55, %v6842_v18  ;;  %v1351_v23 = vmul.f32 0.125, %v10935_v30  ;;  %v6852_v42 = vld [vmem:[%s10913_s3 + $0xc8] sm:$0xff]  ;;  %v2504_v18 = vld [vmem:[#allocation3 + $0x1d] sm:$0xff] }
 0x37b   : > { %7943 = vmatmul.mubr.msk.f32.vlgmr.msra.gmra.mrb[20].mxu1 %vm1213_vm4, %v3968_v26  ;;  %8246 = vmatprep.subr.bf16.mxu0 %v8245_v0  ;;  %v4052_v25 = vld [vmem:[#allocation4 + $0x6] sm:$0xff]  ;;  %v6866_v55 = vld [vmem:[%s10913_s3 + $0x110] sm:$0x3f] }
 0x37c   : > { %8375 = vmatpush3.bf16.msra.mxu1 %v8374_v54  ;;  %1929 = vadd.xlane.f32.xlu0 %v9766_v39  ;;  %v8249_v39 = vpack.c.bf16 %v6833_v45, %v6832_v4  ;;  %v2276_v41 = vld [vmem:[#allocation3 + $0x1b] sm:$0xff]  ;;  %v8389_v54 = vpack.c.bf16 %v7000_v47, %v6999_v53  ;;  %v7005_v4 = vld [vmem:[%s10914_s4 + $0x170] sm:$0xff] }
 0x37d   : > { %7673 = vmatmul.mubr.msk.f32.gmra.mrb[30].mxu0 %vm1213_vm4, %v1942_v62  ;;  %8376 = vmatprep.subr.bf16.mxu1 %v8869_v8  ;;  %v6854_v26 = vld [vmem:[%s10913_s3 + $0xd8] sm:$0xff]  ;;  %v8265_v62 = vpack.c.bf16 %v6853_v17, %v6852_v42  ;;  %v2616_v63 = vld [vmem:[#allocation3 + $0xe] sm:$0xff] }
 0x37e   : > { %8248 = vmatpush3.bf16.msra.mxu0 %v8245_v0  ;;  %7685 = vmatprep.mubr.msk.f32.mxu0 %vm1213_vm4, %v2159_v21  ;;  %v1390_v0 = vrot.slane %v1389_v56, 1  ;;  %v2388_v21 = vld [vmem:[#allocation3 + $0xc] sm:$0xff]  ;;  %v2389_v46 = vld [vmem:[#allocation3 + $0x14] sm:$0xff]  ;;  %v2618_v47 = vld [vmem:[#allocation3 + $0x1e] sm:$0xff] }
 0x37f   : > { %7683 = vmatprep.subr.msk.mxu0 %vm1970_vm12, %v6826_v29  ;;  %7955 = vmatprep.mubr.msk.f32.mxu1 %vm8870_vm3, %v10932_v50  ;;  %v7015_v30 = vld [vmem:[%s10914_s4 + $0x1b0] sm:$0x3f]  ;;  %v6876_v17 = vld [vmem:[%s10913_s3 + $0x138] sm:$0x3f] }
 0x380   : > { %8378 = vmatpush3.bf16.msra.mxu1 %v8377_v40  ;;  %v1391_v59 = vmax.f32 %v1389_v56, %v1390_v0  ;;  %v7004_v40 = vld [vmem:[%s10914_s4 + $0x168] sm:$0xff]  ;;  %v6875_v56 = vld [vmem:[%s10913_s3 + $0x130] sm:$0xff] }
 0x381   : > { %7953 = vmatprep.subr.mxu1 %v10932_v50  ;;  %v8392_v1 = vpack.c.bf16 %v7005_v4, %v7004_v40  ;;  %v6883_v0 = vld [vmem:[%s10913_s3 + $0x148] sm:$0xff]  ;;  %v7027_v4 = vld [vmem:[%s10914_s4 + $0x1f0] sm:$0xff] }
 0x382   : > { %7684 = vmatpush3.msk.msra.mxu0 %vm1970_vm12, %v6826_v29  ;;  %v6855_v29 = vld [vmem:[%s10913_s3 + $0xe0] sm:$0xff] }
 0x383   : > { %7686 = vmatmul.mubr.msk.f32.vlgmr.msra.gmra.mrb[28].mxu0 %vm1213_vm4, %v2160_v12  ;;  %8250 = vmatprep.subr.bf16.mxu0 %v8249_v39  ;;  %v8269_v45 = vpack.c.bf16 %v6855_v29, %v6854_v26  ;;  %v2390_v12 = vld [vmem:[#allocation3 + $0x1c] sm:$0xff] }
 0x384   : > { %7688 = vmatprep.mubr.msk.f32.mxu0 %vm1213_vm4, %v2161_v15  ;;  %8252 = vmatpush3.bf16.msra.mxu0 %v8249_v39  ;;  %v7001_v39 = vld [vmem:[%s10914_s4 + $0x160] sm:$0x3f]  ;;  %v6863_v15 = vld [vmem:[%s10913_s3 + $0xf8] sm:$0xff] }
 0x385   : > { %7954 = vmatpush3.msk.msra.mxu1 %vm1970_vm12, %v6987_v57  ;;  %1358 = vrot.lane.b32.xlu1 %v1350_v60, %s8868_s29  ;;  %v6862_v57 = vld [vmem:[%s10913_s3 + $0xf0] sm:$0xff]  ;;  %v2501_v60 = vld [vmem:[#allocation3 + $0x5] sm:$0xff] }
 0x386   : > { %7956 = vmatmul.mubr.msk.f32.vlgmr.msra.gmra.mrb[20].mxu1 %vm1213_vm4, %v4052_v25  ;;  %8379 = vmatprep.subr.bf16.mxu1 %v8869_v8  ;;  %v8273_v22 = vpack.c.bf16 %v6863_v15, %v6862_v57  ;;  %v7025_v29 = vld [vmem:[%s10914_s4 + $0x1e0] sm:$0xff]  ;;  %v7040_v15 = vld [vmem:[%s10915_s5 + $0x10] sm:$0xff] }
 0x387   : > { %8381 = vmatpush3.bf16.msra.mxu1 %v8380_v28  ;;  %7689 = vmatmul.mubr.msk.f32.gmra.mrb[30].mxu0 %vm1213_vm4, %v2162_v10  ;;  %v8395_v28 = vpack.c.bf16 %v7007_v14, %v7006_v37  ;;  %v2502_v10 = vld [vmem:[#allocation3 + $0xd] sm:$0xff]  ;;  %v7029_v37 = vld [vmem:[%s10914_s4 + $0x200] sm:$0x3f] }
 0x388   : > { %8254 = vmatprep.subr.bf16.mxu0 %v8253_v48  ;;  %7701 = vmatprep.mubr.msk.f32.mxu0 %vm1213_vm4, %v2273_v58  ;;  %v2503_v58 = vld [vmem:[#allocation3 + $0x15] sm:$0xff] }
 0x389   : > { %8256 = vmatpush3.bf16.msra.mxu0 %v8253_v48  ;;  %1362 = vrot.lane.b32.xlu1 %v1352_v19, %s8868_s29  ;;  %v6865_v48 = vld [vmem:[%s10913_s3 + $0x108] sm:$0xff] }
 0x38a   : > { %8382 = vmatprep.subr.bf16.mxu1 %v8869_v8  ;;  %7699 = vmatprep.subr.msk.mxu0 %vm1970_vm12, %v6836_v24  ;;  %v8277_v25 = vpack.c.bf16 %v6865_v48, %v6864_v3  ;;  %v4735_v3 = vld [vmem:[%s10915_s5 + $0x8] sm:$0x3f] }
 0x38b   : > { %8384 = vmatpush3.bf16.msra.mxu1 %v8383_v9  ;;  %7968 = vmatprep.mubr.msk.f32.mxu1 %vm8870_vm3, %v10932_v50  ;;  %v7036_v48 = vld [vmem:[%s10914_s4 + $0x228] sm:$0x3f] }
 0x38c   : > { %7966 = vmatprep.subr.mxu1 %v10932_v50 }
 0x38d   : > { %7700 = vmatpush3.msk.msra.mxu0 %vm1970_vm12, %v6836_v24  ;;  %1364 = vrot.lane.b32.xlu1 %v1353_v6, %s8868_s29  ;;  %v7008_v24 = vld [vmem:[%s10914_s4 + $0x188] sm:$0x3f]  ;;  %v8398_v6 = vpack.c.bf16 %v7012_v36, %v7011_v31  ;;  %v4737_v31 = vld [vmem:[#allocation5 + $0x9] sm:$0xff] }
 0x38e   : > { %7702 = vmatmul.mubr.msk.f32.vlgmr.msra.gmra.mrb[28].mxu0 %vm1213_vm4, %v2274_v34  ;;  %8258 = vmatprep.subr.bf16.mxu0 %v8257_v35 }
 0x38f   : > { %7704 = vmatprep.mubr.msk.f32.mxu0 %vm1213_vm4, %v2275_v16  ;;  %8260 = vmatpush3.bf16.msra.mxu0 %v8257_v35  ;;  %v6872_v35 = vld [vmem:[%s10913_s3 + $0x118] sm:$0xff] }
 0x390   : > { %7967 = vmatpush3.msk.msra.mxu1 %vm1970_vm12, %v6994_v7  ;;  %8262 = vmatprep.subr.bf16.mxu0 %v8261_v27  ;;  %v8281_v34 = vpack.c.bf16 %v6873_v49, %v6872_v35  ;;  %v6874_v7 = vld [vmem:[%s10913_s3 + $0x128] sm:$0xff]  ;;  %v2617_v16 = vld [vmem:[#allocation3 + $0x16] sm:$0xff] }
 0x391   : > { %7969 = vmatmul.mubr.msk.f32.vlgmr.msra.gmra.mrb[20].mxu1 %vm1213_vm4, %v4136_v38  ;;  %8385 = vmatprep.subr.bf16.mxu1 %v8869_v8  ;;  %v8285_v53 = vpack.c.bf16 %v6875_v56, %v6874_v7  ;;  %v7018_v38 = vld [vmem:[%s10914_s4 + $0x1b8] sm:$0xff]  ;;  %v4738_v35 = vld [vmem:[#allocation5 + $0x11] sm:$0xff] }
 0x392   : > { %8387 = vmatpush3.bf16.msra.mxu1 %v8386_v44  ;;  %1467 = vrot.lane.b32.xlu1 %v1465_v5, %s8868_s29  ;;  %v8401_v44 = vpack.c.bf16 %v7014_v20, %v7013_v2  ;;  %v7019_v5 = vld [vmem:[%s10914_s4 + $0x1c0] sm:$0xff]  ;;  %v7059_v2 = vld [vmem:[%s10915_s5 + $0x30] sm:$0xff]  ;;  %v7060_v20 = vld [vmem:[%s10915_s5 + $0x38] sm:$0x3f] }
 0x393   : > { %7705 = vmatmul.mubr.msk.f32.gmra.mrb[30].mxu0 %vm1213_vm4, %v2276_v41  ;;  %1360 = vrot.lane.b32.xlu0 %v1351_v23, %s8868_s29  ;;  %v8404_v23 = vpack.c.bf16 %v7019_v5, %v7018_v38  ;;  %v7020_v41 = vld [vmem:[%s10914_s4 + $0x1c8] sm:$0xff]  ;;  %v4732_v38 = vld [vmem:[#allocation5 + $0x10] sm:$0xff] }
 0x394   : > { %8264 = vmatpush3.bf16.msra.mxu0 %v8261_v27  ;;  %7717 = vmatprep.mubr.msk.f32.mxu0 %vm1213_vm4, %v2387_v13 }
 0x395   : > { %8388 = vmatprep.subr.bf16.mxu1 %v8869_v8  ;;  %7715 = vmatprep.subr.msk.mxu0 %vm1970_vm12, %v6846_v32 }
 0x396   : > { %8390 = vmatpush3.bf16.msra.mxu1 %v8389_v54  ;;  %7981 = vmatprep.mubr.msk.f32.mxu1 %vm8870_vm3, %v10932_v50  ;;  %v7021_v54 = vld [vmem:[%s10914_s4 + $0x1d0] sm:$0xff] }
 0x397   : > { %1393 = vrot.lane.b32.xlu0 %v1391_v59, %s8868_s29  ;;  %7979 = vmatprep.subr.mxu1 %v10932_v50  ;;  %v8407_v26 = vpack.c.bf16 %v7021_v54, %v7020_v41  ;;  %v7026_v59 = vld [vmem:[%s10914_s4 + $0x1e8] sm:$0xff]  ;;  %s10861_s29 = scalar_lea.hbm %s10916_s6, %s7174_s13 }
 0x398   : > { %7716 = vmatpush3.msk.msra.mxu0 %vm1970_vm12, %v6846_v32  ;;  %v6882_v32 = vld [vmem:[%s10913_s3 + $0x140] sm:$0xff]  ;;  %v8410_v40 = vpack.c.bf16 %v7026_v59, %v7025_v29  ;;  %v7067_v41 = vld [vmem:[%s10915_s5 + $0x48] sm:$0x3f] }
 0x399   : > { %7718 = vmatmul.mubr.msk.f32.vlgmr.msra.gmra.mrb[28].mxu0 %vm1213_vm4, %v2388_v21  ;;  %8266 = vmatprep.subr.bf16.mxu0 %v8265_v62  ;;  %v10111_v13 = vpack.c.bf16 %v6883_v0, %v6882_v32  ;;  %v4733_v32 = vld [vmem:[#allocation5 + $0x18] sm:$0xff]  ;;  %v7066_v0 = vld [vmem:[%s10915_s5 + $0x40] sm:$0xff] }
 0x39a   : > { %7720 = vmatprep.mubr.msk.f32.mxu0 %vm1213_vm4, %v2389_v46  ;;  %8268 = vmatpush3.bf16.msra.mxu0 %v8265_v62  ;;  %v7022_v62 = vld [vmem:[%s10914_s4 + $0x1d8] sm:$0x3f]  ;;  %v7032_v46 = vld [vmem:[%s10914_s4 + $0x208] sm:$0xff]  ;;  %v8445_v29 = vpack.c.bf16 %v7067_v41, %v7066_v0  ;;  %v7094_v0 = vld [vmem:[%s10915_s5 + $0x80] sm:$0xff] }
 0x39b   : > { %7980 = vmatpush3.msk.msra.mxu1 %vm1970_vm12, %v7001_v39  ;;  %8270 = vmatprep.subr.bf16.mxu0 %v8269_v45  ;;  %v7095_v41 = vld [vmem:[%s10915_s5 + $0x88] sm:$0x3f] }
 0x39c   : > { %7982 = vmatmul.mubr.msk.f32.vlgmr.msra.gmra.mrb[20].mxu1 %vm1213_vm4, %v4220_v43  ;;  %8391 = vmatprep.subr.bf16.mxu1 %v8869_v8  ;;  %v7034_v43 = vld [vmem:[%s10914_s4 + $0x218] sm:$0xff] }
 0x39d   : > { %7721 = vmatmul.mubr.msk.f32.gmra.mrb[30].mxu0 %vm1213_vm4, %v2390_v12  ;;  %8393 = vmatpush3.bf16.msra.mxu1 %v8392_v1  ;;  %v7033_v1 = vld [vmem:[%s10914_s4 + $0x210] sm:$0xff] }
 0x39e   : > { %8272 = vmatpush3.bf16.msra.mxu0 %v8269_v45  ;;  %7733 = vmatprep.mubr.msk.f32.mxu0 %vm1213_vm4, %v2501_v60  ;;  %v7028_v45 = vld [vmem:[%s10914_s4 + $0x1f8] sm:$0xff]  ;;  %v8416_v14 = vpack.c.bf16 %v7033_v1, %v7032_v46  ;;  %v4946_v46 = vld [vmem:[#allocation5 + $0x1a] sm:$0xff] }
 0x39f   : > { %7731 = vmatprep.subr.msk.mxu0 %vm1970_vm12, %v6856_v33  ;;  %8394 = vmatprep.subr.bf16.mxu1 %v8869_v8  ;;  %v8413_v39 = vpack.c.bf16 %v7028_v45, %v7027_v4  ;;  %v7041_v60 = vld [vmem:[%s10915_s5 + $0x18] sm:$0x3f]  ;;  %v4945_v4 = vld [vmem:[#allocation5 + $0x12] sm:$0xff]  ;;  %v7073_v1 = vld [vmem:[%s10915_s5 + $0x50] sm:$0xff] }
 0x3a0   : > { %v1506_v11 = vpop.xlane.xlu0 %1505  ;;  %7994 = vmatprep.mubr.msk.f32.mxu1 %vm8870_vm3, %v10932_v50 }
 0x3a1   : > { %v1512_v61 = vmul.f32 0.03125, %v1506_v11  ;;  %8396 = vmatpush3.bf16.msra.mxu1 %v8395_v28  ;;  %v4734_v28 = vld [vmem:[%s10915_s5] sm:$0xff] }
 0x3a2   : > { %7732 = vmatpush3.msk.msra.mxu0 %vm1970_vm12, %v6856_v33  ;;  %7992 = vmatprep.subr.mxu1 %v10932_v50  ;;  %v7035_v33 = vld [vmem:[%s10914_s4 + $0x220] sm:$0xff] }
 0x3a3   : > { %7734 = vmatmul.mubr.msk.f32.vlgmr.msra.gmra.mrb[28].mxu0 %vm1213_vm4, %v2502_v10  ;;  %8274 = vmatprep.subr.bf16.mxu0 %v8273_v22  ;;  %1516 = vst.msk [vmem:[#allocation5 + $0x33] sm:$0xff] %vm1498_vm6, %v1512_v61  ;;  %v10038_v19 = vpop.xlane.xlu1 %1645  ;;  %v8419_v57 = vpack.c.bf16 %v7035_v33, %v7034_v43  ;;  %v8427_v61 = vpack.c.bf16 %v4735_v3, %v4734_v28  ;;  %v7052_v10 = vld [vmem:[%s10915_s5 + $0x20] sm:$0xff]  ;;  %v5054_v43 = vld [vmem:[#allocation5 + $0x3] sm:$0xff] }
 0x3a4   : > { %7736 = vmatprep.mubr.msk.f32.mxu0 %vm1213_vm4, %v2503_v58  ;;  %8276 = vmatpush3.bf16.msra.mxu0 %v8273_v22  ;;  %v1837_v9 = vpop.permute.xlu0 %1836  ;;  %v8421_v22 = vpack.c.bf16 %v7041_v60, %v7040_v15  ;;  %v4736_v58 = vld [vmem:[#allocation5 + $0x1] sm:$0xff]  ;;  %v5055_v60 = vld [vmem:[#allocation5 + $0xb] sm:$0xff]  ;;  %v5056_v3 = vld [vmem:[#allocation5 + $0x13] sm:$0xff] }
 0x3a5   : > { %8278 = vmatprep.subr.bf16.mxu0 %v8277_v25  ;;  %1839 = vst.msk [vmem:[#allocation4 + $0x19] sm:$0x1] %vm1396_vm11, %v1837_v9  ;;  %7993 = vmatpush3.msk.msra.mxu1 %vm1970_vm12, %v7008_v24  ;;  %v7053_v24 = vld [vmem:[%s10915_s5 + $0x28] sm:$0x3f]  ;;  %v6926_v11 = vld [vmem:[%s10913_s3 + $0x200] sm:$0x3f] }
 0x3a6   : > { %8397 = vmatprep.subr.bf16.mxu1 %v8869_v8 }
 0x3a7   : > { %7737 = vmatmul.mubr.msk.f32.gmra.mrb[30].mxu0 %vm1213_vm4, %v2504_v18  ;;  %v1907_v51 = vpop.permute.xlu1 %1906 }
 0x3a8   : > { %8280 = vmatpush3.bf16.msra.mxu0 %v8277_v25  ;;  %7749 = vmatprep.mubr.msk.f32.mxu0 %vm1213_vm4, %v2615_v52  ;;  %1909 = vst.msk [vmem:[#allocation4 + $0x1a] sm:$0x1] %vm1396_vm11, %v1907_v51  ;;  %v8433_v52 = vpack.c.bf16 %v7053_v24, %v7052_v10  ;;  %v7080_v10 = vld [vmem:[%s10915_s5 + $0x60] sm:$0xff]  ;;  %v7081_v24 = vld [vmem:[%s10915_s5 + $0x68] sm:$0x3f] }
 0x3a9   : > { %7747 = vmatprep.subr.msk.mxu0 %vm1970_vm12, %v6866_v55 }
 0x3ac   : > { %7748 = vmatpush3.msk.msra.mxu0 %vm1970_vm12, %v6866_v55  ;;  %v4304_v27 = vld [vmem:[#allocation4 + $0x12] sm:$0xff]  ;;  %v1652_v55 = vmul.f32 0.03125, %v10038_v19 }
 0x3ad   : > { %7750 = vmatmul.mubr.msk.f32.vlgmr.msra.gmra.mrb[28].mxu0 %vm1213_vm4, %v2616_v63  ;;  %7995 = vmatmul.mubr.msk.f32.vlgmr.msra.gmra.mrb[20].mxu1 %vm1213_vm4, %v4304_v27  ;;  %v4739_v63 = vld [vmem:[#allocation5 + $0x19] sm:$0xff] }
 0x3ae   : > { %7752 = vmatprep.mubr.msk.f32.mxu0 %vm1213_vm4, %v2617_v16  ;;  %8399 = vmatpush3.bf16.msra.mxu1 %v8398_v6  ;;  %v8439_v16 = vpack.c.bf16 %v7060_v20, %v7059_v2  ;;  %v7087_v2 = vld [vmem:[%s10915_s5 + $0x70] sm:$0xff]  ;;  %v7088_v20 = vld [vmem:[%s10915_s5 + $0x78] sm:$0x3f] }
 0x3af   : > { %8400 = vmatprep.subr.bf16.mxu1 %v8869_v8  ;;  %8007 = vmatprep.mubr.msk.f32.mxu1 %vm8870_vm3, %v10932_v50  ;;  %v4388_v42 = vld [vmem:[#allocation4 + $0x13] sm:$0xff] }
 0x3b0   : > { %8282 = vmatprep.subr.bf16.mxu0 %v8281_v34  ;;  %v4472_v21 = vld [vmem:[#allocation4 + $0x14] sm:$0xff] }
 0x3b1   : > { %7753 = vmatmul.mubr.msk.f32.gmra.mrb[30].mxu0 %vm1213_vm4, %v2618_v47  ;;  %v4556_v12 = vld [vmem:[#allocation4 + $0x15] sm:$0xff] }
 0x3b2   : > { %8402 = vmatpush3.bf16.msra.mxu1 %v8401_v44  ;;  %8284 = vmatpush3.bf16.msra.mxu0 %v8281_v34  ;;  %v4640_v25 = vld [vmem:[#allocation4 + $0x16] sm:$0xff]  ;;  %v4730_v34 = vld [vmem:[#allocation5] sm:$0xff] }
 0x3b3   : > { %8005 = vmatprep.subr.mxu1 %v10932_v50  ;;  %8286 = vmatprep.subr.bf16.mxu0 %v8285_v53 }
 0x3b6   : > { %8006 = vmatpush3.msk.msra.mxu1 %vm1970_vm12, %v7015_v30  ;;  %8288 = vmatpush3.bf16.msra.mxu0 %v8285_v53  ;;  %v4731_v53 = vld [vmem:[#allocation5 + $0x8] sm:$0xff] }
 0x3b7   : > { %8008 = vmatmul.mubr.msk.f32.vlgmr.msra.gmra.mrb[20].mxu1 %vm1213_vm4, %v4388_v42  ;;  %8403 = vmatprep.subr.bf16.mxu1 %v8869_v8  ;;  %v4943_v42 = vld [vmem:[#allocation5 + $0x2] sm:$0xff] }
 0x3b8   : > { %8405 = vmatpush3.bf16.msra.mxu1 %v8404_v23  ;;  %8020 = vmatprep.mubr.msk.f32.mxu1 %vm8870_vm3, %v10932_v50 }
 0x3b9   : > { %8406 = vmatprep.subr.bf16.mxu1 %v8869_v8  ;;  %7763 = vmatprep.subr.msk.mxu0 %vm1970_vm12, %v6876_v17 }
 0x3ba   : > { %7764 = vmatpush3.msk.msra.mxu0 %vm1970_vm12, %v6876_v17 }
 0x3bb   : > { %8290 = vmatprep.subr.bf16.mxu0 %v10111_v13 }
 0x3bc   : > { %8408 = vmatpush3.bf16.msra.mxu1 %v8407_v26 }
 0x3bd   : > { %8018 = vmatprep.subr.mxu1 %v10932_v50 }
 0x3c0   : > { %8019 = vmatpush3.msk.msra.mxu1 %vm1970_vm12, %v7022_v62  ;;  %v4944_v62 = vld [vmem:[#allocation5 + $0xa] sm:$0xff] }
 0x3c1   : > { %8021 = vmatmul.mubr.msk.f32.vlgmr.msra.gmra.mrb[20].mxu1 %vm1213_vm4, %v4472_v21  ;;  %8409 = vmatprep.subr.bf16.mxu1 %v8869_v8 }
 0x3c2   : > { %8411 = vmatpush3.bf16.msra.mxu1 %v8410_v40  ;;  %8033 = vmatprep.mubr.msk.f32.mxu1 %vm8870_vm3, %v10932_v50 }
 0x3c3   : > { %8412 = vmatprep.subr.bf16.mxu1 %v8869_v8 }
 0x3c6   : > { %8414 = vmatpush3.bf16.msra.mxu1 %v8413_v39 }
 0x3c7   : > { %8031 = vmatprep.subr.mxu1 %v10932_v50 }
 0x3ca   : > { %8032 = vmatpush3.msk.msra.mxu1 %vm1970_vm12, %v7029_v37  ;;  %v7074_v37 = vld [vmem:[%s10915_s5 + $0x58] sm:$0x3f] }
 0x3cb   : > { %8034 = vmatmul.mubr.msk.f32.vlgmr.msra.gmra.mrb[20].mxu1 %vm1213_vm4, %v4556_v12  ;;  %8415 = vmatprep.subr.bf16.mxu1 %v8869_v8 }
 0x3cc   : > { %8417 = vmatpush3.bf16.msra.mxu1 %v8416_v14  ;;  %8046 = vmatprep.mubr.msk.f32.mxu1 %vm8870_vm3, %v10932_v50 }
 0x3cd   : > { %8418 = vmatprep.subr.bf16.mxu1 %v8869_v8 }
 0x3d0   : > { %8420 = vmatpush3.bf16.msra.mxu1 %v8419_v57  ;;  %v8451_v57 = vpack.c.bf16 %v7074_v37, %v7073_v1  ;;  %v7102_v1 = vld [vmem:[%s10915_s5 + $0x98] sm:$0x3f] }
 0x3d1   : > { %8044 = vmatprep.subr.mxu1 %v10932_v50 }
 0x3d4   : > { %8045 = vmatpush3.msk.msra.mxu1 %vm1970_vm12, %v7036_v48 }
 0x3d5   : > { %8047 = vmatmul.mubr.msk.f32.vlgmr.msra.gmra.mrb[20].mxu1 %vm1213_vm4, %v4640_v25  ;;  %8423 = vmatprep.subr.msk.bf16.mxu1 %vm10180_vm1, %v8421_v22  ;;  %v1576_v9 = vpop.xlane.xlu0 %1575  ;;  %v5057_v25 = vld [vmem:[#allocation5 + $0x1b] sm:$0xff] }
 0x3d6   : > { %8426 = vmatpush3.bf16.msk.msra.mxu1 %vm10180_vm1, %v8421_v22  ;;  %8053 = vmatprep.mubr.msk.f32.mxu1 %vm1229_vm2, %v4736_v58  ;;  %v1582_v18 = vmul.f32 0.03125, %v1576_v9  ;;  %v5165_v9 = vld [vmem:[#allocation5 + $0x4] sm:$0xff] }
 0x3d7   : > { %8429 = vmatprep.subr.msk.bf16.mxu1 %vm10180_vm1, %v8427_v61 }
 0x3d8   : > { %1586 = vst.msk [vmem:[#allocation5 + $0x33] sm:$0xff] %vm1568_vm7, %v1582_v18  ;;  %v1439_v51 = vpop.xlane.xlu1 %1438 }
 0x3d9   : > { %1656 = vst.msk [vmem:[#allocation5 + $0x33] sm:$0xff] %vm1638_vm8, %v1652_v55  ;;  %v1443_v36 = vmul.f32 0.03125, %v1439_v51  ;;  %8054 = vmatmul.mubr.msk.f32.vlgmr.msra.gmra.mrb[22].mxu1 %vm1229_vm2, %v4737_v31  ;;  %v1437_v49 = vpop.xlane.xlu0 %1436  ;;  %v5166_v31 = vld [vmem:[#allocation5 + $0xc] sm:$0xff] }
 0x3da   : > { %8056 = vmatprep.mubr.msk.f32.mxu1 %vm1229_vm2, %v4738_v35  ;;  %v1442_v6 = vmul.f32 0.03125, %v1437_v49  ;;  %8432 = vmatpush3.bf16.msk.msra.mxu1 %vm10180_vm1, %v8427_v61 }
 0x3db   : > { %1448 = vst.msk [vmem:[#allocation5 + $0x43] sm:$0xff] %vm1427_vm5, %v1443_v36  ;;  %8435 = vmatprep.subr.msk.bf16.mxu1 %vm10180_vm1, %v8433_v52  ;;  %v5167_v36 = vld [vmem:[#allocation5 + $0x14] sm:$0xff] }
 0x3dc   : > { %1447 = vst.msk [vmem:[#allocation5 + $0x3b] sm:$0xff] %vm1427_vm5, %v1442_v6  ;;  %v1716_v19 = vpop.xlane.xlu1 %1715 }
 0x3dd   : > { %v1722_v27 = vmul.f32 0.03125, %v1716_v19  ;;  %8057 = vmatmul.mubr.msk.f32.gmra.mrb[24].mxu1 %vm1229_vm2, %v4739_v63  ;;  %v1714_v7 = vpop.xlane.xlu0 %1713  ;;  %v5168_v63 = vld [vmem:[#allocation5 + $0x1c] sm:$0xff] }
 0x3de   : > { %8063 = vmatprep.mubr.msk.f32.mxu1 %vm1229_vm2, %v4730_v34  ;;  %v1721_v56 = vmul.f32 0.03125, %v1714_v7  ;;  %v5276_v34 = vld [vmem:[#allocation5 + $0x5] sm:$0xff] }
 0x3df   : > { %1726 = vst.msk [vmem:[#allocation5 + $0x33] sm:$0xff] %vm1708_vm9, %v1722_v27 }
 0x3e0   : > { %1725 = vst.msk [vmem:[#allocation5 + $0x2b] sm:$0xff] %vm1708_vm9, %v1721_v56  ;;  %v1510_v44 = vpop.xlane.xlu1 %1509 }
 0x3e1   : > { %v1514_v47 = vmul.f32 0.03125, %v1510_v44  ;;  %8064 = vmatmul.mubr.msk.f32.vlgmr.msra.gmra.mrb[22].mxu1 %vm1229_vm2, %v4731_v53  ;;  %v1508_v5 = vpop.xlane.xlu0 %1507  ;;  %v5277_v53 = vld [vmem:[#allocation5 + $0xd] sm:$0xff] }
 0x3e2   : > { %8066 = vmatprep.mubr.msk.f32.mxu1 %vm1229_vm2, %v4732_v38  ;;  %v1513_v30 = vmul.f32 0.03125, %v1508_v5  ;;  %8438 = vmatpush3.bf16.msk.msra.mxu1 %vm10180_vm1, %v8433_v52  ;;  %v8457_v52 = vpack.c.bf16 %v7081_v24, %v7080_v10  ;;  %v5278_v38 = vld [vmem:[#allocation5 + $0x15] sm:$0xff] }
 0x3e3   : > { %1518 = vst.msk [vmem:[#allocation5 + $0x43] sm:$0xff] %vm1498_vm6, %v1514_v47  ;;  %8441 = vmatprep.subr.msk.bf16.mxu1 %vm10180_vm1, %v8439_v16  ;;  %v7108_v10 = vld [vmem:[%s10915_s5 + $0xa0] sm:$0xff]  ;;  %v7109_v24 = vld [vmem:[%s10915_s5 + $0xa8] sm:$0x3f] }
 0x3e4   : > { %1517 = vst.msk [vmem:[#allocation5 + $0x3b] sm:$0xff] %vm1498_vm6, %v1513_v30  ;;  %v1786_v23 = vpop.xlane.xlu1 %1785 }
 0x3e5   : > { %v1792_v54 = vmul.f32 0.03125, %v1786_v23  ;;  %8067 = vmatmul.mubr.msk.f32.gmra.mrb[24].mxu1 %vm1229_vm2, %v4733_v32  ;;  %v1784_v17 = vpop.xlane.xlu0 %1783  ;;  %v5279_v32 = vld [vmem:[#allocation5 + $0x1d] sm:$0xff] }
 0x3e6   : > { %8073 = vmatprep.mubr.msk.f32.mxu1 %vm1229_vm2, %v4943_v42  ;;  %v1791_v26 = vmul.f32 0.03125, %v1784_v17 }
 0x3e7   : > { %1796 = vst.msk [vmem:[#allocation5 + $0x33] sm:$0xff] %vm1778_vm13, %v1792_v54  ;;  %v5387_v54 = vld [vmem:[#allocation5 + $0x6] sm:$0xff] }
 0x3e8   : > { %1795 = vst.msk [vmem:[#allocation5 + $0x2b] sm:$0xff] %vm1778_vm13, %v1791_v26  ;;  %v1580_v59 = vpop.xlane.xlu1 %1579  ;;  %v8469_v26 = vpack.c.bf16 %v7095_v41, %v7094_v0  ;;  %v6905_v0 = vld [vmem:[%s10913_s3 + $0x1a8] sm:$0xff] }
 0x3e9   : > { %v1584_v40 = vmul.f32 0.03125, %v1580_v59  ;;  %8074 = vmatmul.mubr.msk.f32.vlgmr.msra.gmra.mrb[22].mxu1 %vm1229_vm2, %v4944_v62  ;;  %v1578_v45 = vpop.xlane.xlu0 %1577  ;;  %v5388_v59 = vld [vmem:[#allocation5 + $0xe] sm:$0xff]  ;;  %v5389_v62 = vld [vmem:[#allocation5 + $0x16] sm:$0xff] }
 0x3ea   : > { %8076 = vmatprep.mubr.msk.f32.mxu1 %vm1229_vm2, %v4945_v4  ;;  %v1583_v21 = vmul.f32 0.03125, %v1578_v45  ;;  %8444 = vmatpush3.bf16.msk.msra.mxu1 %vm10180_vm1, %v8439_v16  ;;  %v8463_v16 = vpack.c.bf16 %v7088_v20, %v7087_v2  ;;  %v5390_v45 = vld [vmem:[#allocation5 + $0x1e] sm:$0xff]  ;;  %v7116_v2 = vld [vmem:[%s10915_s5 + $0xb8] sm:$0x3f] }
 0x3eb   : > { %1588 = vst.msk [vmem:[#allocation5 + $0x43] sm:$0xff] %vm1568_vm7, %v1584_v40  ;;  %8447 = vmatprep.subr.msk.bf16.mxu1 %vm10180_vm1, %v8445_v29 }
 0x3ec   : > { %1587 = vst.msk [vmem:[#allocation5 + $0x3b] sm:$0xff] %vm1568_vm7, %v1583_v21  ;;  %v1856_v39 = vpop.xlane.xlu1 %1855 }
 0x3ed   : > { %v1862_v14 = vmul.f32 0.03125, %v1856_v39  ;;  %8077 = vmatmul.mubr.msk.f32.gmra.mrb[24].mxu1 %vm1229_vm2, %v4946_v46  ;;  %v1854_v33 = vpop.xlane.xlu0 %1853  ;;  %v7101_v46 = vld [vmem:[%s10915_s5 + $0x90] sm:$0xff] }
 0x3ee   : > { %8083 = vmatprep.mubr.msk.f32.mxu1 %vm1229_vm2, %v5054_v43  ;;  %v1861_v12 = vmul.f32 0.03125, %v1854_v33  ;;  %v8475_v43 = vpack.c.bf16 %v7102_v1, %v7101_v46  ;;  %v7130_v1 = vld [vmem:[%s10915_s5 + $0xd8] sm:$0x3f] }
 0x3ef   : > { %1866 = vst.msk [vmem:[#allocation5 + $0x33] sm:$0xff] %vm1848_vm14, %v1862_v14 }
 0x3f0   : > { %1865 = vst.msk [vmem:[#allocation5 + $0x2b] sm:$0xff] %vm1848_vm14, %v1861_v12  ;;  %v1650_v15 = vpop.xlane.xlu1 %1649 }
 0x3f1   : > { %v1654_v28 = vmul.f32 0.03125, %v1650_v15  ;;  %8084 = vmatmul.mubr.msk.f32.vlgmr.msra.gmra.mrb[22].mxu1 %vm1229_vm2, %v5055_v60  ;;  %v1648_v48 = vpop.xlane.xlu0 %1647  ;;  %v6884_v60 = vld [vmem:[%s10913_s3 + $0x150] sm:$0xff] }
 0x3f2   : > { %8086 = vmatprep.mubr.msk.f32.mxu1 %vm1229_vm2, %v5056_v3  ;;  %v1653_v22 = vmul.f32 0.03125, %v1648_v48  ;;  %8450 = vmatpush3.bf16.msk.msra.mxu1 %vm10180_vm1, %v8445_v29 }
 0x3f3   : > { %1658 = vst.msk [vmem:[#allocation5 + $0x43] sm:$0xff] %vm1638_vm8, %v1654_v28  ;;  %8453 = vmatprep.subr.msk.bf16.mxu1 %vm10180_vm1, %v8451_v57  ;;  %v6885_v28 = vld [vmem:[%s10913_s3 + $0x158] sm:$0xff] }
 0x3f4   : > { %1657 = vst.msk [vmem:[#allocation5 + $0x3b] sm:$0xff] %vm1638_vm8, %v1653_v22  ;;  %v1926_v61 = vpop.xlane.xlu1 %1925  ;;  %v8293_v48 = vpack.c.bf16 %v6885_v28, %v6884_v60 }
 0x3f5   : > { %v1932_v58 = vmul.f32 0.03125, %v1926_v61  ;;  %8087 = vmatmul.mubr.msk.f32.gmra.mrb[24].mxu1 %vm1229_vm2, %v5057_v25  ;;  %v1924_v18 = vpop.xlane.xlu0 %1923 }
 0x3f6   : > { %8093 = vmatprep.mubr.msk.f32.mxu1 %vm1229_vm2, %v5165_v9  ;;  %v1931_v55 = vmul.f32 0.03125, %v1924_v18  ;;  %v6886_v9 = vld [vmem:[%s10913_s3 + $0x160] sm:$0x3f]  ;;  %v6892_v18 = vld [vmem:[%s10913_s3 + $0x168] sm:$0xff] }
 0x3f7   : > { %1936 = vst.msk [vmem:[#allocation5 + $0x33] sm:$0xff] %vm1918_vm15, %v1932_v58 }
 0x3f8   : > { %1935 = vst.msk [vmem:[#allocation5 + $0x2b] sm:$0xff] %vm1918_vm15, %v1931_v55  ;;  %v1788_v51 = vpop.xlane.xlu1 %1787 }
 0x3f9   : > { %8094 = vmatmul.mubr.msk.f32.vlgmr.msra.gmra.mrb[22].mxu1 %vm1229_vm2, %v5166_v31  ;;  %v1718_v35 = vpop.xlane.xlu0 %1717  ;;  %v1793_v6 = vmul.f32 0.03125, %v1788_v51  ;;  %v8481_v51 = vpack.c.bf16 %v7109_v24, %v7108_v10  ;;  %v6916_v24 = vld [vmem:[%s10913_s3 + $0x1d8] sm:$0x3f] }
 0x3fa   : > { %8096 = vmatprep.mubr.msk.f32.mxu1 %vm1229_vm2, %v5167_v36  ;;  %v1723_v49 = vmul.f32 0.03125, %v1718_v35  ;;  %8456 = vmatpush3.bf16.msk.msra.mxu1 %vm10180_vm1, %v8451_v57  ;;  %v6894_v36 = vld [vmem:[%s10913_s3 + $0x178] sm:$0xff]  ;;  %v6895_v35 = vld [vmem:[%s10913_s3 + $0x180] sm:$0xff] }
 0x3fb   : > { %8459 = vmatprep.subr.msk.bf16.mxu1 %vm10180_vm1, %v8457_v52  ;;  %v8301_v20 = vpack.c.bf16 %v6895_v35, %v6894_v36 }
 0x3fc   : > { %1727 = vst.msk [vmem:[#allocation5 + $0x3b] sm:$0xff] %vm1708_vm9, %v1723_v49  ;;  %v1858_v19 = vpop.xlane.xlu1 %1857 }
 0x3fd   : > { %1797 = vst.msk [vmem:[#allocation5 + $0x3b] sm:$0xff] %vm1778_vm13, %v1793_v6  ;;  %v1863_v27 = vmul.f32 0.03125, %v1858_v19  ;;  %8097 = vmatmul.mubr.msk.f32.gmra.mrb[24].mxu1 %vm1229_vm2, %v5168_v63  ;;  %v1720_v7 = vpop.xlane.xlu0 %1719  ;;  %v7115_v63 = vld [vmem:[%s10915_s5 + $0xb0] sm:$0xff] }
 0x3fe   : > { %8103 = vmatprep.mubr.msk.f32.mxu1 %vm1229_vm2, %v5276_v34  ;;  %v1724_v56 = vmul.f32 0.03125, %v1720_v7  ;;  %v8487_v7 = vpack.c.bf16 %v7116_v2, %v7115_v63 }
 0x3ff   : > { %1867 = vst.msk [vmem:[#allocation5 + $0x3b] sm:$0xff] %vm1848_vm14, %v1863_v27  ;;  %v5498_v37 = vld [vmem:[#allocation5 + $0x28] sm:$0xff]  ;;  %v5499_v12 = vld [vmem:[#allocation5 + $0x30] sm:$0xff] }
 0x400   : > { %1728 = vst.msk [vmem:[#allocation5 + $0x43] sm:$0xff] %vm1708_vm9, %v1724_v56  ;;  %v1928_v44 = vpop.xlane.xlu1 %1927  ;;  %v5609_v22 = vld [vmem:[#allocation5 + $0x29] sm:$0xff]  ;;  %v5610_v58 = vld [vmem:[#allocation5 + $0x31] sm:$0xff] }
 0x401   : > { %v1933_v47 = vmul.f32 0.03125, %v1928_v44  ;;  %8104 = vmatmul.mubr.msk.f32.vlgmr.msra.gmra.mrb[22].mxu1 %vm1229_vm2, %v5277_v53  ;;  %v1790_v5 = vpop.xlane.xlu0 %1789  ;;  %v5720_v19 = vld [vmem:[#allocation5 + $0x2a] sm:$0xff]  ;;  %v5721_v56 = vld [vmem:[#allocation5 + $0x32] sm:$0xff] }
 0x402   : > { %8106 = vmatprep.mubr.msk.f32.mxu1 %vm1229_vm2, %v5278_v38  ;;  %v1794_v30 = vmul.f32 0.03125, %v1790_v5  ;;  %8462 = vmatpush3.bf16.msk.msra.mxu1 %vm10180_vm1, %v8457_v52  ;;  %v6896_v53 = vld [vmem:[%s10913_s3 + $0x188] sm:$0x3f]  ;;  %v6902_v38 = vld [vmem:[%s10913_s3 + $0x190] sm:$0xff]  ;;  %v6903_v5 = vld [vmem:[%s10913_s3 + $0x198] sm:$0xff] }
 0x403   : > { %1937 = vst.msk [vmem:[#allocation5 + $0x3b] sm:$0xff] %vm1918_vm15, %v1933_v47  ;;  %8465 = vmatprep.subr.msk.bf16.mxu1 %vm10180_vm1, %v8463_v16  ;;  %v8305_v41 = vpack.c.bf16 %v6903_v5, %v6902_v38 }
 0x404   : > { %1798 = vst.msk [vmem:[#allocation5 + $0x43] sm:$0xff] %vm1778_vm13, %v1794_v30  ;;  %v1359_v23 = vpop.permute.xlu1 %1358 }
 0x405   : > { %1371 = vst.msk [vmem:[#allocation3 + $0x2b] sm:$0xff] %vm1345_vm0, %v1359_v23  ;;  %8107 = vmatmul.mubr.msk.f32.gmra.mrb[24].mxu1 %vm1229_vm2, %v5279_v32  ;;  %v1860_v42 = vpop.xlane.xlu0 %1859  ;;  %v5831_v23 = vld [vmem:[#allocation5 + $0x2b] sm:$0xff] }
 0x406   : > { %8113 = vmatprep.mubr.msk.f32.mxu1 %vm1229_vm2, %v5387_v54  ;;  %v1864_v17 = vmul.f32 0.03125, %v1860_v42  ;;  %v6904_v32 = vld [vmem:[%s10913_s3 + $0x1a0] sm:$0xff] }
 0x407   : > { %v7122_v54 = vld [vmem:[%s10915_s5 + $0xc0] sm:$0xff] }
 0x408   : > { %1868 = vst.msk [vmem:[#allocation5 + $0x43] sm:$0xff] %vm1848_vm14, %v1864_v17  ;;  %v1363_v29 = vpop.permute.xlu1 %1362  ;;  %v5832_v42 = vld [vmem:[#allocation5 + $0x33] sm:$0xff] }
 0x409   : > { %1373 = vst.msk [vmem:[#allocation3 + $0x3b] sm:$0xff] %vm1345_vm0, %v1363_v29  ;;  %8114 = vmatmul.mubr.msk.f32.vlgmr.msra.gmra.mrb[22].mxu1 %vm1229_vm2, %v5388_v59  ;;  %v1930_v40 = vpop.xlane.xlu0 %1929  ;;  %v7123_v29 = vld [vmem:[%s10915_s5 + $0xc8] sm:$0x3f] }
 0x40a   : > { %8116 = vmatprep.mubr.msk.f32.mxu1 %vm1229_vm2, %v5389_v62  ;;  %v1934_v4 = vmul.f32 0.03125, %v1930_v40  ;;  %8468 = vmatpush3.bf16.msk.msra.mxu1 %vm10180_vm1, %v8463_v16  ;;  %v5500_v57 = vld [vmem:[#allocation5 + $0x38] sm:$0xff]  ;;  %v6906_v40 = vld [vmem:[%s10913_s3 + $0x1b0] sm:$0x3f] }
 0x40b   : > { %8471 = vmatprep.subr.msk.bf16.mxu1 %vm10180_vm1, %v8469_v26  ;;  %v5611_v55 = vld [vmem:[#allocation5 + $0x39] sm:$0xff] }
 0x40c   : > { %1938 = vst.msk [vmem:[#allocation5 + $0x43] sm:$0xff] %vm1918_vm15, %v1934_v4  ;;  %v1365_v21 = vpop.permute.xlu1 %1364  ;;  %v2729_v39 = vld [vmem:[#allocation3 + $0x28] sm:$0xff]  ;;  %v6912_v4 = vld [vmem:[%s10913_s3 + $0x1b8] sm:$0xff] }
 0x40d   : > { %1374 = vst.msk [vmem:[#allocation3 + $0x43] sm:$0xff] %vm1345_vm0, %v1365_v21  ;;  %8117 = vmatmul.mubr.msk.f32.gmra.mrb[24].mxu1 %vm1229_vm2, %v5390_v45  ;;  %7765 = vmatprep.mubr.msk.f32.mxu0 %vm1213_vm4, %v2729_v39  ;;  %v1361_v14 = vpop.permute.xlu0 %1360  ;;  %v2843_v31 = vld [vmem:[#allocation3 + $0x29] sm:$0xff]  ;;  %v8493_v45 = vpack.c.bf16 %v7123_v29, %v7122_v54 }
 0x40e   : > { %8123 = vmatprep.mubr.msk.f32.mxu1 %vm1229_vm2, %v5498_v37  ;;  %1372 = vst.msk [vmem:[#allocation3 + $0x33] sm:$0xff] %vm1345_vm0, %v1361_v14  ;;  %v5722_v16 = vld [vmem:[#allocation5 + $0x3a] sm:$0xff]  ;;  %v5942_v37 = vld [vmem:[#allocation5 + $0x2c] sm:$0xff] }
 0x40f   : > { %v2957_v47 = vld [vmem:[#allocation3 + $0x2a] sm:$0xff] }
 0x410   : > { %v1468_v33 = vpop.permute.xlu1 %1467  ;;  %v5833_v59 = vld [vmem:[#allocation5 + $0x3b] sm:$0xff] }
 0x411   : > { %1470 = vst.msk [vmem:[#allocation4 + $0x4] sm:$0x1] %vm1396_vm11, %v1468_v33  ;;  %8124 = vmatmul.mubr.msk.f32.vlgmr.msra.gmra.mrb[22].mxu1 %vm1229_vm2, %v5499_v12  ;;  %v1394_v15 = vpop.permute.xlu0 %1393  ;;  %v7129_v21 = vld [vmem:[%s10915_s5 + $0xd0] sm:$0xff]  ;;  %v6914_v33 = vld [vmem:[%s10913_s3 + $0x1c8] sm:$0xff] }
 0x412   : > { %8126 = vmatprep.mubr.msk.f32.mxu1 %vm1229_vm2, %v5500_v57  ;;  %1397 = vst.msk [vmem:[#allocation4 + $0x3] sm:$0x1] %vm1396_vm11, %v1394_v15  ;;  %8474 = vmatpush3.bf16.msk.msra.mxu1 %vm10180_vm1, %v8469_v26  ;;  %v8309_v26 = vpack.c.bf16 %v6905_v0, %v6904_v32  ;;  %v3071_v14 = vld [vmem:[#allocation3 + $0x2b] sm:$0xff]  ;;  %v8499_v57 = vpack.c.bf16 %v7130_v1, %v7129_v21 }
 0x413   : > { %v5501_v3 = vld [vmem:[#allocation5 + $0x40] sm:$0xff]  ;;  %8477 = vmatprep.subr.msk.bf16.mxu1 %vm10180_vm1, %v8475_v43  ;;  %v5943_v15 = vld [vmem:[#allocation5 + $0x34] sm:$0xff] }
 0x414   : > { %v2732_v52 = vld [vmem:[#allocation3 + $0x40] sm:$0xff]  ;;  %v5612_v49 = vld [vmem:[#allocation5 + $0x41] sm:$0xff]  ;;  %v6946_v0 = vld [vmem:[%s10914_s4 + $0x28] sm:$0xff] }
 0x415   : > { %8127 = vmatmul.mubr.msk.f32.gmra.mrb[24].mxu1 %vm1229_vm2, %v5501_v3  ;;  %v2730_v61 = vld [vmem:[#allocation3 + $0x30] sm:$0xff]  ;;  %v2731_v25 = vld [vmem:[#allocation3 + $0x38] sm:$0xff]  ;;  %v2846_v44 = vld [vmem:[#allocation3 + $0x41] sm:$0xff] }
 0x416   : > { %8133 = vmatprep.mubr.msk.f32.mxu1 %vm1229_vm2, %v5609_v22  ;;  %7766 = vmatmul.mubr.msk.f32.vlgmr.msra.gmra.mrb[28].mxu0 %vm1213_vm4, %v2730_v61  ;;  %v2844_v27 = vld [vmem:[#allocation3 + $0x31] sm:$0xff]  ;;  %v2845_v34 = vld [vmem:[#allocation3 + $0x39] sm:$0xff]  ;;  %v2960_v46 = vld [vmem:[#allocation3 + $0x42] sm:$0xff] }
 0x417   : > { %8292 = vmatpush3.bf16.msra.mxu0 %v10111_v13  ;;  %7768 = vmatprep.mubr.msk.f32.mxu0 %vm1213_vm4, %v2731_v25  ;;  %v6893_v13 = vld [vmem:[%s10913_s3 + $0x170] sm:$0xff]  ;;  %v2959_v62 = vld [vmem:[#allocation3 + $0x3a] sm:$0xff]  ;;  %v3074_v10 = vld [vmem:[#allocation3 + $0x43] sm:$0xff] }
 0x418   : > { %8294 = vmatprep.subr.bf16.mxu0 %v8293_v48  ;;  %v8297_v6 = vpack.c.bf16 %v6893_v13, %v6892_v18  ;;  %v5723_v30 = vld [vmem:[#allocation5 + $0x42] sm:$0xff]  ;;  %v3073_v22 = vld [vmem:[#allocation3 + $0x3b] sm:$0xff]  ;;  %v6923_v18 = vld [vmem:[%s10913_s3 + $0x1e8] sm:$0xff] }
 0x419   : > { %8134 = vmatmul.mubr.msk.f32.vlgmr.msra.gmra.mrb[22].mxu1 %vm1229_vm2, %v5610_v58  ;;  %v2958_v17 = vld [vmem:[#allocation3 + $0x32] sm:$0xff]  ;;  %v6053_v25 = vld [vmem:[#allocation5 + $0x2d] sm:$0xff]  ;;  %v6165_v63 = vld [vmem:[#allocation5 + $0x36] sm:$0xff] }
 0x41a   : > { %8136 = vmatprep.mubr.msk.f32.mxu1 %vm1229_vm2, %v5611_v55  ;;  %7769 = vmatmul.mubr.msk.f32.gmra.mrb[30].mxu0 %vm1213_vm4, %v2732_v52  ;;  %v5834_v39 = vld [vmem:[#allocation5 + $0x43] sm:$0xff]  ;;  %v6054_v55 = vld [vmem:[#allocation5 + $0x35] sm:$0xff]  ;;  %v3301_v5 = vld [vmem:[#allocation3 + $0x3d] sm:$0xff] }
 0x41b   : > { %8296 = vmatpush3.bf16.msra.mxu0 %v8293_v48  ;;  %7781 = vmatprep.mubr.msk.f32.mxu0 %vm1213_vm4, %v2843_v31  ;;  %v6915_v12 = vld [vmem:[%s10913_s3 + $0x1d0] sm:$0xff]  ;;  %v3188_v2 = vld [vmem:[#allocation3 + $0x44] sm:$0xff] }
 0x41c   : > { %7779 = vmatprep.subr.msk.mxu0 %vm1970_vm12, %v6886_v9  ;;  %8480 = vmatpush3.bf16.msk.msra.mxu1 %vm10180_vm1, %v8475_v43  ;;  %v6913_v43 = vld [vmem:[%s10913_s3 + $0x1c0] sm:$0xff]  ;;  %v5944_v28 = vld [vmem:[#allocation5 + $0x3c] sm:$0xff]  ;;  %v8317_v3 = vpack.c.bf16 %v6915_v12, %v6914_v33  ;;  %v5945_v61 = vld [vmem:[#allocation5 + $0x44] sm:$0xff] }
 0x41d   : > { %8137 = vmatmul.mubr.msk.f32.gmra.mrb[24].mxu1 %vm1229_vm2, %v5612_v49  ;;  %8483 = vmatprep.subr.msk.bf16.mxu1 %vm10180_vm1, %v8481_v51  ;;  %v8313_v60 = vpack.c.bf16 %v6913_v43, %v6912_v4  ;;  %v3072_v48 = vld [vmem:[#allocation3 + $0x33] sm:$0xff]  ;;  %v3415_v29 = vld [vmem:[#allocation3 + $0x3e] sm:$0xff]  ;;  %v3553_v4 = vld [vmem:[%s10914_s4 + $0x8] sm:$0xff] }
 0x41e   : > { %8143 = vmatprep.mubr.msk.f32.mxu1 %vm1229_vm2, %v5720_v19  ;;  %v3185_v58 = vld [vmem:[#allocation3 + $0x2c] sm:$0xff]  ;;  %v6056_v36 = vld [vmem:[#allocation5 + $0x45] sm:$0xff]  ;;  %v3556_v33 = vld [vmem:[%s10914_s4 + $0x20] sm:$0x3f] }
 0x41f   : > { %7780 = vmatpush3.msk.msra.mxu0 %vm1970_vm12, %v6886_v9  ;;  %v6922_v9 = vld [vmem:[%s10913_s3 + $0x1e0] sm:$0xff]  ;;  %v6055_v52 = vld [vmem:[#allocation5 + $0x3d] sm:$0xff]  ;;  %v3300_v38 = vld [vmem:[#allocation3 + $0x35] sm:$0xff] }
 0x420   : > { %7782 = vmatmul.mubr.msk.f32.vlgmr.msra.gmra.mrb[28].mxu0 %vm1213_vm4, %v2844_v27  ;;  %8298 = vmatprep.subr.bf16.mxu0 %v8297_v6  ;;  %v6924_v13 = vld [vmem:[%s10913_s3 + $0x1f0] sm:$0xff]  ;;  %v8321_v31 = vpack.c.bf16 %v6923_v18, %v6922_v9  ;;  %v3187_v19 = vld [vmem:[#allocation3 + $0x3c] sm:$0xff]  ;;  %v6970_v18 = vld [vmem:[%s10914_s4 + $0xa8] sm:$0xff] }
 0x421   : > { %7784 = vmatprep.mubr.msk.f32.mxu0 %vm1213_vm4, %v2845_v34  ;;  %8300 = vmatpush3.bf16.msra.mxu0 %v8297_v6  ;;  %v3186_v35 = vld [vmem:[#allocation3 + $0x34] sm:$0xff]  ;;  %v6164_v6 = vld [vmem:[#allocation5 + $0x2e] sm:$0xff] }
 0x422   : > { %8144 = vmatmul.mubr.msk.f32.vlgmr.msra.gmra.mrb[22].mxu1 %vm1229_vm2, %v5721_v56  ;;  %8302 = vmatprep.subr.bf16.mxu0 %v8301_v20  ;;  %v6166_v27 = vld [vmem:[#allocation5 + $0x3e] sm:$0xff]  ;;  %v6934_v56 = vld [vmem:[%s10913_s3 + $0x218] sm:$0xff]  ;;  %v6969_v9 = vld [vmem:[%s10914_s4 + $0xa0] sm:$0xff] }
 0x423   : > { %8146 = vmatprep.mubr.msk.f32.mxu1 %vm1229_vm2, %v5722_v16  ;;  %8486 = vmatpush3.bf16.msk.msra.mxu1 %vm10180_vm1, %v8481_v51  ;;  %v6925_v51 = vld [vmem:[%s10913_s3 + $0x1f8] sm:$0xff]  ;;  %v3299_v34 = vld [vmem:[#allocation3 + $0x2d] sm:$0xff]  ;;  %v6935_v16 = vld [vmem:[%s10913_s3 + $0x220] sm:$0xff] }
 0x424   : > { %7785 = vmatmul.mubr.msk.f32.gmra.mrb[30].mxu0 %vm1213_vm4, %v2846_v44  ;;  %8489 = vmatprep.subr.msk.bf16.mxu1 %vm10180_vm1, %v8487_v7  ;;  %v8325_v49 = vpack.c.bf16 %v6925_v51, %v6924_v13  ;;  %v6167_v44 = vld [vmem:[#allocation5 + $0x46] sm:$0xff]  ;;  %v3413_v32 = vld [vmem:[#allocation3 + $0x2e] sm:$0xff] }
 0x425   : > { %8304 = vmatpush3.bf16.msra.mxu0 %v8301_v20  ;;  %7797 = vmatprep.mubr.msk.f32.mxu0 %vm1213_vm4, %v2957_v47  ;;  %v6932_v20 = vld [vmem:[%s10913_s3 + $0x208] sm:$0xff]  ;;  %v8333_v47 = vpack.c.bf16 %v6935_v16, %v6934_v56  ;;  %v3557_v1 = vld [vmem:[#allocation4 + $0x1] sm:$0xff] }
 0x426   : > { %8147 = vmatmul.mubr.msk.f32.gmra.mrb[24].mxu1 %vm1229_vm2, %v5723_v30  ;;  %7795 = vmatprep.subr.msk.mxu0 %vm1970_vm12, %v6896_v53  ;;  %v3302_v30 = vld [vmem:[#allocation3 + $0x45] sm:$0xff]  ;;  %v6956_v43 = vld [vmem:[%s10914_s4 + $0x58] sm:$0xff]  ;;  %v6971_v13 = vld [vmem:[%s10914_s4 + $0xb0] sm:$0xff] }
 0x427   : > { %8153 = vmatprep.mubr.msk.f32.mxu1 %vm1229_vm2, %v5831_v23  ;;  %v6936_v23 = vld [vmem:[%s10913_s3 + $0x228] sm:$0x3f]  ;;  %v6972_v51 = vld [vmem:[%s10914_s4 + $0xb8] sm:$0xff] }
 0x429   : > { %7796 = vmatpush3.msk.msra.mxu0 %vm1970_vm12, %v6896_v53 }
 0x42a   : > { %8154 = vmatmul.mubr.msk.f32.vlgmr.msra.gmra.mrb[22].mxu1 %vm1229_vm2, %v5832_v42  ;;  %7798 = vmatmul.mubr.msk.f32.vlgmr.msra.gmra.mrb[28].mxu0 %vm1213_vm4, %v2958_v17  ;;  %v6948_v42 = vld [vmem:[%s10914_s4 + $0x38] sm:$0xff]  ;;  %v6949_v17 = vld [vmem:[%s10914_s4 + $0x40] sm:$0xff] }
 0x42b   : > { %8306 = vmatprep.subr.bf16.mxu0 %v8305_v41  ;;  %8156 = vmatprep.mubr.msk.f32.mxu1 %vm1229_vm2, %v5833_v59  ;;  %v8341_v59 = vpack.c.bf16 %v6949_v17, %v6948_v42  ;;  %v8878_v17 = vmov 6  }
 0x42c   : > { %7800 = vmatprep.mubr.msk.f32.mxu0 %vm1213_vm4, %v2959_v62  ;;  %8308 = vmatpush3.bf16.msra.mxu0 %v8305_v41  ;;  %v6947_v41 = vld [vmem:[%s10914_s4 + $0x30] sm:$0xff]  ;;  %v3416_v62 = vld [vmem:[#allocation3 + $0x46] sm:$0xff] }
 0x42d   : > { %8310 = vmatprep.subr.bf16.mxu0 %v8309_v26  ;;  %8492 = vmatpush3.bf16.msk.msra.mxu1 %vm10180_vm1, %v8487_v7  ;;  %v6933_v7 = vld [vmem:[%s10913_s3 + $0x210] sm:$0xff]  ;;  %v8338_v54 = vpack.c.bf16 %v6947_v41, %v6946_v0  ;;  %v8875_v0 = vmov 2   ;;  %v8876_v41 = vmov 5  }
 0x42e   : > { %8157 = vmatmul.mubr.msk.f32.gmra.mrb[24].mxu1 %vm1229_vm2, %v5834_v39  ;;  %7801 = vmatmul.mubr.msk.f32.gmra.mrb[30].mxu0 %vm1213_vm4, %v2960_v46  ;;  %v8329_v53 = vpack.c.bf16 %v6933_v7, %v6932_v20  ;;  %v3554_v39 = vld [vmem:[%s10914_s4 + $0x10] sm:$0xff]  ;;  %v3555_v46 = vld [vmem:[%s10914_s4 + $0x18] sm:$0xff] }
 0x42f   : > { %8163 = vmatprep.mubr.msk.f32.mxu1 %vm1229_vm2, %v5942_v37  ;;  %7813 = vmatprep.mubr.msk.f32.mxu0 %vm1213_vm4, %v3071_v14  ;;  %v8347_v37 = vpack.c.bf16 %v3555_v46, %v3554_v39  ;;  %v6955_v14 = vld [vmem:[%s10914_s4 + $0x50] sm:$0xff] }
 0x430   : > { %8312 = vmatpush3.bf16.msra.mxu0 %v8309_v26  ;;  %8495 = vmatprep.subr.msk.bf16.mxu1 %vm10180_vm1, %v8493_v45  ;;  %v3414_v26 = vld [vmem:[#allocation3 + $0x36] sm:$0xff]  ;;  %v8350_v12 = vpack.c.bf16 %v6956_v43, %v6955_v14 }
 0x431   : > { %7811 = vmatprep.subr.msk.mxu0 %vm1970_vm12, %v6906_v40 }
 0x432   : > { %8164 = vmatmul.mubr.msk.f32.vlgmr.msra.gmra.mrb[22].mxu1 %vm1229_vm2, %v5943_v15  ;;  %v6958_v15 = vld [vmem:[%s10914_s4 + $0x68] sm:$0xff] }
 0x433   : > { %8166 = vmatprep.mubr.msk.f32.mxu1 %vm1229_vm2, %v5944_v28  ;;  %8498 = vmatpush3.bf16.msk.msra.mxu1 %vm10180_vm1, %v8493_v45  ;;  %v6950_v45 = vld [vmem:[%s10914_s4 + $0x48] sm:$0x3f] }
 0x434   : > { %7812 = vmatpush3.msk.msra.mxu0 %vm1970_vm12, %v6906_v40  ;;  %8501 = vmatprep.subr.msk.bf16.mxu1 %vm10180_vm1, %v8499_v57  ;;  %v3552_v40 = vld [vmem:[%s10914_s4] sm:$0xff] }
 0x435   : > { %7814 = vmatmul.mubr.msk.f32.vlgmr.msra.gmra.mrb[28].mxu0 %vm1213_vm4, %v3072_v48  ;;  %8314 = vmatprep.subr.bf16.mxu0 %v8313_v60  ;;  %v8344_v21 = vpack.c.bf16 %v3553_v4, %v3552_v40  ;;  %v6963_v48 = vld [vmem:[%s10914_s4 + $0x80] sm:$0xff]  ;;  %v8879_v40 = vmov 7  }
 0x436   : > { %7816 = vmatprep.mubr.msk.f32.mxu0 %vm1213_vm4, %v3073_v22  ;;  %8316 = vmatpush3.bf16.msra.mxu0 %v8313_v60  ;;  %v3551_v60 = vld [vmem:[#allocation4] sm:$0xff] }
 0x437   : > { %8167 = vmatmul.mubr.msk.f32.gmra.mrb[24].mxu1 %vm1229_vm2, %v5945_v61  ;;  %8318 = vmatprep.subr.bf16.mxu0 %v8317_v3  ;;  %v6959_v22 = vld [vmem:[%s10914_s4 + $0x70] sm:$0x3f] }
 0x438   : > { %8173 = vmatprep.mubr.msk.f32.mxu1 %vm1229_vm2, %v6053_v25  ;;  %v6964_v25 = vld [vmem:[%s10914_s4 + $0x88] sm:$0xff] }
 0x439   : > { %7817 = vmatmul.mubr.msk.f32.gmra.mrb[30].mxu0 %vm1213_vm4, %v3074_v10  ;;  %v6965_v10 = vld [vmem:[%s10914_s4 + $0x90] sm:$0xff] }
 0x43a   : > { %8320 = vmatpush3.bf16.msra.mxu0 %v8317_v3  ;;  %7829 = vmatprep.mubr.msk.f32.mxu0 %vm1213_vm4, %v3185_v58  ;;  %v6962_v3 = vld [vmem:[%s10914_s4 + $0x78] sm:$0xff]  ;;  %v8359_v58 = vpack.c.bf16 %v6965_v10, %v6964_v25 }
 0x43b   : > { %8174 = vmatmul.mubr.msk.f32.vlgmr.msra.gmra.mrb[22].mxu1 %vm1229_vm2, %v6054_v55  ;;  %7827 = vmatprep.subr.msk.mxu0 %vm1970_vm12, %v6916_v24  ;;  %v8356_v61 = vpack.c.bf16 %v6963_v48, %v6962_v3  ;;  %v6966_v55 = vld [vmem:[%s10914_s4 + $0x98] sm:$0x3f] }
 0x43c   : > { %8176 = vmatprep.mubr.msk.f32.mxu1 %vm1229_vm2, %v6055_v52  ;;  %8504 = vmatpush3.bf16.msk.msra.mxu1 %vm10180_vm1, %v8499_v57  ;;  %v6957_v57 = vld [vmem:[%s10914_s4 + $0x60] sm:$0xff]  ;;  %v8362_v52 = vpack.c.bf16 %v6970_v18, %v6969_v9  ;;  %vm10938_vm1 = vcmask 261120  }
 0x43d   : > { %v8353_v28 = vpack.c.bf16 %v6958_v15, %v6957_v57  ;;  %vm10941_vm5 = vmmov %vm10938_vm1 }
 0x43e   : > { %7828 = vmatpush3.msk.msra.mxu0 %vm1970_vm12, %v6916_v24  ;;  %v3716_v24 = vld [vmem:[#allocation4 + $0x2] sm:$0xff]  ;;  %vm10942_vm6 = vmmov %vm10938_vm1 }
 0x43f   : > { %8177 = vmatmul.mubr.msk.f32.gmra.mrb[24].mxu1 %vm1229_vm2, %v6056_v36  ;;  %7830 = vmatmul.mubr.msk.f32.vlgmr.msra.gmra.mrb[28].mxu0 %vm1213_vm4, %v3186_v35  ;;  %v8365_v36 = vpack.c.bf16 %v6972_v51, %v6971_v13  ;;  %v6973_v35 = vld [vmem:[%s10914_s4 + $0xc0] sm:$0x3f]  ;;  %vm10943_vm7 = vmmov %vm10938_vm1 }
 0x440   : > { %8322 = vmatprep.subr.bf16.mxu0 %v8321_v31  ;;  %8183 = vmatprep.mubr.msk.f32.mxu1 %vm1229_vm2, %v6164_v6  ;;  %vm10944_vm8 = vmmov %vm10938_vm1 }
 0x441   : > { %7832 = vmatprep.mubr.msk.f32.mxu0 %vm1213_vm4, %v3187_v19  ;;  %8324 = vmatpush3.bf16.msra.mxu0 %v8321_v31  ;;  %v3800_v31 = vld [vmem:[#allocation4 + $0x3] sm:$0xff]  ;;  %vm10945_vm9 = vmmov %vm10938_vm1 }
 0x442   : > { %8326 = vmatprep.subr.bf16.mxu0 %v8325_v49  ;;  %vm10946_vm11 = vmmov %vm10938_vm1 }
 0x443   : > { %8184 = vmatmul.mubr.msk.f32.vlgmr.msra.gmra.mrb[22].mxu1 %vm1229_vm2, %v6165_v63  ;;  %7833 = vmatmul.mubr.msk.f32.gmra.mrb[30].mxu0 %vm1213_vm4, %v3188_v2  ;;  %v8873_v63 = vmov 0   ;;  %vm10948_vm13 = vmmov %vm10938_vm1 }
 0x444   : > { %8186 = vmatprep.mubr.msk.f32.mxu1 %vm1229_vm2, %v6166_v27  ;;  %7845 = vmatprep.mubr.msk.f32.mxu0 %vm1213_vm4, %v3299_v34  ;;  %vm10949_vm14 = vmmov %vm10938_vm1 }
 0x445   : > { %8328 = vmatpush3.bf16.msra.mxu0 %v8325_v49  ;;  %v3884_v49 = vld [vmem:[#allocation4 + $0x4] sm:$0xff]  ;;  %8701 = vset.pattern.permute.xlu1 %v8873_v63  ;;  %vm10950_vm15 = vmmov %vm10938_vm1 }
 0x446   : > { %7843 = vmatprep.subr.msk.mxu0 %vm1970_vm12, %v6926_v11  ;;  %vm10951_vm0 = vmmov %vm10938_vm1 }
 0x447   : > { %8187 = vmatmul.mubr.msk.f32.gmra.mrb[24].mxu1 %vm1229_vm2, %v6167_v44  ;;  %vm10939_vm2 = vmmov %vm10938_vm1 }
 0x448   : > { %vm10953_vm10 = vmmov %vm10951_vm0 }
 0x449   : > { %7844 = vmatpush3.msk.msra.mxu0 %vm1970_vm12, %v6926_v11  ;;  %v8872_v11 = vmov 1  }
 0x44a   : > { %7846 = vmatmul.mubr.msk.f32.vlgmr.msra.gmra.mrb[28].mxu0 %vm1213_vm4, %v3300_v38  ;;  %8330 = vmatprep.subr.bf16.mxu0 %v8329_v53 }
 0x44b   : > { %7848 = vmatprep.mubr.msk.f32.mxu0 %vm1213_vm4, %v3301_v5  ;;  %8332 = vmatpush3.bf16.msra.mxu0 %v8329_v53 }
 0x44c   : > { %8334 = vmatprep.subr.bf16.mxu0 %v8333_v47  ;;  %8702 = vset.pattern.permute.xlu0 %v8872_v11 }
 0x44e   : > { %7849 = vmatmul.mubr.msk.f32.gmra.mrb[30].mxu0 %vm1213_vm4, %v3302_v30 }
 0x44f   : > { %8336 = vmatpush3.bf16.msra.mxu0 %v8333_v47  ;;  %7861 = vmatprep.mubr.msk.f32.mxu0 %vm1213_vm4, %v3413_v32  ;;  %v8874_v32 = vmov 3  }
 0x450   : > { %7859 = vmatprep.subr.msk.mxu0 %vm1970_vm12, %v6936_v23 }
 0x453   : > { %7860 = vmatpush3.msk.msra.mxu0 %vm1970_vm12, %v6936_v23 }
 0x454   : > { %7862 = vmatmul.mubr.msk.f32.vlgmr.msra.gmra.mrb[28].mxu0 %vm1213_vm4, %v3414_v26  ;;  %8337 = vmatprep.subr.bf16.mxu0 %v8869_v8 }
 0x455   : > { %7864 = vmatprep.mubr.msk.f32.mxu0 %vm1213_vm4, %v3415_v29  ;;  %8339 = vmatpush3.bf16.msra.mxu0 %v8338_v54  ;;  %v8877_v54 = vmov 4  }
 0x456   : > { %8340 = vmatprep.subr.bf16.mxu0 %v8869_v8 }
 0x458   : > { %7865 = vmatmul.mubr.msk.f32.gmra.mrb[30].mxu0 %vm1213_vm4, %v3416_v62 }
 0x459   : > { %8342 = vmatpush3.bf16.msra.mxu0 %v8341_v59  ;;  %7877 = vmatprep.mubr.msk.f32.mxu0 %vm8870_vm3, %v10932_v50 }
 0x45a   : > { %7875 = vmatprep.subr.mxu0 %v10932_v50 }
 0x45d   : > { %7876 = vmatpush3.msk.msra.mxu0 %vm1970_vm12, %v6950_v45 }
 0x45e   : > { %7878 = vmatmul.mubr.msk.f32.vlgmr.msra.gmra.mrb[32].mxu0 %vm1213_vm4, %v3557_v1  ;;  %8343 = vmatprep.subr.bf16.mxu0 %v8869_v8 }
 0x45f   : > { %8345 = vmatpush3.bf16.msra.mxu0 %v8344_v21  ;;  %7890 = vmatprep.mubr.msk.f32.mxu0 %vm8870_vm3, %v10932_v50 }
 0x460   : > { %8346 = vmatprep.subr.bf16.mxu0 %v8869_v8 }
 0x463   : > { %8348 = vmatpush3.bf16.msra.mxu0 %v8347_v37 }
 0x464   : > { %7888 = vmatprep.subr.mxu0 %v10932_v50 }
 0x467   : > { %7889 = vmatpush3.msk.msra.mxu0 %vm1970_vm12, %v3556_v33 }
 0x468   : > { %7891 = vmatmul.mubr.msk.f32.vlgmr.msra.gmra.mrb[32].mxu0 %vm1213_vm4, %v3551_v60  ;;  %8349 = vmatprep.subr.bf16.mxu0 %v8869_v8 }
 0x469   : > { %8351 = vmatpush3.bf16.msra.mxu0 %v8350_v12  ;;  %7903 = vmatprep.mubr.msk.f32.mxu0 %vm8870_vm3, %v10932_v50 }
 0x46a   : > { %8352 = vmatprep.subr.bf16.mxu0 %v8869_v8 }
 0x46d   : > { %8354 = vmatpush3.bf16.msra.mxu0 %v8353_v28 }
 0x46e   : > { %7901 = vmatprep.subr.mxu0 %v10932_v50 }
 0x471   : > { %7902 = vmatpush3.msk.msra.mxu0 %vm1970_vm12, %v6959_v22  ;;  %v6299_v22 = vlaneseq }
 0x472   : > { %7904 = vmatmul.mubr.msk.f32.vlgmr.msra.gmra.mrb[32].mxu0 %vm1213_vm4, %v3716_v24  ;;  %8355 = vmatprep.subr.bf16.mxu0 %v8869_v8 }
 0x473   : > { %8357 = vmatpush3.bf16.msra.mxu0 %v8356_v61  ;;  %7916 = vmatprep.mubr.msk.f32.mxu0 %vm8870_vm3, %v10932_v50  ;;  %v6300_v24 = vshrl.u32 %v6299_v22, 7 }
 0x474   : > { %8358 = vmatprep.subr.bf16.mxu0 %v8869_v8 }
 0x475   : > { %v6301_v9 = vsub.s32 0, %v6300_v24  ;;  %v6349_v18 = vsub.s32 1, %v6300_v24  ;;  %v6484_v13 = vsub.s32 4, %v6300_v24  ;;  %v6529_v51 = vsub.s32 5, %v6300_v24 }
 0x477   : > { %8360 = vmatpush3.bf16.msra.mxu0 %v8359_v58 }
 0x478   : > { %7914 = vmatprep.subr.mxu0 %v10932_v50 }
 0x47b   : > { %7915 = vmatpush3.msk.msra.mxu0 %vm1970_vm12, %v6966_v55  ;;  %v6394_v55 = vsub.s32 2, %v6300_v24 }
 0x47c   : > { %7917 = vmatmul.mubr.msk.f32.vlgmr.msra.gmra.mrb[32].mxu0 %vm1213_vm4, %v3800_v31  ;;  %8361 = vmatprep.subr.bf16.mxu0 %v8869_v8  ;;  %v6574_v31 = vsub.s32 6, %v6300_v24 }
 0x47d   : > { %8363 = vmatpush3.bf16.msra.mxu0 %v8362_v52  ;;  %7929 = vmatprep.mubr.msk.f32.mxu0 %vm8870_vm3, %v10932_v50  ;;  %v6439_v52 = vsub.s32 3, %v6300_v24  ;;  %vm10952_vm3 = vmmov %vm10951_vm0 }
 0x47e   : > { %8364 = vmatprep.subr.bf16.mxu0 %v8869_v8 }
 0x481   : > { %8366 = vmatpush3.bf16.msra.mxu0 %v8365_v36  ;;  %v6619_v36 = vsub.s32 7, %v6300_v24 }
 0x482   : > { %7927 = vmatprep.subr.mxu0 %v10932_v50 }
 0x485   : > { %7928 = vmatpush3.msk.msra.mxu0 %vm1970_vm12, %v6973_v35  ;;  %vm10947_vm12 = vmmov %vm10938_vm1 }
 0x486   : > { %7930 = vmatmul.mubr.msk.f32.vlgmr.msra.gmra.mrb[32].mxu0 %vm1213_vm4, %v3884_v49  ;;  %vm10940_vm4 = vmmov %vm10938_vm1 }
 0x4a8   : > { %v10638_v6 = vpop.f32.mrb[20].mxu1 }
 0x4a9   : > { %v8048_v19 = vpop.f32.mrb[21].mxu1 }
 0x516   : > { %v8185_v8 = vpop.f32.mrb[22].mxu1 }
 0x517   : > { %v7137_v50 = vmul.f32 -1.442695, %v8185_v8  ;;  %v6252_v2 = vpop.f32.mrb[23].mxu1 }
 0x518   : > { %v7136_v34 = vmul.f32 -1.442695, %v6252_v2 }
 0x519   : > { %8732 = vpow2.f32 %v7137_v50 }
 0x51a   : > { %v8188_v20 = vpop.f32.mrb[24].mxu1  ;;  %8734 = vpow2.f32 %v7136_v34 }
 0x51b   : > { %v6262_v27 = vpop.f32.mrb[25].mxu1  ;;  %v7139_v23 = vmul.f32 -1.442695, %v8188_v20 }
 0x51c   : > { %v7138_v59 = vmul.f32 -1.442695, %v6262_v27 }
 0x523   : > { %v8733_v7 = vpop.eup %8732 }
 0x524   : > { %v6288_v56 = vadd.f32 1.0, %v8733_v7  ;;  %v8735_v38 = vpop.eup %8734 }
 0x525   : > { %v6287_v30 = vadd.f32 1.0, %v8735_v38 }
 0x526   : > { %8736 = vrcp.f32 %v6288_v56 }
 0x527   : > { %v7863_v16 = vpop.f32.mrb[28].mxu0  ;;  %8738 = vrcp.f32 %v6287_v30 }
 0x528   : > { %v3504_v44 = vpop.f32.mrb[29].mxu0  ;;  %8740 = vpow2.f32 %v7139_v23  ;;  %v6943_v21 = vmul.f32 -1.442695, %v7863_v16 }
 0x529   : > { %v6942_v39 = vmul.f32 -1.442695, %v3504_v44 }
 0x52b   : > { %v7866_v53 = vpop.f32.mrb[30].mxu0 }
 0x52c   : > { %v10642_v47 = vpop.f32.mrb[31].mxu0  ;;  %v6945_v14 = vmul.f32 -1.442695, %v7866_v53 }
 0x52d   : > { %v6944_v33 = vmul.f32 -1.442695, %v10642_v47 }
 0x530   : > { %v10644_v5 = vpop.eup %8736 }
 0x531   : > { %6360 = vperm.xlu0 %8702, %v10644_v5   ;;  %6314 = vperm.xlu1 %8701, %v10644_v5   ;;  %v8739_v42 = vpop.eup %8738 }
 0x532   : > { %v8741_v26 = vpop.eup %8740 }
 0x533   : > { %v6290_v29 = vadd.f32 1.0, %v8741_v26 }
 0x535   : > { %8704 = vset.pattern.permute.xlu0 %v8874_v32  ;;  %8703 = vset.pattern.permute.xlu1 %v8875_v0  ;;  %8742 = vrcp.f32 %v6290_v29 }
 0x536   : > { %6450 = vperm.xlu0 %8704, %v10644_v5   ;;  %6405 = vperm.xlu1 %8703, %v10644_v5   ;;  %8744 = vpow2.f32 %v7138_v59 }
 0x53a   : > { %8706 = vset.pattern.permute.xlu0 %v8876_v41  ;;  %8705 = vset.pattern.permute.xlu1 %v8877_v54 }
 0x53b   : > { %6540 = vperm.xlu0 %8706, %v10644_v5   ;;  %6495 = vperm.xlu1 %8705, %v10644_v5  }
 0x53f   : > { %8708 = vset.pattern.permute.xlu0 %v8873_v63  ;;  %8707 = vset.pattern.permute.xlu1 %v8878_v17  ;;  %v10665_v62 = vpop.eup %8742 }
 0x540   : > { %6585 = vperm.xlu1 %8707, %v10644_v5   ;;  %6309 = vperm.xlu0 %8708, %v8739_v42   ;;  %v8745_v4 = vpop.eup %8744 }
 0x541   : > { %v6289_v45 = vadd.f32 1.0, %v8745_v4 }
 0x543   : > { %8746 = vrcp.f32 %v6289_v45 }
 0x544   : > { %8709 = vset.pattern.permute.xlu1 %v8872_v11  ;;  %8710 = vset.pattern.permute.xlu0 %v8875_v0  ;;  %8748 = vpow2.f32 %v6943_v21 }
 0x545   : > { %6356 = vperm.xlu1 %8709, %v8739_v42   ;;  %6401 = vperm.xlu0 %8710, %v8739_v42   ;;  %8750 = vpow2.f32 %v6942_v39 }
 0x549   : > { %8711 = vset.pattern.permute.xlu1 %v8874_v32  ;;  %8712 = vset.pattern.permute.xlu0 %v8877_v54 }
 0x54a   : > { %6446 = vperm.xlu1 %8711, %v8739_v42   ;;  %6491 = vperm.xlu0 %8712, %v8739_v42  }
 0x54d   : > { %v10684_v12 = vpop.eup %8746 }
 0x54e   : > { %8713 = vset.pattern.permute.xlu1 %v8876_v41  ;;  %8714 = vset.pattern.permute.xlu0 %v8878_v17  ;;  %v8749_v57 = vpop.eup %8748 }
 0x54f   : > { %6536 = vperm.xlu1 %8713, %v8739_v42   ;;  %6581 = vperm.xlu0 %8714, %v8739_v42   ;;  %v8751_v15 = vpop.eup %8750  ;;  %v3540_v3 = vadd.f32 1.0, %v8749_v57 }
 0x550   : > { %v3539_v61 = vadd.f32 1.0, %v8751_v15 }
 0x553   : > { %8715 = vset.pattern.permute.xlu1 %v8879_v40  ;;  %8716 = vset.pattern.permute.xlu0 %v8873_v63 }
 0x554   : > { %6626 = vperm.xlu1 %8715, %v8739_v42   ;;  %6324 = vperm.xlu0 %8716, %v10665_v62  }
 0x558   : > { %8717 = vset.pattern.permute.xlu1 %v8872_v11  ;;  %8718 = vset.pattern.permute.xlu0 %v8875_v0 }
 0x559   : > { %6368 = vperm.xlu1 %8717, %v10665_v62   ;;  %6413 = vperm.xlu0 %8718, %v10665_v62   ;;  %v3963_v46 = vpop.f32.mrb[32].mxu0 }
 0x55a   : > { %v8505_v1 = vadd.f32 %v10638_v6, %v3963_v46  ;;  %v7931_v37 = vpop.f32.mrb[33].mxu0 }
 0x55c   : > { %v7039_v43 = vmul.f32 -1.442695, %v8505_v1 }
 0x55d   : > { %8719 = vset.pattern.permute.xlu1 %v8874_v32  ;;  %8720 = vset.pattern.permute.xlu0 %v8877_v54 }
 0x55e   : > { %8752 = vpow2.f32 %v7039_v43  ;;  %6458 = vperm.xlu1 %8719, %v10665_v62   ;;  %6503 = vperm.xlu0 %8720, %v10665_v62  }
 0x55f   : > { %8754 = vpow2.f32 %v6945_v14 }
 0x560   : > { %8756 = vpow2.f32 %v6944_v33 }
 0x562   : > { %8721 = vset.pattern.permute.xlu1 %v8876_v41  ;;  %8722 = vset.pattern.permute.xlu0 %v8878_v17 }
 0x563   : > { %6548 = vperm.xlu1 %8721, %v10665_v62   ;;  %6593 = vperm.xlu0 %8722, %v10665_v62  }
 0x567   : > { %8723 = vset.pattern.permute.xlu1 %v8873_v63  ;;  %8730 = vset.pattern.permute.xlu0 %v8879_v40 }
 0x568   : > { %v8753_v60 = vpop.eup %8752  ;;  %6630 = vperm.xlu0 %8730, %v10644_v5   ;;  %6319 = vperm.xlu1 %8723, %v10684_v12  }
 0x569   : > { %v8755_v28 = vpop.eup %8754  ;;  %v4727_v48 = vadd.f32 1.0, %v8753_v60 }
 0x56a   : > { %v8757_v25 = vpop.eup %8756  ;;  %v3542_v10 = vadd.f32 1.0, %v8755_v28 }
 0x56b   : > { %8758 = vrcp.f32 %v4727_v48  ;;  %v3541_v58 = vadd.f32 1.0, %v8757_v25 }
 0x56c   : > { %8724 = vset.pattern.permute.xlu1 %v8872_v11  ;;  %8760 = vrcp.f32 %v3540_v3 }
 0x56d   : > { %6364 = vperm.xlu1 %8724, %v10684_v12   ;;  %8762 = vrcp.f32 %v3539_v61 }
 0x56e   : > { %8764 = vrcp.f32 %v3542_v10 }
 0x56f   : > { %8766 = vrcp.f32 %v3541_v58  ;;  %v6336_v58 = vld [vmem:[#allocation2 + $0x8] sm:$0xff] }
 0x571   : > { %8725 = vset.pattern.permute.xlu1 %v8875_v0 }
 0x572   : > { %6409 = vperm.xlu1 %8725, %v10684_v12  }
 0x575   : > { %v8759_v35 = vpop.eup %8758 }
 0x576   : > { %8726 = vset.pattern.permute.xlu1 %v8874_v32  ;;  %v6302_v49 = vrot.slane %v8759_v35, %v6301_v9  ;;  %v6350_v6 = vrot.slane %v8759_v35, %v6349_v18  ;;  %v6395_v19 = vrot.slane %v8759_v35, %v6394_v55  ;;  %v6440_v11 = vrot.slane %v8759_v35, %v6439_v52  ;;  %v8761_v63 = vpop.eup %8760  ;;  %v6380_v9 = vld [vmem:[#allocation2 + $0x28] sm:$0xff] }
 0x577   : > { %6454 = vperm.xlu1 %8726, %v10684_v12   ;;  %v6485_v8 = vrot.slane %v8759_v35, %v6484_v13  ;;  %v6530_v50 = vrot.slane %v8759_v35, %v6529_v51  ;;  %v6575_v2 = vrot.slane %v8759_v35, %v6574_v31  ;;  %v6620_v20 = vrot.slane %v8759_v35, %v6619_v36  ;;  %v8763_v27 = vpop.eup %8762  ;;  %v6425_v51 = vld [vmem:[#allocation2 + $0x48] sm:$0xff] }
 0x578   : > { %v6304_v34 = vadd.f32 %v8761_v63, %v6302_v49  ;;  %v6352_v7 = vadd.f32 %v8761_v63, %v6350_v6  ;;  %v6397_v56 = vadd.f32 %v8761_v63, %v6395_v19  ;;  %v6442_v16 = vadd.f32 %v8761_v63, %v6440_v11  ;;  %v8765_v5 = vpop.eup %8764  ;;  %v6470_v31 = vld [vmem:[#allocation2 + $0x68] sm:$0xff] }
 0x579   : > { %v10696_v44 = vadd.f32 %v8761_v63, %v6485_v8  ;;  %v10698_v53 = vadd.f32 %v8761_v63, %v6530_v50  ;;  %v10700_v47 = vadd.f32 %v8761_v63, %v6575_v2  ;;  %v10702_v38 = vadd.f32 %v8763_v27, %v6302_v49  ;;  %v8767_v4 = vpop.eup %8766 }
 0x57a   : > { %v10704_v30 = vadd.f32 %v8763_v27, %v6350_v6  ;;  %v10706_v23 = vadd.f32 %v8763_v27, %v6395_v19  ;;  %v10708_v32 = vadd.f32 %v8763_v27, %v6440_v11  ;;  %v10710_v0 = vadd.f32 %v8763_v27, %v6485_v8 }
 0x57b   : > { %8727 = vset.pattern.permute.xlu1 %v8877_v54  ;;  %v10713_v42 = vadd.f32 %v8763_v27, %v6530_v50  ;;  %v10715_v26 = vadd.f32 %v8763_v27, %v6575_v2  ;;  %v10717_v29 = vadd.f32 %v8763_v27, %v6620_v20  ;;  %v10719_v59 = vadd.f32 %v8765_v5, %v6302_v49 }
 0x57c   : > { %6499 = vperm.xlu1 %8727, %v10684_v12   ;;  %v10722_v45 = vadd.f32 %v8765_v5, %v6350_v6  ;;  %v10724_v21 = vadd.f32 %v8765_v5, %v6395_v19  ;;  %v10726_v39 = vadd.f32 %v8765_v5, %v6440_v11  ;;  %v10728_v46 = vadd.f32 %v8765_v5, %v6485_v8 }
 0x57d   : > { %v10730_v54 = vadd.f32 %v8765_v5, %v6530_v50  ;;  %v10732_v1 = vadd.f32 %v8765_v5, %v6575_v2  ;;  %v10734_v37 = vadd.f32 %v8767_v4, %v6302_v49  ;;  %v10736_v14 = vadd.f32 %v8761_v63, %v6620_v20 }
 0x57e   : > { %v10738_v43 = vadd.f32 %v8767_v4, %v6350_v6  ;;  %v10740_v33 = vadd.f32 %v8767_v4, %v6395_v19  ;;  %v10742_v57 = vadd.f32 %v8767_v4, %v6440_v11  ;;  %v10744_v15 = vadd.f32 %v8767_v4, %v6485_v8 }
 0x57f   : > { %v10746_v60 = vadd.f32 %v8767_v4, %v6530_v50  ;;  %v10748_v28 = vadd.f32 %v8767_v4, %v6575_v2  ;;  %v10750_v3 = vadd.f32 %v8767_v4, %v6620_v20  ;;  %v10752_v48 = vadd.f32 %v8765_v5, %v6620_v20  ;;  %v6515_v50 = vld [vmem:[#allocation2 + $0x88] sm:$0xff]  ;;  %v6335_v4 = vld [vmem:[#allocation2] sm:$0xff] }
 0x580   : > { %8728 = vset.pattern.permute.xlu1 %v8876_v41  ;;  %v6560_v2 = vld [vmem:[#allocation2 + $0xa8] sm:$0xff] }
 0x581   : > { %6544 = vperm.xlu1 %8728, %v10684_v12   ;;  %v6605_v5 = vld [vmem:[#allocation2 + $0xc8] sm:$0xff] }
 0x585   : > { %8729 = vset.pattern.permute.xlu1 %v8878_v17 }
 0x586   : > { %6589 = vperm.xlu1 %8729, %v10684_v12  }
 0x58a   : > { %8731 = vset.pattern.permute.xlu1 %v8879_v40 }
 0x58b   : > { %6634 = vperm.xlu1 %8731, %v10684_v12  }
 0x58f   : > { %6638 = vperm.xlu1 %8731, %v10665_v62  }
 0x5b0   : > { %v6315_v22 = vpop.permute.xlu1 %6314  ;;  %v6361_v61 = vpop.permute.xlu0 %6360 }
 0x5b1   : > { %v6328_v25 = vadd.f32 %v6315_v22, %v6304_v34  ;;  %v6372_v10 = vadd.f32 %v6361_v61, %v6352_v7 }
 0x5b3   : > { %v6332_v41 = vmul.f32 0.33333334, %v6328_v25  ;;  %v6376_v24 = vmul.f32 0.33333334, %v6372_v10 }
 0x5b5   : > { %v6340_v17 = vmul.f32 %v6336_v58, %v6332_v41  ;;  %v6384_v18 = vmul.f32 %v6380_v9, %v6376_v24  ;;  %v6406_v55 = vpop.permute.xlu1 %6405  ;;  %v6451_v52 = vpop.permute.xlu0 %6450  ;;  %v6379_v58 = vld [vmem:[#allocation2 + $0x20] sm:$0xff] }
 0x5b6   : > { %v6417_v40 = vadd.f32 %v6406_v55, %v6397_v56  ;;  %v6462_v13 = vadd.f32 %v6451_v52, %v6442_v16  ;;  %v6424_v9 = vld [vmem:[#allocation2 + $0x40] sm:$0xff] }
 0x5b7   : > { %6344 = vst.msk [vmem:[%s10764_s10 + $0x8] sm:$0xff] %vm10938_vm1, %v6340_v17  ;;  %vm10954_vm1 = vmmov %vm10951_vm0 }
 0x5b8   : > { %7141 = vst.msk [vmem:[%s10764_s10 + $0x28] sm:$0xff] %vm10939_vm2, %v6384_v18  ;;  %v6421_v62 = vmul.f32 0.33333334, %v6417_v40  ;;  %v6466_v12 = vmul.f32 0.33333334, %v6462_v13  ;;  %vm10955_vm2 = vmmov %vm10951_vm0 }
 0x5ba   : > { %v6429_v36 = vmul.f32 %v6425_v51, %v6421_v62  ;;  %v6474_v35 = vmul.f32 %v6470_v31, %v6466_v12  ;;  %v6496_v49 = vpop.permute.xlu1 %6495  ;;  %v6541_v6 = vpop.permute.xlu0 %6540  ;;  %v6469_v62 = vld [vmem:[#allocation2 + $0x60] sm:$0xff] }
 0x5bb   : > { %v6507_v19 = vadd.f32 %v6496_v49, %v10696_v44  ;;  %v6552_v11 = vadd.f32 %v6541_v6, %v10698_v53  ;;  %v6514_v12 = vld [vmem:[#allocation2 + $0x80] sm:$0xff] }
 0x5bc   : > { %7145 = vst.msk [vmem:[%s10764_s10 + $0x48] sm:$0xff] %vm10940_vm4, %v6429_v36  ;;  %vm10956_vm4 = vmmov %vm10951_vm0 }
 0x5bd   : > { %7149 = vst.msk [vmem:[%s10764_s10 + $0x68] sm:$0xff] %vm10941_vm5, %v6474_v35  ;;  %v6511_v63 = vmul.f32 0.33333334, %v6507_v19  ;;  %v6556_v8 = vmul.f32 0.33333334, %v6552_v11  ;;  %v6559_v19 = vld [vmem:[#allocation2 + $0xa0] sm:$0xff]  ;;  %vm10957_vm5 = vmmov %vm10951_vm0 }
 0x5be   : > { %v6604_v11 = vld [vmem:[#allocation2 + $0xc0] sm:$0xff] }
 0x5bf   : > { %v6519_v20 = vmul.f32 %v6515_v50, %v6511_v63  ;;  %v6564_v27 = vmul.f32 %v6560_v2, %v6556_v8  ;;  %v6586_v34 = vpop.permute.xlu1 %6585  ;;  %v6310_v7 = vpop.permute.xlu0 %6309 }
 0x5c0   : > { %v6597_v56 = vadd.f32 %v6586_v34, %v10700_v47  ;;  %v6327_v16 = vadd.f32 %v6310_v7, %v10702_v38  ;;  %v6649_v34 = vld [vmem:[#allocation2 + $0xe0] sm:$0xff]  ;;  %v6338_v7 = vld [vmem:[#allocation2 + $0x18] sm:$0xff] }
 0x5c1   : > { %7153 = vst.msk [vmem:[%s10764_s10 + $0x88] sm:$0xff] %vm10942_vm6, %v6519_v20  ;;  %vm10958_vm6 = vmmov %vm10951_vm0 }
 0x5c2   : > { %7157 = vst.msk [vmem:[%s10764_s10 + $0xa8] sm:$0xff] %vm10943_vm7, %v6564_v27  ;;  %v6601_v44 = vmul.f32 0.33333334, %v6597_v56  ;;  %v6331_v53 = vmul.f32 0.33333334, %v6327_v16  ;;  %vm10959_vm7 = vmmov %vm10951_vm0 }
 0x5c4   : > { %v6609_v22 = vmul.f32 %v6605_v5, %v6601_v44  ;;  %v6339_v61 = vmul.f32 %v6335_v4, %v6331_v53  ;;  %v6357_v25 = vpop.permute.xlu1 %6356  ;;  %v6402_v10 = vpop.permute.xlu0 %6401 }
 0x5c5   : > { %v6371_v41 = vadd.f32 %v6357_v25, %v10704_v30  ;;  %v6416_v47 = vadd.f32 %v6402_v10, %v10706_v23 }
 0x5c6   : > { %7161 = vst.msk [vmem:[%s10764_s10 + $0xc8] sm:$0xff] %vm10944_vm8, %v6609_v22  ;;  %v6382_v22 = vld [vmem:[#allocation2 + $0x38] sm:$0xff]  ;;  %vm10960_vm8 = vmmov %vm10951_vm0 }
 0x5c7   : > { %6343 = vst.msk [vmem:[%s10764_s10] sm:$0xff] %vm10945_vm9, %v6339_v61  ;;  %v6375_v38 = vmul.f32 0.33333334, %v6371_v41  ;;  %v6420_v24 = vmul.f32 0.33333334, %v6416_v47  ;;  %v6427_v61 = vld [vmem:[#allocation2 + $0x58] sm:$0xff]  ;;  %vm10961_vm9 = vmmov %vm10951_vm0 }
 0x5c9   : > { %v6383_v17 = vmul.f32 %v6379_v58, %v6375_v38  ;;  %v6428_v18 = vmul.f32 %v6424_v9, %v6420_v24  ;;  %v6447_v55 = vpop.permute.xlu1 %6446  ;;  %v6492_v52 = vpop.permute.xlu0 %6491  ;;  %v6472_v58 = vld [vmem:[#allocation2 + $0x78] sm:$0xff] }
 0x5ca   : > { %v6461_v40 = vadd.f32 %v6447_v55, %v10708_v32  ;;  %v6506_v30 = vadd.f32 %v6492_v52, %v10710_v0  ;;  %v6517_v9 = vld [vmem:[#allocation2 + $0x98] sm:$0xff] }
 0x5cb   : > { %7140 = vst.msk [vmem:[%s10764_s10 + $0x20] sm:$0xff] %vm10946_vm11, %v6383_v17  ;;  %vm10962_vm11 = vmmov %vm10951_vm0 }
 0x5cc   : > { %7144 = vst.msk [vmem:[%s10764_s10 + $0x40] sm:$0xff] %vm10947_vm12, %v6428_v18  ;;  %v6465_v23 = vmul.f32 0.33333334, %v6461_v40  ;;  %v6510_v13 = vmul.f32 0.33333334, %v6506_v30  ;;  %vm10963_vm12 = vmmov %vm10951_vm0 }
 0x5ce   : > { %v6473_v51 = vmul.f32 %v6469_v62, %v6465_v23  ;;  %v6518_v31 = vmul.f32 %v6514_v12, %v6510_v13  ;;  %v6537_v36 = vpop.permute.xlu1 %6536  ;;  %v6582_v35 = vpop.permute.xlu0 %6581  ;;  %v6562_v23 = vld [vmem:[#allocation2 + $0xb8] sm:$0xff] }
 0x5cf   : > { %v6551_v49 = vadd.f32 %v6537_v36, %v10713_v42  ;;  %v6596_v32 = vadd.f32 %v6582_v35, %v10715_v26  ;;  %v6607_v13 = vld [vmem:[#allocation2 + $0xd8] sm:$0xff] }
 0x5d0   : > { %7148 = vst.msk [vmem:[%s10764_s10 + $0x60] sm:$0xff] %vm10948_vm13, %v6473_v51  ;;  %vm10964_vm13 = vmmov %vm10951_vm0 }
 0x5d1   : > { %7152 = vst.msk [vmem:[%s10764_s10 + $0x80] sm:$0xff] %vm10949_vm14, %v6518_v31  ;;  %v6555_v0 = vmul.f32 0.33333334, %v6551_v49  ;;  %v6600_v6 = vmul.f32 0.33333334, %v6596_v32  ;;  %v6337_v49 = vld [vmem:[#allocation2 + $0x10] sm:$0xff]  ;;  %vm10965_vm14 = vmmov %vm10951_vm0 }
 0x5d2   : > { %v6650_v32 = vld [vmem:[#allocation2 + $0xe8] sm:$0xff] }
 0x5d3   : > { %v6563_v63 = vmul.f32 %v6559_v19, %v6555_v0  ;;  %v6608_v8 = vmul.f32 %v6604_v11, %v6600_v6  ;;  %v6627_v50 = vpop.permute.xlu1 %6626  ;;  %v6325_v2 = vpop.permute.xlu0 %6324 }
 0x5d4   : > { %v6641_v20 = vadd.f32 %v6627_v50, %v10717_v29  ;;  %v6330_v42 = vadd.f32 %v6325_v2, %v10719_v59 }
 0x5d5   : > { %7156 = vst.msk [vmem:[%s10764_s10 + $0xa0] sm:$0xff] %vm10950_vm15, %v6563_v63  ;;  %vm10966_vm15 = vmmov %vm10951_vm0 }
 0x5d6   : > { %7160 = vst.msk [vmem:[%s10764_s10 + $0xc0] sm:$0xff] %vm10951_vm0, %v6608_v8  ;;  %v6645_v26 = vmul.f32 0.33333334, %v6641_v20  ;;  %v6334_v27 = vmul.f32 0.33333334, %v6330_v42  ;;  %v6426_v20 = vld [vmem:[#allocation2 + $0x50] sm:$0xff] }
 0x5d8   : > { %v6653_v56 = vmul.f32 %v6649_v34, %v6645_v26  ;;  %v6342_v16 = vmul.f32 %v6338_v7, %v6334_v27  ;;  %v6369_v44 = vpop.permute.xlu1 %6368  ;;  %v6414_v53 = vpop.permute.xlu0 %6413  ;;  %v6471_v34 = vld [vmem:[#allocation2 + $0x70] sm:$0xff] }
 0x5d9   : > { %v6374_v5 = vadd.f32 %v6369_v44, %v10722_v45  ;;  %v6419_v29 = vadd.f32 %v6414_v53, %v10724_v21  ;;  %v6516_v44 = vld [vmem:[#allocation2 + $0x90] sm:$0xff] }
 0x5da   : > { %7164 = vst.msk [vmem:[%s10764_s10 + $0xe0] sm:$0xff] %vm10952_vm3, %v6653_v56  ;;  %vm10967_vm3 = vmmov %vm10951_vm0 }
 0x5db   : > { %6346 = vst.msk [vmem:[%s10764_s10 + $0x18] sm:$0xff] %vm10953_vm10, %v6342_v16  ;;  %v6378_v59 = vmul.f32 0.33333334, %v6374_v5  ;;  %v6423_v4 = vmul.f32 0.33333334, %v6419_v29  ;;  %vm10968_vm10 = vmmov %vm10951_vm0 }
 0x5dd   : > { %v6386_v25 = vmul.f32 %v6382_v22, %v6378_v59  ;;  %v6431_v10 = vmul.f32 %v6427_v61, %v6423_v4  ;;  %v6459_v41 = vpop.permute.xlu1 %6458  ;;  %v6504_v47 = vpop.permute.xlu0 %6503  ;;  %v6561_v59 = vld [vmem:[#allocation2 + $0xb0] sm:$0xff] }
 0x5de   : > { %v6464_v38 = vadd.f32 %v6459_v41, %v10726_v39  ;;  %v6509_v45 = vadd.f32 %v6504_v47, %v10728_v46 }
 0x5df   : > { %7143 = vst.msk [vmem:[%s10764_s10 + $0x38] sm:$0xff] %vm10954_vm1, %v6386_v25  ;;  %v6606_v25 = vld [vmem:[#allocation2 + $0xd0] sm:$0xff] }
 0x5e0   : > { %7147 = vst.msk [vmem:[%s10764_s10 + $0x58] sm:$0xff] %vm10955_vm2, %v6431_v10  ;;  %v6468_v21 = vmul.f32 0.33333334, %v6464_v38  ;;  %v6513_v24 = vmul.f32 0.33333334, %v6509_v45  ;;  %v6651_v38 = vld [vmem:[#allocation2 + $0xf0] sm:$0xff] }
 0x5e2   : > { %v6476_v17 = vmul.f32 %v6472_v58, %v6468_v21  ;;  %v6521_v18 = vmul.f32 %v6517_v9, %v6513_v24  ;;  %v6549_v55 = vpop.permute.xlu1 %6548  ;;  %v6594_v52 = vpop.permute.xlu0 %6593  ;;  %v6652_v58 = vld [vmem:[#allocation2 + $0xf8] sm:$0xff] }
 0x5e3   : > { %v6554_v40 = vadd.f32 %v6549_v55, %v10730_v54  ;;  %v6599_v39 = vadd.f32 %v6594_v52, %v10732_v1 }
 0x5e4   : > { %7151 = vst.msk [vmem:[%s10764_s10 + $0x78] sm:$0xff] %vm10956_vm4, %v6476_v17 }
 0x5e5   : > { %7155 = vst.msk [vmem:[%s10764_s10 + $0x98] sm:$0xff] %vm10957_vm5, %v6521_v18  ;;  %v6558_v46 = vmul.f32 0.33333334, %v6554_v40  ;;  %v6603_v30 = vmul.f32 0.33333334, %v6599_v39 }
 0x5e7   : > { %v6566_v62 = vmul.f32 %v6562_v23, %v6558_v46  ;;  %v6611_v12 = vmul.f32 %v6607_v13, %v6603_v30  ;;  %v6320_v51 = vpop.permute.xlu1 %6319  ;;  %v6631_v31 = vpop.permute.xlu0 %6630 }
 0x5e8   : > { %v6329_v36 = vadd.f32 %v6320_v51, %v10734_v37  ;;  %v6642_v54 = vadd.f32 %v6631_v31, %v10736_v14  ;;  %v6381_v14 = vld [vmem:[#allocation2 + $0x30] sm:$0xff] }
 0x5e9   : > { %7159 = vst.msk [vmem:[%s10764_s10 + $0xb8] sm:$0xff] %vm10958_vm6, %v6566_v62 }
 0x5ea   : > { %7163 = vst.msk [vmem:[%s10764_s10 + $0xd8] sm:$0xff] %vm10959_vm7, %v6611_v12  ;;  %v6333_v1 = vmul.f32 0.33333334, %v6329_v36  ;;  %v6646_v35 = vmul.f32 0.33333334, %v6642_v54 }
 0x5ec   : > { %v6341_v0 = vmul.f32 %v6337_v49, %v6333_v1  ;;  %v6654_v6 = vmul.f32 %v6650_v32, %v6646_v35  ;;  %v6365_v19 = vpop.permute.xlu1 %6364 }
 0x5ed   : > { %v6373_v11 = vadd.f32 %v6365_v19, %v10738_v43 }
 0x5ee   : > { %6345 = vst.msk [vmem:[%s10764_s10 + $0x10] sm:$0xff] %vm10960_vm8, %v6341_v0 }
 0x5ef   : > { %7165 = vst.msk [vmem:[%s10764_s10 + $0xe8] sm:$0xff] %vm10961_vm9, %v6654_v6  ;;  %v6377_v37 = vmul.f32 0.33333334, %v6373_v11 }
 0x5f1   : > { %v6385_v63 = vmul.f32 %v6381_v14, %v6377_v37  ;;  %v6410_v8 = vpop.permute.xlu1 %6409 }
 0x5f2   : > { %v6418_v50 = vadd.f32 %v6410_v8, %v10740_v33 }
 0x5f3   : > { %7142 = vst.msk [vmem:[%s10764_s10 + $0x30] sm:$0xff] %vm10962_vm11, %v6385_v63 }
 0x5f4   : > { %v6422_v2 = vmul.f32 0.33333334, %v6418_v50 }
 0x5f6   : > { %v6430_v42 = vmul.f32 %v6426_v20, %v6422_v2  ;;  %v6455_v26 = vpop.permute.xlu1 %6454 }
 0x5f7   : > { %v6463_v43 = vadd.f32 %v6455_v26, %v10742_v57 }
 0x5f8   : > { %7146 = vst.msk [vmem:[%s10764_s10 + $0x50] sm:$0xff] %vm10963_vm12, %v6430_v42 }
 0x5f9   : > { %v6467_v27 = vmul.f32 0.33333334, %v6463_v43 }
 0x5fb   : > { %v6475_v7 = vmul.f32 %v6471_v34, %v6467_v27  ;;  %v6500_v56 = vpop.permute.xlu1 %6499 }
 0x5fc   : > { %v6508_v16 = vadd.f32 %v6500_v56, %v10744_v15 }
 0x5fd   : > { %7150 = vst.msk [vmem:[%s10764_s10 + $0x70] sm:$0xff] %vm10964_vm13, %v6475_v7 }
 0x5fe   : > { %v6512_v33 = vmul.f32 0.33333334, %v6508_v16 }
 0x600   : > { %v6520_v53 = vmul.f32 %v6516_v44, %v6512_v33  ;;  %v6545_v5 = vpop.permute.xlu1 %6544 }
 0x601   : > { %v6553_v29 = vadd.f32 %v6545_v5, %v10746_v60 }
 0x602   : > { %7154 = vst.msk [vmem:[%s10764_s10 + $0x90] sm:$0xff] %vm10965_vm14, %v6520_v53 }
 0x603   : > { %v6557_v57 = vmul.f32 0.33333334, %v6553_v29 }
 0x605   : > { %v6565_v4 = vmul.f32 %v6561_v59, %v6557_v57  ;;  %v6590_v22 = vpop.permute.xlu1 %6589 }
 0x606   : > { %v6598_v15 = vadd.f32 %v6590_v22, %v10748_v28 }
 0x607   : > { %7158 = vst.msk [vmem:[%s10764_s10 + $0xb0] sm:$0xff] %vm10966_vm15, %v6565_v4 }
 0x608   : > { %v6602_v61 = vmul.f32 0.33333334, %v6598_v15 }
 0x60a   : > { %v6610_v10 = vmul.f32 %v6606_v25, %v6602_v61  ;;  %v6635_v41 = vpop.permute.xlu1 %6634 }
 0x60b   : > { %v6643_v60 = vadd.f32 %v6635_v41, %v10750_v3 }
 0x60c   : > { %7162 = vst.msk [vmem:[%s10764_s10 + $0xd0] sm:$0xff] %vm10951_vm0, %v6610_v10 }
 0x60d   : > { %v6647_v47 = vmul.f32 0.33333334, %v6643_v60 }
 0x60e   : > { %v6639_v45 = vpop.permute.xlu1 %6638 }
 0x60f   : > { %v6655_v21 = vmul.f32 %v6651_v38, %v6647_v47  ;;  %v6644_v24 = vadd.f32 %v6639_v45, %v10752_v48 }
 0x611   : > { %7166 = vst.msk [vmem:[%s10764_s10 + $0xf0] sm:$0xff] %vm10967_vm3, %v6655_v21  ;;  %v6648_v28 = vmul.f32 0.33333334, %v6644_v24 }
 0x613   : > { %v6656_v3 = vmul.f32 %v6652_v58, %v6648_v28 }
 0x615   : > { %7167 = vst.msk [vmem:[%s10764_s10 + $0xf8] sm:$0xff] %vm10968_vm10, %v6656_v3 }
 0x616   : > { %8809 = shalt.err (!%p8806_p7)
}
 0x617   : > { %s8810_s18 = scalar_lea.hbm %s10861_s29, 4096  ;;  %s8814_s26 = scalar_lea.hbm %s10916_s6, 8192 }
 0x618   : > { %p8811_p8 = scmp.ne.s32.totalorder %s10861_s29, %s8810_s18  ;;  %p8815_p1 = scmp.lt.u32.totalorder %s10861_s29, %s10916_s6 }
 0x619   : > { %p8816_p0 = scmp.lt.u32.totalorder %s8814_s26, %s8810_s18  ;;  %p8818_p6 = scmp.lt.u32.totalorder %s8810_s18, %s10861_s29 }
 0x61a   : > { %p8812_p11 = pnand %p8811_p8, %p10969_p9 }
 0x61b   : > { %p8817_p5 = por %p8816_p0, %p8815_p1 }
 0x61c   : > { %p8813_p13 = pneg %p8812_p11 }
 0x61d   : > { %p8819_p10 = por %p8818_p6, %p8817_p5 }
 0x61f   : > { %p8820_p12 = pnand %p8819_p10, %p8813_p13 }
 0x621   : > { %8823 = shalt.err (!%p8820_p12)
}
 0x622   : > { %s8881_s13 = smov 128   ;;  %s8882_s15 = smov 8  }
 0x623   : > { %8638 = dma.vmem_to_hbm [thread:$0]  (%p10969_p9), %s10863_s14, 4096, %s10861_s29, %s10869_s25, %s8881_s13, %s8881_s13, %s8882_s15  }
 0x624 PF: > { %p8650_p2 = scmp.ge.s32.totalorder %s8862_s24, 2  ;;  %s6691_s12 = sand.u32 1, %s8850_s21  }
 0x625   : > { %p10970_p3 = scmp.ne.s32.totalorder %s10924_s8, 0  ;;  %s6692_s16 = scalar_lea.sflag [#allocation8], %s6691_s12 }
 0x627   : > { %p8645_p4 = pnand %p8650_p2, %p10970_p3 }
 0x629   : > { %8845 = dma.done.wait (!%p8645_p4), %s6692_s16, 4096  }
 0x62a   : > { %8847 = vsyncadd (!%p8645_p4), %s6692_s16, 4294963200  ;;  %p17_p7 = scmp.ge.s32.totalorder %s8943_s27, 4   ;;  %s10971_s21 = smov %s8854_s22 }
 0x62b   : > { %s10972_s22 = smov %s8858_s23  ;;  %s10973_s23 = smov %s8954_s30 }
 0x62c   : > { %s10974_s24 = smov %s8943_s27  ;;  %19 = sbr.rel (!%p17_p7) target bundleno = 4 (0x4), region = 140 }
 0x633   :  { %6697 = vsyncpa [#allocation7], 1 }
 0x634   :  { %6699 = vsyncpa [#allocation7 + $0x1], 1 }
 0x635   :  { %6700 = vsyncpa [#allocation8], 1 }
 0x636   :  { %6702 = vsyncpa [#allocation8 + $0x1], 1 }

</bundles_post_ra>
